<compile_context>
chip_gen: v7x
topology: tpu7x:2x2x1
jax: 0.10.0
libtpu: 0.0.40
codegen_flags: <defaults>
</compile_context>

<pallas_src>
import numpy as np
import jax
import jax.numpy as jnp
from jax.experimental import pallas as pl
from jax.experimental.pallas import tpu as pltpu


# --------------------------------------------------------------------------
# Wrapper-side helpers
# --------------------------------------------------------------------------
def _im2col(x, k):
    """x: (N, Hp, Wp, C) -> (N, Ho*Wo, k*k*C) patches with (kh, kw, c) ordering."""
    N, Hp, Wp, C = x.shape
    Ho, Wo = Hp - k + 1, Wp - k + 1
    cols = [x[:, i:i + Ho, j:j + Wo, :] for i in range(k) for j in range(k)]
    pat = jnp.concatenate(cols, axis=-1)            # (N, Ho, Wo, k*k*C)
    return pat.reshape(N, Ho * Wo, k * k * C)


def _interp_matrix_1d(n_out, n_in):
    """align_corners=True bilinear interpolation matrix (n_out, n_in)."""
    M = np.zeros((n_out, n_in), np.float32)
    if n_in == 1 or n_out == 1:
        M[:, 0] = 1.0
        return M
    scale = (n_in - 1) / (n_out - 1)
    for i in range(n_out):
        src = i * scale
        lo = min(int(np.floor(src)), n_in - 1)
        hi = min(lo + 1, n_in - 1)
        w = src - lo
        M[i, lo] += 1.0 - w
        M[i, hi] += w
    return M


# --------------------------------------------------------------------------
# Fused kernel: [conv1 -> maxpool2x2 -> conv2] and [fusion1-conv -> bilinear x2]
# Grid: (N, Cout_split).  All matmuls bf16 x bf16 -> f32 accumulate.
# --------------------------------------------------------------------------
def _make_kernel(H1, W1, K2, C1, Ho, Wo):
    Hq, Wq = H1 // 2, W1 // 2

    def kernel(xp_ref, w1_ref, b1_ref, w2_ref, b2_ref,
               p3p_ref, wf_ref, bf_ref, m_ref, xo_ref, po_ref):
        # xp_ref : (1, H1*W1, Kc1)   bf16 conv1 im2col patches (contraction padded)
        # w1_ref : (Kc1, C1)         bf16
        # b1_ref : (1, C1)           f32
        # w2_ref : (K2*K2*C1, C2b)   bf16 (Cout block)
        # b2_ref : (1, C2b)          f32
        # p3p_ref: (1, Hc*Wc, Kcf)   bf16 fusion-conv im2col patches
        # wf_ref : (Kcf, Cfb)        bf16 (Cout block)
        # bf_ref : (1, Cfb)          f32
        # m_ref  : (Hu*Wu, Hc*Wc)    f32 bilinear interp matrix
        # xo_ref : (1, Ho*Wo, C2b)   f32
        # po_ref : (1, Hu*Wu, Cfb)   f32

        # ---- conv1: one bf16 matmul over all output pixels --------------------
        h1 = jnp.dot(xp_ref[0], w1_ref[...],
                     preferred_element_type=jnp.float32) + b1_ref[...]   # (H1*W1, C1)

        # ---- maxpool 2x2 / stride 2 on VMEM-resident data ----------------------
        h = jnp.max(h1.reshape(H1 * Wq, 2, C1), axis=1)        # pool along W
        pooled = jnp.max(h.reshape(Hq, 2, Wq, C1), axis=1)     # (Hq, Wq, C1)

        # ---- conv2 (no padding): in-kernel im2col, single bf16 matmul ----------
        cols = [pooled[kh:kh + Ho, kw:kw + Wo, :]
                for kh in range(K2) for kw in range(K2)]
        pat2 = jnp.concatenate(cols, axis=-1).reshape(Ho * Wo, K2 * K2 * C1)
        xv = jnp.dot(pat2.astype(jnp.bfloat16), w2_ref[...],
                     preferred_element_type=jnp.float32) + b2_ref[...]
        xo_ref[0] = xv

        # ---- fusion1: conv as one bf16 matmul + bilinear x2 upsample matmul -----
        cf = jnp.dot(p3p_ref[0], wf_ref[...],
                     preferred_element_type=jnp.float32) + bf_ref[...]   # (Hc*Wc, Cfb)
        po_ref[0] = jnp.dot(m_ref[...], cf, preferred_element_type=jnp.float32)

    return kernel


def _fused_forward(xp, w1f, b1r, w2f, b2r, p3p, wff, bfr, M,
                   H1, W1, K2, C1, Ho, Wo, Hu, Wu):
    N, HW1, Kc1 = xp.shape
    Kc2, C2 = w2f.shape
    Kcf, Cf = wff.shape
    HcWc = M.shape[1]

    # Split Cout across a parallel grid axis (>=128-lane blocks => unmasked stores);
    # at N=1 this gives the second v7x TensorCore real work.
    CS = 2 if (C2 % 256 == 0 and Cf % 256 == 0) else 1
    C2b, Cfb = C2 // CS, Cf // CS

    kernel = _make_kernel(H1, W1, K2, C1, Ho, Wo)
    x_out, p3_out = pl.pallas_call(
        kernel,
        out_shape=(jax.ShapeDtypeStruct((N, Ho * Wo, C2), jnp.float32),
                   jax.ShapeDtypeStruct((N, Hu * Wu, Cf), jnp.float32)),
        grid_spec=pltpu.PrefetchScalarGridSpec(
            num_scalar_prefetch=0,
            grid=(N, CS),
            in_specs=[
                pl.BlockSpec((1, HW1, Kc1), lambda n, c: (n, 0, 0)),
                pl.BlockSpec((Kc1, C1), lambda n, c: (0, 0)),
                pl.BlockSpec((1, C1), lambda n, c: (0, 0)),
                pl.BlockSpec((Kc2, C2b), lambda n, c: (0, c)),
                pl.BlockSpec((1, C2b), lambda n, c: (0, c)),
                pl.BlockSpec((1, HcWc, Kcf), lambda n, c: (n, 0, 0)),
                pl.BlockSpec((Kcf, Cfb), lambda n, c: (0, c)),
                pl.BlockSpec((1, Cfb), lambda n, c: (0, c)),
                pl.BlockSpec((Hu * Wu, HcWc), lambda n, c: (0, 0)),
            ],
            out_specs=[
                pl.BlockSpec((1, Ho * Wo, C2b), lambda n, c: (n, 0, c)),
                pl.BlockSpec((1, Hu * Wu, Cfb), lambda n, c: (n, 0, c)),
            ],
        ),
        compiler_params=pltpu.CompilerParams(
            dimension_semantics=("parallel", "parallel"),
        ),
    )(xp, w1f, b1r, w2f, b2r, p3p, wff, bfr, M)
    return x_out, p3_out


# --------------------------------------------------------------------------
# Refinement forward (reachable prefix before the first exit()).
# --------------------------------------------------------------------------
@jax.jit
def refinement_forward(x_nchw, p3_nchw, params):
    # NCHW -> NHWC, zero padding, im2col and bf16 casts all live in the jitted
    # wrapper; they are tiny one-time XLA ops feeding lane-dense kernel inputs.
    x = jnp.transpose(x_nchw, (0, 2, 3, 1))
    p3 = jnp.transpose(p3_nchw, (0, 2, 3, 1))
    x_pad = jnp.pad(x, ((0, 0), (1, 1), (1, 1), (0, 0)))
    p3_pad = jnp.pad(p3, ((0, 0), (1, 1), (1, 1), (0, 0)))

    N, Hp, Wp, Cin = x_pad.shape
    K1, _, _, C1 = params["conv1_w"].shape
    K2, _, _, C2 = params["conv2_w"].shape
    Kf, _, Cfi, Cf = params["fusion1_w"].shape

    H1, W1 = Hp - K1 + 1, Wp - K1 + 1            # conv1 output
    Hq, Wq = H1 // 2, W1 // 2                    # pooled
    Ho, Wo = Hq - K2 + 1, Wq - K2 + 1            # conv2 output
    _, Hfp, Wfp, _ = p3_pad.shape
    Hc, Wc = Hfp - Kf + 1, Wfp - Kf + 1          # fusion conv output
    Hu, Wu = 2 * Hc, 2 * Wc                      # upsampled

    # conv1 im2col patches, contraction zero-padded to a multiple of 128, bf16.
    xp = _im2col(x_pad, K1)                                      # (N, H1*W1, K1*K1*Cin)
    kc1 = K1 * K1 * Cin
    kc1_pad = ((kc1 + 127) // 128) * 128
    xp = jnp.pad(xp, ((0, 0), (0, 0), (0, kc1_pad - kc1))).astype(jnp.bfloat16)
    w1f = jnp.pad(params["conv1_w"].reshape(kc1, C1),
                  ((0, kc1_pad - kc1), (0, 0))).astype(jnp.bfloat16)

    # conv2 / fusion1 weights flattened HWIO -> (K*K*Cin, Cout), bf16.
    w2f = params["conv2_w"].reshape(K2 * K2 * C1, C2).astype(jnp.bfloat16)
    wff = params["fusion1_w"].reshape(Kf * Kf * Cfi, Cf).astype(jnp.bfloat16)

    # fusion-conv im2col patches (tiny), bf16.
    p3p = _im2col(p3_pad, Kf).astype(jnp.bfloat16)               # (N, Hc*Wc, Kf*Kf*Cfi)

    # align_corners=True bilinear x2 as a (Hu*Wu, Hc*Wc) matrix (f32, exact halves).
    M = jnp.asarray(np.kron(_interp_matrix_1d(Hu, Hc), _interp_matrix_1d(Wu, Wc)))

    x_out, p3_out = _fused_forward(
        xp, w1f, params["conv1_b"].reshape(1, C1),
        w2f, params["conv2_b"].reshape(1, C2),
        p3p, wff, params["fusion1_b"].reshape(1, Cf), M,
        H1, W1, K2, C1, Ho, Wo, Hu, Wu)

    x_out = x_out.reshape(N, Ho, Wo, C2)
    p3_out = p3_out.reshape(N, Hu, Wu, Cf)
    # TODO(synk): the PyTorch forward calls exit() here; conv3..conv10, fusion2,
    # fusion3 and torch.cat are unreachable dead code — not implemented.
    return jnp.transpose(x_out, (0, 3, 1, 2)), jnp.transpose(p3_out, (0, 3, 1, 2))


# --------------------------------------------------------------------------
# Pure-JAX reference (sanity check of the Pallas kernel).
# --------------------------------------------------------------------------
def _ref_conv(x_nhwc, w, b, padding):
    out = jax.lax.conv_general_dilated(
        x_nhwc, w, window_strides=(1, 1),
        padding=((padding, padding), (padding, padding)),
        dimension_numbers=("NHWC", "HWIO", "NHWC"),
        precision=jax.lax.Precision.HIGHEST)
    return out + b


def _ref_forward(x_nchw, p3_nchw, params):
    x = jnp.transpose(x_nchw, (0, 2, 3, 1))
    p3 = jnp.transpose(p3_nchw, (0, 2, 3, 1))
    p3 = _ref_conv(p3, params["fusion1_w"], params["fusion1_b"], 1)
    _, H, W, _ = p3.shape
    R = jnp.asarray(_interp_matrix_1d(2 * H, H))
    Cm = jnp.asarray(_interp_matrix_1d(2 * W, W))
    p3 = jnp.einsum("ip,jq,npqc->nijc", R, Cm, p3,
                    precision=jax.lax.Precision.HIGHEST)
    x = _ref_conv(x, params["conv1_w"], params["conv1_b"], 1)
    x = jax.lax.reduce_window(x, -jnp.inf, jax.lax.max,
                              (1, 2, 2, 1), (1, 2, 2, 1), "VALID")
    x = _ref_conv(x, params["conv2_w"], params["conv2_b"], 0)
    return jnp.transpose(x, (0, 3, 1, 2)), jnp.transpose(p3, (0, 3, 1, 2))


def _init_conv(key, kh, kw, cin, cout, scale=0.05):
    kw_key, kb_key = jax.random.split(key)
    w = jax.random.normal(kw_key, (kh, kw, cin, cout), jnp.float32) * scale
    b = jax.random.normal(kb_key, (cout,), jnp.float32) * scale
    return w, b


if __name__ == "__main__":
    key = jax.random.PRNGKey(0)
    keys = jax.random.split(key, 5)

    # Small deterministic inputs (NCHW, matching the PyTorch module).
    x = jax.random.normal(keys[0], (2, 3, 22, 22), jnp.float32)
    p3 = jax.random.normal(keys[1], (2, 256, 6, 6), jnp.float32)

    params = {}
    params["conv1_w"], params["conv1_b"] = _init_conv(keys[2], 9, 9, 3, 64)
    params["conv2_w"], params["conv2_b"] = _init_conv(keys[3], 5, 5, 64, 256)
    params["fusion1_w"], params["fusion1_b"] = _init_conv(keys[4], 5, 5, 256, 256)

    x_out, p3_out = refinement_forward(x, p3, params)
    jax.block_until_ready((x_out, p3_out))

    x_ref, p3_ref = _ref_forward(x, p3, params)
    np.testing.assert_allclose(np.asarray(x_out), np.asarray(x_ref),
                               rtol=2e-2, atol=1e-1)
    np.testing.assert_allclose(np.asarray(p3_out), np.asarray(p3_ref),
                               rtol=2e-2, atol=1e-1)

    print("KERNEL_OK")
</pallas_src>

<mosaic_0001>
module attributes {stable_mosaic.version = 11 : i64} {
  func.func @kernel(%arg0: i32, %arg1: i32, %arg2: memref<1x256x256xbf16, #tpu.memory_space<vmem>>, %arg3: memref<256x64xbf16, #tpu.memory_space<vmem>>, %arg4: memref<1x64xf32, #tpu.memory_space<vmem>>, %arg5: memref<1600x128xbf16, #tpu.memory_space<vmem>>, %arg6: memref<1x128xf32, #tpu.memory_space<vmem>>, %arg7: memref<1x16x6400xbf16, #tpu.memory_space<vmem>>, %arg8: memref<6400x128xbf16, #tpu.memory_space<vmem>>, %arg9: memref<1x128xf32, #tpu.memory_space<vmem>>, %arg10: memref<64x16xf32, #tpu.memory_space<vmem>>, %arg11: memref<1x16x128xf32, #tpu.memory_space<vmem>>, %arg12: memref<1x64x128xf32, #tpu.memory_space<vmem>>) attributes {dimension_semantics = [#tpu.dimension_semantics<parallel>, #tpu.dimension_semantics<parallel>], iteration_bounds = array<i64: 2, 2>, scalar_prefetch = 0 : i64, scratch_operands = 0 : i64, tpu.core_type = #tpu.core_type<tc>, window_params = [{transform_indices = @transform_0, window_bounds = array<i64: 1, 256, 256>}, {pipeline_mode = #tpu.pipeline_mode<synchronous>, transform_indices = @transform_1, window_bounds = array<i64: 256, 64>}, {pipeline_mode = #tpu.pipeline_mode<synchronous>, transform_indices = @transform_2, window_bounds = array<i64: 1, 64>}, {transform_indices = @transform_3, window_bounds = array<i64: 1600, 128>}, {transform_indices = @transform_4, window_bounds = array<i64: 1, 128>}, {transform_indices = @transform_5, window_bounds = array<i64: 1, 16, 6400>}, {transform_indices = @transform_6, window_bounds = array<i64: 6400, 128>}, {transform_indices = @transform_7, window_bounds = array<i64: 1, 128>}, {pipeline_mode = #tpu.pipeline_mode<synchronous>, transform_indices = @transform_8, window_bounds = array<i64: 64, 16>}, {transform_indices = @transform_9, window_bounds = array<i64: 1, 16, 128>}, {transform_indices = @transform_10, window_bounds = array<i64: 1, 64, 128>}]} {
    %c0 = arith.constant 0 : index
    %c0_0 = arith.constant 0 : index
    %c0_1 = arith.constant 0 : index
    %0 = vector.load %arg2[%c0, %c0_0, %c0_1] : memref<1x256x256xbf16, #tpu.memory_space<vmem>>, vector<1x256x256xbf16>
    %1 = vector.shape_cast %0 : vector<1x256x256xbf16> to vector<256x256xbf16>
    %c0_2 = arith.constant 0 : index
    %c0_3 = arith.constant 0 : index
    %2 = vector.load %arg3[%c0_2, %c0_3] : memref<256x64xbf16, #tpu.memory_space<vmem>>, vector<256x64xbf16>
    %cst = arith.constant dense<0.000000e+00> : vector<256x64xf32>
    %3 = tpu.matmul %1, %2, %cst {dimension_numbers = #tpu.dot_dimension_numbers<[1], [0], [0], [1], [0, 0, 1, 1], [], []>} : vector<256x256xbf16>, vector<256x64xbf16>, vector<256x64xf32> -> vector<256x64xf32>
    %c0_4 = arith.constant 0 : index
    %c0_5 = arith.constant 0 : index
    %4 = vector.load %arg4[%c0_4, %c0_5] : memref<1x64xf32, #tpu.memory_space<vmem>>, vector<1x64xf32>
    %5 = vector.broadcast %4 : vector<1x64xf32> to vector<256x64xf32>
    %6 = arith.addf %3, %5 : vector<256x64xf32>
    %7 = vector.shape_cast %6 : vector<256x64xf32> to vector<128x2x64xf32>
    %cst_6 = arith.constant dense<0xFF800000> : vector<128x64xf32>
    %8 = vector.multi_reduction <maximumf>, %7, %cst_6 [1] : vector<128x2x64xf32> to vector<128x64xf32>
    %9 = vector.shape_cast %8 : vector<128x64xf32> to vector<8x2x8x64xf32>
    %cst_7 = arith.constant dense<0xFF800000> : vector<8x8x64xf32>
    %10 = vector.multi_reduction <maximumf>, %9, %cst_7 [1] : vector<8x2x8x64xf32> to vector<8x8x64xf32>
    %11 = vector.extract_strided_slice %10 {offsets = [0, 0, 0], sizes = [4, 4, 64], strides = [1, 1, 1]} : vector<8x8x64xf32> to vector<4x4x64xf32>
    %12 = vector.extract_strided_slice %10 {offsets = [0, 1, 0], sizes = [4, 4, 64], strides = [1, 1, 1]} : vector<8x8x64xf32> to vector<4x4x64xf32>
    %13 = vector.extract_strided_slice %10 {offsets = [0, 2, 0], sizes = [4, 4, 64], strides = [1, 1, 1]} : vector<8x8x64xf32> to vector<4x4x64xf32>
    %14 = vector.extract_strided_slice %10 {offsets = [0, 3, 0], sizes = [4, 4, 64], strides = [1, 1, 1]} : vector<8x8x64xf32> to vector<4x4x64xf32>
    %15 = vector.extract_strided_slice %10 {offsets = [0, 4, 0], sizes = [4, 4, 64], strides = [1, 1, 1]} : vector<8x8x64xf32> to vector<4x4x64xf32>
    %16 = vector.extract_strided_slice %10 {offsets = [1, 0, 0], sizes = [4, 4, 64], strides = [1, 1, 1]} : vector<8x8x64xf32> to vector<4x4x64xf32>
    %17 = vector.extract_strided_slice %10 {offsets = [1, 1, 0], sizes = [4, 4, 64], strides = [1, 1, 1]} : vector<8x8x64xf32> to vector<4x4x64xf32>
    %18 = vector.extract_strided_slice %10 {offsets = [1, 2, 0], sizes = [4, 4, 64], strides = [1, 1, 1]} : vector<8x8x64xf32> to vector<4x4x64xf32>
    %19 = vector.extract_strided_slice %10 {offsets = [1, 3, 0], sizes = [4, 4, 64], strides = [1, 1, 1]} : vector<8x8x64xf32> to vector<4x4x64xf32>
    %20 = vector.extract_strided_slice %10 {offsets = [1, 4, 0], sizes = [4, 4, 64], strides = [1, 1, 1]} : vector<8x8x64xf32> to vector<4x4x64xf32>
    %21 = vector.extract_strided_slice %10 {offsets = [2, 0, 0], sizes = [4, 4, 64], strides = [1, 1, 1]} : vector<8x8x64xf32> to vector<4x4x64xf32>
    %22 = vector.extract_strided_slice %10 {offsets = [2, 1, 0], sizes = [4, 4, 64], strides = [1, 1, 1]} : vector<8x8x64xf32> to vector<4x4x64xf32>
    %23 = vector.extract_strided_slice %10 {offsets = [2, 2, 0], sizes = [4, 4, 64], strides = [1, 1, 1]} : vector<8x8x64xf32> to vector<4x4x64xf32>
    %24 = vector.extract_strided_slice %10 {offsets = [2, 3, 0], sizes = [4, 4, 64], strides = [1, 1, 1]} : vector<8x8x64xf32> to vector<4x4x64xf32>
    %25 = vector.extract_strided_slice %10 {offsets = [2, 4, 0], sizes = [4, 4, 64], strides = [1, 1, 1]} : vector<8x8x64xf32> to vector<4x4x64xf32>
    %26 = vector.extract_strided_slice %10 {offsets = [3, 0, 0], sizes = [4, 4, 64], strides = [1, 1, 1]} : vector<8x8x64xf32> to vector<4x4x64xf32>
    %27 = vector.extract_strided_slice %10 {offsets = [3, 1, 0], sizes = [4, 4, 64], strides = [1, 1, 1]} : vector<8x8x64xf32> to vector<4x4x64xf32>
    %28 = vector.extract_strided_slice %10 {offsets = [3, 2, 0], sizes = [4, 4, 64], strides = [1, 1, 1]} : vector<8x8x64xf32> to vector<4x4x64xf32>
    %29 = vector.extract_strided_slice %10 {offsets = [3, 3, 0], sizes = [4, 4, 64], strides = [1, 1, 1]} : vector<8x8x64xf32> to vector<4x4x64xf32>
    %30 = vector.extract_strided_slice %10 {offsets = [3, 4, 0], sizes = [4, 4, 64], strides = [1, 1, 1]} : vector<8x8x64xf32> to vector<4x4x64xf32>
    %31 = vector.extract_strided_slice %10 {offsets = [4, 0, 0], sizes = [4, 4, 64], strides = [1, 1, 1]} : vector<8x8x64xf32> to vector<4x4x64xf32>
    %32 = vector.extract_strided_slice %10 {offsets = [4, 1, 0], sizes = [4, 4, 64], strides = [1, 1, 1]} : vector<8x8x64xf32> to vector<4x4x64xf32>
    %33 = vector.extract_strided_slice %10 {offsets = [4, 2, 0], sizes = [4, 4, 64], strides = [1, 1, 1]} : vector<8x8x64xf32> to vector<4x4x64xf32>
    %34 = vector.extract_strided_slice %10 {offsets = [4, 3, 0], sizes = [4, 4, 64], strides = [1, 1, 1]} : vector<8x8x64xf32> to vector<4x4x64xf32>
    %35 = vector.extract_strided_slice %10 {offsets = [4, 4, 0], sizes = [4, 4, 64], strides = [1, 1, 1]} : vector<8x8x64xf32> to vector<4x4x64xf32>
    %36 = tpu.concatenate %11, %12, %13, %14, %15, %16, %17, %18, %19, %20, %21, %22, %23, %24, %25, %26 in 2 : vector<4x4x64xf32>, vector<4x4x64xf32>, vector<4x4x64xf32>, vector<4x4x64xf32>, vector<4x4x64xf32>, vector<4x4x64xf32>, vector<4x4x64xf32>, vector<4x4x64xf32>, vector<4x4x64xf32>, vector<4x4x64xf32>, vector<4x4x64xf32>, vector<4x4x64xf32>, vector<4x4x64xf32>, vector<4x4x64xf32>, vector<4x4x64xf32>, vector<4x4x64xf32> -> vector<4x4x1024xf32>
    %37 = tpu.concatenate %27, %28, %29, %30, %31, %32, %33, %34, %35 in 2 : vector<4x4x64xf32>, vector<4x4x64xf32>, vector<4x4x64xf32>, vector<4x4x64xf32>, vector<4x4x64xf32>, vector<4x4x64xf32>, vector<4x4x64xf32>, vector<4x4x64xf32>, vector<4x4x64xf32> -> vector<4x4x576xf32>
    %38 = tpu.concatenate %36, %37 in 2 : vector<4x4x1024xf32>, vector<4x4x576xf32> -> vector<4x4x1600xf32>
    %39 = vector.shape_cast %38 : vector<4x4x1600xf32> to vector<16x1600xf32>
    %40 = arith.truncf %39 : vector<16x1600xf32> to vector<16x1600xbf16>
    %c0_8 = arith.constant 0 : index
    %c0_9 = arith.constant 0 : index
    %41 = vector.load %arg5[%c0_8, %c0_9] : memref<1600x128xbf16, #tpu.memory_space<vmem>>, vector<1600x128xbf16>
    %cst_10 = arith.constant dense<0.000000e+00> : vector<16x128xf32>
    %42 = tpu.matmul %40, %41, %cst_10 {dimension_numbers = #tpu.dot_dimension_numbers<[1], [0], [0], [1], [0, 0, 1, 1], [], []>} : vector<16x1600xbf16>, vector<1600x128xbf16>, vector<16x128xf32> -> vector<16x128xf32>
    %c0_11 = arith.constant 0 : index
    %c0_12 = arith.constant 0 : index
    %43 = vector.load %arg6[%c0_11, %c0_12] : memref<1x128xf32, #tpu.memory_space<vmem>>, vector<1x128xf32>
    %44 = vector.broadcast %43 : vector<1x128xf32> to vector<16x128xf32>
    %45 = arith.addf %42, %44 : vector<16x128xf32>
    %c0_13 = arith.constant 0 : index
    %c0_14 = arith.constant 0 : index
    %c0_15 = arith.constant 0 : index
    %46 = vector.load %arg11[%c0_13, %c0_14, %c0_15] : memref<1x16x128xf32, #tpu.memory_space<vmem>>, vector<1x16x128xf32>
    %47 = vector.shape_cast %46 : vector<1x16x128xf32> to vector<16x128xf32>
    %48 = vector.shape_cast %45 : vector<16x128xf32> to vector<1x16x128xf32>
    tpu.vector_store %arg11[%c0_13, %c0_14, %c0_15], %48 {strides = array<i32>} : memref<1x16x128xf32, #tpu.memory_space<vmem>>, vector<1x16x128xf32>,
    %c0_16 = arith.constant 0 : index
    %c0_17 = arith.constant 0 : index
    %c0_18 = arith.constant 0 : index
    %49 = vector.load %arg7[%c0_16, %c0_17, %c0_18] : memref<1x16x6400xbf16, #tpu.memory_space<vmem>>, vector<1x16x6400xbf16>
    %50 = vector.shape_cast %49 : vector<1x16x6400xbf16> to vector<16x6400xbf16>
    %c0_19 = arith.constant 0 : index
    %c0_20 = arith.constant 0 : index
    %51 = vector.load %arg8[%c0_19, %c0_20] : memref<6400x128xbf16, #tpu.memory_space<vmem>>, vector<6400x128xbf16>
    %cst_21 = arith.constant dense<0.000000e+00> : vector<16x128xf32>
    %52 = tpu.matmul %50, %51, %cst_21 {dimension_numbers = #tpu.dot_dimension_numbers<[1], [0], [0], [1], [0, 0, 1, 1], [], []>} : vector<16x6400xbf16>, vector<6400x128xbf16>, vector<16x128xf32> -> vector<16x128xf32>
    %c0_22 = arith.constant 0 : index
    %c0_23 = arith.constant 0 : index
    %53 = vector.load %arg9[%c0_22, %c0_23] : memref<1x128xf32, #tpu.memory_space<vmem>>, vector<1x128xf32>
    %54 = vector.broadcast %53 : vector<1x128xf32> to vector<16x128xf32>
    %55 = arith.addf %52, %54 : vector<16x128xf32>
    %c0_24 = arith.constant 0 : index
    %c0_25 = arith.constant 0 : index
    %56 = vector.load %arg10[%c0_24, %c0_25] : memref<64x16xf32, #tpu.memory_space<vmem>>, vector<64x16xf32>
    %cst_26 = arith.constant dense<0.000000e+00> : vector<64x128xf32>
    %57 = tpu.matmul %56, %55, %cst_26 {dimension_numbers = #tpu.dot_dimension_numbers<[1], [0], [0], [1], [0, 0, 1, 1], [], []>} : vector<64x16xf32>, vector<16x128xf32>, vector<64x128xf32> -> vector<64x128xf32>
    %c0_27 = arith.constant 0 : index
    %c0_28 = arith.constant 0 : index
    %c0_29 = arith.constant 0 : index
    %58 = vector.load %arg12[%c0_27, %c0_28, %c0_29] : memref<1x64x128xf32, #tpu.memory_space<vmem>>, vector<1x64x128xf32>
    %59 = vector.shape_cast %58 : vector<1x64x128xf32> to vector<64x128xf32>
    %60 = vector.shape_cast %57 : vector<64x128xf32> to vector<1x64x128xf32>
    tpu.vector_store %arg12[%c0_27, %c0_28, %c0_29], %60 {strides = array<i32>} : memref<1x64x128xf32, #tpu.memory_space<vmem>>, vector<1x64x128xf32>,
    return
  }
  func.func @transform_0(%arg0: i32, %arg1: i32) -> (i32, i32, i32) {
    %c0_i32 = arith.constant 0 : i32
    %c0_i32_0 = arith.constant 0 : i32
    %c0_i32_1 = arith.constant 0 : i32
    return %arg0, %c0_i32, %c0_i32_0 : i32, i32, i32
  }
  func.func @transform_1(%arg0: i32, %arg1: i32) -> (i32, i32) {
    %c0_i32 = arith.constant 0 : i32
    %c0_i32_0 = arith.constant 0 : i32
    %c0_i32_1 = arith.constant 0 : i32
    return %c0_i32, %c0_i32_0 : i32, i32
  }
  func.func @transform_2(%arg0: i32, %arg1: i32) -> (i32, i32) {
    %c0_i32 = arith.constant 0 : i32
    %c0_i32_0 = arith.constant 0 : i32
    %c0_i32_1 = arith.constant 0 : i32
    return %c0_i32, %c0_i32_0 : i32, i32
  }
  func.func @transform_3(%arg0: i32, %arg1: i32) -> (i32, i32) {
    %c0_i32 = arith.constant 0 : i32
    %c0_i32_0 = arith.constant 0 : i32
    return %c0_i32, %arg1 : i32, i32
  }
  func.func @transform_4(%arg0: i32, %arg1: i32) -> (i32, i32) {
    %c0_i32 = arith.constant 0 : i32
    %c0_i32_0 = arith.constant 0 : i32
    return %c0_i32, %arg1 : i32, i32
  }
  func.func @transform_5(%arg0: i32, %arg1: i32) -> (i32, i32, i32) {
    %c0_i32 = arith.constant 0 : i32
    %c0_i32_0 = arith.constant 0 : i32
    %c0_i32_1 = arith.constant 0 : i32
    return %arg0, %c0_i32, %c0_i32_0 : i32, i32, i32
  }
  func.func @transform_6(%arg0: i32, %arg1: i32) -> (i32, i32) {
    %c0_i32 = arith.constant 0 : i32
    %c0_i32_0 = arith.constant 0 : i32
    return %c0_i32, %arg1 : i32, i32
  }
  func.func @transform_7(%arg0: i32, %arg1: i32) -> (i32, i32) {
    %c0_i32 = arith.constant 0 : i32
    %c0_i32_0 = arith.constant 0 : i32
    return %c0_i32, %arg1 : i32, i32
  }
  func.func @transform_8(%arg0: i32, %arg1: i32) -> (i32, i32) {
    %c0_i32 = arith.constant 0 : i32
    %c0_i32_0 = arith.constant 0 : i32
    %c0_i32_1 = arith.constant 0 : i32
    return %c0_i32, %c0_i32_0 : i32, i32
  }
  func.func @transform_9(%arg0: i32, %arg1: i32) -> (i32, i32, i32) {
    %c0_i32 = arith.constant 0 : i32
    %c0_i32_0 = arith.constant 0 : i32
    return %arg0, %c0_i32, %arg1 : i32, i32, i32
  }
  func.func @transform_10(%arg0: i32, %arg1: i32) -> (i32, i32, i32) {
    %c0_i32 = arith.constant 0 : i32
    %c0_i32_0 = arith.constant 0 : i32
    return %arg0, %c0_i32, %arg1 : i32, i32, i32
  }
}

</mosaic_0001>

<bundles_post_ra>
// kernel: refinement_forward.1
= control target key start
LH: loop header
LB: loop body
LE: loop exit
PB: predicated region body
PF: predicated region fallthrough
CT: control target
= control target key end

     0   :  { %s23803_s0 = inlined_call_operand.vmem [shape: bf16[2,256,256], index: 0, kind: input, shape index: {}]   ;;  %s23804_s1 = inlined_call_operand.vmem [shape: bf16[256,64], index: 1, kind: input, shape index: {}]   ;;  %s23805_s2 = inlined_call_operand.vmem [shape: f32[1,64], index: 2, kind: input, shape index: {}]   ;;  %s23806_s3 = inlined_call_operand.vmem [shape: bf16[1600,256], index: 3, kind: input, shape index: {}]   ;;  %s23807_s4 = inlined_call_operand.vmem [shape: f32[1,256], index: 4, kind: input, shape index: {}]   ;;  %s23808_s5 = inlined_call_operand.vmem [shape: bf16[2,16,6400], index: 5, kind: input, shape index: {}]   ;;  %s23809_s6 = inlined_call_operand.vmem [shape: bf16[6400,256], index: 6, kind: input, shape index: {}]   ;;  %s23810_s7 = inlined_call_operand.vmem [shape: f32[1,256], index: 7, kind: input, shape index: {}]   ;;  %s23811_s8 = inlined_call_operand.vmem [shape: f32[64,16], index: 8, kind: input, shape index: {}]   ;;  %s23812_s9 = inlined_call_operand.vmem [shape: f32[2,16,256], index: 9, kind: output, shape index: {0}]   ;;  %s23813_s10 = inlined_call_operand.hbm [shape: f32[2,64,256], index: 10, kind: output, shape index: {1}]  }
   0x1   :  { %23870 = sst [smem:[#allocation64_spill]] %s23803_s0 }
   0x2   :  { %23871 = sst [smem:[#allocation65_spill]] %s23804_s1 }
   0x3   :  { %23872 = sst [smem:[#allocation66_spill]] %s23806_s3 }
   0x4   :  { %23873 = sst [smem:[#allocation67_spill]] %s23809_s6 }
   0x5   :  { %23874 = sst [smem:[#allocation68_spill]] %s23811_s8 }
   0x6   :  { %23875 = sst [smem:[#allocation69_spill]] %s23812_s9 }
   0x7   :  { %23876 = sst [smem:[#allocation70_spill]] %s23813_s10 }
   0x8   :  { %16 = vsyncpa [#allocation6], 0 }
   0x9   :  { %18 = vsyncpa [#allocation6 + $0x1], 0  ;;  %s18965_s13 = smov 0   ;;  %s18967_s14 = smov 0  }
   0xa   :  { %s18969_s15 = smov 0   ;;  %s18971_s16 = smov 0  }
   0xb   :  { %s18973_s17 = smov 0   ;;  %s18975_s18 = smov 0  }
   0xc   :  { %s18977_s19 = smov 0   ;;  %s18979_s20 = smov 0  }
   0xd   :  { %s18981_s21 = smov 0   ;;  %s18983_s22 = smov 0  }
   0xe LB: > { %s16554_s23 = sadd.s32 4294967295, %s18900_s22   ;;  %s16555_s24 = sadd.s32 4294967294, %s18900_s22   ;;  %s18900_s22 = sphi %s18983_s22, %s24_s22   ;;  %s18896_s21 = sphi %s18981_s21, %s24107_s21   ;;  %s18892_s20 = sphi %s18979_s20, %s24106_s20   ;;  %s18888_s19 = sphi %s18977_s19, %s24105_s19   ;;  %s18884_s18 = sphi %s18975_s18, %s24104_s18   ;;  %s18880_s17 = sphi %s18973_s17, %s24103_s17   ;;  %s18876_s16 = sphi %s18971_s16, %s24102_s16   ;;  %s18872_s15 = sphi %s18969_s15, %s24101_s15   ;;  %s18868_s14 = sphi %s18967_s14, %s24100_s14   ;;  %s18864_s13 = sphi %s18965_s13, %s24099_s13  }
   0xf   : > { %s33_s25 = sadd.s32 1, %s18892_s20  ;;  %s36_s26 = sadd.s32 1, %s18896_s21 }
  0x10   : > { %p34_p0 = scmp.ge.s32.totalorder %s33_s25, 2  ;;  %s111_s27 = sadd.s32 1, %s18880_s17 }
  0x11   : > { %p118_p1 = scmp.ne.s32.totalorder %s18880_s17, %s18876_s16  ;;  %p119_p2 = scmp.eq.s32.totalorder %s18900_s22, 0 }
  0x12   : > { %s24109_s25 = smov (%p34_p0, %s33_s25), 0  ;;  %s24111_s26 = smov (!%p34_p0, %s36_s26), %s18896_s21 }
  0x13   : > { %23877 = sst [smem:[#allocation8_spill]] %s24109_s25  ;;  %s108_s28 = ssub.s32 %s18892_s20, %s24109_s25 }
  0x14   : > { %p19028_p3 = por %p119_p2, %p118_p1  ;;  %p38_p4 = scmp.ge.s32.totalorder %s24111_s26, 2 }
  0x15   : > { %p109_p5 = scmp.eq.s32.totalorder %s108_s28, 0  ;;  %s264_s30 = sadd.s32 1, %s18872_s15 }
  0x16   : > { %p274_p6 = scmp.ne.s32.totalorder %s18872_s15, %s18868_s14  ;;  %s24113_s26 = smov (%p38_p4, %s24111_s26), 0 }
  0x17   : > { %23879 = sst [smem:[#allocation9_spill]] %s24113_s26  ;;  %s259_s12 = ssub.s32 %s18896_s21, %s24113_s26 }
  0x18   : > { %s19038_s11 = scalar_select %p109_p5, %s18880_s17, %s111_s27  }
  0x19   : > { %p275_p7 = scmp.eq.s32.totalorder %s16554_s23, 3  ;;  %s261_s10 = sor.u32 %s259_s12, %s108_s28 }
  0x1a   : > { %p308_p8 = scmp.ne.s32.totalorder %s18868_s14, %s18864_s13  ;;  %p262_p9 = scmp.eq.s32.totalorder %s261_s10, 0 }
  0x1b   : > { %p19044_p10 = por %p275_p7, %p274_p6  ;;  %p309_p11 = scmp.eq.s32.totalorder %s16555_s24, 3 }
  0x1c   : > { %s19049_s9 = scalar_select %p262_p9, %s18872_s15, %s264_s30  }
  0x1d   : > { %p19051_p12 = por %p309_p11, %p308_p8  ;;  %p16557_p13 = scmp.ge.s32.totalorder %s18900_s22, 4 }
  0x1f   : > { %334 = sbr.rel (%p16557_p13) target bundleno = 724 (0x2d4), region = 28 }
  0x26   : > { %345 = sbr.rel (!%p19028_p3) target bundleno = 181 (0xb5), region = 36  ;;  %s347_s10 = sand.u32 (%p19028_p3), 1, %s18880_s17  }
  0x27   : > { %s16558_s23 = sshll.u32 (%p19028_p3), %s18892_s20, 2  ;;  %s18050_s27 = smul.u32 (%p19028_p3), 800, %s347_s10 }
  0x28   : > { %s23882_s3 = sld [smem:[#allocation66_spill]] (%p19028_p3) }
  0x29   : > { %s19070_s30 = scalar_lea.vmem (%p19028_p3), [#allocation2], %s18050_s27 }
  0x2e   : > { %s19063_s24 = scalar_lea.vmem %s23882_s3, %s16558_s23 }
  0x2f   : > { %v367_v0 = vld [vmem:[%s19063_s24] sm:$0xf]  ;;  %v369_v1 = vld [vmem:[%s19063_s24 + $0x8] sm:$0xf]  ;;  %v371_v2 = vld [vmem:[%s19063_s24 + $0x10] sm:$0xf] }
  0x30   : > { %v373_v3 = vld [vmem:[%s19063_s24 + $0x18] sm:$0xf]  ;;  %v375_v4 = vld [vmem:[%s19063_s24 + $0x20] sm:$0xf]  ;;  %368 = vst [vmem:[%s19070_s30] sm:$0xf] %v367_v0 }
  0x31   : > { %370 = vst [vmem:[%s19070_s30 + $0x4] sm:$0xf] %v369_v1  ;;  %372 = vst [vmem:[%s19070_s30 + $0x8] sm:$0xf] %v371_v2  ;;  %v377_v5 = vld [vmem:[%s19063_s24 + $0x28] sm:$0xf] }
  0x32   : > { %374 = vst [vmem:[%s19070_s30 + $0xc] sm:$0xf] %v373_v3  ;;  %376 = vst [vmem:[%s19070_s30 + $0x10] sm:$0xf] %v375_v4  ;;  %v379_v6 = vld [vmem:[%s19063_s24 + $0x30] sm:$0xf] }
  0x33   : > { %v381_v7 = vld [vmem:[%s19063_s24 + $0x38] sm:$0xf]  ;;  %378 = vst [vmem:[%s19070_s30 + $0x14] sm:$0xf] %v377_v5  ;;  %380 = vst [vmem:[%s19070_s30 + $0x18] sm:$0xf] %v379_v6 }
  0x34   : > { %382 = vst [vmem:[%s19070_s30 + $0x1c] sm:$0xf] %v381_v7  ;;  %v383_v8 = vld [vmem:[%s19063_s24 + $0x40] sm:$0xf]  ;;  %v385_v9 = vld [vmem:[%s19063_s24 + $0x48] sm:$0xf] }
  0x35   : > { %v387_v10 = vld [vmem:[%s19063_s24 + $0x50] sm:$0xf]  ;;  %384 = vst [vmem:[%s19070_s30 + $0x20] sm:$0xf] %v383_v8  ;;  %386 = vst [vmem:[%s19070_s30 + $0x24] sm:$0xf] %v385_v9 }
  0x36   : > { %388 = vst [vmem:[%s19070_s30 + $0x28] sm:$0xf] %v387_v10  ;;  %v389_v11 = vld [vmem:[%s19063_s24 + $0x58] sm:$0xf]  ;;  %v391_v12 = vld [vmem:[%s19063_s24 + $0x60] sm:$0xf] }
  0x37   : > { %v393_v13 = vld [vmem:[%s19063_s24 + $0x68] sm:$0xf]  ;;  %390 = vst [vmem:[%s19070_s30 + $0x2c] sm:$0xf] %v389_v11  ;;  %392 = vst [vmem:[%s19070_s30 + $0x30] sm:$0xf] %v391_v12 }
  0x38   : > { %394 = vst [vmem:[%s19070_s30 + $0x34] sm:$0xf] %v393_v13  ;;  %v395_v14 = vld [vmem:[%s19063_s24 + $0x70] sm:$0xf]  ;;  %v397_v15 = vld [vmem:[%s19063_s24 + $0x78] sm:$0xf] }
  0x39   : > { %v399_v16 = vld [vmem:[%s19063_s24 + $0x80] sm:$0xf]  ;;  %396 = vst [vmem:[%s19070_s30 + $0x38] sm:$0xf] %v395_v14  ;;  %398 = vst [vmem:[%s19070_s30 + $0x3c] sm:$0xf] %v397_v15 }
  0x3a   : > { %400 = vst [vmem:[%s19070_s30 + $0x40] sm:$0xf] %v399_v16  ;;  %v401_v17 = vld [vmem:[%s19063_s24 + $0x88] sm:$0xf]  ;;  %v403_v18 = vld [vmem:[%s19063_s24 + $0x90] sm:$0xf] }
  0x3b   : > { %v405_v19 = vld [vmem:[%s19063_s24 + $0x98] sm:$0xf]  ;;  %402 = vst [vmem:[%s19070_s30 + $0x44] sm:$0xf] %v401_v17  ;;  %404 = vst [vmem:[%s19070_s30 + $0x48] sm:$0xf] %v403_v18 }
  0x3c   : > { %406 = vst [vmem:[%s19070_s30 + $0x4c] sm:$0xf] %v405_v19  ;;  %v407_v20 = vld [vmem:[%s19063_s24 + $0xa0] sm:$0xf]  ;;  %v409_v21 = vld [vmem:[%s19063_s24 + $0xa8] sm:$0xf] }
  0x3d   : > { %v411_v22 = vld [vmem:[%s19063_s24 + $0xb0] sm:$0xf]  ;;  %408 = vst [vmem:[%s19070_s30 + $0x50] sm:$0xf] %v407_v20  ;;  %410 = vst [vmem:[%s19070_s30 + $0x54] sm:$0xf] %v409_v21 }
  0x3e   : > { %412 = vst [vmem:[%s19070_s30 + $0x58] sm:$0xf] %v411_v22  ;;  %v413_v23 = vld [vmem:[%s19063_s24 + $0xb8] sm:$0xf]  ;;  %v415_v24 = vld [vmem:[%s19063_s24 + $0xc0] sm:$0xf] }
  0x3f   : > { %v417_v25 = vld [vmem:[%s19063_s24 + $0xc8] sm:$0xf]  ;;  %414 = vst [vmem:[%s19070_s30 + $0x5c] sm:$0xf] %v413_v23  ;;  %416 = vst [vmem:[%s19070_s30 + $0x60] sm:$0xf] %v415_v24 }
  0x40   : > { %418 = vst [vmem:[%s19070_s30 + $0x64] sm:$0xf] %v417_v25  ;;  %v419_v26 = vld [vmem:[%s19063_s24 + $0xd0] sm:$0xf]  ;;  %v421_v27 = vld [vmem:[%s19063_s24 + $0xd8] sm:$0xf] }
  0x41   : > { %v423_v28 = vld [vmem:[%s19063_s24 + $0xe0] sm:$0xf]  ;;  %420 = vst [vmem:[%s19070_s30 + $0x68] sm:$0xf] %v419_v26  ;;  %422 = vst [vmem:[%s19070_s30 + $0x6c] sm:$0xf] %v421_v27 }
  0x42   : > { %424 = vst [vmem:[%s19070_s30 + $0x70] sm:$0xf] %v423_v28  ;;  %v425_v29 = vld [vmem:[%s19063_s24 + $0xe8] sm:$0xf]  ;;  %v427_v30 = vld [vmem:[%s19063_s24 + $0xf0] sm:$0xf] }
  0x43   : > { %v429_v31 = vld [vmem:[%s19063_s24 + $0xf8] sm:$0xf]  ;;  %426 = vst [vmem:[%s19070_s30 + $0x74] sm:$0xf] %v425_v29  ;;  %428 = vst [vmem:[%s19070_s30 + $0x78] sm:$0xf] %v427_v30 }
  0x44   : > { %430 = vst [vmem:[%s19070_s30 + $0x7c] sm:$0xf] %v429_v31  ;;  %v431_v32 = vld [vmem:[%s19063_s24 + $0x100] sm:$0xf]  ;;  %v433_v33 = vld [vmem:[%s19063_s24 + $0x108] sm:$0xf] }
  0x45   : > { %v435_v34 = vld [vmem:[%s19063_s24 + $0x110] sm:$0xf]  ;;  %432 = vst [vmem:[%s19070_s30 + $0x80] sm:$0xf] %v431_v32  ;;  %434 = vst [vmem:[%s19070_s30 + $0x84] sm:$0xf] %v433_v33 }
  0x46   : > { %436 = vst [vmem:[%s19070_s30 + $0x88] sm:$0xf] %v435_v34  ;;  %v437_v35 = vld [vmem:[%s19063_s24 + $0x118] sm:$0xf]  ;;  %v439_v36 = vld [vmem:[%s19063_s24 + $0x120] sm:$0xf] }
  0x47   : > { %v441_v37 = vld [vmem:[%s19063_s24 + $0x128] sm:$0xf]  ;;  %438 = vst [vmem:[%s19070_s30 + $0x8c] sm:$0xf] %v437_v35  ;;  %440 = vst [vmem:[%s19070_s30 + $0x90] sm:$0xf] %v439_v36 }
  0x48   : > { %442 = vst [vmem:[%s19070_s30 + $0x94] sm:$0xf] %v441_v37  ;;  %v443_v38 = vld [vmem:[%s19063_s24 + $0x130] sm:$0xf]  ;;  %v445_v39 = vld [vmem:[%s19063_s24 + $0x138] sm:$0xf] }
  0x49   : > { %v447_v40 = vld [vmem:[%s19063_s24 + $0x140] sm:$0xf]  ;;  %444 = vst [vmem:[%s19070_s30 + $0x98] sm:$0xf] %v443_v38  ;;  %446 = vst [vmem:[%s19070_s30 + $0x9c] sm:$0xf] %v445_v39 }
  0x4a   : > { %448 = vst [vmem:[%s19070_s30 + $0xa0] sm:$0xf] %v447_v40  ;;  %v449_v41 = vld [vmem:[%s19063_s24 + $0x148] sm:$0xf]  ;;  %v451_v42 = vld [vmem:[%s19063_s24 + $0x150] sm:$0xf] }
  0x4b   : > { %v453_v43 = vld [vmem:[%s19063_s24 + $0x158] sm:$0xf]  ;;  %450 = vst [vmem:[%s19070_s30 + $0xa4] sm:$0xf] %v449_v41  ;;  %452 = vst [vmem:[%s19070_s30 + $0xa8] sm:$0xf] %v451_v42 }
  0x4c   : > { %454 = vst [vmem:[%s19070_s30 + $0xac] sm:$0xf] %v453_v43  ;;  %v455_v44 = vld [vmem:[%s19063_s24 + $0x160] sm:$0xf]  ;;  %v457_v45 = vld [vmem:[%s19063_s24 + $0x168] sm:$0xf] }
  0x4d   : > { %v459_v46 = vld [vmem:[%s19063_s24 + $0x170] sm:$0xf]  ;;  %456 = vst [vmem:[%s19070_s30 + $0xb0] sm:$0xf] %v455_v44  ;;  %458 = vst [vmem:[%s19070_s30 + $0xb4] sm:$0xf] %v457_v45 }
  0x4e   : > { %460 = vst [vmem:[%s19070_s30 + $0xb8] sm:$0xf] %v459_v46  ;;  %v461_v47 = vld [vmem:[%s19063_s24 + $0x178] sm:$0xf]  ;;  %v463_v48 = vld [vmem:[%s19063_s24 + $0x180] sm:$0xf] }
  0x4f   : > { %v465_v49 = vld [vmem:[%s19063_s24 + $0x188] sm:$0xf]  ;;  %462 = vst [vmem:[%s19070_s30 + $0xbc] sm:$0xf] %v461_v47  ;;  %464 = vst [vmem:[%s19070_s30 + $0xc0] sm:$0xf] %v463_v48 }
  0x50   : > { %466 = vst [vmem:[%s19070_s30 + $0xc4] sm:$0xf] %v465_v49  ;;  %v467_v50 = vld [vmem:[%s19063_s24 + $0x190] sm:$0xf]  ;;  %v469_v51 = vld [vmem:[%s19063_s24 + $0x198] sm:$0xf] }
  0x51   : > { %v471_v52 = vld [vmem:[%s19063_s24 + $0x1a0] sm:$0xf]  ;;  %468 = vst [vmem:[%s19070_s30 + $0xc8] sm:$0xf] %v467_v50  ;;  %470 = vst [vmem:[%s19070_s30 + $0xcc] sm:$0xf] %v469_v51 }
  0x52   : > { %472 = vst [vmem:[%s19070_s30 + $0xd0] sm:$0xf] %v471_v52  ;;  %v473_v53 = vld [vmem:[%s19063_s24 + $0x1a8] sm:$0xf]  ;;  %v475_v54 = vld [vmem:[%s19063_s24 + $0x1b0] sm:$0xf] }
  0x53   : > { %v477_v55 = vld [vmem:[%s19063_s24 + $0x1b8] sm:$0xf]  ;;  %474 = vst [vmem:[%s19070_s30 + $0xd4] sm:$0xf] %v473_v53  ;;  %476 = vst [vmem:[%s19070_s30 + $0xd8] sm:$0xf] %v475_v54 }
  0x54   : > { %478 = vst [vmem:[%s19070_s30 + $0xdc] sm:$0xf] %v477_v55  ;;  %v479_v56 = vld [vmem:[%s19063_s24 + $0x1c0] sm:$0xf]  ;;  %v481_v57 = vld [vmem:[%s19063_s24 + $0x1c8] sm:$0xf] }
  0x55   : > { %v483_v58 = vld [vmem:[%s19063_s24 + $0x1d0] sm:$0xf]  ;;  %480 = vst [vmem:[%s19070_s30 + $0xe0] sm:$0xf] %v479_v56  ;;  %482 = vst [vmem:[%s19070_s30 + $0xe4] sm:$0xf] %v481_v57 }
  0x56   : > { %484 = vst [vmem:[%s19070_s30 + $0xe8] sm:$0xf] %v483_v58  ;;  %v485_v59 = vld [vmem:[%s19063_s24 + $0x1d8] sm:$0xf]  ;;  %v487_v60 = vld [vmem:[%s19063_s24 + $0x1e0] sm:$0xf] }
  0x57   : > { %v489_v61 = vld [vmem:[%s19063_s24 + $0x1e8] sm:$0xf]  ;;  %486 = vst [vmem:[%s19070_s30 + $0xec] sm:$0xf] %v485_v59  ;;  %488 = vst [vmem:[%s19070_s30 + $0xf0] sm:$0xf] %v487_v60 }
  0x58   : > { %490 = vst [vmem:[%s19070_s30 + $0xf4] sm:$0xf] %v489_v61  ;;  %v491_v62 = vld [vmem:[%s19063_s24 + $0x1f0] sm:$0xf]  ;;  %v493_v63 = vld [vmem:[%s19063_s24 + $0x1f8] sm:$0xf] }
  0x59   : > { %v495_v0 = vld [vmem:[%s19063_s24 + $0x200] sm:$0xf]  ;;  %492 = vst [vmem:[%s19070_s30 + $0xf8] sm:$0xf] %v491_v62  ;;  %494 = vst [vmem:[%s19070_s30 + $0xfc] sm:$0xf] %v493_v63 }
  0x5a   : > { %496 = vst [vmem:[%s19070_s30 + $0x100] sm:$0xf] %v495_v0  ;;  %v497_v1 = vld [vmem:[%s19063_s24 + $0x208] sm:$0xf]  ;;  %v499_v2 = vld [vmem:[%s19063_s24 + $0x210] sm:$0xf] }
  0x5b   : > { %v501_v3 = vld [vmem:[%s19063_s24 + $0x218] sm:$0xf]  ;;  %498 = vst [vmem:[%s19070_s30 + $0x104] sm:$0xf] %v497_v1  ;;  %500 = vst [vmem:[%s19070_s30 + $0x108] sm:$0xf] %v499_v2 }
  0x5c   : > { %502 = vst [vmem:[%s19070_s30 + $0x10c] sm:$0xf] %v501_v3  ;;  %v503_v4 = vld [vmem:[%s19063_s24 + $0x220] sm:$0xf]  ;;  %v505_v5 = vld [vmem:[%s19063_s24 + $0x228] sm:$0xf] }
  0x5d   : > { %v507_v6 = vld [vmem:[%s19063_s24 + $0x230] sm:$0xf]  ;;  %504 = vst [vmem:[%s19070_s30 + $0x110] sm:$0xf] %v503_v4  ;;  %506 = vst [vmem:[%s19070_s30 + $0x114] sm:$0xf] %v505_v5 }
  0x5e   : > { %508 = vst [vmem:[%s19070_s30 + $0x118] sm:$0xf] %v507_v6  ;;  %v509_v7 = vld [vmem:[%s19063_s24 + $0x238] sm:$0xf]  ;;  %v511_v8 = vld [vmem:[%s19063_s24 + $0x240] sm:$0xf] }
  0x5f   : > { %v513_v9 = vld [vmem:[%s19063_s24 + $0x248] sm:$0xf]  ;;  %510 = vst [vmem:[%s19070_s30 + $0x11c] sm:$0xf] %v509_v7  ;;  %512 = vst [vmem:[%s19070_s30 + $0x120] sm:$0xf] %v511_v8 }
  0x60   : > { %514 = vst [vmem:[%s19070_s30 + $0x124] sm:$0xf] %v513_v9  ;;  %v515_v10 = vld [vmem:[%s19063_s24 + $0x250] sm:$0xf]  ;;  %v517_v11 = vld [vmem:[%s19063_s24 + $0x258] sm:$0xf] }
  0x61   : > { %v519_v12 = vld [vmem:[%s19063_s24 + $0x260] sm:$0xf]  ;;  %516 = vst [vmem:[%s19070_s30 + $0x128] sm:$0xf] %v515_v10  ;;  %518 = vst [vmem:[%s19070_s30 + $0x12c] sm:$0xf] %v517_v11 }
  0x62   : > { %520 = vst [vmem:[%s19070_s30 + $0x130] sm:$0xf] %v519_v12  ;;  %v521_v13 = vld [vmem:[%s19063_s24 + $0x268] sm:$0xf]  ;;  %v523_v14 = vld [vmem:[%s19063_s24 + $0x270] sm:$0xf] }
  0x63   : > { %v525_v15 = vld [vmem:[%s19063_s24 + $0x278] sm:$0xf]  ;;  %522 = vst [vmem:[%s19070_s30 + $0x134] sm:$0xf] %v521_v13  ;;  %524 = vst [vmem:[%s19070_s30 + $0x138] sm:$0xf] %v523_v14 }
  0x64   : > { %526 = vst [vmem:[%s19070_s30 + $0x13c] sm:$0xf] %v525_v15  ;;  %v527_v16 = vld [vmem:[%s19063_s24 + $0x280] sm:$0xf]  ;;  %v529_v17 = vld [vmem:[%s19063_s24 + $0x288] sm:$0xf] }
  0x65   : > { %v531_v18 = vld [vmem:[%s19063_s24 + $0x290] sm:$0xf]  ;;  %528 = vst [vmem:[%s19070_s30 + $0x140] sm:$0xf] %v527_v16  ;;  %530 = vst [vmem:[%s19070_s30 + $0x144] sm:$0xf] %v529_v17 }
  0x66   : > { %532 = vst [vmem:[%s19070_s30 + $0x148] sm:$0xf] %v531_v18  ;;  %v533_v19 = vld [vmem:[%s19063_s24 + $0x298] sm:$0xf]  ;;  %v535_v20 = vld [vmem:[%s19063_s24 + $0x2a0] sm:$0xf] }
  0x67   : > { %v537_v21 = vld [vmem:[%s19063_s24 + $0x2a8] sm:$0xf]  ;;  %534 = vst [vmem:[%s19070_s30 + $0x14c] sm:$0xf] %v533_v19  ;;  %536 = vst [vmem:[%s19070_s30 + $0x150] sm:$0xf] %v535_v20 }
  0x68   : > { %538 = vst [vmem:[%s19070_s30 + $0x154] sm:$0xf] %v537_v21  ;;  %v539_v22 = vld [vmem:[%s19063_s24 + $0x2b0] sm:$0xf]  ;;  %v541_v23 = vld [vmem:[%s19063_s24 + $0x2b8] sm:$0xf] }
  0x69   : > { %v543_v24 = vld [vmem:[%s19063_s24 + $0x2c0] sm:$0xf]  ;;  %540 = vst [vmem:[%s19070_s30 + $0x158] sm:$0xf] %v539_v22  ;;  %542 = vst [vmem:[%s19070_s30 + $0x15c] sm:$0xf] %v541_v23 }
  0x6a   : > { %544 = vst [vmem:[%s19070_s30 + $0x160] sm:$0xf] %v543_v24  ;;  %v545_v25 = vld [vmem:[%s19063_s24 + $0x2c8] sm:$0xf]  ;;  %v547_v26 = vld [vmem:[%s19063_s24 + $0x2d0] sm:$0xf] }
  0x6b   : > { %v549_v27 = vld [vmem:[%s19063_s24 + $0x2d8] sm:$0xf]  ;;  %546 = vst [vmem:[%s19070_s30 + $0x164] sm:$0xf] %v545_v25  ;;  %548 = vst [vmem:[%s19070_s30 + $0x168] sm:$0xf] %v547_v26 }
  0x6c   : > { %550 = vst [vmem:[%s19070_s30 + $0x16c] sm:$0xf] %v549_v27  ;;  %v551_v28 = vld [vmem:[%s19063_s24 + $0x2e0] sm:$0xf]  ;;  %v553_v29 = vld [vmem:[%s19063_s24 + $0x2e8] sm:$0xf] }
  0x6d   : > { %v555_v30 = vld [vmem:[%s19063_s24 + $0x2f0] sm:$0xf]  ;;  %552 = vst [vmem:[%s19070_s30 + $0x170] sm:$0xf] %v551_v28  ;;  %554 = vst [vmem:[%s19070_s30 + $0x174] sm:$0xf] %v553_v29 }
  0x6e   : > { %556 = vst [vmem:[%s19070_s30 + $0x178] sm:$0xf] %v555_v30  ;;  %v557_v31 = vld [vmem:[%s19063_s24 + $0x2f8] sm:$0xf]  ;;  %v559_v32 = vld [vmem:[%s19063_s24 + $0x300] sm:$0xf] }
  0x6f   : > { %v561_v33 = vld [vmem:[%s19063_s24 + $0x308] sm:$0xf]  ;;  %558 = vst [vmem:[%s19070_s30 + $0x17c] sm:$0xf] %v557_v31  ;;  %560 = vst [vmem:[%s19070_s30 + $0x180] sm:$0xf] %v559_v32 }
  0x70   : > { %562 = vst [vmem:[%s19070_s30 + $0x184] sm:$0xf] %v561_v33  ;;  %v563_v34 = vld [vmem:[%s19063_s24 + $0x310] sm:$0xf]  ;;  %v565_v35 = vld [vmem:[%s19063_s24 + $0x318] sm:$0xf] }
  0x71   : > { %v567_v36 = vld [vmem:[%s19063_s24 + $0x320] sm:$0xf]  ;;  %564 = vst [vmem:[%s19070_s30 + $0x188] sm:$0xf] %v563_v34  ;;  %566 = vst [vmem:[%s19070_s30 + $0x18c] sm:$0xf] %v565_v35 }
  0x72   : > { %568 = vst [vmem:[%s19070_s30 + $0x190] sm:$0xf] %v567_v36  ;;  %v569_v37 = vld [vmem:[%s19063_s24 + $0x328] sm:$0xf]  ;;  %v571_v38 = vld [vmem:[%s19063_s24 + $0x330] sm:$0xf] }
  0x73   : > { %v573_v39 = vld [vmem:[%s19063_s24 + $0x338] sm:$0xf]  ;;  %570 = vst [vmem:[%s19070_s30 + $0x194] sm:$0xf] %v569_v37  ;;  %572 = vst [vmem:[%s19070_s30 + $0x198] sm:$0xf] %v571_v38 }
  0x74   : > { %574 = vst [vmem:[%s19070_s30 + $0x19c] sm:$0xf] %v573_v39  ;;  %v575_v40 = vld [vmem:[%s19063_s24 + $0x340] sm:$0xf]  ;;  %v577_v41 = vld [vmem:[%s19063_s24 + $0x348] sm:$0xf] }
  0x75   : > { %v579_v42 = vld [vmem:[%s19063_s24 + $0x350] sm:$0xf]  ;;  %576 = vst [vmem:[%s19070_s30 + $0x1a0] sm:$0xf] %v575_v40  ;;  %578 = vst [vmem:[%s19070_s30 + $0x1a4] sm:$0xf] %v577_v41 }
  0x76   : > { %580 = vst [vmem:[%s19070_s30 + $0x1a8] sm:$0xf] %v579_v42  ;;  %v581_v43 = vld [vmem:[%s19063_s24 + $0x358] sm:$0xf]  ;;  %v583_v44 = vld [vmem:[%s19063_s24 + $0x360] sm:$0xf] }
  0x77   : > { %v585_v45 = vld [vmem:[%s19063_s24 + $0x368] sm:$0xf]  ;;  %582 = vst [vmem:[%s19070_s30 + $0x1ac] sm:$0xf] %v581_v43  ;;  %584 = vst [vmem:[%s19070_s30 + $0x1b0] sm:$0xf] %v583_v44 }
  0x78   : > { %586 = vst [vmem:[%s19070_s30 + $0x1b4] sm:$0xf] %v585_v45  ;;  %v587_v46 = vld [vmem:[%s19063_s24 + $0x370] sm:$0xf]  ;;  %v589_v47 = vld [vmem:[%s19063_s24 + $0x378] sm:$0xf] }
  0x79   : > { %v591_v48 = vld [vmem:[%s19063_s24 + $0x380] sm:$0xf]  ;;  %588 = vst [vmem:[%s19070_s30 + $0x1b8] sm:$0xf] %v587_v46  ;;  %590 = vst [vmem:[%s19070_s30 + $0x1bc] sm:$0xf] %v589_v47 }
  0x7a   : > { %592 = vst [vmem:[%s19070_s30 + $0x1c0] sm:$0xf] %v591_v48  ;;  %v593_v49 = vld [vmem:[%s19063_s24 + $0x388] sm:$0xf]  ;;  %v595_v50 = vld [vmem:[%s19063_s24 + $0x390] sm:$0xf] }
  0x7b   : > { %v597_v51 = vld [vmem:[%s19063_s24 + $0x398] sm:$0xf]  ;;  %594 = vst [vmem:[%s19070_s30 + $0x1c4] sm:$0xf] %v593_v49  ;;  %596 = vst [vmem:[%s19070_s30 + $0x1c8] sm:$0xf] %v595_v50 }
  0x7c   : > { %598 = vst [vmem:[%s19070_s30 + $0x1cc] sm:$0xf] %v597_v51  ;;  %v599_v52 = vld [vmem:[%s19063_s24 + $0x3a0] sm:$0xf]  ;;  %v601_v53 = vld [vmem:[%s19063_s24 + $0x3a8] sm:$0xf] }
  0x7d   : > { %v603_v54 = vld [vmem:[%s19063_s24 + $0x3b0] sm:$0xf]  ;;  %600 = vst [vmem:[%s19070_s30 + $0x1d0] sm:$0xf] %v599_v52  ;;  %602 = vst [vmem:[%s19070_s30 + $0x1d4] sm:$0xf] %v601_v53 }
  0x7e   : > { %604 = vst [vmem:[%s19070_s30 + $0x1d8] sm:$0xf] %v603_v54  ;;  %v605_v55 = vld [vmem:[%s19063_s24 + $0x3b8] sm:$0xf]  ;;  %v607_v56 = vld [vmem:[%s19063_s24 + $0x3c0] sm:$0xf] }
  0x7f   : > { %v609_v57 = vld [vmem:[%s19063_s24 + $0x3c8] sm:$0xf]  ;;  %606 = vst [vmem:[%s19070_s30 + $0x1dc] sm:$0xf] %v605_v55  ;;  %608 = vst [vmem:[%s19070_s30 + $0x1e0] sm:$0xf] %v607_v56 }
  0x80   : > { %610 = vst [vmem:[%s19070_s30 + $0x1e4] sm:$0xf] %v609_v57  ;;  %v611_v58 = vld [vmem:[%s19063_s24 + $0x3d0] sm:$0xf]  ;;  %v613_v59 = vld [vmem:[%s19063_s24 + $0x3d8] sm:$0xf] }
  0x81   : > { %v615_v60 = vld [vmem:[%s19063_s24 + $0x3e0] sm:$0xf]  ;;  %612 = vst [vmem:[%s19070_s30 + $0x1e8] sm:$0xf] %v611_v58  ;;  %614 = vst [vmem:[%s19070_s30 + $0x1ec] sm:$0xf] %v613_v59 }
  0x82   : > { %616 = vst [vmem:[%s19070_s30 + $0x1f0] sm:$0xf] %v615_v60  ;;  %v617_v61 = vld [vmem:[%s19063_s24 + $0x3e8] sm:$0xf]  ;;  %v619_v62 = vld [vmem:[%s19063_s24 + $0x3f0] sm:$0xf] }
  0x83   : > { %v621_v63 = vld [vmem:[%s19063_s24 + $0x3f8] sm:$0xf]  ;;  %618 = vst [vmem:[%s19070_s30 + $0x1f4] sm:$0xf] %v617_v61  ;;  %620 = vst [vmem:[%s19070_s30 + $0x1f8] sm:$0xf] %v619_v62 }
  0x84   : > { %622 = vst [vmem:[%s19070_s30 + $0x1fc] sm:$0xf] %v621_v63  ;;  %v623_v0 = vld [vmem:[%s19063_s24 + $0x400] sm:$0xf]  ;;  %v625_v1 = vld [vmem:[%s19063_s24 + $0x408] sm:$0xf] }
  0x85   : > { %v627_v2 = vld [vmem:[%s19063_s24 + $0x410] sm:$0xf]  ;;  %624 = vst [vmem:[%s19070_s30 + $0x200] sm:$0xf] %v623_v0  ;;  %626 = vst [vmem:[%s19070_s30 + $0x204] sm:$0xf] %v625_v1 }
  0x86   : > { %628 = vst [vmem:[%s19070_s30 + $0x208] sm:$0xf] %v627_v2  ;;  %v629_v3 = vld [vmem:[%s19063_s24 + $0x418] sm:$0xf]  ;;  %v631_v4 = vld [vmem:[%s19063_s24 + $0x420] sm:$0xf] }
  0x87   : > { %v633_v5 = vld [vmem:[%s19063_s24 + $0x428] sm:$0xf]  ;;  %630 = vst [vmem:[%s19070_s30 + $0x20c] sm:$0xf] %v629_v3  ;;  %632 = vst [vmem:[%s19070_s30 + $0x210] sm:$0xf] %v631_v4 }
  0x88   : > { %634 = vst [vmem:[%s19070_s30 + $0x214] sm:$0xf] %v633_v5  ;;  %v635_v6 = vld [vmem:[%s19063_s24 + $0x430] sm:$0xf]  ;;  %v637_v7 = vld [vmem:[%s19063_s24 + $0x438] sm:$0xf] }
  0x89   : > { %v639_v8 = vld [vmem:[%s19063_s24 + $0x440] sm:$0xf]  ;;  %636 = vst [vmem:[%s19070_s30 + $0x218] sm:$0xf] %v635_v6  ;;  %638 = vst [vmem:[%s19070_s30 + $0x21c] sm:$0xf] %v637_v7 }
  0x8a   : > { %640 = vst [vmem:[%s19070_s30 + $0x220] sm:$0xf] %v639_v8  ;;  %v641_v9 = vld [vmem:[%s19063_s24 + $0x448] sm:$0xf]  ;;  %v643_v10 = vld [vmem:[%s19063_s24 + $0x450] sm:$0xf] }
  0x8b   : > { %v645_v11 = vld [vmem:[%s19063_s24 + $0x458] sm:$0xf]  ;;  %642 = vst [vmem:[%s19070_s30 + $0x224] sm:$0xf] %v641_v9  ;;  %644 = vst [vmem:[%s19070_s30 + $0x228] sm:$0xf] %v643_v10 }
  0x8c   : > { %646 = vst [vmem:[%s19070_s30 + $0x22c] sm:$0xf] %v645_v11  ;;  %v647_v12 = vld [vmem:[%s19063_s24 + $0x460] sm:$0xf]  ;;  %v649_v13 = vld [vmem:[%s19063_s24 + $0x468] sm:$0xf] }
  0x8d   : > { %v651_v14 = vld [vmem:[%s19063_s24 + $0x470] sm:$0xf]  ;;  %648 = vst [vmem:[%s19070_s30 + $0x230] sm:$0xf] %v647_v12  ;;  %650 = vst [vmem:[%s19070_s30 + $0x234] sm:$0xf] %v649_v13 }
  0x8e   : > { %652 = vst [vmem:[%s19070_s30 + $0x238] sm:$0xf] %v651_v14  ;;  %v653_v15 = vld [vmem:[%s19063_s24 + $0x478] sm:$0xf]  ;;  %v655_v16 = vld [vmem:[%s19063_s24 + $0x480] sm:$0xf] }
  0x8f   : > { %v657_v17 = vld [vmem:[%s19063_s24 + $0x488] sm:$0xf]  ;;  %654 = vst [vmem:[%s19070_s30 + $0x23c] sm:$0xf] %v653_v15  ;;  %656 = vst [vmem:[%s19070_s30 + $0x240] sm:$0xf] %v655_v16 }
  0x90   : > { %658 = vst [vmem:[%s19070_s30 + $0x244] sm:$0xf] %v657_v17  ;;  %v659_v18 = vld [vmem:[%s19063_s24 + $0x490] sm:$0xf]  ;;  %v661_v19 = vld [vmem:[%s19063_s24 + $0x498] sm:$0xf] }
  0x91   : > { %v663_v20 = vld [vmem:[%s19063_s24 + $0x4a0] sm:$0xf]  ;;  %660 = vst [vmem:[%s19070_s30 + $0x248] sm:$0xf] %v659_v18  ;;  %662 = vst [vmem:[%s19070_s30 + $0x24c] sm:$0xf] %v661_v19 }
  0x92   : > { %664 = vst [vmem:[%s19070_s30 + $0x250] sm:$0xf] %v663_v20  ;;  %v665_v21 = vld [vmem:[%s19063_s24 + $0x4a8] sm:$0xf]  ;;  %v667_v22 = vld [vmem:[%s19063_s24 + $0x4b0] sm:$0xf] }
  0x93   : > { %v669_v23 = vld [vmem:[%s19063_s24 + $0x4b8] sm:$0xf]  ;;  %666 = vst [vmem:[%s19070_s30 + $0x254] sm:$0xf] %v665_v21  ;;  %668 = vst [vmem:[%s19070_s30 + $0x258] sm:$0xf] %v667_v22 }
  0x94   : > { %670 = vst [vmem:[%s19070_s30 + $0x25c] sm:$0xf] %v669_v23  ;;  %v671_v24 = vld [vmem:[%s19063_s24 + $0x4c0] sm:$0xf]  ;;  %v673_v25 = vld [vmem:[%s19063_s24 + $0x4c8] sm:$0xf] }
  0x95   : > { %v675_v26 = vld [vmem:[%s19063_s24 + $0x4d0] sm:$0xf]  ;;  %672 = vst [vmem:[%s19070_s30 + $0x260] sm:$0xf] %v671_v24  ;;  %674 = vst [vmem:[%s19070_s30 + $0x264] sm:$0xf] %v673_v25 }
  0x96   : > { %676 = vst [vmem:[%s19070_s30 + $0x268] sm:$0xf] %v675_v26  ;;  %v677_v27 = vld [vmem:[%s19063_s24 + $0x4d8] sm:$0xf]  ;;  %v679_v28 = vld [vmem:[%s19063_s24 + $0x4e0] sm:$0xf] }
  0x97   : > { %v681_v29 = vld [vmem:[%s19063_s24 + $0x4e8] sm:$0xf]  ;;  %678 = vst [vmem:[%s19070_s30 + $0x26c] sm:$0xf] %v677_v27  ;;  %680 = vst [vmem:[%s19070_s30 + $0x270] sm:$0xf] %v679_v28 }
  0x98   : > { %682 = vst [vmem:[%s19070_s30 + $0x274] sm:$0xf] %v681_v29  ;;  %v683_v30 = vld [vmem:[%s19063_s24 + $0x4f0] sm:$0xf]  ;;  %v685_v31 = vld [vmem:[%s19063_s24 + $0x4f8] sm:$0xf] }
  0x99   : > { %v687_v32 = vld [vmem:[%s19063_s24 + $0x500] sm:$0xf]  ;;  %684 = vst [vmem:[%s19070_s30 + $0x278] sm:$0xf] %v683_v30  ;;  %686 = vst [vmem:[%s19070_s30 + $0x27c] sm:$0xf] %v685_v31 }
  0x9a   : > { %688 = vst [vmem:[%s19070_s30 + $0x280] sm:$0xf] %v687_v32  ;;  %v689_v33 = vld [vmem:[%s19063_s24 + $0x508] sm:$0xf]  ;;  %v691_v34 = vld [vmem:[%s19063_s24 + $0x510] sm:$0xf] }
  0x9b   : > { %v693_v35 = vld [vmem:[%s19063_s24 + $0x518] sm:$0xf]  ;;  %690 = vst [vmem:[%s19070_s30 + $0x284] sm:$0xf] %v689_v33  ;;  %692 = vst [vmem:[%s19070_s30 + $0x288] sm:$0xf] %v691_v34 }
  0x9c   : > { %694 = vst [vmem:[%s19070_s30 + $0x28c] sm:$0xf] %v693_v35  ;;  %v695_v36 = vld [vmem:[%s19063_s24 + $0x520] sm:$0xf]  ;;  %v697_v37 = vld [vmem:[%s19063_s24 + $0x528] sm:$0xf] }
  0x9d   : > { %v699_v38 = vld [vmem:[%s19063_s24 + $0x530] sm:$0xf]  ;;  %696 = vst [vmem:[%s19070_s30 + $0x290] sm:$0xf] %v695_v36  ;;  %698 = vst [vmem:[%s19070_s30 + $0x294] sm:$0xf] %v697_v37 }
  0x9e   : > { %700 = vst [vmem:[%s19070_s30 + $0x298] sm:$0xf] %v699_v38  ;;  %v701_v39 = vld [vmem:[%s19063_s24 + $0x538] sm:$0xf]  ;;  %v703_v40 = vld [vmem:[%s19063_s24 + $0x540] sm:$0xf] }
  0x9f   : > { %v705_v41 = vld [vmem:[%s19063_s24 + $0x548] sm:$0xf]  ;;  %702 = vst [vmem:[%s19070_s30 + $0x29c] sm:$0xf] %v701_v39  ;;  %704 = vst [vmem:[%s19070_s30 + $0x2a0] sm:$0xf] %v703_v40 }
  0xa0   : > { %706 = vst [vmem:[%s19070_s30 + $0x2a4] sm:$0xf] %v705_v41  ;;  %v707_v42 = vld [vmem:[%s19063_s24 + $0x550] sm:$0xf]  ;;  %v709_v43 = vld [vmem:[%s19063_s24 + $0x558] sm:$0xf] }
  0xa1   : > { %v711_v44 = vld [vmem:[%s19063_s24 + $0x560] sm:$0xf]  ;;  %708 = vst [vmem:[%s19070_s30 + $0x2a8] sm:$0xf] %v707_v42  ;;  %710 = vst [vmem:[%s19070_s30 + $0x2ac] sm:$0xf] %v709_v43 }
  0xa2   : > { %712 = vst [vmem:[%s19070_s30 + $0x2b0] sm:$0xf] %v711_v44  ;;  %v713_v45 = vld [vmem:[%s19063_s24 + $0x568] sm:$0xf]  ;;  %v715_v46 = vld [vmem:[%s19063_s24 + $0x570] sm:$0xf] }
  0xa3   : > { %v717_v47 = vld [vmem:[%s19063_s24 + $0x578] sm:$0xf]  ;;  %714 = vst [vmem:[%s19070_s30 + $0x2b4] sm:$0xf] %v713_v45  ;;  %716 = vst [vmem:[%s19070_s30 + $0x2b8] sm:$0xf] %v715_v46 }
  0xa4   : > { %718 = vst [vmem:[%s19070_s30 + $0x2bc] sm:$0xf] %v717_v47  ;;  %v719_v48 = vld [vmem:[%s19063_s24 + $0x580] sm:$0xf]  ;;  %v721_v49 = vld [vmem:[%s19063_s24 + $0x588] sm:$0xf] }
  0xa5   : > { %v723_v50 = vld [vmem:[%s19063_s24 + $0x590] sm:$0xf]  ;;  %720 = vst [vmem:[%s19070_s30 + $0x2c0] sm:$0xf] %v719_v48  ;;  %722 = vst [vmem:[%s19070_s30 + $0x2c4] sm:$0xf] %v721_v49 }
  0xa6   : > { %724 = vst [vmem:[%s19070_s30 + $0x2c8] sm:$0xf] %v723_v50  ;;  %v725_v51 = vld [vmem:[%s19063_s24 + $0x598] sm:$0xf]  ;;  %v727_v52 = vld [vmem:[%s19063_s24 + $0x5a0] sm:$0xf] }
  0xa7   : > { %v729_v53 = vld [vmem:[%s19063_s24 + $0x5a8] sm:$0xf]  ;;  %726 = vst [vmem:[%s19070_s30 + $0x2cc] sm:$0xf] %v725_v51  ;;  %728 = vst [vmem:[%s19070_s30 + $0x2d0] sm:$0xf] %v727_v52 }
  0xa8   : > { %730 = vst [vmem:[%s19070_s30 + $0x2d4] sm:$0xf] %v729_v53  ;;  %v731_v54 = vld [vmem:[%s19063_s24 + $0x5b0] sm:$0xf]  ;;  %v733_v55 = vld [vmem:[%s19063_s24 + $0x5b8] sm:$0xf] }
  0xa9   : > { %v735_v56 = vld [vmem:[%s19063_s24 + $0x5c0] sm:$0xf]  ;;  %732 = vst [vmem:[%s19070_s30 + $0x2d8] sm:$0xf] %v731_v54  ;;  %734 = vst [vmem:[%s19070_s30 + $0x2dc] sm:$0xf] %v733_v55 }
  0xaa   : > { %736 = vst [vmem:[%s19070_s30 + $0x2e0] sm:$0xf] %v735_v56  ;;  %v737_v57 = vld [vmem:[%s19063_s24 + $0x5c8] sm:$0xf]  ;;  %v739_v58 = vld [vmem:[%s19063_s24 + $0x5d0] sm:$0xf] }
  0xab   : > { %v741_v59 = vld [vmem:[%s19063_s24 + $0x5d8] sm:$0xf]  ;;  %738 = vst [vmem:[%s19070_s30 + $0x2e4] sm:$0xf] %v737_v57  ;;  %740 = vst [vmem:[%s19070_s30 + $0x2e8] sm:$0xf] %v739_v58 }
  0xac   : > { %742 = vst [vmem:[%s19070_s30 + $0x2ec] sm:$0xf] %v741_v59  ;;  %v743_v60 = vld [vmem:[%s19063_s24 + $0x5e0] sm:$0xf]  ;;  %v745_v61 = vld [vmem:[%s19063_s24 + $0x5e8] sm:$0xf] }
  0xad   : > { %v747_v62 = vld [vmem:[%s19063_s24 + $0x5f0] sm:$0xf]  ;;  %744 = vst [vmem:[%s19070_s30 + $0x2f0] sm:$0xf] %v743_v60  ;;  %746 = vst [vmem:[%s19070_s30 + $0x2f4] sm:$0xf] %v745_v61 }
  0xae   : > { %748 = vst [vmem:[%s19070_s30 + $0x2f8] sm:$0xf] %v747_v62  ;;  %v749_v63 = vld [vmem:[%s19063_s24 + $0x5f8] sm:$0xf]  ;;  %v751_v0 = vld [vmem:[%s19063_s24 + $0x600] sm:$0xf] }
  0xaf   : > { %v753_v1 = vld [vmem:[%s19063_s24 + $0x608] sm:$0xf]  ;;  %750 = vst [vmem:[%s19070_s30 + $0x2fc] sm:$0xf] %v749_v63  ;;  %752 = vst [vmem:[%s19070_s30 + $0x300] sm:$0xf] %v751_v0 }
  0xb0   : > { %754 = vst [vmem:[%s19070_s30 + $0x304] sm:$0xf] %v753_v1  ;;  %v755_v2 = vld [vmem:[%s19063_s24 + $0x610] sm:$0xf]  ;;  %v757_v3 = vld [vmem:[%s19063_s24 + $0x618] sm:$0xf] }
  0xb1   : > { %v759_v4 = vld [vmem:[%s19063_s24 + $0x620] sm:$0xf]  ;;  %756 = vst [vmem:[%s19070_s30 + $0x308] sm:$0xf] %v755_v2  ;;  %758 = vst [vmem:[%s19070_s30 + $0x30c] sm:$0xf] %v757_v3 }
  0xb2   : > { %760 = vst [vmem:[%s19070_s30 + $0x310] sm:$0xf] %v759_v4  ;;  %v761_v5 = vld [vmem:[%s19063_s24 + $0x628] sm:$0xf]  ;;  %v763_v6 = vld [vmem:[%s19063_s24 + $0x630] sm:$0xf] }
  0xb3   : > { %v765_v7 = vld [vmem:[%s19063_s24 + $0x638] sm:$0xf]  ;;  %762 = vst [vmem:[%s19070_s30 + $0x314] sm:$0xf] %v761_v5  ;;  %764 = vst [vmem:[%s19070_s30 + $0x318] sm:$0xf] %v763_v6 }
  0xb4   : > { %766 = vst [vmem:[%s19070_s30 + $0x31c] sm:$0xf] %v765_v7 }
  0xb5 PF: > { %1203 = sbr.rel (!%p19028_p3) target bundleno = 724 (0x2d4), region = 85  ;;  %s1205_s10 = sand.u32 (%p19028_p3), 1, %s18880_s17  }
  0xb6   : > { %s16559_s23 = sshll.u32 (%p19028_p3), %s18892_s20, 2  ;;  %s18051_s27 = smul.u32 (%p19028_p3), 3200, %s1205_s10 }
  0xb7   : > { %s23883_s6 = sld [smem:[#allocation67_spill]] (%p19028_p3) }
  0xb8   : > { %s19481_s29 = scalar_lea.vmem (%p19028_p3), [#allocation3], %s18051_s27 }
  0xbd   : > { %s19474_s3 = scalar_lea.vmem %s23883_s6, %s16559_s23 }
  0xbe   : > { %v1225_v8 = vld [vmem:[%s19474_s3] sm:$0xf]  ;;  %v1227_v9 = vld [vmem:[%s19474_s3 + $0x8] sm:$0xf]  ;;  %v1229_v10 = vld [vmem:[%s19474_s3 + $0x10] sm:$0xf] }
  0xbf   : > { %v1231_v11 = vld [vmem:[%s19474_s3 + $0x18] sm:$0xf]  ;;  %v1233_v12 = vld [vmem:[%s19474_s3 + $0x20] sm:$0xf]  ;;  %1226 = vst [vmem:[%s19481_s29] sm:$0xf] %v1225_v8 }
  0xc0   : > { %1228 = vst [vmem:[%s19481_s29 + $0x4] sm:$0xf] %v1227_v9  ;;  %1230 = vst [vmem:[%s19481_s29 + $0x8] sm:$0xf] %v1229_v10  ;;  %v1235_v13 = vld [vmem:[%s19474_s3 + $0x28] sm:$0xf] }
  0xc1   : > { %1232 = vst [vmem:[%s19481_s29 + $0xc] sm:$0xf] %v1231_v11  ;;  %1234 = vst [vmem:[%s19481_s29 + $0x10] sm:$0xf] %v1233_v12  ;;  %v1237_v14 = vld [vmem:[%s19474_s3 + $0x30] sm:$0xf] }
  0xc2   : > { %v1239_v15 = vld [vmem:[%s19474_s3 + $0x38] sm:$0xf]  ;;  %1236 = vst [vmem:[%s19481_s29 + $0x14] sm:$0xf] %v1235_v13  ;;  %1238 = vst [vmem:[%s19481_s29 + $0x18] sm:$0xf] %v1237_v14 }
  0xc3   : > { %1240 = vst [vmem:[%s19481_s29 + $0x1c] sm:$0xf] %v1239_v15  ;;  %v1241_v16 = vld [vmem:[%s19474_s3 + $0x40] sm:$0xf]  ;;  %v1243_v17 = vld [vmem:[%s19474_s3 + $0x48] sm:$0xf] }
  0xc4   : > { %v1245_v18 = vld [vmem:[%s19474_s3 + $0x50] sm:$0xf]  ;;  %1242 = vst [vmem:[%s19481_s29 + $0x20] sm:$0xf] %v1241_v16  ;;  %1244 = vst [vmem:[%s19481_s29 + $0x24] sm:$0xf] %v1243_v17 }
  0xc5   : > { %1246 = vst [vmem:[%s19481_s29 + $0x28] sm:$0xf] %v1245_v18  ;;  %v1247_v19 = vld [vmem:[%s19474_s3 + $0x58] sm:$0xf]  ;;  %v1249_v20 = vld [vmem:[%s19474_s3 + $0x60] sm:$0xf] }
  0xc6   : > { %v1251_v21 = vld [vmem:[%s19474_s3 + $0x68] sm:$0xf]  ;;  %1248 = vst [vmem:[%s19481_s29 + $0x2c] sm:$0xf] %v1247_v19  ;;  %1250 = vst [vmem:[%s19481_s29 + $0x30] sm:$0xf] %v1249_v20 }
  0xc7   : > { %1252 = vst [vmem:[%s19481_s29 + $0x34] sm:$0xf] %v1251_v21  ;;  %v1253_v22 = vld [vmem:[%s19474_s3 + $0x70] sm:$0xf]  ;;  %v1255_v23 = vld [vmem:[%s19474_s3 + $0x78] sm:$0xf] }
  0xc8   : > { %v1257_v24 = vld [vmem:[%s19474_s3 + $0x80] sm:$0xf]  ;;  %1254 = vst [vmem:[%s19481_s29 + $0x38] sm:$0xf] %v1253_v22  ;;  %1256 = vst [vmem:[%s19481_s29 + $0x3c] sm:$0xf] %v1255_v23 }
  0xc9   : > { %1258 = vst [vmem:[%s19481_s29 + $0x40] sm:$0xf] %v1257_v24  ;;  %v1259_v25 = vld [vmem:[%s19474_s3 + $0x88] sm:$0xf]  ;;  %v1261_v26 = vld [vmem:[%s19474_s3 + $0x90] sm:$0xf] }
  0xca   : > { %v1263_v27 = vld [vmem:[%s19474_s3 + $0x98] sm:$0xf]  ;;  %1260 = vst [vmem:[%s19481_s29 + $0x44] sm:$0xf] %v1259_v25  ;;  %1262 = vst [vmem:[%s19481_s29 + $0x48] sm:$0xf] %v1261_v26 }
  0xcb   : > { %1264 = vst [vmem:[%s19481_s29 + $0x4c] sm:$0xf] %v1263_v27  ;;  %v1265_v28 = vld [vmem:[%s19474_s3 + $0xa0] sm:$0xf]  ;;  %v1267_v29 = vld [vmem:[%s19474_s3 + $0xa8] sm:$0xf] }
  0xcc   : > { %v1269_v30 = vld [vmem:[%s19474_s3 + $0xb0] sm:$0xf]  ;;  %1266 = vst [vmem:[%s19481_s29 + $0x50] sm:$0xf] %v1265_v28  ;;  %1268 = vst [vmem:[%s19481_s29 + $0x54] sm:$0xf] %v1267_v29 }
  0xcd   : > { %1270 = vst [vmem:[%s19481_s29 + $0x58] sm:$0xf] %v1269_v30  ;;  %v1271_v31 = vld [vmem:[%s19474_s3 + $0xb8] sm:$0xf]  ;;  %v1273_v32 = vld [vmem:[%s19474_s3 + $0xc0] sm:$0xf] }
  0xce   : > { %v1275_v33 = vld [vmem:[%s19474_s3 + $0xc8] sm:$0xf]  ;;  %1272 = vst [vmem:[%s19481_s29 + $0x5c] sm:$0xf] %v1271_v31  ;;  %1274 = vst [vmem:[%s19481_s29 + $0x60] sm:$0xf] %v1273_v32 }
  0xcf   : > { %1276 = vst [vmem:[%s19481_s29 + $0x64] sm:$0xf] %v1275_v33  ;;  %v1277_v34 = vld [vmem:[%s19474_s3 + $0xd0] sm:$0xf]  ;;  %v1279_v35 = vld [vmem:[%s19474_s3 + $0xd8] sm:$0xf] }
  0xd0   : > { %v1281_v36 = vld [vmem:[%s19474_s3 + $0xe0] sm:$0xf]  ;;  %1278 = vst [vmem:[%s19481_s29 + $0x68] sm:$0xf] %v1277_v34  ;;  %1280 = vst [vmem:[%s19481_s29 + $0x6c] sm:$0xf] %v1279_v35 }
  0xd1   : > { %1282 = vst [vmem:[%s19481_s29 + $0x70] sm:$0xf] %v1281_v36  ;;  %v1283_v37 = vld [vmem:[%s19474_s3 + $0xe8] sm:$0xf]  ;;  %v1285_v38 = vld [vmem:[%s19474_s3 + $0xf0] sm:$0xf] }
  0xd2   : > { %v1287_v39 = vld [vmem:[%s19474_s3 + $0xf8] sm:$0xf]  ;;  %1284 = vst [vmem:[%s19481_s29 + $0x74] sm:$0xf] %v1283_v37  ;;  %1286 = vst [vmem:[%s19481_s29 + $0x78] sm:$0xf] %v1285_v38 }
  0xd3   : > { %1288 = vst [vmem:[%s19481_s29 + $0x7c] sm:$0xf] %v1287_v39  ;;  %v1289_v40 = vld [vmem:[%s19474_s3 + $0x100] sm:$0xf]  ;;  %v1291_v41 = vld [vmem:[%s19474_s3 + $0x108] sm:$0xf] }
  0xd4   : > { %v1293_v42 = vld [vmem:[%s19474_s3 + $0x110] sm:$0xf]  ;;  %1290 = vst [vmem:[%s19481_s29 + $0x80] sm:$0xf] %v1289_v40  ;;  %1292 = vst [vmem:[%s19481_s29 + $0x84] sm:$0xf] %v1291_v41 }
  0xd5   : > { %1294 = vst [vmem:[%s19481_s29 + $0x88] sm:$0xf] %v1293_v42  ;;  %v1295_v43 = vld [vmem:[%s19474_s3 + $0x118] sm:$0xf]  ;;  %v1297_v44 = vld [vmem:[%s19474_s3 + $0x120] sm:$0xf] }
  0xd6   : > { %v1299_v45 = vld [vmem:[%s19474_s3 + $0x128] sm:$0xf]  ;;  %1296 = vst [vmem:[%s19481_s29 + $0x8c] sm:$0xf] %v1295_v43  ;;  %1298 = vst [vmem:[%s19481_s29 + $0x90] sm:$0xf] %v1297_v44 }
  0xd7   : > { %1300 = vst [vmem:[%s19481_s29 + $0x94] sm:$0xf] %v1299_v45  ;;  %v1301_v46 = vld [vmem:[%s19474_s3 + $0x130] sm:$0xf]  ;;  %v1303_v47 = vld [vmem:[%s19474_s3 + $0x138] sm:$0xf] }
  0xd8   : > { %v1305_v48 = vld [vmem:[%s19474_s3 + $0x140] sm:$0xf]  ;;  %1302 = vst [vmem:[%s19481_s29 + $0x98] sm:$0xf] %v1301_v46  ;;  %1304 = vst [vmem:[%s19481_s29 + $0x9c] sm:$0xf] %v1303_v47 }
  0xd9   : > { %1306 = vst [vmem:[%s19481_s29 + $0xa0] sm:$0xf] %v1305_v48  ;;  %v1307_v49 = vld [vmem:[%s19474_s3 + $0x148] sm:$0xf]  ;;  %v1309_v50 = vld [vmem:[%s19474_s3 + $0x150] sm:$0xf] }
  0xda   : > { %v1311_v51 = vld [vmem:[%s19474_s3 + $0x158] sm:$0xf]  ;;  %1308 = vst [vmem:[%s19481_s29 + $0xa4] sm:$0xf] %v1307_v49  ;;  %1310 = vst [vmem:[%s19481_s29 + $0xa8] sm:$0xf] %v1309_v50 }
  0xdb   : > { %1312 = vst [vmem:[%s19481_s29 + $0xac] sm:$0xf] %v1311_v51  ;;  %v1313_v52 = vld [vmem:[%s19474_s3 + $0x160] sm:$0xf]  ;;  %v1315_v53 = vld [vmem:[%s19474_s3 + $0x168] sm:$0xf] }
  0xdc   : > { %v1317_v54 = vld [vmem:[%s19474_s3 + $0x170] sm:$0xf]  ;;  %1314 = vst [vmem:[%s19481_s29 + $0xb0] sm:$0xf] %v1313_v52  ;;  %1316 = vst [vmem:[%s19481_s29 + $0xb4] sm:$0xf] %v1315_v53 }
  0xdd   : > { %1318 = vst [vmem:[%s19481_s29 + $0xb8] sm:$0xf] %v1317_v54  ;;  %v1319_v55 = vld [vmem:[%s19474_s3 + $0x178] sm:$0xf]  ;;  %v1321_v56 = vld [vmem:[%s19474_s3 + $0x180] sm:$0xf] }
  0xde   : > { %v1323_v57 = vld [vmem:[%s19474_s3 + $0x188] sm:$0xf]  ;;  %1320 = vst [vmem:[%s19481_s29 + $0xbc] sm:$0xf] %v1319_v55  ;;  %1322 = vst [vmem:[%s19481_s29 + $0xc0] sm:$0xf] %v1321_v56 }
  0xdf   : > { %1324 = vst [vmem:[%s19481_s29 + $0xc4] sm:$0xf] %v1323_v57  ;;  %v1325_v58 = vld [vmem:[%s19474_s3 + $0x190] sm:$0xf]  ;;  %v1327_v59 = vld [vmem:[%s19474_s3 + $0x198] sm:$0xf] }
  0xe0   : > { %v1329_v60 = vld [vmem:[%s19474_s3 + $0x1a0] sm:$0xf]  ;;  %1326 = vst [vmem:[%s19481_s29 + $0xc8] sm:$0xf] %v1325_v58  ;;  %1328 = vst [vmem:[%s19481_s29 + $0xcc] sm:$0xf] %v1327_v59 }
  0xe1   : > { %1330 = vst [vmem:[%s19481_s29 + $0xd0] sm:$0xf] %v1329_v60  ;;  %v1331_v61 = vld [vmem:[%s19474_s3 + $0x1a8] sm:$0xf]  ;;  %v1333_v62 = vld [vmem:[%s19474_s3 + $0x1b0] sm:$0xf] }
  0xe2   : > { %v1335_v63 = vld [vmem:[%s19474_s3 + $0x1b8] sm:$0xf]  ;;  %1332 = vst [vmem:[%s19481_s29 + $0xd4] sm:$0xf] %v1331_v61  ;;  %1334 = vst [vmem:[%s19481_s29 + $0xd8] sm:$0xf] %v1333_v62 }
  0xe3   : > { %1336 = vst [vmem:[%s19481_s29 + $0xdc] sm:$0xf] %v1335_v63  ;;  %v1337_v0 = vld [vmem:[%s19474_s3 + $0x1c0] sm:$0xf]  ;;  %v1339_v1 = vld [vmem:[%s19474_s3 + $0x1c8] sm:$0xf] }
  0xe4   : > { %v1341_v2 = vld [vmem:[%s19474_s3 + $0x1d0] sm:$0xf]  ;;  %1338 = vst [vmem:[%s19481_s29 + $0xe0] sm:$0xf] %v1337_v0  ;;  %1340 = vst [vmem:[%s19481_s29 + $0xe4] sm:$0xf] %v1339_v1 }
  0xe5   : > { %1342 = vst [vmem:[%s19481_s29 + $0xe8] sm:$0xf] %v1341_v2  ;;  %v1343_v3 = vld [vmem:[%s19474_s3 + $0x1d8] sm:$0xf]  ;;  %v1345_v4 = vld [vmem:[%s19474_s3 + $0x1e0] sm:$0xf] }
  0xe6   : > { %v1347_v5 = vld [vmem:[%s19474_s3 + $0x1e8] sm:$0xf]  ;;  %1344 = vst [vmem:[%s19481_s29 + $0xec] sm:$0xf] %v1343_v3  ;;  %1346 = vst [vmem:[%s19481_s29 + $0xf0] sm:$0xf] %v1345_v4 }
  0xe7   : > { %1348 = vst [vmem:[%s19481_s29 + $0xf4] sm:$0xf] %v1347_v5  ;;  %v1349_v6 = vld [vmem:[%s19474_s3 + $0x1f0] sm:$0xf]  ;;  %v1351_v7 = vld [vmem:[%s19474_s3 + $0x1f8] sm:$0xf] }
  0xe8   : > { %v1353_v8 = vld [vmem:[%s19474_s3 + $0x200] sm:$0xf]  ;;  %1350 = vst [vmem:[%s19481_s29 + $0xf8] sm:$0xf] %v1349_v6  ;;  %1352 = vst [vmem:[%s19481_s29 + $0xfc] sm:$0xf] %v1351_v7 }
  0xe9   : > { %1354 = vst [vmem:[%s19481_s29 + $0x100] sm:$0xf] %v1353_v8  ;;  %v1355_v9 = vld [vmem:[%s19474_s3 + $0x208] sm:$0xf]  ;;  %v1357_v10 = vld [vmem:[%s19474_s3 + $0x210] sm:$0xf] }
  0xea   : > { %v1359_v11 = vld [vmem:[%s19474_s3 + $0x218] sm:$0xf]  ;;  %1356 = vst [vmem:[%s19481_s29 + $0x104] sm:$0xf] %v1355_v9  ;;  %1358 = vst [vmem:[%s19481_s29 + $0x108] sm:$0xf] %v1357_v10 }
  0xeb   : > { %1360 = vst [vmem:[%s19481_s29 + $0x10c] sm:$0xf] %v1359_v11  ;;  %v1361_v12 = vld [vmem:[%s19474_s3 + $0x220] sm:$0xf]  ;;  %v1363_v13 = vld [vmem:[%s19474_s3 + $0x228] sm:$0xf] }
  0xec   : > { %v1365_v14 = vld [vmem:[%s19474_s3 + $0x230] sm:$0xf]  ;;  %1362 = vst [vmem:[%s19481_s29 + $0x110] sm:$0xf] %v1361_v12  ;;  %1364 = vst [vmem:[%s19481_s29 + $0x114] sm:$0xf] %v1363_v13 }
  0xed   : > { %1366 = vst [vmem:[%s19481_s29 + $0x118] sm:$0xf] %v1365_v14  ;;  %v1367_v15 = vld [vmem:[%s19474_s3 + $0x238] sm:$0xf]  ;;  %v1369_v16 = vld [vmem:[%s19474_s3 + $0x240] sm:$0xf] }
  0xee   : > { %v1371_v17 = vld [vmem:[%s19474_s3 + $0x248] sm:$0xf]  ;;  %1368 = vst [vmem:[%s19481_s29 + $0x11c] sm:$0xf] %v1367_v15  ;;  %1370 = vst [vmem:[%s19481_s29 + $0x120] sm:$0xf] %v1369_v16 }
  0xef   : > { %1372 = vst [vmem:[%s19481_s29 + $0x124] sm:$0xf] %v1371_v17  ;;  %v1373_v18 = vld [vmem:[%s19474_s3 + $0x250] sm:$0xf]  ;;  %v1375_v19 = vld [vmem:[%s19474_s3 + $0x258] sm:$0xf] }
  0xf0   : > { %v1377_v20 = vld [vmem:[%s19474_s3 + $0x260] sm:$0xf]  ;;  %1374 = vst [vmem:[%s19481_s29 + $0x128] sm:$0xf] %v1373_v18  ;;  %1376 = vst [vmem:[%s19481_s29 + $0x12c] sm:$0xf] %v1375_v19 }
  0xf1   : > { %1378 = vst [vmem:[%s19481_s29 + $0x130] sm:$0xf] %v1377_v20  ;;  %v1379_v21 = vld [vmem:[%s19474_s3 + $0x268] sm:$0xf]  ;;  %v1381_v22 = vld [vmem:[%s19474_s3 + $0x270] sm:$0xf] }
  0xf2   : > { %v1383_v23 = vld [vmem:[%s19474_s3 + $0x278] sm:$0xf]  ;;  %1380 = vst [vmem:[%s19481_s29 + $0x134] sm:$0xf] %v1379_v21  ;;  %1382 = vst [vmem:[%s19481_s29 + $0x138] sm:$0xf] %v1381_v22 }
  0xf3   : > { %1384 = vst [vmem:[%s19481_s29 + $0x13c] sm:$0xf] %v1383_v23  ;;  %v1385_v24 = vld [vmem:[%s19474_s3 + $0x280] sm:$0xf]  ;;  %v1387_v25 = vld [vmem:[%s19474_s3 + $0x288] sm:$0xf] }
  0xf4   : > { %v1389_v26 = vld [vmem:[%s19474_s3 + $0x290] sm:$0xf]  ;;  %1386 = vst [vmem:[%s19481_s29 + $0x140] sm:$0xf] %v1385_v24  ;;  %1388 = vst [vmem:[%s19481_s29 + $0x144] sm:$0xf] %v1387_v25 }
  0xf5   : > { %1390 = vst [vmem:[%s19481_s29 + $0x148] sm:$0xf] %v1389_v26  ;;  %v1391_v27 = vld [vmem:[%s19474_s3 + $0x298] sm:$0xf]  ;;  %v1393_v28 = vld [vmem:[%s19474_s3 + $0x2a0] sm:$0xf] }
  0xf6   : > { %v1395_v29 = vld [vmem:[%s19474_s3 + $0x2a8] sm:$0xf]  ;;  %1392 = vst [vmem:[%s19481_s29 + $0x14c] sm:$0xf] %v1391_v27  ;;  %1394 = vst [vmem:[%s19481_s29 + $0x150] sm:$0xf] %v1393_v28 }
  0xf7   : > { %1396 = vst [vmem:[%s19481_s29 + $0x154] sm:$0xf] %v1395_v29  ;;  %v1397_v30 = vld [vmem:[%s19474_s3 + $0x2b0] sm:$0xf]  ;;  %v1399_v31 = vld [vmem:[%s19474_s3 + $0x2b8] sm:$0xf] }
  0xf8   : > { %v1401_v32 = vld [vmem:[%s19474_s3 + $0x2c0] sm:$0xf]  ;;  %1398 = vst [vmem:[%s19481_s29 + $0x158] sm:$0xf] %v1397_v30  ;;  %1400 = vst [vmem:[%s19481_s29 + $0x15c] sm:$0xf] %v1399_v31 }
  0xf9   : > { %1402 = vst [vmem:[%s19481_s29 + $0x160] sm:$0xf] %v1401_v32  ;;  %v1403_v33 = vld [vmem:[%s19474_s3 + $0x2c8] sm:$0xf]  ;;  %v1405_v34 = vld [vmem:[%s19474_s3 + $0x2d0] sm:$0xf] }
  0xfa   : > { %v1407_v35 = vld [vmem:[%s19474_s3 + $0x2d8] sm:$0xf]  ;;  %1404 = vst [vmem:[%s19481_s29 + $0x164] sm:$0xf] %v1403_v33  ;;  %1406 = vst [vmem:[%s19481_s29 + $0x168] sm:$0xf] %v1405_v34 }
  0xfb   : > { %1408 = vst [vmem:[%s19481_s29 + $0x16c] sm:$0xf] %v1407_v35  ;;  %v1409_v36 = vld [vmem:[%s19474_s3 + $0x2e0] sm:$0xf]  ;;  %v1411_v37 = vld [vmem:[%s19474_s3 + $0x2e8] sm:$0xf] }
  0xfc   : > { %v1413_v38 = vld [vmem:[%s19474_s3 + $0x2f0] sm:$0xf]  ;;  %1410 = vst [vmem:[%s19481_s29 + $0x170] sm:$0xf] %v1409_v36  ;;  %1412 = vst [vmem:[%s19481_s29 + $0x174] sm:$0xf] %v1411_v37 }
  0xfd   : > { %1414 = vst [vmem:[%s19481_s29 + $0x178] sm:$0xf] %v1413_v38  ;;  %v1415_v39 = vld [vmem:[%s19474_s3 + $0x2f8] sm:$0xf]  ;;  %v1417_v40 = vld [vmem:[%s19474_s3 + $0x300] sm:$0xf] }
  0xfe   : > { %v1419_v41 = vld [vmem:[%s19474_s3 + $0x308] sm:$0xf]  ;;  %1416 = vst [vmem:[%s19481_s29 + $0x17c] sm:$0xf] %v1415_v39  ;;  %1418 = vst [vmem:[%s19481_s29 + $0x180] sm:$0xf] %v1417_v40 }
  0xff   : > { %1420 = vst [vmem:[%s19481_s29 + $0x184] sm:$0xf] %v1419_v41  ;;  %v1421_v42 = vld [vmem:[%s19474_s3 + $0x310] sm:$0xf]  ;;  %v1423_v43 = vld [vmem:[%s19474_s3 + $0x318] sm:$0xf] }
 0x100   : > { %v1425_v44 = vld [vmem:[%s19474_s3 + $0x320] sm:$0xf]  ;;  %1422 = vst [vmem:[%s19481_s29 + $0x188] sm:$0xf] %v1421_v42  ;;  %1424 = vst [vmem:[%s19481_s29 + $0x18c] sm:$0xf] %v1423_v43 }
 0x101   : > { %1426 = vst [vmem:[%s19481_s29 + $0x190] sm:$0xf] %v1425_v44  ;;  %v1427_v45 = vld [vmem:[%s19474_s3 + $0x328] sm:$0xf]  ;;  %v1429_v46 = vld [vmem:[%s19474_s3 + $0x330] sm:$0xf] }
 0x102   : > { %v1431_v47 = vld [vmem:[%s19474_s3 + $0x338] sm:$0xf]  ;;  %1428 = vst [vmem:[%s19481_s29 + $0x194] sm:$0xf] %v1427_v45  ;;  %1430 = vst [vmem:[%s19481_s29 + $0x198] sm:$0xf] %v1429_v46 }
 0x103   : > { %1432 = vst [vmem:[%s19481_s29 + $0x19c] sm:$0xf] %v1431_v47  ;;  %v1433_v48 = vld [vmem:[%s19474_s3 + $0x340] sm:$0xf]  ;;  %v1435_v49 = vld [vmem:[%s19474_s3 + $0x348] sm:$0xf] }
 0x104   : > { %v1437_v50 = vld [vmem:[%s19474_s3 + $0x350] sm:$0xf]  ;;  %1434 = vst [vmem:[%s19481_s29 + $0x1a0] sm:$0xf] %v1433_v48  ;;  %1436 = vst [vmem:[%s19481_s29 + $0x1a4] sm:$0xf] %v1435_v49 }
 0x105   : > { %1438 = vst [vmem:[%s19481_s29 + $0x1a8] sm:$0xf] %v1437_v50  ;;  %v1439_v51 = vld [vmem:[%s19474_s3 + $0x358] sm:$0xf]  ;;  %v1441_v52 = vld [vmem:[%s19474_s3 + $0x360] sm:$0xf] }
 0x106   : > { %v1443_v53 = vld [vmem:[%s19474_s3 + $0x368] sm:$0xf]  ;;  %1440 = vst [vmem:[%s19481_s29 + $0x1ac] sm:$0xf] %v1439_v51  ;;  %1442 = vst [vmem:[%s19481_s29 + $0x1b0] sm:$0xf] %v1441_v52 }
 0x107   : > { %1444 = vst [vmem:[%s19481_s29 + $0x1b4] sm:$0xf] %v1443_v53  ;;  %v1445_v54 = vld [vmem:[%s19474_s3 + $0x370] sm:$0xf]  ;;  %v1447_v55 = vld [vmem:[%s19474_s3 + $0x378] sm:$0xf] }
 0x108   : > { %v1449_v56 = vld [vmem:[%s19474_s3 + $0x380] sm:$0xf]  ;;  %1446 = vst [vmem:[%s19481_s29 + $0x1b8] sm:$0xf] %v1445_v54  ;;  %1448 = vst [vmem:[%s19481_s29 + $0x1bc] sm:$0xf] %v1447_v55 }
 0x109   : > { %1450 = vst [vmem:[%s19481_s29 + $0x1c0] sm:$0xf] %v1449_v56  ;;  %v1451_v57 = vld [vmem:[%s19474_s3 + $0x388] sm:$0xf]  ;;  %v1453_v58 = vld [vmem:[%s19474_s3 + $0x390] sm:$0xf] }
 0x10a   : > { %v1455_v59 = vld [vmem:[%s19474_s3 + $0x398] sm:$0xf]  ;;  %1452 = vst [vmem:[%s19481_s29 + $0x1c4] sm:$0xf] %v1451_v57  ;;  %1454 = vst [vmem:[%s19481_s29 + $0x1c8] sm:$0xf] %v1453_v58 }
 0x10b   : > { %1456 = vst [vmem:[%s19481_s29 + $0x1cc] sm:$0xf] %v1455_v59  ;;  %v1457_v60 = vld [vmem:[%s19474_s3 + $0x3a0] sm:$0xf]  ;;  %v1459_v61 = vld [vmem:[%s19474_s3 + $0x3a8] sm:$0xf] }
 0x10c   : > { %v1461_v62 = vld [vmem:[%s19474_s3 + $0x3b0] sm:$0xf]  ;;  %1458 = vst [vmem:[%s19481_s29 + $0x1d0] sm:$0xf] %v1457_v60  ;;  %1460 = vst [vmem:[%s19481_s29 + $0x1d4] sm:$0xf] %v1459_v61 }
 0x10d   : > { %1462 = vst [vmem:[%s19481_s29 + $0x1d8] sm:$0xf] %v1461_v62  ;;  %v1463_v63 = vld [vmem:[%s19474_s3 + $0x3b8] sm:$0xf]  ;;  %v1465_v0 = vld [vmem:[%s19474_s3 + $0x3c0] sm:$0xf] }
 0x10e   : > { %v1467_v1 = vld [vmem:[%s19474_s3 + $0x3c8] sm:$0xf]  ;;  %1464 = vst [vmem:[%s19481_s29 + $0x1dc] sm:$0xf] %v1463_v63  ;;  %1466 = vst [vmem:[%s19481_s29 + $0x1e0] sm:$0xf] %v1465_v0 }
 0x10f   : > { %1468 = vst [vmem:[%s19481_s29 + $0x1e4] sm:$0xf] %v1467_v1  ;;  %v1469_v2 = vld [vmem:[%s19474_s3 + $0x3d0] sm:$0xf]  ;;  %v1471_v3 = vld [vmem:[%s19474_s3 + $0x3d8] sm:$0xf] }
 0x110   : > { %v1473_v4 = vld [vmem:[%s19474_s3 + $0x3e0] sm:$0xf]  ;;  %1470 = vst [vmem:[%s19481_s29 + $0x1e8] sm:$0xf] %v1469_v2  ;;  %1472 = vst [vmem:[%s19481_s29 + $0x1ec] sm:$0xf] %v1471_v3 }
 0x111   : > { %1474 = vst [vmem:[%s19481_s29 + $0x1f0] sm:$0xf] %v1473_v4  ;;  %v1475_v5 = vld [vmem:[%s19474_s3 + $0x3e8] sm:$0xf]  ;;  %v1477_v6 = vld [vmem:[%s19474_s3 + $0x3f0] sm:$0xf] }
 0x112   : > { %v1479_v7 = vld [vmem:[%s19474_s3 + $0x3f8] sm:$0xf]  ;;  %1476 = vst [vmem:[%s19481_s29 + $0x1f4] sm:$0xf] %v1475_v5  ;;  %1478 = vst [vmem:[%s19481_s29 + $0x1f8] sm:$0xf] %v1477_v6 }
 0x113   : > { %1480 = vst [vmem:[%s19481_s29 + $0x1fc] sm:$0xf] %v1479_v7  ;;  %v1481_v8 = vld [vmem:[%s19474_s3 + $0x400] sm:$0xf]  ;;  %v1483_v9 = vld [vmem:[%s19474_s3 + $0x408] sm:$0xf] }
 0x114   : > { %v1485_v10 = vld [vmem:[%s19474_s3 + $0x410] sm:$0xf]  ;;  %1482 = vst [vmem:[%s19481_s29 + $0x200] sm:$0xf] %v1481_v8  ;;  %1484 = vst [vmem:[%s19481_s29 + $0x204] sm:$0xf] %v1483_v9 }
 0x115   : > { %1486 = vst [vmem:[%s19481_s29 + $0x208] sm:$0xf] %v1485_v10  ;;  %v1487_v11 = vld [vmem:[%s19474_s3 + $0x418] sm:$0xf]  ;;  %v1489_v12 = vld [vmem:[%s19474_s3 + $0x420] sm:$0xf] }
 0x116   : > { %v1491_v13 = vld [vmem:[%s19474_s3 + $0x428] sm:$0xf]  ;;  %1488 = vst [vmem:[%s19481_s29 + $0x20c] sm:$0xf] %v1487_v11  ;;  %1490 = vst [vmem:[%s19481_s29 + $0x210] sm:$0xf] %v1489_v12 }
 0x117   : > { %1492 = vst [vmem:[%s19481_s29 + $0x214] sm:$0xf] %v1491_v13  ;;  %v1493_v14 = vld [vmem:[%s19474_s3 + $0x430] sm:$0xf]  ;;  %v1495_v15 = vld [vmem:[%s19474_s3 + $0x438] sm:$0xf] }
 0x118   : > { %v1497_v16 = vld [vmem:[%s19474_s3 + $0x440] sm:$0xf]  ;;  %1494 = vst [vmem:[%s19481_s29 + $0x218] sm:$0xf] %v1493_v14  ;;  %1496 = vst [vmem:[%s19481_s29 + $0x21c] sm:$0xf] %v1495_v15 }
 0x119   : > { %1498 = vst [vmem:[%s19481_s29 + $0x220] sm:$0xf] %v1497_v16  ;;  %v1499_v17 = vld [vmem:[%s19474_s3 + $0x448] sm:$0xf]  ;;  %v1501_v18 = vld [vmem:[%s19474_s3 + $0x450] sm:$0xf] }
 0x11a   : > { %v1503_v19 = vld [vmem:[%s19474_s3 + $0x458] sm:$0xf]  ;;  %1500 = vst [vmem:[%s19481_s29 + $0x224] sm:$0xf] %v1499_v17  ;;  %1502 = vst [vmem:[%s19481_s29 + $0x228] sm:$0xf] %v1501_v18 }
 0x11b   : > { %1504 = vst [vmem:[%s19481_s29 + $0x22c] sm:$0xf] %v1503_v19  ;;  %v1505_v20 = vld [vmem:[%s19474_s3 + $0x460] sm:$0xf]  ;;  %v1507_v21 = vld [vmem:[%s19474_s3 + $0x468] sm:$0xf] }
 0x11c   : > { %v1509_v22 = vld [vmem:[%s19474_s3 + $0x470] sm:$0xf]  ;;  %1506 = vst [vmem:[%s19481_s29 + $0x230] sm:$0xf] %v1505_v20  ;;  %1508 = vst [vmem:[%s19481_s29 + $0x234] sm:$0xf] %v1507_v21 }
 0x11d   : > { %1510 = vst [vmem:[%s19481_s29 + $0x238] sm:$0xf] %v1509_v22  ;;  %v1511_v23 = vld [vmem:[%s19474_s3 + $0x478] sm:$0xf]  ;;  %v1513_v24 = vld [vmem:[%s19474_s3 + $0x480] sm:$0xf] }
 0x11e   : > { %v1515_v25 = vld [vmem:[%s19474_s3 + $0x488] sm:$0xf]  ;;  %1512 = vst [vmem:[%s19481_s29 + $0x23c] sm:$0xf] %v1511_v23  ;;  %1514 = vst [vmem:[%s19481_s29 + $0x240] sm:$0xf] %v1513_v24 }
 0x11f   : > { %1516 = vst [vmem:[%s19481_s29 + $0x244] sm:$0xf] %v1515_v25  ;;  %v1517_v26 = vld [vmem:[%s19474_s3 + $0x490] sm:$0xf]  ;;  %v1519_v27 = vld [vmem:[%s19474_s3 + $0x498] sm:$0xf] }
 0x120   : > { %v1521_v28 = vld [vmem:[%s19474_s3 + $0x4a0] sm:$0xf]  ;;  %1518 = vst [vmem:[%s19481_s29 + $0x248] sm:$0xf] %v1517_v26  ;;  %1520 = vst [vmem:[%s19481_s29 + $0x24c] sm:$0xf] %v1519_v27 }
 0x121   : > { %1522 = vst [vmem:[%s19481_s29 + $0x250] sm:$0xf] %v1521_v28  ;;  %v1523_v29 = vld [vmem:[%s19474_s3 + $0x4a8] sm:$0xf]  ;;  %v1525_v30 = vld [vmem:[%s19474_s3 + $0x4b0] sm:$0xf] }
 0x122   : > { %v1527_v31 = vld [vmem:[%s19474_s3 + $0x4b8] sm:$0xf]  ;;  %1524 = vst [vmem:[%s19481_s29 + $0x254] sm:$0xf] %v1523_v29  ;;  %1526 = vst [vmem:[%s19481_s29 + $0x258] sm:$0xf] %v1525_v30 }
 0x123   : > { %1528 = vst [vmem:[%s19481_s29 + $0x25c] sm:$0xf] %v1527_v31  ;;  %v1529_v32 = vld [vmem:[%s19474_s3 + $0x4c0] sm:$0xf]  ;;  %v1531_v33 = vld [vmem:[%s19474_s3 + $0x4c8] sm:$0xf] }
 0x124   : > { %v1533_v34 = vld [vmem:[%s19474_s3 + $0x4d0] sm:$0xf]  ;;  %1530 = vst [vmem:[%s19481_s29 + $0x260] sm:$0xf] %v1529_v32  ;;  %1532 = vst [vmem:[%s19481_s29 + $0x264] sm:$0xf] %v1531_v33 }
 0x125   : > { %1534 = vst [vmem:[%s19481_s29 + $0x268] sm:$0xf] %v1533_v34  ;;  %v1535_v35 = vld [vmem:[%s19474_s3 + $0x4d8] sm:$0xf]  ;;  %v1537_v36 = vld [vmem:[%s19474_s3 + $0x4e0] sm:$0xf] }
 0x126   : > { %v1539_v37 = vld [vmem:[%s19474_s3 + $0x4e8] sm:$0xf]  ;;  %1536 = vst [vmem:[%s19481_s29 + $0x26c] sm:$0xf] %v1535_v35  ;;  %1538 = vst [vmem:[%s19481_s29 + $0x270] sm:$0xf] %v1537_v36 }
 0x127   : > { %1540 = vst [vmem:[%s19481_s29 + $0x274] sm:$0xf] %v1539_v37  ;;  %v1541_v38 = vld [vmem:[%s19474_s3 + $0x4f0] sm:$0xf]  ;;  %v1543_v39 = vld [vmem:[%s19474_s3 + $0x4f8] sm:$0xf] }
 0x128   : > { %v1545_v40 = vld [vmem:[%s19474_s3 + $0x500] sm:$0xf]  ;;  %1542 = vst [vmem:[%s19481_s29 + $0x278] sm:$0xf] %v1541_v38  ;;  %1544 = vst [vmem:[%s19481_s29 + $0x27c] sm:$0xf] %v1543_v39 }
 0x129   : > { %1546 = vst [vmem:[%s19481_s29 + $0x280] sm:$0xf] %v1545_v40  ;;  %v1547_v41 = vld [vmem:[%s19474_s3 + $0x508] sm:$0xf]  ;;  %v1549_v42 = vld [vmem:[%s19474_s3 + $0x510] sm:$0xf] }
 0x12a   : > { %v1551_v43 = vld [vmem:[%s19474_s3 + $0x518] sm:$0xf]  ;;  %1548 = vst [vmem:[%s19481_s29 + $0x284] sm:$0xf] %v1547_v41  ;;  %1550 = vst [vmem:[%s19481_s29 + $0x288] sm:$0xf] %v1549_v42 }
 0x12b   : > { %1552 = vst [vmem:[%s19481_s29 + $0x28c] sm:$0xf] %v1551_v43  ;;  %v1553_v44 = vld [vmem:[%s19474_s3 + $0x520] sm:$0xf]  ;;  %v1555_v45 = vld [vmem:[%s19474_s3 + $0x528] sm:$0xf] }
 0x12c   : > { %v1557_v46 = vld [vmem:[%s19474_s3 + $0x530] sm:$0xf]  ;;  %1554 = vst [vmem:[%s19481_s29 + $0x290] sm:$0xf] %v1553_v44  ;;  %1556 = vst [vmem:[%s19481_s29 + $0x294] sm:$0xf] %v1555_v45 }
 0x12d   : > { %1558 = vst [vmem:[%s19481_s29 + $0x298] sm:$0xf] %v1557_v46  ;;  %v1559_v47 = vld [vmem:[%s19474_s3 + $0x538] sm:$0xf]  ;;  %v1561_v48 = vld [vmem:[%s19474_s3 + $0x540] sm:$0xf] }
 0x12e   : > { %v1563_v49 = vld [vmem:[%s19474_s3 + $0x548] sm:$0xf]  ;;  %1560 = vst [vmem:[%s19481_s29 + $0x29c] sm:$0xf] %v1559_v47  ;;  %1562 = vst [vmem:[%s19481_s29 + $0x2a0] sm:$0xf] %v1561_v48 }
 0x12f   : > { %1564 = vst [vmem:[%s19481_s29 + $0x2a4] sm:$0xf] %v1563_v49  ;;  %v1565_v50 = vld [vmem:[%s19474_s3 + $0x550] sm:$0xf]  ;;  %v1567_v51 = vld [vmem:[%s19474_s3 + $0x558] sm:$0xf] }
 0x130   : > { %v1569_v52 = vld [vmem:[%s19474_s3 + $0x560] sm:$0xf]  ;;  %1566 = vst [vmem:[%s19481_s29 + $0x2a8] sm:$0xf] %v1565_v50  ;;  %1568 = vst [vmem:[%s19481_s29 + $0x2ac] sm:$0xf] %v1567_v51 }
 0x131   : > { %1570 = vst [vmem:[%s19481_s29 + $0x2b0] sm:$0xf] %v1569_v52  ;;  %v1571_v53 = vld [vmem:[%s19474_s3 + $0x568] sm:$0xf]  ;;  %v1573_v54 = vld [vmem:[%s19474_s3 + $0x570] sm:$0xf] }
 0x132   : > { %v1575_v55 = vld [vmem:[%s19474_s3 + $0x578] sm:$0xf]  ;;  %1572 = vst [vmem:[%s19481_s29 + $0x2b4] sm:$0xf] %v1571_v53  ;;  %1574 = vst [vmem:[%s19481_s29 + $0x2b8] sm:$0xf] %v1573_v54 }
 0x133   : > { %1576 = vst [vmem:[%s19481_s29 + $0x2bc] sm:$0xf] %v1575_v55  ;;  %v1577_v56 = vld [vmem:[%s19474_s3 + $0x580] sm:$0xf]  ;;  %v1579_v57 = vld [vmem:[%s19474_s3 + $0x588] sm:$0xf] }
 0x134   : > { %v1581_v58 = vld [vmem:[%s19474_s3 + $0x590] sm:$0xf]  ;;  %1578 = vst [vmem:[%s19481_s29 + $0x2c0] sm:$0xf] %v1577_v56  ;;  %1580 = vst [vmem:[%s19481_s29 + $0x2c4] sm:$0xf] %v1579_v57 }
 0x135   : > { %1582 = vst [vmem:[%s19481_s29 + $0x2c8] sm:$0xf] %v1581_v58  ;;  %v1583_v59 = vld [vmem:[%s19474_s3 + $0x598] sm:$0xf]  ;;  %v1585_v60 = vld [vmem:[%s19474_s3 + $0x5a0] sm:$0xf] }
 0x136   : > { %v1587_v61 = vld [vmem:[%s19474_s3 + $0x5a8] sm:$0xf]  ;;  %1584 = vst [vmem:[%s19481_s29 + $0x2cc] sm:$0xf] %v1583_v59  ;;  %1586 = vst [vmem:[%s19481_s29 + $0x2d0] sm:$0xf] %v1585_v60 }
 0x137   : > { %1588 = vst [vmem:[%s19481_s29 + $0x2d4] sm:$0xf] %v1587_v61  ;;  %v1589_v62 = vld [vmem:[%s19474_s3 + $0x5b0] sm:$0xf]  ;;  %v1591_v63 = vld [vmem:[%s19474_s3 + $0x5b8] sm:$0xf] }
 0x138   : > { %v1593_v0 = vld [vmem:[%s19474_s3 + $0x5c0] sm:$0xf]  ;;  %1590 = vst [vmem:[%s19481_s29 + $0x2d8] sm:$0xf] %v1589_v62  ;;  %1592 = vst [vmem:[%s19481_s29 + $0x2dc] sm:$0xf] %v1591_v63 }
 0x139   : > { %1594 = vst [vmem:[%s19481_s29 + $0x2e0] sm:$0xf] %v1593_v0  ;;  %v1595_v1 = vld [vmem:[%s19474_s3 + $0x5c8] sm:$0xf]  ;;  %v1597_v2 = vld [vmem:[%s19474_s3 + $0x5d0] sm:$0xf] }
 0x13a   : > { %v1599_v3 = vld [vmem:[%s19474_s3 + $0x5d8] sm:$0xf]  ;;  %1596 = vst [vmem:[%s19481_s29 + $0x2e4] sm:$0xf] %v1595_v1  ;;  %1598 = vst [vmem:[%s19481_s29 + $0x2e8] sm:$0xf] %v1597_v2 }
 0x13b   : > { %1600 = vst [vmem:[%s19481_s29 + $0x2ec] sm:$0xf] %v1599_v3  ;;  %v1601_v4 = vld [vmem:[%s19474_s3 + $0x5e0] sm:$0xf]  ;;  %v1603_v5 = vld [vmem:[%s19474_s3 + $0x5e8] sm:$0xf] }
 0x13c   : > { %v1605_v6 = vld [vmem:[%s19474_s3 + $0x5f0] sm:$0xf]  ;;  %1602 = vst [vmem:[%s19481_s29 + $0x2f0] sm:$0xf] %v1601_v4  ;;  %1604 = vst [vmem:[%s19481_s29 + $0x2f4] sm:$0xf] %v1603_v5 }
 0x13d   : > { %1606 = vst [vmem:[%s19481_s29 + $0x2f8] sm:$0xf] %v1605_v6  ;;  %v1607_v7 = vld [vmem:[%s19474_s3 + $0x5f8] sm:$0xf]  ;;  %v1609_v8 = vld [vmem:[%s19474_s3 + $0x600] sm:$0xf] }
 0x13e   : > { %v1611_v9 = vld [vmem:[%s19474_s3 + $0x608] sm:$0xf]  ;;  %1608 = vst [vmem:[%s19481_s29 + $0x2fc] sm:$0xf] %v1607_v7  ;;  %1610 = vst [vmem:[%s19481_s29 + $0x300] sm:$0xf] %v1609_v8 }
 0x13f   : > { %1612 = vst [vmem:[%s19481_s29 + $0x304] sm:$0xf] %v1611_v9  ;;  %v1613_v10 = vld [vmem:[%s19474_s3 + $0x610] sm:$0xf]  ;;  %v1615_v11 = vld [vmem:[%s19474_s3 + $0x618] sm:$0xf] }
 0x140   : > { %v1617_v12 = vld [vmem:[%s19474_s3 + $0x620] sm:$0xf]  ;;  %1614 = vst [vmem:[%s19481_s29 + $0x308] sm:$0xf] %v1613_v10  ;;  %1616 = vst [vmem:[%s19481_s29 + $0x30c] sm:$0xf] %v1615_v11 }
 0x141   : > { %1618 = vst [vmem:[%s19481_s29 + $0x310] sm:$0xf] %v1617_v12  ;;  %v1619_v13 = vld [vmem:[%s19474_s3 + $0x628] sm:$0xf]  ;;  %v1621_v14 = vld [vmem:[%s19474_s3 + $0x630] sm:$0xf] }
 0x142   : > { %v1623_v15 = vld [vmem:[%s19474_s3 + $0x638] sm:$0xf]  ;;  %1620 = vst [vmem:[%s19481_s29 + $0x314] sm:$0xf] %v1619_v13  ;;  %1622 = vst [vmem:[%s19481_s29 + $0x318] sm:$0xf] %v1621_v14 }
 0x143   : > { %1624 = vst [vmem:[%s19481_s29 + $0x31c] sm:$0xf] %v1623_v15  ;;  %v1625_v16 = vld [vmem:[%s19474_s3 + $0x640] sm:$0xf]  ;;  %v1627_v17 = vld [vmem:[%s19474_s3 + $0x648] sm:$0xf] }
 0x144   : > { %v1629_v18 = vld [vmem:[%s19474_s3 + $0x650] sm:$0xf]  ;;  %1626 = vst [vmem:[%s19481_s29 + $0x320] sm:$0xf] %v1625_v16  ;;  %1628 = vst [vmem:[%s19481_s29 + $0x324] sm:$0xf] %v1627_v17 }
 0x145   : > { %1630 = vst [vmem:[%s19481_s29 + $0x328] sm:$0xf] %v1629_v18  ;;  %v1631_v19 = vld [vmem:[%s19474_s3 + $0x658] sm:$0xf]  ;;  %v1633_v20 = vld [vmem:[%s19474_s3 + $0x660] sm:$0xf] }
 0x146   : > { %v1635_v21 = vld [vmem:[%s19474_s3 + $0x668] sm:$0xf]  ;;  %1632 = vst [vmem:[%s19481_s29 + $0x32c] sm:$0xf] %v1631_v19  ;;  %1634 = vst [vmem:[%s19481_s29 + $0x330] sm:$0xf] %v1633_v20 }
 0x147   : > { %1636 = vst [vmem:[%s19481_s29 + $0x334] sm:$0xf] %v1635_v21  ;;  %v1637_v22 = vld [vmem:[%s19474_s3 + $0x670] sm:$0xf]  ;;  %v1639_v23 = vld [vmem:[%s19474_s3 + $0x678] sm:$0xf] }
 0x148   : > { %v1641_v24 = vld [vmem:[%s19474_s3 + $0x680] sm:$0xf]  ;;  %1638 = vst [vmem:[%s19481_s29 + $0x338] sm:$0xf] %v1637_v22  ;;  %1640 = vst [vmem:[%s19481_s29 + $0x33c] sm:$0xf] %v1639_v23 }
 0x149   : > { %1642 = vst [vmem:[%s19481_s29 + $0x340] sm:$0xf] %v1641_v24  ;;  %v1643_v25 = vld [vmem:[%s19474_s3 + $0x688] sm:$0xf]  ;;  %v1645_v26 = vld [vmem:[%s19474_s3 + $0x690] sm:$0xf] }
 0x14a   : > { %v1647_v27 = vld [vmem:[%s19474_s3 + $0x698] sm:$0xf]  ;;  %1644 = vst [vmem:[%s19481_s29 + $0x344] sm:$0xf] %v1643_v25  ;;  %1646 = vst [vmem:[%s19481_s29 + $0x348] sm:$0xf] %v1645_v26 }
 0x14b   : > { %1648 = vst [vmem:[%s19481_s29 + $0x34c] sm:$0xf] %v1647_v27  ;;  %v1649_v28 = vld [vmem:[%s19474_s3 + $0x6a0] sm:$0xf]  ;;  %v1651_v29 = vld [vmem:[%s19474_s3 + $0x6a8] sm:$0xf] }
 0x14c   : > { %v1653_v30 = vld [vmem:[%s19474_s3 + $0x6b0] sm:$0xf]  ;;  %1650 = vst [vmem:[%s19481_s29 + $0x350] sm:$0xf] %v1649_v28  ;;  %1652 = vst [vmem:[%s19481_s29 + $0x354] sm:$0xf] %v1651_v29 }
 0x14d   : > { %1654 = vst [vmem:[%s19481_s29 + $0x358] sm:$0xf] %v1653_v30  ;;  %v1655_v31 = vld [vmem:[%s19474_s3 + $0x6b8] sm:$0xf]  ;;  %v1657_v32 = vld [vmem:[%s19474_s3 + $0x6c0] sm:$0xf] }
 0x14e   : > { %v1659_v33 = vld [vmem:[%s19474_s3 + $0x6c8] sm:$0xf]  ;;  %1656 = vst [vmem:[%s19481_s29 + $0x35c] sm:$0xf] %v1655_v31  ;;  %1658 = vst [vmem:[%s19481_s29 + $0x360] sm:$0xf] %v1657_v32 }
 0x14f   : > { %1660 = vst [vmem:[%s19481_s29 + $0x364] sm:$0xf] %v1659_v33  ;;  %v1661_v34 = vld [vmem:[%s19474_s3 + $0x6d0] sm:$0xf]  ;;  %v1663_v35 = vld [vmem:[%s19474_s3 + $0x6d8] sm:$0xf] }
 0x150   : > { %v1665_v36 = vld [vmem:[%s19474_s3 + $0x6e0] sm:$0xf]  ;;  %1662 = vst [vmem:[%s19481_s29 + $0x368] sm:$0xf] %v1661_v34  ;;  %1664 = vst [vmem:[%s19481_s29 + $0x36c] sm:$0xf] %v1663_v35 }
 0x151   : > { %1666 = vst [vmem:[%s19481_s29 + $0x370] sm:$0xf] %v1665_v36  ;;  %v1667_v37 = vld [vmem:[%s19474_s3 + $0x6e8] sm:$0xf]  ;;  %v1669_v38 = vld [vmem:[%s19474_s3 + $0x6f0] sm:$0xf] }
 0x152   : > { %v1671_v39 = vld [vmem:[%s19474_s3 + $0x6f8] sm:$0xf]  ;;  %1668 = vst [vmem:[%s19481_s29 + $0x374] sm:$0xf] %v1667_v37  ;;  %1670 = vst [vmem:[%s19481_s29 + $0x378] sm:$0xf] %v1669_v38 }
 0x153   : > { %1672 = vst [vmem:[%s19481_s29 + $0x37c] sm:$0xf] %v1671_v39  ;;  %v1673_v40 = vld [vmem:[%s19474_s3 + $0x700] sm:$0xf]  ;;  %v1675_v41 = vld [vmem:[%s19474_s3 + $0x708] sm:$0xf] }
 0x154   : > { %v1677_v42 = vld [vmem:[%s19474_s3 + $0x710] sm:$0xf]  ;;  %1674 = vst [vmem:[%s19481_s29 + $0x380] sm:$0xf] %v1673_v40  ;;  %1676 = vst [vmem:[%s19481_s29 + $0x384] sm:$0xf] %v1675_v41 }
 0x155   : > { %1678 = vst [vmem:[%s19481_s29 + $0x388] sm:$0xf] %v1677_v42  ;;  %v1679_v43 = vld [vmem:[%s19474_s3 + $0x718] sm:$0xf]  ;;  %v1681_v44 = vld [vmem:[%s19474_s3 + $0x720] sm:$0xf] }
 0x156   : > { %v1683_v45 = vld [vmem:[%s19474_s3 + $0x728] sm:$0xf]  ;;  %1680 = vst [vmem:[%s19481_s29 + $0x38c] sm:$0xf] %v1679_v43  ;;  %1682 = vst [vmem:[%s19481_s29 + $0x390] sm:$0xf] %v1681_v44 }
 0x157   : > { %1684 = vst [vmem:[%s19481_s29 + $0x394] sm:$0xf] %v1683_v45  ;;  %v1685_v46 = vld [vmem:[%s19474_s3 + $0x730] sm:$0xf]  ;;  %v1687_v47 = vld [vmem:[%s19474_s3 + $0x738] sm:$0xf] }
 0x158   : > { %v1689_v48 = vld [vmem:[%s19474_s3 + $0x740] sm:$0xf]  ;;  %1686 = vst [vmem:[%s19481_s29 + $0x398] sm:$0xf] %v1685_v46  ;;  %1688 = vst [vmem:[%s19481_s29 + $0x39c] sm:$0xf] %v1687_v47 }
 0x159   : > { %1690 = vst [vmem:[%s19481_s29 + $0x3a0] sm:$0xf] %v1689_v48  ;;  %v1691_v49 = vld [vmem:[%s19474_s3 + $0x748] sm:$0xf]  ;;  %v1693_v50 = vld [vmem:[%s19474_s3 + $0x750] sm:$0xf] }
 0x15a   : > { %v1695_v51 = vld [vmem:[%s19474_s3 + $0x758] sm:$0xf]  ;;  %1692 = vst [vmem:[%s19481_s29 + $0x3a4] sm:$0xf] %v1691_v49  ;;  %1694 = vst [vmem:[%s19481_s29 + $0x3a8] sm:$0xf] %v1693_v50 }
 0x15b   : > { %1696 = vst [vmem:[%s19481_s29 + $0x3ac] sm:$0xf] %v1695_v51  ;;  %v1697_v52 = vld [vmem:[%s19474_s3 + $0x760] sm:$0xf]  ;;  %v1699_v53 = vld [vmem:[%s19474_s3 + $0x768] sm:$0xf] }
 0x15c   : > { %v1701_v54 = vld [vmem:[%s19474_s3 + $0x770] sm:$0xf]  ;;  %1698 = vst [vmem:[%s19481_s29 + $0x3b0] sm:$0xf] %v1697_v52  ;;  %1700 = vst [vmem:[%s19481_s29 + $0x3b4] sm:$0xf] %v1699_v53 }
 0x15d   : > { %1702 = vst [vmem:[%s19481_s29 + $0x3b8] sm:$0xf] %v1701_v54  ;;  %v1703_v55 = vld [vmem:[%s19474_s3 + $0x778] sm:$0xf]  ;;  %v1705_v56 = vld [vmem:[%s19474_s3 + $0x780] sm:$0xf] }
 0x15e   : > { %v1707_v57 = vld [vmem:[%s19474_s3 + $0x788] sm:$0xf]  ;;  %1704 = vst [vmem:[%s19481_s29 + $0x3bc] sm:$0xf] %v1703_v55  ;;  %1706 = vst [vmem:[%s19481_s29 + $0x3c0] sm:$0xf] %v1705_v56 }
 0x15f   : > { %1708 = vst [vmem:[%s19481_s29 + $0x3c4] sm:$0xf] %v1707_v57  ;;  %v1709_v58 = vld [vmem:[%s19474_s3 + $0x790] sm:$0xf]  ;;  %v1711_v59 = vld [vmem:[%s19474_s3 + $0x798] sm:$0xf] }
 0x160   : > { %v1713_v60 = vld [vmem:[%s19474_s3 + $0x7a0] sm:$0xf]  ;;  %1710 = vst [vmem:[%s19481_s29 + $0x3c8] sm:$0xf] %v1709_v58  ;;  %1712 = vst [vmem:[%s19481_s29 + $0x3cc] sm:$0xf] %v1711_v59 }
 0x161   : > { %1714 = vst [vmem:[%s19481_s29 + $0x3d0] sm:$0xf] %v1713_v60  ;;  %v1715_v61 = vld [vmem:[%s19474_s3 + $0x7a8] sm:$0xf]  ;;  %v1717_v62 = vld [vmem:[%s19474_s3 + $0x7b0] sm:$0xf] }
 0x162   : > { %v1719_v63 = vld [vmem:[%s19474_s3 + $0x7b8] sm:$0xf]  ;;  %1716 = vst [vmem:[%s19481_s29 + $0x3d4] sm:$0xf] %v1715_v61  ;;  %1718 = vst [vmem:[%s19481_s29 + $0x3d8] sm:$0xf] %v1717_v62 }
 0x163   : > { %1720 = vst [vmem:[%s19481_s29 + $0x3dc] sm:$0xf] %v1719_v63  ;;  %v1721_v0 = vld [vmem:[%s19474_s3 + $0x7c0] sm:$0xf]  ;;  %v1723_v1 = vld [vmem:[%s19474_s3 + $0x7c8] sm:$0xf] }
 0x164   : > { %v1725_v2 = vld [vmem:[%s19474_s3 + $0x7d0] sm:$0xf]  ;;  %1722 = vst [vmem:[%s19481_s29 + $0x3e0] sm:$0xf] %v1721_v0  ;;  %1724 = vst [vmem:[%s19481_s29 + $0x3e4] sm:$0xf] %v1723_v1 }
 0x165   : > { %1726 = vst [vmem:[%s19481_s29 + $0x3e8] sm:$0xf] %v1725_v2  ;;  %v1727_v3 = vld [vmem:[%s19474_s3 + $0x7d8] sm:$0xf]  ;;  %v1729_v4 = vld [vmem:[%s19474_s3 + $0x7e0] sm:$0xf] }
 0x166   : > { %v1731_v5 = vld [vmem:[%s19474_s3 + $0x7e8] sm:$0xf]  ;;  %1728 = vst [vmem:[%s19481_s29 + $0x3ec] sm:$0xf] %v1727_v3  ;;  %1730 = vst [vmem:[%s19481_s29 + $0x3f0] sm:$0xf] %v1729_v4 }
 0x167   : > { %1732 = vst [vmem:[%s19481_s29 + $0x3f4] sm:$0xf] %v1731_v5  ;;  %v1733_v6 = vld [vmem:[%s19474_s3 + $0x7f0] sm:$0xf]  ;;  %v1735_v7 = vld [vmem:[%s19474_s3 + $0x7f8] sm:$0xf] }
 0x168   : > { %v1737_v8 = vld [vmem:[%s19474_s3 + $0x800] sm:$0xf]  ;;  %1734 = vst [vmem:[%s19481_s29 + $0x3f8] sm:$0xf] %v1733_v6  ;;  %1736 = vst [vmem:[%s19481_s29 + $0x3fc] sm:$0xf] %v1735_v7 }
 0x169   : > { %1738 = vst [vmem:[%s19481_s29 + $0x400] sm:$0xf] %v1737_v8  ;;  %v1739_v9 = vld [vmem:[%s19474_s3 + $0x808] sm:$0xf]  ;;  %v1741_v10 = vld [vmem:[%s19474_s3 + $0x810] sm:$0xf] }
 0x16a   : > { %v1743_v11 = vld [vmem:[%s19474_s3 + $0x818] sm:$0xf]  ;;  %1740 = vst [vmem:[%s19481_s29 + $0x404] sm:$0xf] %v1739_v9  ;;  %1742 = vst [vmem:[%s19481_s29 + $0x408] sm:$0xf] %v1741_v10 }
 0x16b   : > { %1744 = vst [vmem:[%s19481_s29 + $0x40c] sm:$0xf] %v1743_v11  ;;  %v1745_v12 = vld [vmem:[%s19474_s3 + $0x820] sm:$0xf]  ;;  %v1747_v13 = vld [vmem:[%s19474_s3 + $0x828] sm:$0xf] }
 0x16c   : > { %v1749_v14 = vld [vmem:[%s19474_s3 + $0x830] sm:$0xf]  ;;  %1746 = vst [vmem:[%s19481_s29 + $0x410] sm:$0xf] %v1745_v12  ;;  %1748 = vst [vmem:[%s19481_s29 + $0x414] sm:$0xf] %v1747_v13 }
 0x16d   : > { %1750 = vst [vmem:[%s19481_s29 + $0x418] sm:$0xf] %v1749_v14  ;;  %v1751_v15 = vld [vmem:[%s19474_s3 + $0x838] sm:$0xf]  ;;  %v1753_v16 = vld [vmem:[%s19474_s3 + $0x840] sm:$0xf] }
 0x16e   : > { %v1755_v17 = vld [vmem:[%s19474_s3 + $0x848] sm:$0xf]  ;;  %1752 = vst [vmem:[%s19481_s29 + $0x41c] sm:$0xf] %v1751_v15  ;;  %1754 = vst [vmem:[%s19481_s29 + $0x420] sm:$0xf] %v1753_v16 }
 0x16f   : > { %1756 = vst [vmem:[%s19481_s29 + $0x424] sm:$0xf] %v1755_v17  ;;  %v1757_v18 = vld [vmem:[%s19474_s3 + $0x850] sm:$0xf]  ;;  %v1759_v19 = vld [vmem:[%s19474_s3 + $0x858] sm:$0xf] }
 0x170   : > { %v1761_v20 = vld [vmem:[%s19474_s3 + $0x860] sm:$0xf]  ;;  %1758 = vst [vmem:[%s19481_s29 + $0x428] sm:$0xf] %v1757_v18  ;;  %1760 = vst [vmem:[%s19481_s29 + $0x42c] sm:$0xf] %v1759_v19 }
 0x171   : > { %1762 = vst [vmem:[%s19481_s29 + $0x430] sm:$0xf] %v1761_v20  ;;  %v1763_v21 = vld [vmem:[%s19474_s3 + $0x868] sm:$0xf]  ;;  %v1765_v22 = vld [vmem:[%s19474_s3 + $0x870] sm:$0xf] }
 0x172   : > { %v1767_v23 = vld [vmem:[%s19474_s3 + $0x878] sm:$0xf]  ;;  %1764 = vst [vmem:[%s19481_s29 + $0x434] sm:$0xf] %v1763_v21  ;;  %1766 = vst [vmem:[%s19481_s29 + $0x438] sm:$0xf] %v1765_v22 }
 0x173   : > { %1768 = vst [vmem:[%s19481_s29 + $0x43c] sm:$0xf] %v1767_v23  ;;  %v1769_v24 = vld [vmem:[%s19474_s3 + $0x880] sm:$0xf]  ;;  %v1771_v25 = vld [vmem:[%s19474_s3 + $0x888] sm:$0xf] }
 0x174   : > { %v1773_v26 = vld [vmem:[%s19474_s3 + $0x890] sm:$0xf]  ;;  %1770 = vst [vmem:[%s19481_s29 + $0x440] sm:$0xf] %v1769_v24  ;;  %1772 = vst [vmem:[%s19481_s29 + $0x444] sm:$0xf] %v1771_v25 }
 0x175   : > { %1774 = vst [vmem:[%s19481_s29 + $0x448] sm:$0xf] %v1773_v26  ;;  %v1775_v27 = vld [vmem:[%s19474_s3 + $0x898] sm:$0xf]  ;;  %v1777_v28 = vld [vmem:[%s19474_s3 + $0x8a0] sm:$0xf] }
 0x176   : > { %v1779_v29 = vld [vmem:[%s19474_s3 + $0x8a8] sm:$0xf]  ;;  %1776 = vst [vmem:[%s19481_s29 + $0x44c] sm:$0xf] %v1775_v27  ;;  %1778 = vst [vmem:[%s19481_s29 + $0x450] sm:$0xf] %v1777_v28 }
 0x177   : > { %1780 = vst [vmem:[%s19481_s29 + $0x454] sm:$0xf] %v1779_v29  ;;  %v1781_v30 = vld [vmem:[%s19474_s3 + $0x8b0] sm:$0xf]  ;;  %v1783_v31 = vld [vmem:[%s19474_s3 + $0x8b8] sm:$0xf] }
 0x178   : > { %v1785_v32 = vld [vmem:[%s19474_s3 + $0x8c0] sm:$0xf]  ;;  %1782 = vst [vmem:[%s19481_s29 + $0x458] sm:$0xf] %v1781_v30  ;;  %1784 = vst [vmem:[%s19481_s29 + $0x45c] sm:$0xf] %v1783_v31 }
 0x179   : > { %1786 = vst [vmem:[%s19481_s29 + $0x460] sm:$0xf] %v1785_v32  ;;  %v1787_v33 = vld [vmem:[%s19474_s3 + $0x8c8] sm:$0xf]  ;;  %v1789_v34 = vld [vmem:[%s19474_s3 + $0x8d0] sm:$0xf] }
 0x17a   : > { %v1791_v35 = vld [vmem:[%s19474_s3 + $0x8d8] sm:$0xf]  ;;  %1788 = vst [vmem:[%s19481_s29 + $0x464] sm:$0xf] %v1787_v33  ;;  %1790 = vst [vmem:[%s19481_s29 + $0x468] sm:$0xf] %v1789_v34 }
 0x17b   : > { %1792 = vst [vmem:[%s19481_s29 + $0x46c] sm:$0xf] %v1791_v35  ;;  %v1793_v36 = vld [vmem:[%s19474_s3 + $0x8e0] sm:$0xf]  ;;  %v1795_v37 = vld [vmem:[%s19474_s3 + $0x8e8] sm:$0xf] }
 0x17c   : > { %v1797_v38 = vld [vmem:[%s19474_s3 + $0x8f0] sm:$0xf]  ;;  %1794 = vst [vmem:[%s19481_s29 + $0x470] sm:$0xf] %v1793_v36  ;;  %1796 = vst [vmem:[%s19481_s29 + $0x474] sm:$0xf] %v1795_v37 }
 0x17d   : > { %1798 = vst [vmem:[%s19481_s29 + $0x478] sm:$0xf] %v1797_v38  ;;  %v1799_v39 = vld [vmem:[%s19474_s3 + $0x8f8] sm:$0xf]  ;;  %v1801_v40 = vld [vmem:[%s19474_s3 + $0x900] sm:$0xf] }
 0x17e   : > { %v1803_v41 = vld [vmem:[%s19474_s3 + $0x908] sm:$0xf]  ;;  %1800 = vst [vmem:[%s19481_s29 + $0x47c] sm:$0xf] %v1799_v39  ;;  %1802 = vst [vmem:[%s19481_s29 + $0x480] sm:$0xf] %v1801_v40 }
 0x17f   : > { %1804 = vst [vmem:[%s19481_s29 + $0x484] sm:$0xf] %v1803_v41  ;;  %v1805_v42 = vld [vmem:[%s19474_s3 + $0x910] sm:$0xf]  ;;  %v1807_v43 = vld [vmem:[%s19474_s3 + $0x918] sm:$0xf] }
 0x180   : > { %v1809_v44 = vld [vmem:[%s19474_s3 + $0x920] sm:$0xf]  ;;  %1806 = vst [vmem:[%s19481_s29 + $0x488] sm:$0xf] %v1805_v42  ;;  %1808 = vst [vmem:[%s19481_s29 + $0x48c] sm:$0xf] %v1807_v43 }
 0x181   : > { %1810 = vst [vmem:[%s19481_s29 + $0x490] sm:$0xf] %v1809_v44  ;;  %v1811_v45 = vld [vmem:[%s19474_s3 + $0x928] sm:$0xf]  ;;  %v1813_v46 = vld [vmem:[%s19474_s3 + $0x930] sm:$0xf] }
 0x182   : > { %v1815_v47 = vld [vmem:[%s19474_s3 + $0x938] sm:$0xf]  ;;  %1812 = vst [vmem:[%s19481_s29 + $0x494] sm:$0xf] %v1811_v45  ;;  %1814 = vst [vmem:[%s19481_s29 + $0x498] sm:$0xf] %v1813_v46 }
 0x183   : > { %1816 = vst [vmem:[%s19481_s29 + $0x49c] sm:$0xf] %v1815_v47  ;;  %v1817_v48 = vld [vmem:[%s19474_s3 + $0x940] sm:$0xf]  ;;  %v1819_v49 = vld [vmem:[%s19474_s3 + $0x948] sm:$0xf] }
 0x184   : > { %v1821_v50 = vld [vmem:[%s19474_s3 + $0x950] sm:$0xf]  ;;  %1818 = vst [vmem:[%s19481_s29 + $0x4a0] sm:$0xf] %v1817_v48  ;;  %1820 = vst [vmem:[%s19481_s29 + $0x4a4] sm:$0xf] %v1819_v49 }
 0x185   : > { %1822 = vst [vmem:[%s19481_s29 + $0x4a8] sm:$0xf] %v1821_v50  ;;  %v1823_v51 = vld [vmem:[%s19474_s3 + $0x958] sm:$0xf]  ;;  %v1825_v52 = vld [vmem:[%s19474_s3 + $0x960] sm:$0xf] }
 0x186   : > { %v1827_v53 = vld [vmem:[%s19474_s3 + $0x968] sm:$0xf]  ;;  %1824 = vst [vmem:[%s19481_s29 + $0x4ac] sm:$0xf] %v1823_v51  ;;  %1826 = vst [vmem:[%s19481_s29 + $0x4b0] sm:$0xf] %v1825_v52 }
 0x187   : > { %1828 = vst [vmem:[%s19481_s29 + $0x4b4] sm:$0xf] %v1827_v53  ;;  %v1829_v54 = vld [vmem:[%s19474_s3 + $0x970] sm:$0xf]  ;;  %v1831_v55 = vld [vmem:[%s19474_s3 + $0x978] sm:$0xf] }
 0x188   : > { %v1833_v56 = vld [vmem:[%s19474_s3 + $0x980] sm:$0xf]  ;;  %1830 = vst [vmem:[%s19481_s29 + $0x4b8] sm:$0xf] %v1829_v54  ;;  %1832 = vst [vmem:[%s19481_s29 + $0x4bc] sm:$0xf] %v1831_v55 }
 0x189   : > { %1834 = vst [vmem:[%s19481_s29 + $0x4c0] sm:$0xf] %v1833_v56  ;;  %v1835_v57 = vld [vmem:[%s19474_s3 + $0x988] sm:$0xf]  ;;  %v1837_v58 = vld [vmem:[%s19474_s3 + $0x990] sm:$0xf] }
 0x18a   : > { %v1839_v59 = vld [vmem:[%s19474_s3 + $0x998] sm:$0xf]  ;;  %1836 = vst [vmem:[%s19481_s29 + $0x4c4] sm:$0xf] %v1835_v57  ;;  %1838 = vst [vmem:[%s19481_s29 + $0x4c8] sm:$0xf] %v1837_v58 }
 0x18b   : > { %1840 = vst [vmem:[%s19481_s29 + $0x4cc] sm:$0xf] %v1839_v59  ;;  %v1841_v60 = vld [vmem:[%s19474_s3 + $0x9a0] sm:$0xf]  ;;  %v1843_v61 = vld [vmem:[%s19474_s3 + $0x9a8] sm:$0xf] }
 0x18c   : > { %v1845_v62 = vld [vmem:[%s19474_s3 + $0x9b0] sm:$0xf]  ;;  %1842 = vst [vmem:[%s19481_s29 + $0x4d0] sm:$0xf] %v1841_v60  ;;  %1844 = vst [vmem:[%s19481_s29 + $0x4d4] sm:$0xf] %v1843_v61 }
 0x18d   : > { %1846 = vst [vmem:[%s19481_s29 + $0x4d8] sm:$0xf] %v1845_v62  ;;  %v1847_v63 = vld [vmem:[%s19474_s3 + $0x9b8] sm:$0xf]  ;;  %v1849_v0 = vld [vmem:[%s19474_s3 + $0x9c0] sm:$0xf] }
 0x18e   : > { %v1851_v1 = vld [vmem:[%s19474_s3 + $0x9c8] sm:$0xf]  ;;  %1848 = vst [vmem:[%s19481_s29 + $0x4dc] sm:$0xf] %v1847_v63  ;;  %1850 = vst [vmem:[%s19481_s29 + $0x4e0] sm:$0xf] %v1849_v0 }
 0x18f   : > { %1852 = vst [vmem:[%s19481_s29 + $0x4e4] sm:$0xf] %v1851_v1  ;;  %v1853_v2 = vld [vmem:[%s19474_s3 + $0x9d0] sm:$0xf]  ;;  %v1855_v3 = vld [vmem:[%s19474_s3 + $0x9d8] sm:$0xf] }
 0x190   : > { %v1857_v4 = vld [vmem:[%s19474_s3 + $0x9e0] sm:$0xf]  ;;  %1854 = vst [vmem:[%s19481_s29 + $0x4e8] sm:$0xf] %v1853_v2  ;;  %1856 = vst [vmem:[%s19481_s29 + $0x4ec] sm:$0xf] %v1855_v3 }
 0x191   : > { %1858 = vst [vmem:[%s19481_s29 + $0x4f0] sm:$0xf] %v1857_v4  ;;  %v1859_v5 = vld [vmem:[%s19474_s3 + $0x9e8] sm:$0xf]  ;;  %v1861_v6 = vld [vmem:[%s19474_s3 + $0x9f0] sm:$0xf] }
 0x192   : > { %v1863_v7 = vld [vmem:[%s19474_s3 + $0x9f8] sm:$0xf]  ;;  %1860 = vst [vmem:[%s19481_s29 + $0x4f4] sm:$0xf] %v1859_v5  ;;  %1862 = vst [vmem:[%s19481_s29 + $0x4f8] sm:$0xf] %v1861_v6 }
 0x193   : > { %1864 = vst [vmem:[%s19481_s29 + $0x4fc] sm:$0xf] %v1863_v7  ;;  %v1865_v8 = vld [vmem:[%s19474_s3 + $0xa00] sm:$0xf]  ;;  %v1867_v9 = vld [vmem:[%s19474_s3 + $0xa08] sm:$0xf] }
 0x194   : > { %v1869_v10 = vld [vmem:[%s19474_s3 + $0xa10] sm:$0xf]  ;;  %1866 = vst [vmem:[%s19481_s29 + $0x500] sm:$0xf] %v1865_v8  ;;  %1868 = vst [vmem:[%s19481_s29 + $0x504] sm:$0xf] %v1867_v9 }
 0x195   : > { %1870 = vst [vmem:[%s19481_s29 + $0x508] sm:$0xf] %v1869_v10  ;;  %v1871_v11 = vld [vmem:[%s19474_s3 + $0xa18] sm:$0xf]  ;;  %v1873_v12 = vld [vmem:[%s19474_s3 + $0xa20] sm:$0xf] }
 0x196   : > { %v1875_v13 = vld [vmem:[%s19474_s3 + $0xa28] sm:$0xf]  ;;  %1872 = vst [vmem:[%s19481_s29 + $0x50c] sm:$0xf] %v1871_v11  ;;  %1874 = vst [vmem:[%s19481_s29 + $0x510] sm:$0xf] %v1873_v12 }
 0x197   : > { %1876 = vst [vmem:[%s19481_s29 + $0x514] sm:$0xf] %v1875_v13  ;;  %v1877_v14 = vld [vmem:[%s19474_s3 + $0xa30] sm:$0xf]  ;;  %v1879_v15 = vld [vmem:[%s19474_s3 + $0xa38] sm:$0xf] }
 0x198   : > { %v1881_v16 = vld [vmem:[%s19474_s3 + $0xa40] sm:$0xf]  ;;  %1878 = vst [vmem:[%s19481_s29 + $0x518] sm:$0xf] %v1877_v14  ;;  %1880 = vst [vmem:[%s19481_s29 + $0x51c] sm:$0xf] %v1879_v15 }
 0x199   : > { %1882 = vst [vmem:[%s19481_s29 + $0x520] sm:$0xf] %v1881_v16  ;;  %v1883_v17 = vld [vmem:[%s19474_s3 + $0xa48] sm:$0xf]  ;;  %v1885_v18 = vld [vmem:[%s19474_s3 + $0xa50] sm:$0xf] }
 0x19a   : > { %v1887_v19 = vld [vmem:[%s19474_s3 + $0xa58] sm:$0xf]  ;;  %1884 = vst [vmem:[%s19481_s29 + $0x524] sm:$0xf] %v1883_v17  ;;  %1886 = vst [vmem:[%s19481_s29 + $0x528] sm:$0xf] %v1885_v18 }
 0x19b   : > { %1888 = vst [vmem:[%s19481_s29 + $0x52c] sm:$0xf] %v1887_v19  ;;  %v1889_v20 = vld [vmem:[%s19474_s3 + $0xa60] sm:$0xf]  ;;  %v1891_v21 = vld [vmem:[%s19474_s3 + $0xa68] sm:$0xf] }
 0x19c   : > { %v1893_v22 = vld [vmem:[%s19474_s3 + $0xa70] sm:$0xf]  ;;  %1890 = vst [vmem:[%s19481_s29 + $0x530] sm:$0xf] %v1889_v20  ;;  %1892 = vst [vmem:[%s19481_s29 + $0x534] sm:$0xf] %v1891_v21 }
 0x19d   : > { %1894 = vst [vmem:[%s19481_s29 + $0x538] sm:$0xf] %v1893_v22  ;;  %v1895_v23 = vld [vmem:[%s19474_s3 + $0xa78] sm:$0xf]  ;;  %v1897_v24 = vld [vmem:[%s19474_s3 + $0xa80] sm:$0xf] }
 0x19e   : > { %v1899_v25 = vld [vmem:[%s19474_s3 + $0xa88] sm:$0xf]  ;;  %1896 = vst [vmem:[%s19481_s29 + $0x53c] sm:$0xf] %v1895_v23  ;;  %1898 = vst [vmem:[%s19481_s29 + $0x540] sm:$0xf] %v1897_v24 }
 0x19f   : > { %1900 = vst [vmem:[%s19481_s29 + $0x544] sm:$0xf] %v1899_v25  ;;  %v1901_v26 = vld [vmem:[%s19474_s3 + $0xa90] sm:$0xf]  ;;  %v1903_v27 = vld [vmem:[%s19474_s3 + $0xa98] sm:$0xf] }
 0x1a0   : > { %v1905_v28 = vld [vmem:[%s19474_s3 + $0xaa0] sm:$0xf]  ;;  %1902 = vst [vmem:[%s19481_s29 + $0x548] sm:$0xf] %v1901_v26  ;;  %1904 = vst [vmem:[%s19481_s29 + $0x54c] sm:$0xf] %v1903_v27 }
 0x1a1   : > { %1906 = vst [vmem:[%s19481_s29 + $0x550] sm:$0xf] %v1905_v28  ;;  %v1907_v29 = vld [vmem:[%s19474_s3 + $0xaa8] sm:$0xf]  ;;  %v1909_v30 = vld [vmem:[%s19474_s3 + $0xab0] sm:$0xf] }
 0x1a2   : > { %v1911_v31 = vld [vmem:[%s19474_s3 + $0xab8] sm:$0xf]  ;;  %1908 = vst [vmem:[%s19481_s29 + $0x554] sm:$0xf] %v1907_v29  ;;  %1910 = vst [vmem:[%s19481_s29 + $0x558] sm:$0xf] %v1909_v30 }
 0x1a3   : > { %1912 = vst [vmem:[%s19481_s29 + $0x55c] sm:$0xf] %v1911_v31  ;;  %v1913_v32 = vld [vmem:[%s19474_s3 + $0xac0] sm:$0xf]  ;;  %v1915_v33 = vld [vmem:[%s19474_s3 + $0xac8] sm:$0xf] }
 0x1a4   : > { %v1917_v34 = vld [vmem:[%s19474_s3 + $0xad0] sm:$0xf]  ;;  %1914 = vst [vmem:[%s19481_s29 + $0x560] sm:$0xf] %v1913_v32  ;;  %1916 = vst [vmem:[%s19481_s29 + $0x564] sm:$0xf] %v1915_v33 }
 0x1a5   : > { %1918 = vst [vmem:[%s19481_s29 + $0x568] sm:$0xf] %v1917_v34  ;;  %v1919_v35 = vld [vmem:[%s19474_s3 + $0xad8] sm:$0xf]  ;;  %v1921_v36 = vld [vmem:[%s19474_s3 + $0xae0] sm:$0xf] }
 0x1a6   : > { %v1923_v37 = vld [vmem:[%s19474_s3 + $0xae8] sm:$0xf]  ;;  %1920 = vst [vmem:[%s19481_s29 + $0x56c] sm:$0xf] %v1919_v35  ;;  %1922 = vst [vmem:[%s19481_s29 + $0x570] sm:$0xf] %v1921_v36 }
 0x1a7   : > { %1924 = vst [vmem:[%s19481_s29 + $0x574] sm:$0xf] %v1923_v37  ;;  %v1925_v38 = vld [vmem:[%s19474_s3 + $0xaf0] sm:$0xf]  ;;  %v1927_v39 = vld [vmem:[%s19474_s3 + $0xaf8] sm:$0xf] }
 0x1a8   : > { %v1929_v40 = vld [vmem:[%s19474_s3 + $0xb00] sm:$0xf]  ;;  %1926 = vst [vmem:[%s19481_s29 + $0x578] sm:$0xf] %v1925_v38  ;;  %1928 = vst [vmem:[%s19481_s29 + $0x57c] sm:$0xf] %v1927_v39 }
 0x1a9   : > { %1930 = vst [vmem:[%s19481_s29 + $0x580] sm:$0xf] %v1929_v40  ;;  %v1931_v41 = vld [vmem:[%s19474_s3 + $0xb08] sm:$0xf]  ;;  %v1933_v42 = vld [vmem:[%s19474_s3 + $0xb10] sm:$0xf] }
 0x1aa   : > { %v1935_v43 = vld [vmem:[%s19474_s3 + $0xb18] sm:$0xf]  ;;  %1932 = vst [vmem:[%s19481_s29 + $0x584] sm:$0xf] %v1931_v41  ;;  %1934 = vst [vmem:[%s19481_s29 + $0x588] sm:$0xf] %v1933_v42 }
 0x1ab   : > { %1936 = vst [vmem:[%s19481_s29 + $0x58c] sm:$0xf] %v1935_v43  ;;  %v1937_v44 = vld [vmem:[%s19474_s3 + $0xb20] sm:$0xf]  ;;  %v1939_v45 = vld [vmem:[%s19474_s3 + $0xb28] sm:$0xf] }
 0x1ac   : > { %v1941_v46 = vld [vmem:[%s19474_s3 + $0xb30] sm:$0xf]  ;;  %1938 = vst [vmem:[%s19481_s29 + $0x590] sm:$0xf] %v1937_v44  ;;  %1940 = vst [vmem:[%s19481_s29 + $0x594] sm:$0xf] %v1939_v45 }
 0x1ad   : > { %1942 = vst [vmem:[%s19481_s29 + $0x598] sm:$0xf] %v1941_v46  ;;  %v1943_v47 = vld [vmem:[%s19474_s3 + $0xb38] sm:$0xf]  ;;  %v1945_v48 = vld [vmem:[%s19474_s3 + $0xb40] sm:$0xf] }
 0x1ae   : > { %v1947_v49 = vld [vmem:[%s19474_s3 + $0xb48] sm:$0xf]  ;;  %1944 = vst [vmem:[%s19481_s29 + $0x59c] sm:$0xf] %v1943_v47  ;;  %1946 = vst [vmem:[%s19481_s29 + $0x5a0] sm:$0xf] %v1945_v48 }
 0x1af   : > { %1948 = vst [vmem:[%s19481_s29 + $0x5a4] sm:$0xf] %v1947_v49  ;;  %v1949_v50 = vld [vmem:[%s19474_s3 + $0xb50] sm:$0xf]  ;;  %v1951_v51 = vld [vmem:[%s19474_s3 + $0xb58] sm:$0xf] }
 0x1b0   : > { %v1953_v52 = vld [vmem:[%s19474_s3 + $0xb60] sm:$0xf]  ;;  %1950 = vst [vmem:[%s19481_s29 + $0x5a8] sm:$0xf] %v1949_v50  ;;  %1952 = vst [vmem:[%s19481_s29 + $0x5ac] sm:$0xf] %v1951_v51 }
 0x1b1   : > { %1954 = vst [vmem:[%s19481_s29 + $0x5b0] sm:$0xf] %v1953_v52  ;;  %v1955_v53 = vld [vmem:[%s19474_s3 + $0xb68] sm:$0xf]  ;;  %v1957_v54 = vld [vmem:[%s19474_s3 + $0xb70] sm:$0xf] }
 0x1b2   : > { %v1959_v55 = vld [vmem:[%s19474_s3 + $0xb78] sm:$0xf]  ;;  %1956 = vst [vmem:[%s19481_s29 + $0x5b4] sm:$0xf] %v1955_v53  ;;  %1958 = vst [vmem:[%s19481_s29 + $0x5b8] sm:$0xf] %v1957_v54 }
 0x1b3   : > { %1960 = vst [vmem:[%s19481_s29 + $0x5bc] sm:$0xf] %v1959_v55  ;;  %v1961_v56 = vld [vmem:[%s19474_s3 + $0xb80] sm:$0xf]  ;;  %v1963_v57 = vld [vmem:[%s19474_s3 + $0xb88] sm:$0xf] }
 0x1b4   : > { %v1965_v58 = vld [vmem:[%s19474_s3 + $0xb90] sm:$0xf]  ;;  %1962 = vst [vmem:[%s19481_s29 + $0x5c0] sm:$0xf] %v1961_v56  ;;  %1964 = vst [vmem:[%s19481_s29 + $0x5c4] sm:$0xf] %v1963_v57 }
 0x1b5   : > { %1966 = vst [vmem:[%s19481_s29 + $0x5c8] sm:$0xf] %v1965_v58  ;;  %v1967_v59 = vld [vmem:[%s19474_s3 + $0xb98] sm:$0xf]  ;;  %v1969_v60 = vld [vmem:[%s19474_s3 + $0xba0] sm:$0xf] }
 0x1b6   : > { %v1971_v61 = vld [vmem:[%s19474_s3 + $0xba8] sm:$0xf]  ;;  %1968 = vst [vmem:[%s19481_s29 + $0x5cc] sm:$0xf] %v1967_v59  ;;  %1970 = vst [vmem:[%s19481_s29 + $0x5d0] sm:$0xf] %v1969_v60 }
 0x1b7   : > { %1972 = vst [vmem:[%s19481_s29 + $0x5d4] sm:$0xf] %v1971_v61  ;;  %v1973_v62 = vld [vmem:[%s19474_s3 + $0xbb0] sm:$0xf]  ;;  %v1975_v63 = vld [vmem:[%s19474_s3 + $0xbb8] sm:$0xf] }
 0x1b8   : > { %v1977_v0 = vld [vmem:[%s19474_s3 + $0xbc0] sm:$0xf]  ;;  %1974 = vst [vmem:[%s19481_s29 + $0x5d8] sm:$0xf] %v1973_v62  ;;  %1976 = vst [vmem:[%s19481_s29 + $0x5dc] sm:$0xf] %v1975_v63 }
 0x1b9   : > { %1978 = vst [vmem:[%s19481_s29 + $0x5e0] sm:$0xf] %v1977_v0  ;;  %v1979_v1 = vld [vmem:[%s19474_s3 + $0xbc8] sm:$0xf]  ;;  %v1981_v2 = vld [vmem:[%s19474_s3 + $0xbd0] sm:$0xf] }
 0x1ba   : > { %v1983_v3 = vld [vmem:[%s19474_s3 + $0xbd8] sm:$0xf]  ;;  %1980 = vst [vmem:[%s19481_s29 + $0x5e4] sm:$0xf] %v1979_v1  ;;  %1982 = vst [vmem:[%s19481_s29 + $0x5e8] sm:$0xf] %v1981_v2 }
 0x1bb   : > { %1984 = vst [vmem:[%s19481_s29 + $0x5ec] sm:$0xf] %v1983_v3  ;;  %v1985_v4 = vld [vmem:[%s19474_s3 + $0xbe0] sm:$0xf]  ;;  %v1987_v5 = vld [vmem:[%s19474_s3 + $0xbe8] sm:$0xf] }
 0x1bc   : > { %v1989_v6 = vld [vmem:[%s19474_s3 + $0xbf0] sm:$0xf]  ;;  %1986 = vst [vmem:[%s19481_s29 + $0x5f0] sm:$0xf] %v1985_v4  ;;  %1988 = vst [vmem:[%s19481_s29 + $0x5f4] sm:$0xf] %v1987_v5 }
 0x1bd   : > { %1990 = vst [vmem:[%s19481_s29 + $0x5f8] sm:$0xf] %v1989_v6  ;;  %v1991_v7 = vld [vmem:[%s19474_s3 + $0xbf8] sm:$0xf]  ;;  %v1993_v8 = vld [vmem:[%s19474_s3 + $0xc00] sm:$0xf] }
 0x1be   : > { %v1995_v9 = vld [vmem:[%s19474_s3 + $0xc08] sm:$0xf]  ;;  %1992 = vst [vmem:[%s19481_s29 + $0x5fc] sm:$0xf] %v1991_v7  ;;  %1994 = vst [vmem:[%s19481_s29 + $0x600] sm:$0xf] %v1993_v8 }
 0x1bf   : > { %1996 = vst [vmem:[%s19481_s29 + $0x604] sm:$0xf] %v1995_v9  ;;  %v1997_v10 = vld [vmem:[%s19474_s3 + $0xc10] sm:$0xf]  ;;  %v1999_v11 = vld [vmem:[%s19474_s3 + $0xc18] sm:$0xf] }
 0x1c0   : > { %v2001_v12 = vld [vmem:[%s19474_s3 + $0xc20] sm:$0xf]  ;;  %1998 = vst [vmem:[%s19481_s29 + $0x608] sm:$0xf] %v1997_v10  ;;  %2000 = vst [vmem:[%s19481_s29 + $0x60c] sm:$0xf] %v1999_v11 }
 0x1c1   : > { %2002 = vst [vmem:[%s19481_s29 + $0x610] sm:$0xf] %v2001_v12  ;;  %v2003_v13 = vld [vmem:[%s19474_s3 + $0xc28] sm:$0xf]  ;;  %v2005_v14 = vld [vmem:[%s19474_s3 + $0xc30] sm:$0xf] }
 0x1c2   : > { %v2007_v15 = vld [vmem:[%s19474_s3 + $0xc38] sm:$0xf]  ;;  %2004 = vst [vmem:[%s19481_s29 + $0x614] sm:$0xf] %v2003_v13  ;;  %2006 = vst [vmem:[%s19481_s29 + $0x618] sm:$0xf] %v2005_v14 }
 0x1c3   : > { %2008 = vst [vmem:[%s19481_s29 + $0x61c] sm:$0xf] %v2007_v15  ;;  %v2009_v16 = vld [vmem:[%s19474_s3 + $0xc40] sm:$0xf]  ;;  %v2011_v17 = vld [vmem:[%s19474_s3 + $0xc48] sm:$0xf] }
 0x1c4   : > { %v2013_v18 = vld [vmem:[%s19474_s3 + $0xc50] sm:$0xf]  ;;  %2010 = vst [vmem:[%s19481_s29 + $0x620] sm:$0xf] %v2009_v16  ;;  %2012 = vst [vmem:[%s19481_s29 + $0x624] sm:$0xf] %v2011_v17 }
 0x1c5   : > { %2014 = vst [vmem:[%s19481_s29 + $0x628] sm:$0xf] %v2013_v18  ;;  %v2015_v19 = vld [vmem:[%s19474_s3 + $0xc58] sm:$0xf]  ;;  %v2017_v20 = vld [vmem:[%s19474_s3 + $0xc60] sm:$0xf] }
 0x1c6   : > { %v2019_v21 = vld [vmem:[%s19474_s3 + $0xc68] sm:$0xf]  ;;  %2016 = vst [vmem:[%s19481_s29 + $0x62c] sm:$0xf] %v2015_v19  ;;  %2018 = vst [vmem:[%s19481_s29 + $0x630] sm:$0xf] %v2017_v20 }
 0x1c7   : > { %2020 = vst [vmem:[%s19481_s29 + $0x634] sm:$0xf] %v2019_v21  ;;  %v2021_v22 = vld [vmem:[%s19474_s3 + $0xc70] sm:$0xf]  ;;  %v2023_v23 = vld [vmem:[%s19474_s3 + $0xc78] sm:$0xf] }
 0x1c8   : > { %v2025_v24 = vld [vmem:[%s19474_s3 + $0xc80] sm:$0xf]  ;;  %2022 = vst [vmem:[%s19481_s29 + $0x638] sm:$0xf] %v2021_v22  ;;  %2024 = vst [vmem:[%s19481_s29 + $0x63c] sm:$0xf] %v2023_v23 }
 0x1c9   : > { %2026 = vst [vmem:[%s19481_s29 + $0x640] sm:$0xf] %v2025_v24  ;;  %v2027_v25 = vld [vmem:[%s19474_s3 + $0xc88] sm:$0xf]  ;;  %v2029_v26 = vld [vmem:[%s19474_s3 + $0xc90] sm:$0xf] }
 0x1ca   : > { %v2031_v27 = vld [vmem:[%s19474_s3 + $0xc98] sm:$0xf]  ;;  %2028 = vst [vmem:[%s19481_s29 + $0x644] sm:$0xf] %v2027_v25  ;;  %2030 = vst [vmem:[%s19481_s29 + $0x648] sm:$0xf] %v2029_v26 }
 0x1cb   : > { %2032 = vst [vmem:[%s19481_s29 + $0x64c] sm:$0xf] %v2031_v27  ;;  %v2033_v28 = vld [vmem:[%s19474_s3 + $0xca0] sm:$0xf]  ;;  %v2035_v29 = vld [vmem:[%s19474_s3 + $0xca8] sm:$0xf] }
 0x1cc   : > { %v2037_v30 = vld [vmem:[%s19474_s3 + $0xcb0] sm:$0xf]  ;;  %2034 = vst [vmem:[%s19481_s29 + $0x650] sm:$0xf] %v2033_v28  ;;  %2036 = vst [vmem:[%s19481_s29 + $0x654] sm:$0xf] %v2035_v29 }
 0x1cd   : > { %2038 = vst [vmem:[%s19481_s29 + $0x658] sm:$0xf] %v2037_v30  ;;  %v2039_v31 = vld [vmem:[%s19474_s3 + $0xcb8] sm:$0xf]  ;;  %v2041_v32 = vld [vmem:[%s19474_s3 + $0xcc0] sm:$0xf] }
 0x1ce   : > { %v2043_v33 = vld [vmem:[%s19474_s3 + $0xcc8] sm:$0xf]  ;;  %2040 = vst [vmem:[%s19481_s29 + $0x65c] sm:$0xf] %v2039_v31  ;;  %2042 = vst [vmem:[%s19481_s29 + $0x660] sm:$0xf] %v2041_v32 }
 0x1cf   : > { %2044 = vst [vmem:[%s19481_s29 + $0x664] sm:$0xf] %v2043_v33  ;;  %v2045_v34 = vld [vmem:[%s19474_s3 + $0xcd0] sm:$0xf]  ;;  %v2047_v35 = vld [vmem:[%s19474_s3 + $0xcd8] sm:$0xf] }
 0x1d0   : > { %v2049_v36 = vld [vmem:[%s19474_s3 + $0xce0] sm:$0xf]  ;;  %2046 = vst [vmem:[%s19481_s29 + $0x668] sm:$0xf] %v2045_v34  ;;  %2048 = vst [vmem:[%s19481_s29 + $0x66c] sm:$0xf] %v2047_v35 }
 0x1d1   : > { %2050 = vst [vmem:[%s19481_s29 + $0x670] sm:$0xf] %v2049_v36  ;;  %v2051_v37 = vld [vmem:[%s19474_s3 + $0xce8] sm:$0xf]  ;;  %v2053_v38 = vld [vmem:[%s19474_s3 + $0xcf0] sm:$0xf] }
 0x1d2   : > { %v2055_v39 = vld [vmem:[%s19474_s3 + $0xcf8] sm:$0xf]  ;;  %2052 = vst [vmem:[%s19481_s29 + $0x674] sm:$0xf] %v2051_v37  ;;  %2054 = vst [vmem:[%s19481_s29 + $0x678] sm:$0xf] %v2053_v38 }
 0x1d3   : > { %2056 = vst [vmem:[%s19481_s29 + $0x67c] sm:$0xf] %v2055_v39  ;;  %v2057_v40 = vld [vmem:[%s19474_s3 + $0xd00] sm:$0xf]  ;;  %v2059_v41 = vld [vmem:[%s19474_s3 + $0xd08] sm:$0xf] }
 0x1d4   : > { %v2061_v42 = vld [vmem:[%s19474_s3 + $0xd10] sm:$0xf]  ;;  %2058 = vst [vmem:[%s19481_s29 + $0x680] sm:$0xf] %v2057_v40  ;;  %2060 = vst [vmem:[%s19481_s29 + $0x684] sm:$0xf] %v2059_v41 }
 0x1d5   : > { %2062 = vst [vmem:[%s19481_s29 + $0x688] sm:$0xf] %v2061_v42  ;;  %v2063_v43 = vld [vmem:[%s19474_s3 + $0xd18] sm:$0xf]  ;;  %v2065_v44 = vld [vmem:[%s19474_s3 + $0xd20] sm:$0xf] }
 0x1d6   : > { %v2067_v45 = vld [vmem:[%s19474_s3 + $0xd28] sm:$0xf]  ;;  %2064 = vst [vmem:[%s19481_s29 + $0x68c] sm:$0xf] %v2063_v43  ;;  %2066 = vst [vmem:[%s19481_s29 + $0x690] sm:$0xf] %v2065_v44 }
 0x1d7   : > { %2068 = vst [vmem:[%s19481_s29 + $0x694] sm:$0xf] %v2067_v45  ;;  %v2069_v46 = vld [vmem:[%s19474_s3 + $0xd30] sm:$0xf]  ;;  %v2071_v47 = vld [vmem:[%s19474_s3 + $0xd38] sm:$0xf] }
 0x1d8   : > { %v2073_v48 = vld [vmem:[%s19474_s3 + $0xd40] sm:$0xf]  ;;  %2070 = vst [vmem:[%s19481_s29 + $0x698] sm:$0xf] %v2069_v46  ;;  %2072 = vst [vmem:[%s19481_s29 + $0x69c] sm:$0xf] %v2071_v47 }
 0x1d9   : > { %2074 = vst [vmem:[%s19481_s29 + $0x6a0] sm:$0xf] %v2073_v48  ;;  %v2075_v49 = vld [vmem:[%s19474_s3 + $0xd48] sm:$0xf]  ;;  %v2077_v50 = vld [vmem:[%s19474_s3 + $0xd50] sm:$0xf] }
 0x1da   : > { %v2079_v51 = vld [vmem:[%s19474_s3 + $0xd58] sm:$0xf]  ;;  %2076 = vst [vmem:[%s19481_s29 + $0x6a4] sm:$0xf] %v2075_v49  ;;  %2078 = vst [vmem:[%s19481_s29 + $0x6a8] sm:$0xf] %v2077_v50 }
 0x1db   : > { %2080 = vst [vmem:[%s19481_s29 + $0x6ac] sm:$0xf] %v2079_v51  ;;  %v2081_v52 = vld [vmem:[%s19474_s3 + $0xd60] sm:$0xf]  ;;  %v2083_v53 = vld [vmem:[%s19474_s3 + $0xd68] sm:$0xf] }
 0x1dc   : > { %v2085_v54 = vld [vmem:[%s19474_s3 + $0xd70] sm:$0xf]  ;;  %2082 = vst [vmem:[%s19481_s29 + $0x6b0] sm:$0xf] %v2081_v52  ;;  %2084 = vst [vmem:[%s19481_s29 + $0x6b4] sm:$0xf] %v2083_v53 }
 0x1dd   : > { %2086 = vst [vmem:[%s19481_s29 + $0x6b8] sm:$0xf] %v2085_v54  ;;  %v2087_v55 = vld [vmem:[%s19474_s3 + $0xd78] sm:$0xf]  ;;  %v2089_v56 = vld [vmem:[%s19474_s3 + $0xd80] sm:$0xf] }
 0x1de   : > { %v2091_v57 = vld [vmem:[%s19474_s3 + $0xd88] sm:$0xf]  ;;  %2088 = vst [vmem:[%s19481_s29 + $0x6bc] sm:$0xf] %v2087_v55  ;;  %2090 = vst [vmem:[%s19481_s29 + $0x6c0] sm:$0xf] %v2089_v56 }
 0x1df   : > { %2092 = vst [vmem:[%s19481_s29 + $0x6c4] sm:$0xf] %v2091_v57  ;;  %v2093_v58 = vld [vmem:[%s19474_s3 + $0xd90] sm:$0xf]  ;;  %v2095_v59 = vld [vmem:[%s19474_s3 + $0xd98] sm:$0xf] }
 0x1e0   : > { %v2097_v60 = vld [vmem:[%s19474_s3 + $0xda0] sm:$0xf]  ;;  %2094 = vst [vmem:[%s19481_s29 + $0x6c8] sm:$0xf] %v2093_v58  ;;  %2096 = vst [vmem:[%s19481_s29 + $0x6cc] sm:$0xf] %v2095_v59 }
 0x1e1   : > { %2098 = vst [vmem:[%s19481_s29 + $0x6d0] sm:$0xf] %v2097_v60  ;;  %v2099_v61 = vld [vmem:[%s19474_s3 + $0xda8] sm:$0xf]  ;;  %v2101_v62 = vld [vmem:[%s19474_s3 + $0xdb0] sm:$0xf] }
 0x1e2   : > { %v2103_v63 = vld [vmem:[%s19474_s3 + $0xdb8] sm:$0xf]  ;;  %2100 = vst [vmem:[%s19481_s29 + $0x6d4] sm:$0xf] %v2099_v61  ;;  %2102 = vst [vmem:[%s19481_s29 + $0x6d8] sm:$0xf] %v2101_v62 }
 0x1e3   : > { %2104 = vst [vmem:[%s19481_s29 + $0x6dc] sm:$0xf] %v2103_v63  ;;  %v2105_v0 = vld [vmem:[%s19474_s3 + $0xdc0] sm:$0xf]  ;;  %v2107_v1 = vld [vmem:[%s19474_s3 + $0xdc8] sm:$0xf] }
 0x1e4   : > { %v2109_v2 = vld [vmem:[%s19474_s3 + $0xdd0] sm:$0xf]  ;;  %2106 = vst [vmem:[%s19481_s29 + $0x6e0] sm:$0xf] %v2105_v0  ;;  %2108 = vst [vmem:[%s19481_s29 + $0x6e4] sm:$0xf] %v2107_v1 }
 0x1e5   : > { %2110 = vst [vmem:[%s19481_s29 + $0x6e8] sm:$0xf] %v2109_v2  ;;  %v2111_v3 = vld [vmem:[%s19474_s3 + $0xdd8] sm:$0xf]  ;;  %v2113_v4 = vld [vmem:[%s19474_s3 + $0xde0] sm:$0xf] }
 0x1e6   : > { %v2115_v5 = vld [vmem:[%s19474_s3 + $0xde8] sm:$0xf]  ;;  %2112 = vst [vmem:[%s19481_s29 + $0x6ec] sm:$0xf] %v2111_v3  ;;  %2114 = vst [vmem:[%s19481_s29 + $0x6f0] sm:$0xf] %v2113_v4 }
 0x1e7   : > { %2116 = vst [vmem:[%s19481_s29 + $0x6f4] sm:$0xf] %v2115_v5  ;;  %v2117_v6 = vld [vmem:[%s19474_s3 + $0xdf0] sm:$0xf]  ;;  %v2119_v7 = vld [vmem:[%s19474_s3 + $0xdf8] sm:$0xf] }
 0x1e8   : > { %v2121_v8 = vld [vmem:[%s19474_s3 + $0xe00] sm:$0xf]  ;;  %2118 = vst [vmem:[%s19481_s29 + $0x6f8] sm:$0xf] %v2117_v6  ;;  %2120 = vst [vmem:[%s19481_s29 + $0x6fc] sm:$0xf] %v2119_v7 }
 0x1e9   : > { %2122 = vst [vmem:[%s19481_s29 + $0x700] sm:$0xf] %v2121_v8  ;;  %v2123_v9 = vld [vmem:[%s19474_s3 + $0xe08] sm:$0xf]  ;;  %v2125_v10 = vld [vmem:[%s19474_s3 + $0xe10] sm:$0xf] }
 0x1ea   : > { %v2127_v11 = vld [vmem:[%s19474_s3 + $0xe18] sm:$0xf]  ;;  %2124 = vst [vmem:[%s19481_s29 + $0x704] sm:$0xf] %v2123_v9  ;;  %2126 = vst [vmem:[%s19481_s29 + $0x708] sm:$0xf] %v2125_v10 }
 0x1eb   : > { %2128 = vst [vmem:[%s19481_s29 + $0x70c] sm:$0xf] %v2127_v11  ;;  %v2129_v12 = vld [vmem:[%s19474_s3 + $0xe20] sm:$0xf]  ;;  %v2131_v13 = vld [vmem:[%s19474_s3 + $0xe28] sm:$0xf] }
 0x1ec   : > { %v2133_v14 = vld [vmem:[%s19474_s3 + $0xe30] sm:$0xf]  ;;  %2130 = vst [vmem:[%s19481_s29 + $0x710] sm:$0xf] %v2129_v12  ;;  %2132 = vst [vmem:[%s19481_s29 + $0x714] sm:$0xf] %v2131_v13 }
 0x1ed   : > { %2134 = vst [vmem:[%s19481_s29 + $0x718] sm:$0xf] %v2133_v14  ;;  %v2135_v15 = vld [vmem:[%s19474_s3 + $0xe38] sm:$0xf]  ;;  %v2137_v16 = vld [vmem:[%s19474_s3 + $0xe40] sm:$0xf] }
 0x1ee   : > { %v2139_v17 = vld [vmem:[%s19474_s3 + $0xe48] sm:$0xf]  ;;  %2136 = vst [vmem:[%s19481_s29 + $0x71c] sm:$0xf] %v2135_v15  ;;  %2138 = vst [vmem:[%s19481_s29 + $0x720] sm:$0xf] %v2137_v16 }
 0x1ef   : > { %2140 = vst [vmem:[%s19481_s29 + $0x724] sm:$0xf] %v2139_v17  ;;  %v2141_v18 = vld [vmem:[%s19474_s3 + $0xe50] sm:$0xf]  ;;  %v2143_v19 = vld [vmem:[%s19474_s3 + $0xe58] sm:$0xf] }
 0x1f0   : > { %v2145_v20 = vld [vmem:[%s19474_s3 + $0xe60] sm:$0xf]  ;;  %2142 = vst [vmem:[%s19481_s29 + $0x728] sm:$0xf] %v2141_v18  ;;  %2144 = vst [vmem:[%s19481_s29 + $0x72c] sm:$0xf] %v2143_v19 }
 0x1f1   : > { %2146 = vst [vmem:[%s19481_s29 + $0x730] sm:$0xf] %v2145_v20  ;;  %v2147_v21 = vld [vmem:[%s19474_s3 + $0xe68] sm:$0xf]  ;;  %v2149_v22 = vld [vmem:[%s19474_s3 + $0xe70] sm:$0xf] }
 0x1f2   : > { %v2151_v23 = vld [vmem:[%s19474_s3 + $0xe78] sm:$0xf]  ;;  %2148 = vst [vmem:[%s19481_s29 + $0x734] sm:$0xf] %v2147_v21  ;;  %2150 = vst [vmem:[%s19481_s29 + $0x738] sm:$0xf] %v2149_v22 }
 0x1f3   : > { %2152 = vst [vmem:[%s19481_s29 + $0x73c] sm:$0xf] %v2151_v23  ;;  %v2153_v24 = vld [vmem:[%s19474_s3 + $0xe80] sm:$0xf]  ;;  %v2155_v25 = vld [vmem:[%s19474_s3 + $0xe88] sm:$0xf] }
 0x1f4   : > { %v2157_v26 = vld [vmem:[%s19474_s3 + $0xe90] sm:$0xf]  ;;  %2154 = vst [vmem:[%s19481_s29 + $0x740] sm:$0xf] %v2153_v24  ;;  %2156 = vst [vmem:[%s19481_s29 + $0x744] sm:$0xf] %v2155_v25 }
 0x1f5   : > { %2158 = vst [vmem:[%s19481_s29 + $0x748] sm:$0xf] %v2157_v26  ;;  %v2159_v27 = vld [vmem:[%s19474_s3 + $0xe98] sm:$0xf]  ;;  %v2161_v28 = vld [vmem:[%s19474_s3 + $0xea0] sm:$0xf] }
 0x1f6   : > { %v2163_v29 = vld [vmem:[%s19474_s3 + $0xea8] sm:$0xf]  ;;  %2160 = vst [vmem:[%s19481_s29 + $0x74c] sm:$0xf] %v2159_v27  ;;  %2162 = vst [vmem:[%s19481_s29 + $0x750] sm:$0xf] %v2161_v28 }
 0x1f7   : > { %2164 = vst [vmem:[%s19481_s29 + $0x754] sm:$0xf] %v2163_v29  ;;  %v2165_v30 = vld [vmem:[%s19474_s3 + $0xeb0] sm:$0xf]  ;;  %v2167_v31 = vld [vmem:[%s19474_s3 + $0xeb8] sm:$0xf] }
 0x1f8   : > { %v2169_v32 = vld [vmem:[%s19474_s3 + $0xec0] sm:$0xf]  ;;  %2166 = vst [vmem:[%s19481_s29 + $0x758] sm:$0xf] %v2165_v30  ;;  %2168 = vst [vmem:[%s19481_s29 + $0x75c] sm:$0xf] %v2167_v31 }
 0x1f9   : > { %2170 = vst [vmem:[%s19481_s29 + $0x760] sm:$0xf] %v2169_v32  ;;  %v2171_v33 = vld [vmem:[%s19474_s3 + $0xec8] sm:$0xf]  ;;  %v2173_v34 = vld [vmem:[%s19474_s3 + $0xed0] sm:$0xf] }
 0x1fa   : > { %v2175_v35 = vld [vmem:[%s19474_s3 + $0xed8] sm:$0xf]  ;;  %2172 = vst [vmem:[%s19481_s29 + $0x764] sm:$0xf] %v2171_v33  ;;  %2174 = vst [vmem:[%s19481_s29 + $0x768] sm:$0xf] %v2173_v34 }
 0x1fb   : > { %2176 = vst [vmem:[%s19481_s29 + $0x76c] sm:$0xf] %v2175_v35  ;;  %v2177_v36 = vld [vmem:[%s19474_s3 + $0xee0] sm:$0xf]  ;;  %v2179_v37 = vld [vmem:[%s19474_s3 + $0xee8] sm:$0xf] }
 0x1fc   : > { %v2181_v38 = vld [vmem:[%s19474_s3 + $0xef0] sm:$0xf]  ;;  %2178 = vst [vmem:[%s19481_s29 + $0x770] sm:$0xf] %v2177_v36  ;;  %2180 = vst [vmem:[%s19481_s29 + $0x774] sm:$0xf] %v2179_v37 }
 0x1fd   : > { %2182 = vst [vmem:[%s19481_s29 + $0x778] sm:$0xf] %v2181_v38  ;;  %v2183_v39 = vld [vmem:[%s19474_s3 + $0xef8] sm:$0xf]  ;;  %v2185_v40 = vld [vmem:[%s19474_s3 + $0xf00] sm:$0xf] }
 0x1fe   : > { %v2187_v41 = vld [vmem:[%s19474_s3 + $0xf08] sm:$0xf]  ;;  %2184 = vst [vmem:[%s19481_s29 + $0x77c] sm:$0xf] %v2183_v39  ;;  %2186 = vst [vmem:[%s19481_s29 + $0x780] sm:$0xf] %v2185_v40 }
 0x1ff   : > { %2188 = vst [vmem:[%s19481_s29 + $0x784] sm:$0xf] %v2187_v41  ;;  %v2189_v42 = vld [vmem:[%s19474_s3 + $0xf10] sm:$0xf]  ;;  %v2191_v43 = vld [vmem:[%s19474_s3 + $0xf18] sm:$0xf] }
 0x200   : > { %v2193_v44 = vld [vmem:[%s19474_s3 + $0xf20] sm:$0xf]  ;;  %2190 = vst [vmem:[%s19481_s29 + $0x788] sm:$0xf] %v2189_v42  ;;  %2192 = vst [vmem:[%s19481_s29 + $0x78c] sm:$0xf] %v2191_v43 }
 0x201   : > { %2194 = vst [vmem:[%s19481_s29 + $0x790] sm:$0xf] %v2193_v44  ;;  %v2195_v45 = vld [vmem:[%s19474_s3 + $0xf28] sm:$0xf]  ;;  %v2197_v46 = vld [vmem:[%s19474_s3 + $0xf30] sm:$0xf] }
 0x202   : > { %v2199_v47 = vld [vmem:[%s19474_s3 + $0xf38] sm:$0xf]  ;;  %2196 = vst [vmem:[%s19481_s29 + $0x794] sm:$0xf] %v2195_v45  ;;  %2198 = vst [vmem:[%s19481_s29 + $0x798] sm:$0xf] %v2197_v46 }
 0x203   : > { %2200 = vst [vmem:[%s19481_s29 + $0x79c] sm:$0xf] %v2199_v47  ;;  %v2201_v48 = vld [vmem:[%s19474_s3 + $0xf40] sm:$0xf]  ;;  %v2203_v49 = vld [vmem:[%s19474_s3 + $0xf48] sm:$0xf] }
 0x204   : > { %v2205_v50 = vld [vmem:[%s19474_s3 + $0xf50] sm:$0xf]  ;;  %2202 = vst [vmem:[%s19481_s29 + $0x7a0] sm:$0xf] %v2201_v48  ;;  %2204 = vst [vmem:[%s19481_s29 + $0x7a4] sm:$0xf] %v2203_v49 }
 0x205   : > { %2206 = vst [vmem:[%s19481_s29 + $0x7a8] sm:$0xf] %v2205_v50  ;;  %v2207_v51 = vld [vmem:[%s19474_s3 + $0xf58] sm:$0xf]  ;;  %v2209_v52 = vld [vmem:[%s19474_s3 + $0xf60] sm:$0xf] }
 0x206   : > { %v2211_v53 = vld [vmem:[%s19474_s3 + $0xf68] sm:$0xf]  ;;  %2208 = vst [vmem:[%s19481_s29 + $0x7ac] sm:$0xf] %v2207_v51  ;;  %2210 = vst [vmem:[%s19481_s29 + $0x7b0] sm:$0xf] %v2209_v52 }
 0x207   : > { %2212 = vst [vmem:[%s19481_s29 + $0x7b4] sm:$0xf] %v2211_v53  ;;  %v2213_v54 = vld [vmem:[%s19474_s3 + $0xf70] sm:$0xf]  ;;  %v2215_v55 = vld [vmem:[%s19474_s3 + $0xf78] sm:$0xf] }
 0x208   : > { %v2217_v56 = vld [vmem:[%s19474_s3 + $0xf80] sm:$0xf]  ;;  %2214 = vst [vmem:[%s19481_s29 + $0x7b8] sm:$0xf] %v2213_v54  ;;  %2216 = vst [vmem:[%s19481_s29 + $0x7bc] sm:$0xf] %v2215_v55 }
 0x209   : > { %2218 = vst [vmem:[%s19481_s29 + $0x7c0] sm:$0xf] %v2217_v56  ;;  %v2219_v57 = vld [vmem:[%s19474_s3 + $0xf88] sm:$0xf]  ;;  %v2221_v58 = vld [vmem:[%s19474_s3 + $0xf90] sm:$0xf] }
 0x20a   : > { %v2223_v59 = vld [vmem:[%s19474_s3 + $0xf98] sm:$0xf]  ;;  %2220 = vst [vmem:[%s19481_s29 + $0x7c4] sm:$0xf] %v2219_v57  ;;  %2222 = vst [vmem:[%s19481_s29 + $0x7c8] sm:$0xf] %v2221_v58 }
 0x20b   : > { %2224 = vst [vmem:[%s19481_s29 + $0x7cc] sm:$0xf] %v2223_v59  ;;  %v2225_v60 = vld [vmem:[%s19474_s3 + $0xfa0] sm:$0xf]  ;;  %v2227_v61 = vld [vmem:[%s19474_s3 + $0xfa8] sm:$0xf] }
 0x20c   : > { %v2229_v62 = vld [vmem:[%s19474_s3 + $0xfb0] sm:$0xf]  ;;  %2226 = vst [vmem:[%s19481_s29 + $0x7d0] sm:$0xf] %v2225_v60  ;;  %2228 = vst [vmem:[%s19481_s29 + $0x7d4] sm:$0xf] %v2227_v61 }
 0x20d   : > { %2230 = vst [vmem:[%s19481_s29 + $0x7d8] sm:$0xf] %v2229_v62  ;;  %v2231_v63 = vld [vmem:[%s19474_s3 + $0xfb8] sm:$0xf]  ;;  %v2233_v0 = vld [vmem:[%s19474_s3 + $0xfc0] sm:$0xf] }
 0x20e   : > { %v2235_v1 = vld [vmem:[%s19474_s3 + $0xfc8] sm:$0xf]  ;;  %2232 = vst [vmem:[%s19481_s29 + $0x7dc] sm:$0xf] %v2231_v63  ;;  %2234 = vst [vmem:[%s19481_s29 + $0x7e0] sm:$0xf] %v2233_v0 }
 0x20f   : > { %2236 = vst [vmem:[%s19481_s29 + $0x7e4] sm:$0xf] %v2235_v1  ;;  %v2237_v2 = vld [vmem:[%s19474_s3 + $0xfd0] sm:$0xf]  ;;  %v2239_v3 = vld [vmem:[%s19474_s3 + $0xfd8] sm:$0xf] }
 0x210   : > { %v2241_v4 = vld [vmem:[%s19474_s3 + $0xfe0] sm:$0xf]  ;;  %2238 = vst [vmem:[%s19481_s29 + $0x7e8] sm:$0xf] %v2237_v2  ;;  %2240 = vst [vmem:[%s19481_s29 + $0x7ec] sm:$0xf] %v2239_v3 }
 0x211   : > { %2242 = vst [vmem:[%s19481_s29 + $0x7f0] sm:$0xf] %v2241_v4  ;;  %v2243_v5 = vld [vmem:[%s19474_s3 + $0xfe8] sm:$0xf]  ;;  %v2245_v6 = vld [vmem:[%s19474_s3 + $0xff0] sm:$0xf] }
 0x212   : > { %v2247_v7 = vld [vmem:[%s19474_s3 + $0xff8] sm:$0xf]  ;;  %2244 = vst [vmem:[%s19481_s29 + $0x7f4] sm:$0xf] %v2243_v5  ;;  %2246 = vst [vmem:[%s19481_s29 + $0x7f8] sm:$0xf] %v2245_v6 }
 0x213   : > { %2248 = vst [vmem:[%s19481_s29 + $0x7fc] sm:$0xf] %v2247_v7  ;;  %v2249_v8 = vld [vmem:[%s19474_s3 + $0x1000] sm:$0xf]  ;;  %v2251_v9 = vld [vmem:[%s19474_s3 + $0x1008] sm:$0xf] }
 0x214   : > { %v2253_v10 = vld [vmem:[%s19474_s3 + $0x1010] sm:$0xf]  ;;  %2250 = vst [vmem:[%s19481_s29 + $0x800] sm:$0xf] %v2249_v8  ;;  %2252 = vst [vmem:[%s19481_s29 + $0x804] sm:$0xf] %v2251_v9 }
 0x215   : > { %2254 = vst [vmem:[%s19481_s29 + $0x808] sm:$0xf] %v2253_v10  ;;  %v2255_v11 = vld [vmem:[%s19474_s3 + $0x1018] sm:$0xf]  ;;  %v2257_v12 = vld [vmem:[%s19474_s3 + $0x1020] sm:$0xf] }
 0x216   : > { %v2259_v13 = vld [vmem:[%s19474_s3 + $0x1028] sm:$0xf]  ;;  %2256 = vst [vmem:[%s19481_s29 + $0x80c] sm:$0xf] %v2255_v11  ;;  %2258 = vst [vmem:[%s19481_s29 + $0x810] sm:$0xf] %v2257_v12 }
 0x217   : > { %2260 = vst [vmem:[%s19481_s29 + $0x814] sm:$0xf] %v2259_v13  ;;  %v2261_v14 = vld [vmem:[%s19474_s3 + $0x1030] sm:$0xf]  ;;  %v2263_v15 = vld [vmem:[%s19474_s3 + $0x1038] sm:$0xf] }
 0x218   : > { %v2265_v16 = vld [vmem:[%s19474_s3 + $0x1040] sm:$0xf]  ;;  %2262 = vst [vmem:[%s19481_s29 + $0x818] sm:$0xf] %v2261_v14  ;;  %2264 = vst [vmem:[%s19481_s29 + $0x81c] sm:$0xf] %v2263_v15 }
 0x219   : > { %2266 = vst [vmem:[%s19481_s29 + $0x820] sm:$0xf] %v2265_v16  ;;  %v2267_v17 = vld [vmem:[%s19474_s3 + $0x1048] sm:$0xf]  ;;  %v2269_v18 = vld [vmem:[%s19474_s3 + $0x1050] sm:$0xf] }
 0x21a   : > { %v2271_v19 = vld [vmem:[%s19474_s3 + $0x1058] sm:$0xf]  ;;  %2268 = vst [vmem:[%s19481_s29 + $0x824] sm:$0xf] %v2267_v17  ;;  %2270 = vst [vmem:[%s19481_s29 + $0x828] sm:$0xf] %v2269_v18 }
 0x21b   : > { %2272 = vst [vmem:[%s19481_s29 + $0x82c] sm:$0xf] %v2271_v19  ;;  %v2273_v20 = vld [vmem:[%s19474_s3 + $0x1060] sm:$0xf]  ;;  %v2275_v21 = vld [vmem:[%s19474_s3 + $0x1068] sm:$0xf] }
 0x21c   : > { %v2277_v22 = vld [vmem:[%s19474_s3 + $0x1070] sm:$0xf]  ;;  %2274 = vst [vmem:[%s19481_s29 + $0x830] sm:$0xf] %v2273_v20  ;;  %2276 = vst [vmem:[%s19481_s29 + $0x834] sm:$0xf] %v2275_v21 }
 0x21d   : > { %2278 = vst [vmem:[%s19481_s29 + $0x838] sm:$0xf] %v2277_v22  ;;  %v2279_v23 = vld [vmem:[%s19474_s3 + $0x1078] sm:$0xf]  ;;  %v2281_v24 = vld [vmem:[%s19474_s3 + $0x1080] sm:$0xf] }
 0x21e   : > { %v2283_v25 = vld [vmem:[%s19474_s3 + $0x1088] sm:$0xf]  ;;  %2280 = vst [vmem:[%s19481_s29 + $0x83c] sm:$0xf] %v2279_v23  ;;  %2282 = vst [vmem:[%s19481_s29 + $0x840] sm:$0xf] %v2281_v24 }
 0x21f   : > { %2284 = vst [vmem:[%s19481_s29 + $0x844] sm:$0xf] %v2283_v25  ;;  %v2285_v26 = vld [vmem:[%s19474_s3 + $0x1090] sm:$0xf]  ;;  %v2287_v27 = vld [vmem:[%s19474_s3 + $0x1098] sm:$0xf] }
 0x220   : > { %v2289_v28 = vld [vmem:[%s19474_s3 + $0x10a0] sm:$0xf]  ;;  %2286 = vst [vmem:[%s19481_s29 + $0x848] sm:$0xf] %v2285_v26  ;;  %2288 = vst [vmem:[%s19481_s29 + $0x84c] sm:$0xf] %v2287_v27 }
 0x221   : > { %2290 = vst [vmem:[%s19481_s29 + $0x850] sm:$0xf] %v2289_v28  ;;  %v2291_v29 = vld [vmem:[%s19474_s3 + $0x10a8] sm:$0xf]  ;;  %v2293_v30 = vld [vmem:[%s19474_s3 + $0x10b0] sm:$0xf] }
 0x222   : > { %v2295_v31 = vld [vmem:[%s19474_s3 + $0x10b8] sm:$0xf]  ;;  %2292 = vst [vmem:[%s19481_s29 + $0x854] sm:$0xf] %v2291_v29  ;;  %2294 = vst [vmem:[%s19481_s29 + $0x858] sm:$0xf] %v2293_v30 }
 0x223   : > { %2296 = vst [vmem:[%s19481_s29 + $0x85c] sm:$0xf] %v2295_v31  ;;  %v2297_v32 = vld [vmem:[%s19474_s3 + $0x10c0] sm:$0xf]  ;;  %v2299_v33 = vld [vmem:[%s19474_s3 + $0x10c8] sm:$0xf] }
 0x224   : > { %v2301_v34 = vld [vmem:[%s19474_s3 + $0x10d0] sm:$0xf]  ;;  %2298 = vst [vmem:[%s19481_s29 + $0x860] sm:$0xf] %v2297_v32  ;;  %2300 = vst [vmem:[%s19481_s29 + $0x864] sm:$0xf] %v2299_v33 }
 0x225   : > { %2302 = vst [vmem:[%s19481_s29 + $0x868] sm:$0xf] %v2301_v34  ;;  %v2303_v35 = vld [vmem:[%s19474_s3 + $0x10d8] sm:$0xf]  ;;  %v2305_v36 = vld [vmem:[%s19474_s3 + $0x10e0] sm:$0xf] }
 0x226   : > { %v2307_v37 = vld [vmem:[%s19474_s3 + $0x10e8] sm:$0xf]  ;;  %2304 = vst [vmem:[%s19481_s29 + $0x86c] sm:$0xf] %v2303_v35  ;;  %2306 = vst [vmem:[%s19481_s29 + $0x870] sm:$0xf] %v2305_v36 }
 0x227   : > { %2308 = vst [vmem:[%s19481_s29 + $0x874] sm:$0xf] %v2307_v37  ;;  %v2309_v38 = vld [vmem:[%s19474_s3 + $0x10f0] sm:$0xf]  ;;  %v2311_v39 = vld [vmem:[%s19474_s3 + $0x10f8] sm:$0xf] }
 0x228   : > { %v2313_v40 = vld [vmem:[%s19474_s3 + $0x1100] sm:$0xf]  ;;  %2310 = vst [vmem:[%s19481_s29 + $0x878] sm:$0xf] %v2309_v38  ;;  %2312 = vst [vmem:[%s19481_s29 + $0x87c] sm:$0xf] %v2311_v39 }
 0x229   : > { %2314 = vst [vmem:[%s19481_s29 + $0x880] sm:$0xf] %v2313_v40  ;;  %v2315_v41 = vld [vmem:[%s19474_s3 + $0x1108] sm:$0xf]  ;;  %v2317_v42 = vld [vmem:[%s19474_s3 + $0x1110] sm:$0xf] }
 0x22a   : > { %v2319_v43 = vld [vmem:[%s19474_s3 + $0x1118] sm:$0xf]  ;;  %2316 = vst [vmem:[%s19481_s29 + $0x884] sm:$0xf] %v2315_v41  ;;  %2318 = vst [vmem:[%s19481_s29 + $0x888] sm:$0xf] %v2317_v42 }
 0x22b   : > { %2320 = vst [vmem:[%s19481_s29 + $0x88c] sm:$0xf] %v2319_v43  ;;  %v2321_v44 = vld [vmem:[%s19474_s3 + $0x1120] sm:$0xf]  ;;  %v2323_v45 = vld [vmem:[%s19474_s3 + $0x1128] sm:$0xf] }
 0x22c   : > { %v2325_v46 = vld [vmem:[%s19474_s3 + $0x1130] sm:$0xf]  ;;  %2322 = vst [vmem:[%s19481_s29 + $0x890] sm:$0xf] %v2321_v44  ;;  %2324 = vst [vmem:[%s19481_s29 + $0x894] sm:$0xf] %v2323_v45 }
 0x22d   : > { %2326 = vst [vmem:[%s19481_s29 + $0x898] sm:$0xf] %v2325_v46  ;;  %v2327_v47 = vld [vmem:[%s19474_s3 + $0x1138] sm:$0xf]  ;;  %v2329_v48 = vld [vmem:[%s19474_s3 + $0x1140] sm:$0xf] }
 0x22e   : > { %v2331_v49 = vld [vmem:[%s19474_s3 + $0x1148] sm:$0xf]  ;;  %2328 = vst [vmem:[%s19481_s29 + $0x89c] sm:$0xf] %v2327_v47  ;;  %2330 = vst [vmem:[%s19481_s29 + $0x8a0] sm:$0xf] %v2329_v48 }
 0x22f   : > { %2332 = vst [vmem:[%s19481_s29 + $0x8a4] sm:$0xf] %v2331_v49  ;;  %v2333_v50 = vld [vmem:[%s19474_s3 + $0x1150] sm:$0xf]  ;;  %v2335_v51 = vld [vmem:[%s19474_s3 + $0x1158] sm:$0xf] }
 0x230   : > { %v2337_v52 = vld [vmem:[%s19474_s3 + $0x1160] sm:$0xf]  ;;  %2334 = vst [vmem:[%s19481_s29 + $0x8a8] sm:$0xf] %v2333_v50  ;;  %2336 = vst [vmem:[%s19481_s29 + $0x8ac] sm:$0xf] %v2335_v51 }
 0x231   : > { %2338 = vst [vmem:[%s19481_s29 + $0x8b0] sm:$0xf] %v2337_v52  ;;  %v2339_v53 = vld [vmem:[%s19474_s3 + $0x1168] sm:$0xf]  ;;  %v2341_v54 = vld [vmem:[%s19474_s3 + $0x1170] sm:$0xf] }
 0x232   : > { %v2343_v55 = vld [vmem:[%s19474_s3 + $0x1178] sm:$0xf]  ;;  %2340 = vst [vmem:[%s19481_s29 + $0x8b4] sm:$0xf] %v2339_v53  ;;  %2342 = vst [vmem:[%s19481_s29 + $0x8b8] sm:$0xf] %v2341_v54 }
 0x233   : > { %2344 = vst [vmem:[%s19481_s29 + $0x8bc] sm:$0xf] %v2343_v55  ;;  %v2345_v56 = vld [vmem:[%s19474_s3 + $0x1180] sm:$0xf]  ;;  %v2347_v57 = vld [vmem:[%s19474_s3 + $0x1188] sm:$0xf] }
 0x234   : > { %v2349_v58 = vld [vmem:[%s19474_s3 + $0x1190] sm:$0xf]  ;;  %2346 = vst [vmem:[%s19481_s29 + $0x8c0] sm:$0xf] %v2345_v56  ;;  %2348 = vst [vmem:[%s19481_s29 + $0x8c4] sm:$0xf] %v2347_v57 }
 0x235   : > { %2350 = vst [vmem:[%s19481_s29 + $0x8c8] sm:$0xf] %v2349_v58  ;;  %v2351_v59 = vld [vmem:[%s19474_s3 + $0x1198] sm:$0xf]  ;;  %v2353_v60 = vld [vmem:[%s19474_s3 + $0x11a0] sm:$0xf] }
 0x236   : > { %v2355_v61 = vld [vmem:[%s19474_s3 + $0x11a8] sm:$0xf]  ;;  %2352 = vst [vmem:[%s19481_s29 + $0x8cc] sm:$0xf] %v2351_v59  ;;  %2354 = vst [vmem:[%s19481_s29 + $0x8d0] sm:$0xf] %v2353_v60 }
 0x237   : > { %2356 = vst [vmem:[%s19481_s29 + $0x8d4] sm:$0xf] %v2355_v61  ;;  %v2357_v62 = vld [vmem:[%s19474_s3 + $0x11b0] sm:$0xf]  ;;  %v2359_v63 = vld [vmem:[%s19474_s3 + $0x11b8] sm:$0xf] }
 0x238   : > { %v2361_v0 = vld [vmem:[%s19474_s3 + $0x11c0] sm:$0xf]  ;;  %2358 = vst [vmem:[%s19481_s29 + $0x8d8] sm:$0xf] %v2357_v62  ;;  %2360 = vst [vmem:[%s19481_s29 + $0x8dc] sm:$0xf] %v2359_v63 }
 0x239   : > { %2362 = vst [vmem:[%s19481_s29 + $0x8e0] sm:$0xf] %v2361_v0  ;;  %v2363_v1 = vld [vmem:[%s19474_s3 + $0x11c8] sm:$0xf]  ;;  %v2365_v2 = vld [vmem:[%s19474_s3 + $0x11d0] sm:$0xf] }
 0x23a   : > { %v2367_v3 = vld [vmem:[%s19474_s3 + $0x11d8] sm:$0xf]  ;;  %2364 = vst [vmem:[%s19481_s29 + $0x8e4] sm:$0xf] %v2363_v1  ;;  %2366 = vst [vmem:[%s19481_s29 + $0x8e8] sm:$0xf] %v2365_v2 }
 0x23b   : > { %2368 = vst [vmem:[%s19481_s29 + $0x8ec] sm:$0xf] %v2367_v3  ;;  %v2369_v4 = vld [vmem:[%s19474_s3 + $0x11e0] sm:$0xf]  ;;  %v2371_v5 = vld [vmem:[%s19474_s3 + $0x11e8] sm:$0xf] }
 0x23c   : > { %v2373_v6 = vld [vmem:[%s19474_s3 + $0x11f0] sm:$0xf]  ;;  %2370 = vst [vmem:[%s19481_s29 + $0x8f0] sm:$0xf] %v2369_v4  ;;  %2372 = vst [vmem:[%s19481_s29 + $0x8f4] sm:$0xf] %v2371_v5 }
 0x23d   : > { %2374 = vst [vmem:[%s19481_s29 + $0x8f8] sm:$0xf] %v2373_v6  ;;  %v2375_v7 = vld [vmem:[%s19474_s3 + $0x11f8] sm:$0xf]  ;;  %v2377_v8 = vld [vmem:[%s19474_s3 + $0x1200] sm:$0xf] }
 0x23e   : > { %v2379_v9 = vld [vmem:[%s19474_s3 + $0x1208] sm:$0xf]  ;;  %2376 = vst [vmem:[%s19481_s29 + $0x8fc] sm:$0xf] %v2375_v7  ;;  %2378 = vst [vmem:[%s19481_s29 + $0x900] sm:$0xf] %v2377_v8 }
 0x23f   : > { %2380 = vst [vmem:[%s19481_s29 + $0x904] sm:$0xf] %v2379_v9  ;;  %v2381_v10 = vld [vmem:[%s19474_s3 + $0x1210] sm:$0xf]  ;;  %v2383_v11 = vld [vmem:[%s19474_s3 + $0x1218] sm:$0xf] }
 0x240   : > { %v2385_v12 = vld [vmem:[%s19474_s3 + $0x1220] sm:$0xf]  ;;  %2382 = vst [vmem:[%s19481_s29 + $0x908] sm:$0xf] %v2381_v10  ;;  %2384 = vst [vmem:[%s19481_s29 + $0x90c] sm:$0xf] %v2383_v11 }
 0x241   : > { %2386 = vst [vmem:[%s19481_s29 + $0x910] sm:$0xf] %v2385_v12  ;;  %v2387_v13 = vld [vmem:[%s19474_s3 + $0x1228] sm:$0xf]  ;;  %v2389_v14 = vld [vmem:[%s19474_s3 + $0x1230] sm:$0xf] }
 0x242   : > { %v2391_v15 = vld [vmem:[%s19474_s3 + $0x1238] sm:$0xf]  ;;  %2388 = vst [vmem:[%s19481_s29 + $0x914] sm:$0xf] %v2387_v13  ;;  %2390 = vst [vmem:[%s19481_s29 + $0x918] sm:$0xf] %v2389_v14 }
 0x243   : > { %2392 = vst [vmem:[%s19481_s29 + $0x91c] sm:$0xf] %v2391_v15  ;;  %v2393_v16 = vld [vmem:[%s19474_s3 + $0x1240] sm:$0xf]  ;;  %v2395_v17 = vld [vmem:[%s19474_s3 + $0x1248] sm:$0xf] }
 0x244   : > { %v2397_v18 = vld [vmem:[%s19474_s3 + $0x1250] sm:$0xf]  ;;  %2394 = vst [vmem:[%s19481_s29 + $0x920] sm:$0xf] %v2393_v16  ;;  %2396 = vst [vmem:[%s19481_s29 + $0x924] sm:$0xf] %v2395_v17 }
 0x245   : > { %2398 = vst [vmem:[%s19481_s29 + $0x928] sm:$0xf] %v2397_v18  ;;  %v2399_v19 = vld [vmem:[%s19474_s3 + $0x1258] sm:$0xf]  ;;  %v2401_v20 = vld [vmem:[%s19474_s3 + $0x1260] sm:$0xf] }
 0x246   : > { %v2403_v21 = vld [vmem:[%s19474_s3 + $0x1268] sm:$0xf]  ;;  %2400 = vst [vmem:[%s19481_s29 + $0x92c] sm:$0xf] %v2399_v19  ;;  %2402 = vst [vmem:[%s19481_s29 + $0x930] sm:$0xf] %v2401_v20 }
 0x247   : > { %2404 = vst [vmem:[%s19481_s29 + $0x934] sm:$0xf] %v2403_v21  ;;  %v2405_v22 = vld [vmem:[%s19474_s3 + $0x1270] sm:$0xf]  ;;  %v2407_v23 = vld [vmem:[%s19474_s3 + $0x1278] sm:$0xf] }
 0x248   : > { %v2409_v24 = vld [vmem:[%s19474_s3 + $0x1280] sm:$0xf]  ;;  %2406 = vst [vmem:[%s19481_s29 + $0x938] sm:$0xf] %v2405_v22  ;;  %2408 = vst [vmem:[%s19481_s29 + $0x93c] sm:$0xf] %v2407_v23 }
 0x249   : > { %2410 = vst [vmem:[%s19481_s29 + $0x940] sm:$0xf] %v2409_v24  ;;  %v2411_v25 = vld [vmem:[%s19474_s3 + $0x1288] sm:$0xf]  ;;  %v2413_v26 = vld [vmem:[%s19474_s3 + $0x1290] sm:$0xf] }
 0x24a   : > { %v2415_v27 = vld [vmem:[%s19474_s3 + $0x1298] sm:$0xf]  ;;  %2412 = vst [vmem:[%s19481_s29 + $0x944] sm:$0xf] %v2411_v25  ;;  %2414 = vst [vmem:[%s19481_s29 + $0x948] sm:$0xf] %v2413_v26 }
 0x24b   : > { %2416 = vst [vmem:[%s19481_s29 + $0x94c] sm:$0xf] %v2415_v27  ;;  %v2417_v28 = vld [vmem:[%s19474_s3 + $0x12a0] sm:$0xf]  ;;  %v2419_v29 = vld [vmem:[%s19474_s3 + $0x12a8] sm:$0xf] }
 0x24c   : > { %v2421_v30 = vld [vmem:[%s19474_s3 + $0x12b0] sm:$0xf]  ;;  %2418 = vst [vmem:[%s19481_s29 + $0x950] sm:$0xf] %v2417_v28  ;;  %2420 = vst [vmem:[%s19481_s29 + $0x954] sm:$0xf] %v2419_v29 }
 0x24d   : > { %2422 = vst [vmem:[%s19481_s29 + $0x958] sm:$0xf] %v2421_v30  ;;  %v2423_v31 = vld [vmem:[%s19474_s3 + $0x12b8] sm:$0xf]  ;;  %v2425_v32 = vld [vmem:[%s19474_s3 + $0x12c0] sm:$0xf] }
 0x24e   : > { %v2427_v33 = vld [vmem:[%s19474_s3 + $0x12c8] sm:$0xf]  ;;  %2424 = vst [vmem:[%s19481_s29 + $0x95c] sm:$0xf] %v2423_v31  ;;  %2426 = vst [vmem:[%s19481_s29 + $0x960] sm:$0xf] %v2425_v32 }
 0x24f   : > { %2428 = vst [vmem:[%s19481_s29 + $0x964] sm:$0xf] %v2427_v33  ;;  %v2429_v34 = vld [vmem:[%s19474_s3 + $0x12d0] sm:$0xf]  ;;  %v2431_v35 = vld [vmem:[%s19474_s3 + $0x12d8] sm:$0xf] }
 0x250   : > { %v2433_v36 = vld [vmem:[%s19474_s3 + $0x12e0] sm:$0xf]  ;;  %2430 = vst [vmem:[%s19481_s29 + $0x968] sm:$0xf] %v2429_v34  ;;  %2432 = vst [vmem:[%s19481_s29 + $0x96c] sm:$0xf] %v2431_v35 }
 0x251   : > { %2434 = vst [vmem:[%s19481_s29 + $0x970] sm:$0xf] %v2433_v36  ;;  %v2435_v37 = vld [vmem:[%s19474_s3 + $0x12e8] sm:$0xf]  ;;  %v2437_v38 = vld [vmem:[%s19474_s3 + $0x12f0] sm:$0xf] }
 0x252   : > { %v2439_v39 = vld [vmem:[%s19474_s3 + $0x12f8] sm:$0xf]  ;;  %2436 = vst [vmem:[%s19481_s29 + $0x974] sm:$0xf] %v2435_v37  ;;  %2438 = vst [vmem:[%s19481_s29 + $0x978] sm:$0xf] %v2437_v38 }
 0x253   : > { %2440 = vst [vmem:[%s19481_s29 + $0x97c] sm:$0xf] %v2439_v39  ;;  %v2441_v40 = vld [vmem:[%s19474_s3 + $0x1300] sm:$0xf]  ;;  %v2443_v41 = vld [vmem:[%s19474_s3 + $0x1308] sm:$0xf] }
 0x254   : > { %v2445_v42 = vld [vmem:[%s19474_s3 + $0x1310] sm:$0xf]  ;;  %2442 = vst [vmem:[%s19481_s29 + $0x980] sm:$0xf] %v2441_v40  ;;  %2444 = vst [vmem:[%s19481_s29 + $0x984] sm:$0xf] %v2443_v41 }
 0x255   : > { %2446 = vst [vmem:[%s19481_s29 + $0x988] sm:$0xf] %v2445_v42  ;;  %v2447_v43 = vld [vmem:[%s19474_s3 + $0x1318] sm:$0xf]  ;;  %v2449_v44 = vld [vmem:[%s19474_s3 + $0x1320] sm:$0xf] }
 0x256   : > { %v2451_v45 = vld [vmem:[%s19474_s3 + $0x1328] sm:$0xf]  ;;  %2448 = vst [vmem:[%s19481_s29 + $0x98c] sm:$0xf] %v2447_v43  ;;  %2450 = vst [vmem:[%s19481_s29 + $0x990] sm:$0xf] %v2449_v44 }
 0x257   : > { %2452 = vst [vmem:[%s19481_s29 + $0x994] sm:$0xf] %v2451_v45  ;;  %v2453_v46 = vld [vmem:[%s19474_s3 + $0x1330] sm:$0xf]  ;;  %v2455_v47 = vld [vmem:[%s19474_s3 + $0x1338] sm:$0xf] }
 0x258   : > { %v2457_v48 = vld [vmem:[%s19474_s3 + $0x1340] sm:$0xf]  ;;  %2454 = vst [vmem:[%s19481_s29 + $0x998] sm:$0xf] %v2453_v46  ;;  %2456 = vst [vmem:[%s19481_s29 + $0x99c] sm:$0xf] %v2455_v47 }
 0x259   : > { %2458 = vst [vmem:[%s19481_s29 + $0x9a0] sm:$0xf] %v2457_v48  ;;  %v2459_v49 = vld [vmem:[%s19474_s3 + $0x1348] sm:$0xf]  ;;  %v2461_v50 = vld [vmem:[%s19474_s3 + $0x1350] sm:$0xf] }
 0x25a   : > { %v2463_v51 = vld [vmem:[%s19474_s3 + $0x1358] sm:$0xf]  ;;  %2460 = vst [vmem:[%s19481_s29 + $0x9a4] sm:$0xf] %v2459_v49  ;;  %2462 = vst [vmem:[%s19481_s29 + $0x9a8] sm:$0xf] %v2461_v50 }
 0x25b   : > { %2464 = vst [vmem:[%s19481_s29 + $0x9ac] sm:$0xf] %v2463_v51  ;;  %v2465_v52 = vld [vmem:[%s19474_s3 + $0x1360] sm:$0xf]  ;;  %v2467_v53 = vld [vmem:[%s19474_s3 + $0x1368] sm:$0xf] }
 0x25c   : > { %v2469_v54 = vld [vmem:[%s19474_s3 + $0x1370] sm:$0xf]  ;;  %2466 = vst [vmem:[%s19481_s29 + $0x9b0] sm:$0xf] %v2465_v52  ;;  %2468 = vst [vmem:[%s19481_s29 + $0x9b4] sm:$0xf] %v2467_v53 }
 0x25d   : > { %2470 = vst [vmem:[%s19481_s29 + $0x9b8] sm:$0xf] %v2469_v54  ;;  %v2471_v55 = vld [vmem:[%s19474_s3 + $0x1378] sm:$0xf]  ;;  %v2473_v56 = vld [vmem:[%s19474_s3 + $0x1380] sm:$0xf] }
 0x25e   : > { %v2475_v57 = vld [vmem:[%s19474_s3 + $0x1388] sm:$0xf]  ;;  %2472 = vst [vmem:[%s19481_s29 + $0x9bc] sm:$0xf] %v2471_v55  ;;  %2474 = vst [vmem:[%s19481_s29 + $0x9c0] sm:$0xf] %v2473_v56 }
 0x25f   : > { %2476 = vst [vmem:[%s19481_s29 + $0x9c4] sm:$0xf] %v2475_v57  ;;  %v2477_v58 = vld [vmem:[%s19474_s3 + $0x1390] sm:$0xf]  ;;  %v2479_v59 = vld [vmem:[%s19474_s3 + $0x1398] sm:$0xf] }
 0x260   : > { %v2481_v60 = vld [vmem:[%s19474_s3 + $0x13a0] sm:$0xf]  ;;  %2478 = vst [vmem:[%s19481_s29 + $0x9c8] sm:$0xf] %v2477_v58  ;;  %2480 = vst [vmem:[%s19481_s29 + $0x9cc] sm:$0xf] %v2479_v59 }
 0x261   : > { %2482 = vst [vmem:[%s19481_s29 + $0x9d0] sm:$0xf] %v2481_v60  ;;  %v2483_v61 = vld [vmem:[%s19474_s3 + $0x13a8] sm:$0xf]  ;;  %v2485_v62 = vld [vmem:[%s19474_s3 + $0x13b0] sm:$0xf] }
 0x262   : > { %v2487_v63 = vld [vmem:[%s19474_s3 + $0x13b8] sm:$0xf]  ;;  %2484 = vst [vmem:[%s19481_s29 + $0x9d4] sm:$0xf] %v2483_v61  ;;  %2486 = vst [vmem:[%s19481_s29 + $0x9d8] sm:$0xf] %v2485_v62 }
 0x263   : > { %2488 = vst [vmem:[%s19481_s29 + $0x9dc] sm:$0xf] %v2487_v63  ;;  %v2489_v0 = vld [vmem:[%s19474_s3 + $0x13c0] sm:$0xf]  ;;  %v2491_v1 = vld [vmem:[%s19474_s3 + $0x13c8] sm:$0xf] }
 0x264   : > { %v2493_v2 = vld [vmem:[%s19474_s3 + $0x13d0] sm:$0xf]  ;;  %2490 = vst [vmem:[%s19481_s29 + $0x9e0] sm:$0xf] %v2489_v0  ;;  %2492 = vst [vmem:[%s19481_s29 + $0x9e4] sm:$0xf] %v2491_v1 }
 0x265   : > { %2494 = vst [vmem:[%s19481_s29 + $0x9e8] sm:$0xf] %v2493_v2  ;;  %v2495_v3 = vld [vmem:[%s19474_s3 + $0x13d8] sm:$0xf]  ;;  %v2497_v4 = vld [vmem:[%s19474_s3 + $0x13e0] sm:$0xf] }
 0x266   : > { %v2499_v5 = vld [vmem:[%s19474_s3 + $0x13e8] sm:$0xf]  ;;  %2496 = vst [vmem:[%s19481_s29 + $0x9ec] sm:$0xf] %v2495_v3  ;;  %2498 = vst [vmem:[%s19481_s29 + $0x9f0] sm:$0xf] %v2497_v4 }
 0x267   : > { %2500 = vst [vmem:[%s19481_s29 + $0x9f4] sm:$0xf] %v2499_v5  ;;  %v2501_v6 = vld [vmem:[%s19474_s3 + $0x13f0] sm:$0xf]  ;;  %v2503_v7 = vld [vmem:[%s19474_s3 + $0x13f8] sm:$0xf] }
 0x268   : > { %v2505_v8 = vld [vmem:[%s19474_s3 + $0x1400] sm:$0xf]  ;;  %2502 = vst [vmem:[%s19481_s29 + $0x9f8] sm:$0xf] %v2501_v6  ;;  %2504 = vst [vmem:[%s19481_s29 + $0x9fc] sm:$0xf] %v2503_v7 }
 0x269   : > { %2506 = vst [vmem:[%s19481_s29 + $0xa00] sm:$0xf] %v2505_v8  ;;  %v2507_v9 = vld [vmem:[%s19474_s3 + $0x1408] sm:$0xf]  ;;  %v2509_v10 = vld [vmem:[%s19474_s3 + $0x1410] sm:$0xf] }
 0x26a   : > { %v2511_v11 = vld [vmem:[%s19474_s3 + $0x1418] sm:$0xf]  ;;  %2508 = vst [vmem:[%s19481_s29 + $0xa04] sm:$0xf] %v2507_v9  ;;  %2510 = vst [vmem:[%s19481_s29 + $0xa08] sm:$0xf] %v2509_v10 }
 0x26b   : > { %2512 = vst [vmem:[%s19481_s29 + $0xa0c] sm:$0xf] %v2511_v11  ;;  %v2513_v12 = vld [vmem:[%s19474_s3 + $0x1420] sm:$0xf]  ;;  %v2515_v13 = vld [vmem:[%s19474_s3 + $0x1428] sm:$0xf] }
 0x26c   : > { %v2517_v14 = vld [vmem:[%s19474_s3 + $0x1430] sm:$0xf]  ;;  %2514 = vst [vmem:[%s19481_s29 + $0xa10] sm:$0xf] %v2513_v12  ;;  %2516 = vst [vmem:[%s19481_s29 + $0xa14] sm:$0xf] %v2515_v13 }
 0x26d   : > { %2518 = vst [vmem:[%s19481_s29 + $0xa18] sm:$0xf] %v2517_v14  ;;  %v2519_v15 = vld [vmem:[%s19474_s3 + $0x1438] sm:$0xf]  ;;  %v2521_v16 = vld [vmem:[%s19474_s3 + $0x1440] sm:$0xf] }
 0x26e   : > { %v2523_v17 = vld [vmem:[%s19474_s3 + $0x1448] sm:$0xf]  ;;  %2520 = vst [vmem:[%s19481_s29 + $0xa1c] sm:$0xf] %v2519_v15  ;;  %2522 = vst [vmem:[%s19481_s29 + $0xa20] sm:$0xf] %v2521_v16 }
 0x26f   : > { %2524 = vst [vmem:[%s19481_s29 + $0xa24] sm:$0xf] %v2523_v17  ;;  %v2525_v18 = vld [vmem:[%s19474_s3 + $0x1450] sm:$0xf]  ;;  %v2527_v19 = vld [vmem:[%s19474_s3 + $0x1458] sm:$0xf] }
 0x270   : > { %v2529_v20 = vld [vmem:[%s19474_s3 + $0x1460] sm:$0xf]  ;;  %2526 = vst [vmem:[%s19481_s29 + $0xa28] sm:$0xf] %v2525_v18  ;;  %2528 = vst [vmem:[%s19481_s29 + $0xa2c] sm:$0xf] %v2527_v19 }
 0x271   : > { %2530 = vst [vmem:[%s19481_s29 + $0xa30] sm:$0xf] %v2529_v20  ;;  %v2531_v21 = vld [vmem:[%s19474_s3 + $0x1468] sm:$0xf]  ;;  %v2533_v22 = vld [vmem:[%s19474_s3 + $0x1470] sm:$0xf] }
 0x272   : > { %v2535_v23 = vld [vmem:[%s19474_s3 + $0x1478] sm:$0xf]  ;;  %2532 = vst [vmem:[%s19481_s29 + $0xa34] sm:$0xf] %v2531_v21  ;;  %2534 = vst [vmem:[%s19481_s29 + $0xa38] sm:$0xf] %v2533_v22 }
 0x273   : > { %2536 = vst [vmem:[%s19481_s29 + $0xa3c] sm:$0xf] %v2535_v23  ;;  %v2537_v24 = vld [vmem:[%s19474_s3 + $0x1480] sm:$0xf]  ;;  %v2539_v25 = vld [vmem:[%s19474_s3 + $0x1488] sm:$0xf] }
 0x274   : > { %v2541_v26 = vld [vmem:[%s19474_s3 + $0x1490] sm:$0xf]  ;;  %2538 = vst [vmem:[%s19481_s29 + $0xa40] sm:$0xf] %v2537_v24  ;;  %2540 = vst [vmem:[%s19481_s29 + $0xa44] sm:$0xf] %v2539_v25 }
 0x275   : > { %2542 = vst [vmem:[%s19481_s29 + $0xa48] sm:$0xf] %v2541_v26  ;;  %v2543_v27 = vld [vmem:[%s19474_s3 + $0x1498] sm:$0xf]  ;;  %v2545_v28 = vld [vmem:[%s19474_s3 + $0x14a0] sm:$0xf] }
 0x276   : > { %v2547_v29 = vld [vmem:[%s19474_s3 + $0x14a8] sm:$0xf]  ;;  %2544 = vst [vmem:[%s19481_s29 + $0xa4c] sm:$0xf] %v2543_v27  ;;  %2546 = vst [vmem:[%s19481_s29 + $0xa50] sm:$0xf] %v2545_v28 }
 0x277   : > { %2548 = vst [vmem:[%s19481_s29 + $0xa54] sm:$0xf] %v2547_v29  ;;  %v2549_v30 = vld [vmem:[%s19474_s3 + $0x14b0] sm:$0xf]  ;;  %v2551_v31 = vld [vmem:[%s19474_s3 + $0x14b8] sm:$0xf] }
 0x278   : > { %v2553_v32 = vld [vmem:[%s19474_s3 + $0x14c0] sm:$0xf]  ;;  %2550 = vst [vmem:[%s19481_s29 + $0xa58] sm:$0xf] %v2549_v30  ;;  %2552 = vst [vmem:[%s19481_s29 + $0xa5c] sm:$0xf] %v2551_v31 }
 0x279   : > { %2554 = vst [vmem:[%s19481_s29 + $0xa60] sm:$0xf] %v2553_v32  ;;  %v2555_v33 = vld [vmem:[%s19474_s3 + $0x14c8] sm:$0xf]  ;;  %v2557_v34 = vld [vmem:[%s19474_s3 + $0x14d0] sm:$0xf] }
 0x27a   : > { %v2559_v35 = vld [vmem:[%s19474_s3 + $0x14d8] sm:$0xf]  ;;  %2556 = vst [vmem:[%s19481_s29 + $0xa64] sm:$0xf] %v2555_v33  ;;  %2558 = vst [vmem:[%s19481_s29 + $0xa68] sm:$0xf] %v2557_v34 }
 0x27b   : > { %2560 = vst [vmem:[%s19481_s29 + $0xa6c] sm:$0xf] %v2559_v35  ;;  %v2561_v36 = vld [vmem:[%s19474_s3 + $0x14e0] sm:$0xf]  ;;  %v2563_v37 = vld [vmem:[%s19474_s3 + $0x14e8] sm:$0xf] }
 0x27c   : > { %v2565_v38 = vld [vmem:[%s19474_s3 + $0x14f0] sm:$0xf]  ;;  %2562 = vst [vmem:[%s19481_s29 + $0xa70] sm:$0xf] %v2561_v36  ;;  %2564 = vst [vmem:[%s19481_s29 + $0xa74] sm:$0xf] %v2563_v37 }
 0x27d   : > { %2566 = vst [vmem:[%s19481_s29 + $0xa78] sm:$0xf] %v2565_v38  ;;  %v2567_v39 = vld [vmem:[%s19474_s3 + $0x14f8] sm:$0xf]  ;;  %v2569_v40 = vld [vmem:[%s19474_s3 + $0x1500] sm:$0xf] }
 0x27e   : > { %v2571_v41 = vld [vmem:[%s19474_s3 + $0x1508] sm:$0xf]  ;;  %2568 = vst [vmem:[%s19481_s29 + $0xa7c] sm:$0xf] %v2567_v39  ;;  %2570 = vst [vmem:[%s19481_s29 + $0xa80] sm:$0xf] %v2569_v40 }
 0x27f   : > { %2572 = vst [vmem:[%s19481_s29 + $0xa84] sm:$0xf] %v2571_v41  ;;  %v2573_v42 = vld [vmem:[%s19474_s3 + $0x1510] sm:$0xf]  ;;  %v2575_v43 = vld [vmem:[%s19474_s3 + $0x1518] sm:$0xf] }
 0x280   : > { %v2577_v44 = vld [vmem:[%s19474_s3 + $0x1520] sm:$0xf]  ;;  %2574 = vst [vmem:[%s19481_s29 + $0xa88] sm:$0xf] %v2573_v42  ;;  %2576 = vst [vmem:[%s19481_s29 + $0xa8c] sm:$0xf] %v2575_v43 }
 0x281   : > { %2578 = vst [vmem:[%s19481_s29 + $0xa90] sm:$0xf] %v2577_v44  ;;  %v2579_v45 = vld [vmem:[%s19474_s3 + $0x1528] sm:$0xf]  ;;  %v2581_v46 = vld [vmem:[%s19474_s3 + $0x1530] sm:$0xf] }
 0x282   : > { %v2583_v47 = vld [vmem:[%s19474_s3 + $0x1538] sm:$0xf]  ;;  %2580 = vst [vmem:[%s19481_s29 + $0xa94] sm:$0xf] %v2579_v45  ;;  %2582 = vst [vmem:[%s19481_s29 + $0xa98] sm:$0xf] %v2581_v46 }
 0x283   : > { %2584 = vst [vmem:[%s19481_s29 + $0xa9c] sm:$0xf] %v2583_v47  ;;  %v2585_v48 = vld [vmem:[%s19474_s3 + $0x1540] sm:$0xf]  ;;  %v2587_v49 = vld [vmem:[%s19474_s3 + $0x1548] sm:$0xf] }
 0x284   : > { %v2589_v50 = vld [vmem:[%s19474_s3 + $0x1550] sm:$0xf]  ;;  %2586 = vst [vmem:[%s19481_s29 + $0xaa0] sm:$0xf] %v2585_v48  ;;  %2588 = vst [vmem:[%s19481_s29 + $0xaa4] sm:$0xf] %v2587_v49 }
 0x285   : > { %2590 = vst [vmem:[%s19481_s29 + $0xaa8] sm:$0xf] %v2589_v50  ;;  %v2591_v51 = vld [vmem:[%s19474_s3 + $0x1558] sm:$0xf]  ;;  %v2593_v52 = vld [vmem:[%s19474_s3 + $0x1560] sm:$0xf] }
 0x286   : > { %v2595_v53 = vld [vmem:[%s19474_s3 + $0x1568] sm:$0xf]  ;;  %2592 = vst [vmem:[%s19481_s29 + $0xaac] sm:$0xf] %v2591_v51  ;;  %2594 = vst [vmem:[%s19481_s29 + $0xab0] sm:$0xf] %v2593_v52 }
 0x287   : > { %2596 = vst [vmem:[%s19481_s29 + $0xab4] sm:$0xf] %v2595_v53  ;;  %v2597_v54 = vld [vmem:[%s19474_s3 + $0x1570] sm:$0xf]  ;;  %v2599_v55 = vld [vmem:[%s19474_s3 + $0x1578] sm:$0xf] }
 0x288   : > { %v2601_v56 = vld [vmem:[%s19474_s3 + $0x1580] sm:$0xf]  ;;  %2598 = vst [vmem:[%s19481_s29 + $0xab8] sm:$0xf] %v2597_v54  ;;  %2600 = vst [vmem:[%s19481_s29 + $0xabc] sm:$0xf] %v2599_v55 }
 0x289   : > { %2602 = vst [vmem:[%s19481_s29 + $0xac0] sm:$0xf] %v2601_v56  ;;  %v2603_v57 = vld [vmem:[%s19474_s3 + $0x1588] sm:$0xf]  ;;  %v2605_v58 = vld [vmem:[%s19474_s3 + $0x1590] sm:$0xf] }
 0x28a   : > { %v2607_v59 = vld [vmem:[%s19474_s3 + $0x1598] sm:$0xf]  ;;  %2604 = vst [vmem:[%s19481_s29 + $0xac4] sm:$0xf] %v2603_v57  ;;  %2606 = vst [vmem:[%s19481_s29 + $0xac8] sm:$0xf] %v2605_v58 }
 0x28b   : > { %2608 = vst [vmem:[%s19481_s29 + $0xacc] sm:$0xf] %v2607_v59  ;;  %v2609_v60 = vld [vmem:[%s19474_s3 + $0x15a0] sm:$0xf]  ;;  %v2611_v61 = vld [vmem:[%s19474_s3 + $0x15a8] sm:$0xf] }
 0x28c   : > { %v2613_v62 = vld [vmem:[%s19474_s3 + $0x15b0] sm:$0xf]  ;;  %2610 = vst [vmem:[%s19481_s29 + $0xad0] sm:$0xf] %v2609_v60  ;;  %2612 = vst [vmem:[%s19481_s29 + $0xad4] sm:$0xf] %v2611_v61 }
 0x28d   : > { %2614 = vst [vmem:[%s19481_s29 + $0xad8] sm:$0xf] %v2613_v62  ;;  %v2615_v63 = vld [vmem:[%s19474_s3 + $0x15b8] sm:$0xf]  ;;  %v2617_v0 = vld [vmem:[%s19474_s3 + $0x15c0] sm:$0xf] }
 0x28e   : > { %v2619_v1 = vld [vmem:[%s19474_s3 + $0x15c8] sm:$0xf]  ;;  %2616 = vst [vmem:[%s19481_s29 + $0xadc] sm:$0xf] %v2615_v63  ;;  %2618 = vst [vmem:[%s19481_s29 + $0xae0] sm:$0xf] %v2617_v0 }
 0x28f   : > { %2620 = vst [vmem:[%s19481_s29 + $0xae4] sm:$0xf] %v2619_v1  ;;  %v2621_v2 = vld [vmem:[%s19474_s3 + $0x15d0] sm:$0xf]  ;;  %v2623_v3 = vld [vmem:[%s19474_s3 + $0x15d8] sm:$0xf] }
 0x290   : > { %v2625_v4 = vld [vmem:[%s19474_s3 + $0x15e0] sm:$0xf]  ;;  %2622 = vst [vmem:[%s19481_s29 + $0xae8] sm:$0xf] %v2621_v2  ;;  %2624 = vst [vmem:[%s19481_s29 + $0xaec] sm:$0xf] %v2623_v3 }
 0x291   : > { %2626 = vst [vmem:[%s19481_s29 + $0xaf0] sm:$0xf] %v2625_v4  ;;  %v2627_v5 = vld [vmem:[%s19474_s3 + $0x15e8] sm:$0xf]  ;;  %v2629_v6 = vld [vmem:[%s19474_s3 + $0x15f0] sm:$0xf] }
 0x292   : > { %v2631_v7 = vld [vmem:[%s19474_s3 + $0x15f8] sm:$0xf]  ;;  %2628 = vst [vmem:[%s19481_s29 + $0xaf4] sm:$0xf] %v2627_v5  ;;  %2630 = vst [vmem:[%s19481_s29 + $0xaf8] sm:$0xf] %v2629_v6 }
 0x293   : > { %2632 = vst [vmem:[%s19481_s29 + $0xafc] sm:$0xf] %v2631_v7  ;;  %v2633_v8 = vld [vmem:[%s19474_s3 + $0x1600] sm:$0xf]  ;;  %v2635_v9 = vld [vmem:[%s19474_s3 + $0x1608] sm:$0xf] }
 0x294   : > { %v2637_v10 = vld [vmem:[%s19474_s3 + $0x1610] sm:$0xf]  ;;  %2634 = vst [vmem:[%s19481_s29 + $0xb00] sm:$0xf] %v2633_v8  ;;  %2636 = vst [vmem:[%s19481_s29 + $0xb04] sm:$0xf] %v2635_v9 }
 0x295   : > { %2638 = vst [vmem:[%s19481_s29 + $0xb08] sm:$0xf] %v2637_v10  ;;  %v2639_v11 = vld [vmem:[%s19474_s3 + $0x1618] sm:$0xf]  ;;  %v2641_v12 = vld [vmem:[%s19474_s3 + $0x1620] sm:$0xf] }
 0x296   : > { %v2643_v13 = vld [vmem:[%s19474_s3 + $0x1628] sm:$0xf]  ;;  %2640 = vst [vmem:[%s19481_s29 + $0xb0c] sm:$0xf] %v2639_v11  ;;  %2642 = vst [vmem:[%s19481_s29 + $0xb10] sm:$0xf] %v2641_v12 }
 0x297   : > { %2644 = vst [vmem:[%s19481_s29 + $0xb14] sm:$0xf] %v2643_v13  ;;  %v2645_v14 = vld [vmem:[%s19474_s3 + $0x1630] sm:$0xf]  ;;  %v2647_v15 = vld [vmem:[%s19474_s3 + $0x1638] sm:$0xf] }
 0x298   : > { %v2649_v16 = vld [vmem:[%s19474_s3 + $0x1640] sm:$0xf]  ;;  %2646 = vst [vmem:[%s19481_s29 + $0xb18] sm:$0xf] %v2645_v14  ;;  %2648 = vst [vmem:[%s19481_s29 + $0xb1c] sm:$0xf] %v2647_v15 }
 0x299   : > { %2650 = vst [vmem:[%s19481_s29 + $0xb20] sm:$0xf] %v2649_v16  ;;  %v2651_v17 = vld [vmem:[%s19474_s3 + $0x1648] sm:$0xf]  ;;  %v2653_v18 = vld [vmem:[%s19474_s3 + $0x1650] sm:$0xf] }
 0x29a   : > { %v2655_v19 = vld [vmem:[%s19474_s3 + $0x1658] sm:$0xf]  ;;  %2652 = vst [vmem:[%s19481_s29 + $0xb24] sm:$0xf] %v2651_v17  ;;  %2654 = vst [vmem:[%s19481_s29 + $0xb28] sm:$0xf] %v2653_v18 }
 0x29b   : > { %2656 = vst [vmem:[%s19481_s29 + $0xb2c] sm:$0xf] %v2655_v19  ;;  %v2657_v20 = vld [vmem:[%s19474_s3 + $0x1660] sm:$0xf]  ;;  %v2659_v21 = vld [vmem:[%s19474_s3 + $0x1668] sm:$0xf] }
 0x29c   : > { %v2661_v22 = vld [vmem:[%s19474_s3 + $0x1670] sm:$0xf]  ;;  %2658 = vst [vmem:[%s19481_s29 + $0xb30] sm:$0xf] %v2657_v20  ;;  %2660 = vst [vmem:[%s19481_s29 + $0xb34] sm:$0xf] %v2659_v21 }
 0x29d   : > { %2662 = vst [vmem:[%s19481_s29 + $0xb38] sm:$0xf] %v2661_v22  ;;  %v2663_v23 = vld [vmem:[%s19474_s3 + $0x1678] sm:$0xf]  ;;  %v2665_v24 = vld [vmem:[%s19474_s3 + $0x1680] sm:$0xf] }
 0x29e   : > { %v2667_v25 = vld [vmem:[%s19474_s3 + $0x1688] sm:$0xf]  ;;  %2664 = vst [vmem:[%s19481_s29 + $0xb3c] sm:$0xf] %v2663_v23  ;;  %2666 = vst [vmem:[%s19481_s29 + $0xb40] sm:$0xf] %v2665_v24 }
 0x29f   : > { %2668 = vst [vmem:[%s19481_s29 + $0xb44] sm:$0xf] %v2667_v25  ;;  %v2669_v26 = vld [vmem:[%s19474_s3 + $0x1690] sm:$0xf]  ;;  %v2671_v27 = vld [vmem:[%s19474_s3 + $0x1698] sm:$0xf] }
 0x2a0   : > { %v2673_v28 = vld [vmem:[%s19474_s3 + $0x16a0] sm:$0xf]  ;;  %2670 = vst [vmem:[%s19481_s29 + $0xb48] sm:$0xf] %v2669_v26  ;;  %2672 = vst [vmem:[%s19481_s29 + $0xb4c] sm:$0xf] %v2671_v27 }
 0x2a1   : > { %2674 = vst [vmem:[%s19481_s29 + $0xb50] sm:$0xf] %v2673_v28  ;;  %v2675_v29 = vld [vmem:[%s19474_s3 + $0x16a8] sm:$0xf]  ;;  %v2677_v30 = vld [vmem:[%s19474_s3 + $0x16b0] sm:$0xf] }
 0x2a2   : > { %v2679_v31 = vld [vmem:[%s19474_s3 + $0x16b8] sm:$0xf]  ;;  %2676 = vst [vmem:[%s19481_s29 + $0xb54] sm:$0xf] %v2675_v29  ;;  %2678 = vst [vmem:[%s19481_s29 + $0xb58] sm:$0xf] %v2677_v30 }
 0x2a3   : > { %2680 = vst [vmem:[%s19481_s29 + $0xb5c] sm:$0xf] %v2679_v31  ;;  %v2681_v32 = vld [vmem:[%s19474_s3 + $0x16c0] sm:$0xf]  ;;  %v2683_v33 = vld [vmem:[%s19474_s3 + $0x16c8] sm:$0xf] }
 0x2a4   : > { %v2685_v34 = vld [vmem:[%s19474_s3 + $0x16d0] sm:$0xf]  ;;  %2682 = vst [vmem:[%s19481_s29 + $0xb60] sm:$0xf] %v2681_v32  ;;  %2684 = vst [vmem:[%s19481_s29 + $0xb64] sm:$0xf] %v2683_v33 }
 0x2a5   : > { %2686 = vst [vmem:[%s19481_s29 + $0xb68] sm:$0xf] %v2685_v34  ;;  %v2687_v35 = vld [vmem:[%s19474_s3 + $0x16d8] sm:$0xf]  ;;  %v2689_v36 = vld [vmem:[%s19474_s3 + $0x16e0] sm:$0xf] }
 0x2a6   : > { %v2691_v37 = vld [vmem:[%s19474_s3 + $0x16e8] sm:$0xf]  ;;  %2688 = vst [vmem:[%s19481_s29 + $0xb6c] sm:$0xf] %v2687_v35  ;;  %2690 = vst [vmem:[%s19481_s29 + $0xb70] sm:$0xf] %v2689_v36 }
 0x2a7   : > { %2692 = vst [vmem:[%s19481_s29 + $0xb74] sm:$0xf] %v2691_v37  ;;  %v2693_v38 = vld [vmem:[%s19474_s3 + $0x16f0] sm:$0xf]  ;;  %v2695_v39 = vld [vmem:[%s19474_s3 + $0x16f8] sm:$0xf] }
 0x2a8   : > { %v2697_v40 = vld [vmem:[%s19474_s3 + $0x1700] sm:$0xf]  ;;  %2694 = vst [vmem:[%s19481_s29 + $0xb78] sm:$0xf] %v2693_v38  ;;  %2696 = vst [vmem:[%s19481_s29 + $0xb7c] sm:$0xf] %v2695_v39 }
 0x2a9   : > { %2698 = vst [vmem:[%s19481_s29 + $0xb80] sm:$0xf] %v2697_v40  ;;  %v2699_v41 = vld [vmem:[%s19474_s3 + $0x1708] sm:$0xf]  ;;  %v2701_v42 = vld [vmem:[%s19474_s3 + $0x1710] sm:$0xf] }
 0x2aa   : > { %v2703_v43 = vld [vmem:[%s19474_s3 + $0x1718] sm:$0xf]  ;;  %2700 = vst [vmem:[%s19481_s29 + $0xb84] sm:$0xf] %v2699_v41  ;;  %2702 = vst [vmem:[%s19481_s29 + $0xb88] sm:$0xf] %v2701_v42 }
 0x2ab   : > { %2704 = vst [vmem:[%s19481_s29 + $0xb8c] sm:$0xf] %v2703_v43  ;;  %v2705_v44 = vld [vmem:[%s19474_s3 + $0x1720] sm:$0xf]  ;;  %v2707_v45 = vld [vmem:[%s19474_s3 + $0x1728] sm:$0xf] }
 0x2ac   : > { %v2709_v46 = vld [vmem:[%s19474_s3 + $0x1730] sm:$0xf]  ;;  %2706 = vst [vmem:[%s19481_s29 + $0xb90] sm:$0xf] %v2705_v44  ;;  %2708 = vst [vmem:[%s19481_s29 + $0xb94] sm:$0xf] %v2707_v45 }
 0x2ad   : > { %2710 = vst [vmem:[%s19481_s29 + $0xb98] sm:$0xf] %v2709_v46  ;;  %v2711_v47 = vld [vmem:[%s19474_s3 + $0x1738] sm:$0xf]  ;;  %v2713_v48 = vld [vmem:[%s19474_s3 + $0x1740] sm:$0xf] }
 0x2ae   : > { %v2715_v49 = vld [vmem:[%s19474_s3 + $0x1748] sm:$0xf]  ;;  %2712 = vst [vmem:[%s19481_s29 + $0xb9c] sm:$0xf] %v2711_v47  ;;  %2714 = vst [vmem:[%s19481_s29 + $0xba0] sm:$0xf] %v2713_v48 }
 0x2af   : > { %2716 = vst [vmem:[%s19481_s29 + $0xba4] sm:$0xf] %v2715_v49  ;;  %v2717_v50 = vld [vmem:[%s19474_s3 + $0x1750] sm:$0xf]  ;;  %v2719_v51 = vld [vmem:[%s19474_s3 + $0x1758] sm:$0xf] }
 0x2b0   : > { %v2721_v52 = vld [vmem:[%s19474_s3 + $0x1760] sm:$0xf]  ;;  %2718 = vst [vmem:[%s19481_s29 + $0xba8] sm:$0xf] %v2717_v50  ;;  %2720 = vst [vmem:[%s19481_s29 + $0xbac] sm:$0xf] %v2719_v51 }
 0x2b1   : > { %2722 = vst [vmem:[%s19481_s29 + $0xbb0] sm:$0xf] %v2721_v52  ;;  %v2723_v53 = vld [vmem:[%s19474_s3 + $0x1768] sm:$0xf]  ;;  %v2725_v54 = vld [vmem:[%s19474_s3 + $0x1770] sm:$0xf] }
 0x2b2   : > { %v2727_v55 = vld [vmem:[%s19474_s3 + $0x1778] sm:$0xf]  ;;  %2724 = vst [vmem:[%s19481_s29 + $0xbb4] sm:$0xf] %v2723_v53  ;;  %2726 = vst [vmem:[%s19481_s29 + $0xbb8] sm:$0xf] %v2725_v54 }
 0x2b3   : > { %2728 = vst [vmem:[%s19481_s29 + $0xbbc] sm:$0xf] %v2727_v55  ;;  %v2729_v56 = vld [vmem:[%s19474_s3 + $0x1780] sm:$0xf]  ;;  %v2731_v57 = vld [vmem:[%s19474_s3 + $0x1788] sm:$0xf] }
 0x2b4   : > { %v2733_v58 = vld [vmem:[%s19474_s3 + $0x1790] sm:$0xf]  ;;  %2730 = vst [vmem:[%s19481_s29 + $0xbc0] sm:$0xf] %v2729_v56  ;;  %2732 = vst [vmem:[%s19481_s29 + $0xbc4] sm:$0xf] %v2731_v57 }
 0x2b5   : > { %2734 = vst [vmem:[%s19481_s29 + $0xbc8] sm:$0xf] %v2733_v58  ;;  %v2735_v59 = vld [vmem:[%s19474_s3 + $0x1798] sm:$0xf]  ;;  %v2737_v60 = vld [vmem:[%s19474_s3 + $0x17a0] sm:$0xf] }
 0x2b6   : > { %v2739_v61 = vld [vmem:[%s19474_s3 + $0x17a8] sm:$0xf]  ;;  %2736 = vst [vmem:[%s19481_s29 + $0xbcc] sm:$0xf] %v2735_v59  ;;  %2738 = vst [vmem:[%s19481_s29 + $0xbd0] sm:$0xf] %v2737_v60 }
 0x2b7   : > { %2740 = vst [vmem:[%s19481_s29 + $0xbd4] sm:$0xf] %v2739_v61  ;;  %v2741_v62 = vld [vmem:[%s19474_s3 + $0x17b0] sm:$0xf]  ;;  %v2743_v63 = vld [vmem:[%s19474_s3 + $0x17b8] sm:$0xf] }
 0x2b8   : > { %v2745_v0 = vld [vmem:[%s19474_s3 + $0x17c0] sm:$0xf]  ;;  %2742 = vst [vmem:[%s19481_s29 + $0xbd8] sm:$0xf] %v2741_v62  ;;  %2744 = vst [vmem:[%s19481_s29 + $0xbdc] sm:$0xf] %v2743_v63 }
 0x2b9   : > { %2746 = vst [vmem:[%s19481_s29 + $0xbe0] sm:$0xf] %v2745_v0  ;;  %v2747_v1 = vld [vmem:[%s19474_s3 + $0x17c8] sm:$0xf]  ;;  %v2749_v2 = vld [vmem:[%s19474_s3 + $0x17d0] sm:$0xf] }
 0x2ba   : > { %v2751_v3 = vld [vmem:[%s19474_s3 + $0x17d8] sm:$0xf]  ;;  %2748 = vst [vmem:[%s19481_s29 + $0xbe4] sm:$0xf] %v2747_v1  ;;  %2750 = vst [vmem:[%s19481_s29 + $0xbe8] sm:$0xf] %v2749_v2 }
 0x2bb   : > { %2752 = vst [vmem:[%s19481_s29 + $0xbec] sm:$0xf] %v2751_v3  ;;  %v2753_v4 = vld [vmem:[%s19474_s3 + $0x17e0] sm:$0xf]  ;;  %v2755_v5 = vld [vmem:[%s19474_s3 + $0x17e8] sm:$0xf] }
 0x2bc   : > { %v2757_v6 = vld [vmem:[%s19474_s3 + $0x17f0] sm:$0xf]  ;;  %2754 = vst [vmem:[%s19481_s29 + $0xbf0] sm:$0xf] %v2753_v4  ;;  %2756 = vst [vmem:[%s19481_s29 + $0xbf4] sm:$0xf] %v2755_v5 }
 0x2bd   : > { %2758 = vst [vmem:[%s19481_s29 + $0xbf8] sm:$0xf] %v2757_v6  ;;  %v2759_v7 = vld [vmem:[%s19474_s3 + $0x17f8] sm:$0xf]  ;;  %v2761_v8 = vld [vmem:[%s19474_s3 + $0x1800] sm:$0xf] }
 0x2be   : > { %v2763_v9 = vld [vmem:[%s19474_s3 + $0x1808] sm:$0xf]  ;;  %2760 = vst [vmem:[%s19481_s29 + $0xbfc] sm:$0xf] %v2759_v7  ;;  %2762 = vst [vmem:[%s19481_s29 + $0xc00] sm:$0xf] %v2761_v8 }
 0x2bf   : > { %2764 = vst [vmem:[%s19481_s29 + $0xc04] sm:$0xf] %v2763_v9  ;;  %v2765_v10 = vld [vmem:[%s19474_s3 + $0x1810] sm:$0xf]  ;;  %v2767_v11 = vld [vmem:[%s19474_s3 + $0x1818] sm:$0xf] }
 0x2c0   : > { %v2769_v12 = vld [vmem:[%s19474_s3 + $0x1820] sm:$0xf]  ;;  %2766 = vst [vmem:[%s19481_s29 + $0xc08] sm:$0xf] %v2765_v10  ;;  %2768 = vst [vmem:[%s19481_s29 + $0xc0c] sm:$0xf] %v2767_v11 }
 0x2c1   : > { %2770 = vst [vmem:[%s19481_s29 + $0xc10] sm:$0xf] %v2769_v12  ;;  %v2771_v13 = vld [vmem:[%s19474_s3 + $0x1828] sm:$0xf]  ;;  %v2773_v14 = vld [vmem:[%s19474_s3 + $0x1830] sm:$0xf] }
 0x2c2   : > { %v2775_v15 = vld [vmem:[%s19474_s3 + $0x1838] sm:$0xf]  ;;  %2772 = vst [vmem:[%s19481_s29 + $0xc14] sm:$0xf] %v2771_v13  ;;  %2774 = vst [vmem:[%s19481_s29 + $0xc18] sm:$0xf] %v2773_v14 }
 0x2c3   : > { %2776 = vst [vmem:[%s19481_s29 + $0xc1c] sm:$0xf] %v2775_v15  ;;  %v2777_v16 = vld [vmem:[%s19474_s3 + $0x1840] sm:$0xf]  ;;  %v2779_v17 = vld [vmem:[%s19474_s3 + $0x1848] sm:$0xf] }
 0x2c4   : > { %v2781_v18 = vld [vmem:[%s19474_s3 + $0x1850] sm:$0xf]  ;;  %2778 = vst [vmem:[%s19481_s29 + $0xc20] sm:$0xf] %v2777_v16  ;;  %2780 = vst [vmem:[%s19481_s29 + $0xc24] sm:$0xf] %v2779_v17 }
 0x2c5   : > { %2782 = vst [vmem:[%s19481_s29 + $0xc28] sm:$0xf] %v2781_v18  ;;  %v2783_v19 = vld [vmem:[%s19474_s3 + $0x1858] sm:$0xf]  ;;  %v2785_v20 = vld [vmem:[%s19474_s3 + $0x1860] sm:$0xf] }
 0x2c6   : > { %v2787_v21 = vld [vmem:[%s19474_s3 + $0x1868] sm:$0xf]  ;;  %2784 = vst [vmem:[%s19481_s29 + $0xc2c] sm:$0xf] %v2783_v19  ;;  %2786 = vst [vmem:[%s19481_s29 + $0xc30] sm:$0xf] %v2785_v20 }
 0x2c7   : > { %2788 = vst [vmem:[%s19481_s29 + $0xc34] sm:$0xf] %v2787_v21  ;;  %v2789_v22 = vld [vmem:[%s19474_s3 + $0x1870] sm:$0xf]  ;;  %v2791_v23 = vld [vmem:[%s19474_s3 + $0x1878] sm:$0xf] }
 0x2c8   : > { %v2793_v24 = vld [vmem:[%s19474_s3 + $0x1880] sm:$0xf]  ;;  %2790 = vst [vmem:[%s19481_s29 + $0xc38] sm:$0xf] %v2789_v22  ;;  %2792 = vst [vmem:[%s19481_s29 + $0xc3c] sm:$0xf] %v2791_v23 }
 0x2c9   : > { %2794 = vst [vmem:[%s19481_s29 + $0xc40] sm:$0xf] %v2793_v24  ;;  %v2795_v25 = vld [vmem:[%s19474_s3 + $0x1888] sm:$0xf]  ;;  %v2797_v26 = vld [vmem:[%s19474_s3 + $0x1890] sm:$0xf] }
 0x2ca   : > { %v2799_v27 = vld [vmem:[%s19474_s3 + $0x1898] sm:$0xf]  ;;  %2796 = vst [vmem:[%s19481_s29 + $0xc44] sm:$0xf] %v2795_v25  ;;  %2798 = vst [vmem:[%s19481_s29 + $0xc48] sm:$0xf] %v2797_v26 }
 0x2cb   : > { %2800 = vst [vmem:[%s19481_s29 + $0xc4c] sm:$0xf] %v2799_v27  ;;  %v2801_v28 = vld [vmem:[%s19474_s3 + $0x18a0] sm:$0xf]  ;;  %v2803_v29 = vld [vmem:[%s19474_s3 + $0x18a8] sm:$0xf] }
 0x2cc   : > { %v2805_v30 = vld [vmem:[%s19474_s3 + $0x18b0] sm:$0xf]  ;;  %2802 = vst [vmem:[%s19481_s29 + $0xc50] sm:$0xf] %v2801_v28  ;;  %2804 = vst [vmem:[%s19481_s29 + $0xc54] sm:$0xf] %v2803_v29 }
 0x2cd   : > { %2806 = vst [vmem:[%s19481_s29 + $0xc58] sm:$0xf] %v2805_v30  ;;  %v2807_v31 = vld [vmem:[%s19474_s3 + $0x18b8] sm:$0xf]  ;;  %v2809_v32 = vld [vmem:[%s19474_s3 + $0x18c0] sm:$0xf] }
 0x2ce   : > { %v2811_v33 = vld [vmem:[%s19474_s3 + $0x18c8] sm:$0xf]  ;;  %2808 = vst [vmem:[%s19481_s29 + $0xc5c] sm:$0xf] %v2807_v31  ;;  %2810 = vst [vmem:[%s19481_s29 + $0xc60] sm:$0xf] %v2809_v32 }
 0x2cf   : > { %2812 = vst [vmem:[%s19481_s29 + $0xc64] sm:$0xf] %v2811_v33  ;;  %v2813_v34 = vld [vmem:[%s19474_s3 + $0x18d0] sm:$0xf]  ;;  %v2815_v35 = vld [vmem:[%s19474_s3 + $0x18d8] sm:$0xf] }
 0x2d0   : > { %v2817_v36 = vld [vmem:[%s19474_s3 + $0x18e0] sm:$0xf]  ;;  %2814 = vst [vmem:[%s19481_s29 + $0xc68] sm:$0xf] %v2813_v34  ;;  %2816 = vst [vmem:[%s19481_s29 + $0xc6c] sm:$0xf] %v2815_v35 }
 0x2d1   : > { %2818 = vst [vmem:[%s19481_s29 + $0xc70] sm:$0xf] %v2817_v36  ;;  %v2819_v37 = vld [vmem:[%s19474_s3 + $0x18e8] sm:$0xf]  ;;  %v2821_v38 = vld [vmem:[%s19474_s3 + $0x18f0] sm:$0xf] }
 0x2d2   : > { %v2823_v39 = vld [vmem:[%s19474_s3 + $0x18f8] sm:$0xf]  ;;  %2820 = vst [vmem:[%s19481_s29 + $0xc74] sm:$0xf] %v2819_v37  ;;  %2822 = vst [vmem:[%s19481_s29 + $0xc78] sm:$0xf] %v2821_v38 }
 0x2d3   : > { %2824 = vst [vmem:[%s19481_s29 + $0xc7c] sm:$0xf] %v2823_v39 }
 0x2d4 PF: > { %p16560_p0 = scmp.ge.s32.totalorder %s18900_s22, 1  ;;  %p7682_p1 = scmp.lt.s32.totalorder %s18900_s22, 5 }
 0x2d6   : > { %p7683_p2 = pnand %p16560_p0, %p7682_p1 }
 0x2d8   : > { %7686 = sbr.rel (%p7683_p2) target bundleno = 2383 (0x94f), region = 141 }
 0x2df   : > { %s23884_s1 = sld [smem:[#allocation65_spill]]  ;;  %p7757_p3 = scmp.lt.s32.totalorder %s18888_s19, 1  ;;  %v18902_v24 = vmov 1983009808   ;;  %v8298_v26 = vlaneseq  ;;  %v21179_v30 = vld [vmem:[%s23805_s2] ss:$0 sm:$0xff] }
 0x2e0   : > { %s23885_s0 = sld [smem:[#allocation64_spill]]  ;;  %v8296_v25 = vunpack.c.l.s4 %v18902_v24  ;;  %vm8966_vm0 = vcmask 517120   ;;  %vm9863_vm1 = vcmask 523264   ;;  %vm10072_vm2 = vcmask 1041409   ;;  %s7689_s12 = sand.u32 1, %s18876_s16  }
 0x2e1   : > { %s21100_s23 = scalar_select %p7757_p3, %s18888_s19, 1  ;;  %v8299_v28 = vshrl.u32 %v8298_v26, 7  ;;  %vm10074_vm3 = vcmask 1042434   ;;  %vm10076_vm4 = vcmask 1043459   ;;  %vm18905_vm5 = vmmov 0  }
 0x2e2   : > { %v8297_v27 = vunpack.c.0.s8 %v8296_v25  ;;  %s18052_s6 = smul.u32 800, %s7689_s12  ;;  %s23280_s3 = sand.u32 1, %s18868_s14   ;;  %vm16175_vm6 = vcmask 130048  }
 0x2e3   : > { %s17208_s29 = sshll.u32 %s21100_s23, 8  ;;  %s18054_s24 = smul.u32 400, %s21100_s23 }
 0x2e4   : > { %v21181_v33 = vsub.s32 %v8297_v27, %v8299_v28  ;;  %s18053_s23 = smul.u32 3200, %s7689_s12  ;;  %p7762_p4 = scmp.lt.s32.totalorder %s18884_s18, 1 }
 0x2e5   : > { %v18149_v40 = vld [vmem:[%s23884_s1 + $0x40] sm:$0xff]   ;;  %v18151_v42 = vld [vmem:[%s23884_s1 + $0x48] sm:$0xff]   ;;  %v18153_v44 = vld [vmem:[%s23884_s1 + $0x50] sm:$0xff]   ;;  %s21145_s10 = scalar_lea.vmem %s23808_s5, %s18054_s24  ;;  %s22308_s24 = scalar_lea.vmem [#allocation2], %s18052_s6 }
 0x2e6   : > { %v18150_v41 = vld [vmem:[%s23884_s1] sm:$0xff]   ;;  %17209 = vmatprep.subr.bf16.mxu0 %v18149_v40  ;;  %v18152_v43 = vld [vmem:[%s23884_s1 + $0x8] sm:$0xff]   ;;  %v18154_v45 = vld [vmem:[%s23884_s1 + $0x10] sm:$0xff]   ;;  %s21115_s26 = scalar_lea.vmem %s23885_s0, %s17208_s29  ;;  %s22991_s16 = scalar_lea.vmem [#allocation3], %s18053_s23 }
 0x2e7   : > { %17210 = vmatpush3.bf16.msra.mxu0 %v18150_v41  ;;  %v18155_v46 = vld [vmem:[%s23884_s1 + $0x58] sm:$0xff]   ;;  %v18157_v48 = vld [vmem:[%s23884_s1 + $0x60] sm:$0xff]   ;;  %v18159_v50 = vld [vmem:[%s23884_s1 + $0x68] sm:$0xff]   ;;  %s16561_s6 = sshll.u32 %s23280_s3, 4  ;;  %s16562_s30 = sshll.u32 %s23280_s3, 6 }
 0x2e8   : > { %17211 = vmatprep.subr.bf16.mxu0 %v18151_v42  ;;  %v18156_v47 = vld [vmem:[%s23884_s1 + $0x18] sm:$0xff]   ;;  %v18158_v49 = vld [vmem:[%s23884_s1 + $0x20] sm:$0xff]   ;;  %v18160_v52 = vld [vmem:[%s23884_s1 + $0x28] sm:$0xff]   ;;  %s24094_s29 = sld [smem:[#allocation69_spill]] (%p19044_p10) }
 0x2e9   : > { %v18167_v51 = vld [vmem:[%s21115_s26 + $0x4] ss:$8 sps:$4 sm:$0xff]   ;;  %v18161_v53 = vld [vmem:[%s23884_s1 + $0x70] sm:$0xff]   ;;  %v18163_v55 = vld [vmem:[%s23884_s1 + $0x78] sm:$0xff]  }
 0x2ea   : > { %8133 = vmatprep.mubr.bf16.mxu0 %v18167_v51  ;;  %v18162_v54 = vld [vmem:[%s23884_s1 + $0x30] sm:$0xff]   ;;  %v18164_v56 = vld [vmem:[%s23884_s1 + $0x38] sm:$0xff]   ;;  %v18165_v57 = vld [vmem:[%s21115_s26] ss:$8 sps:$4 sm:$0xff]  }
 0x2eb   : > { %17212 = vmatpush3.bf16.msra.mxu0 %v18152_v43  ;;  %v18168_v58 = vld [vmem:[%s21115_s26 + $0x14] ss:$8 sps:$4 sm:$0xff]   ;;  %v18170_v59 = vld [vmem:[%s21115_s26 + $0x10] ss:$8 sps:$4 sm:$0xff]   ;;  %v18171_v60 = vld [vmem:[%s21115_s26 + $0x24] ss:$8 sps:$4 sm:$0xff]  }
 0x2ec   : > { %17213 = vmatprep.subr.bf16.mxu0 %v18153_v44  ;;  %v18173_v61 = vld [vmem:[%s21115_s26 + $0x20] ss:$8 sps:$4 sm:$0xff]   ;;  %v18174_v62 = vld [vmem:[%s21115_s26 + $0x34] ss:$8 sps:$4 sm:$0xff]   ;;  %v18176_v63 = vld [vmem:[%s21115_s26 + $0x30] ss:$8 sps:$4 sm:$0xff]  }
 0x2ed   : > { %v18177_v0 = vld [vmem:[%s21115_s26 + $0x44] ss:$8 sps:$4 sm:$0xff]   ;;  %v18179_v1 = vld [vmem:[%s21115_s26 + $0x40] ss:$8 sps:$4 sm:$0xff]   ;;  %v18180_v2 = vld [vmem:[%s21115_s26 + $0x54] ss:$8 sps:$4 sm:$0xff]  }
 0x2ee   : > { %v18182_v3 = vld [vmem:[%s21115_s26 + $0x50] ss:$8 sps:$4 sm:$0xff]   ;;  %v18183_v4 = vld [vmem:[%s21115_s26 + $0x64] ss:$8 sps:$4 sm:$0xff]   ;;  %v18185_v5 = vld [vmem:[%s21115_s26 + $0x60] ss:$8 sps:$4 sm:$0xff]  }
 0x2ef   : > { %17214 = vmatpush3.bf16.msra.mxu0 %v18154_v45  ;;  %v18186_v6 = vld [vmem:[%s21115_s26 + $0x74] ss:$8 sps:$4 sm:$0xff]   ;;  %v18188_v7 = vld [vmem:[%s21115_s26 + $0x70] ss:$8 sps:$4 sm:$0xff]   ;;  %v18189_v8 = vld [vmem:[%s21115_s26 + $0x84] ss:$8 sps:$4 sm:$0xff]  }
 0x2f0   : > { %17215 = vmatprep.subr.bf16.mxu0 %v18155_v46  ;;  %v18191_v9 = vld [vmem:[%s21115_s26 + $0x80] ss:$8 sps:$4 sm:$0xff]   ;;  %v18192_v10 = vld [vmem:[%s21115_s26 + $0x94] ss:$8 sps:$4 sm:$0xff]   ;;  %v18194_v11 = vld [vmem:[%s21115_s26 + $0x90] ss:$8 sps:$4 sm:$0xff]  }
 0x2f1   : > { %v18195_v12 = vld [vmem:[%s21115_s26 + $0xa4] ss:$8 sps:$4 sm:$0xff]   ;;  %v18197_v13 = vld [vmem:[%s21115_s26 + $0xa0] ss:$8 sps:$4 sm:$0xff]   ;;  %v18198_v14 = vld [vmem:[%s21115_s26 + $0xb4] ss:$8 sps:$4 sm:$0xff]  }
 0x2f2   : > { %v18200_v15 = vld [vmem:[%s21115_s26 + $0xb0] ss:$8 sps:$4 sm:$0xff]   ;;  %v18201_v16 = vld [vmem:[%s21115_s26 + $0xc4] ss:$8 sps:$4 sm:$0xff]   ;;  %v18203_v17 = vld [vmem:[%s21115_s26 + $0xc0] ss:$8 sps:$4 sm:$0xff]  }
 0x2f3   : > { %17216 = vmatpush3.bf16.msra.mxu0 %v18156_v47  ;;  %v18204_v18 = vld [vmem:[%s21115_s26 + $0xd4] ss:$8 sps:$4 sm:$0xff]   ;;  %v18206_v19 = vld [vmem:[%s21115_s26 + $0xd0] ss:$8 sps:$4 sm:$0xff]   ;;  %v18207_v20 = vld [vmem:[%s21115_s26 + $0xe4] ss:$8 sps:$4 sm:$0xff]  }
 0x2f4   : > { %17217 = vmatprep.subr.bf16.mxu0 %v18157_v48  ;;  %v18209_v21 = vld [vmem:[%s21115_s26 + $0xe0] ss:$8 sps:$4 sm:$0xff]   ;;  %v18210_v22 = vld [vmem:[%s21115_s26 + $0xf4] ss:$8 sps:$4 sm:$0xff]   ;;  %v18212_v23 = vld [vmem:[%s21115_s26 + $0xf0] ss:$8 sps:$4 sm:$0xff]  }
 0x2f5   : > { %s18903_s26 = smov 64  }
 0x2f7   : > { %17218 = vmatpush3.bf16.msra.mxu0 %v18158_v49 }
 0x2f8   : > { %17219 = vmatprep.subr.bf16.mxu0 %v18159_v50 }
 0x2fb   : > { %17220 = vmatpush3.bf16.msra.mxu0 %v18160_v52 }
 0x2fc   : > { %17221 = vmatprep.subr.bf16.mxu0 %v18161_v53 }
 0x2ff   : > { %17222 = vmatpush3.bf16.msra.mxu0 %v18162_v54 }
 0x300   : > { %17223 = vmatprep.subr.bf16.mxu0 %v18163_v55 }
 0x303   : > { %17224 = vmatpush3.bf16.msra.mxu0 %v18164_v56 }
 0x306   : > { %8134 = vmatmul.mubr.bf16.vlgmr.msra.gmra.mrb[0].mxu0 %v18165_v57 }
 0x307   : > { %8141 = vmatprep.mubr.bf16.mxu0 %v18168_v58 }
 0x30e   : > { %8142 = vmatmul.mubr.bf16.gmra.mrb[4].mxu0 %v18170_v59 }
 0x30f   : > { %8149 = vmatprep.mubr.bf16.mxu0 %v18171_v60 }
 0x316   : > { %8150 = vmatmul.mubr.bf16.gmra.mrb[8].mxu0 %v18173_v61 }
 0x317   : > { %8157 = vmatprep.mubr.bf16.mxu0 %v18174_v62 }
 0x31e   : > { %8158 = vmatmul.mubr.bf16.gmra.mrb[12].mxu0 %v18176_v63 }
 0x31f   : > { %8165 = vmatprep.mubr.bf16.mxu0 %v18177_v0 }
 0x326   : > { %8166 = vmatmul.mubr.bf16.gmra.mrb[16].mxu0 %v18179_v1 }
 0x327   : > { %8173 = vmatprep.mubr.bf16.mxu0 %v18180_v2 }
 0x32e   : > { %8174 = vmatmul.mubr.bf16.gmra.mrb[20].mxu0 %v18182_v3 }
 0x32f   : > { %8181 = vmatprep.mubr.bf16.mxu0 %v18183_v4 }
 0x336   : > { %8182 = vmatmul.mubr.bf16.gmra.mrb[24].mxu0 %v18185_v5 }
 0x337   : > { %8189 = vmatprep.mubr.bf16.mxu0 %v18186_v6 }
 0x33e   : > { %8190 = vmatmul.mubr.bf16.gmra.mrb[28].mxu0 %v18188_v7 }
 0x33f   : > { %8197 = vmatprep.mubr.bf16.mxu0 %v18189_v8 }
 0x346   : > { %8198 = vmatmul.mubr.bf16.gmra.mrb[32].mxu0 %v18191_v9 }
 0x347   : > { %8205 = vmatprep.mubr.bf16.mxu0 %v18192_v10 }
 0x34e   : > { %8206 = vmatmul.mubr.bf16.gmra.mrb[36].mxu0 %v18194_v11 }
 0x34f   : > { %8213 = vmatprep.mubr.bf16.mxu0 %v18195_v12 }
 0x356   : > { %8214 = vmatmul.mubr.bf16.gmra.mrb[40].mxu0 %v18197_v13 }
 0x357   : > { %8221 = vmatprep.mubr.bf16.mxu0 %v18198_v14 }
 0x35e   : > { %8222 = vmatmul.mubr.bf16.gmra.mrb[44].mxu0 %v18200_v15 }
 0x35f   : > { %8229 = vmatprep.mubr.bf16.mxu0 %v18201_v16 }
 0x366   : > { %8230 = vmatmul.mubr.bf16.gmra.mrb[48].mxu0 %v18203_v17 }
 0x367   : > { %8237 = vmatprep.mubr.bf16.mxu0 %v18204_v18 }
 0x36e   : > { %8238 = vmatmul.mubr.bf16.gmra.mrb[52].mxu0 %v18206_v19 }
 0x36f   : > { %8245 = vmatprep.mubr.bf16.mxu0 %v18207_v20 }
 0x376   : > { %8246 = vmatmul.mubr.bf16.gmra.mrb[56].mxu0 %v18209_v21 }
 0x377   : > { %8253 = vmatprep.mubr.bf16.mxu0 %v18210_v22 }
 0x37e   : > { %8254 = vmatmul.mubr.bf16.gmra.mrb[60].mxu0 %v18212_v23 }
 0x3d9   : > { %v17225_v29 = vpop.f32.mrb[0].mxu0 }
 0x3da   : > { %v17226_v31 = vpop.f32.mrb[1].mxu0 }
 0x3db   : > { %v17227_v32 = vadd.f32 %v17226_v31, %v17225_v29  ;;  %v17228_v34 = vpop.f32.mrb[2].mxu0 }
 0x3dc   : > { %v17229_v35 = vpop.f32.mrb[3].mxu0 }
 0x3dd   : > { %v8136_v36 = vadd.f32 %v17227_v32, %v21179_v30  ;;  %v17230_v37 = vadd.f32 %v17229_v35, %v17228_v34 }
 0x3df   : > { %v8294_v38 = vcombine.high %v8136_v36, %v8136_v36  ;;  %v8301_v39 = vrot.slane %v8136_v36, %v21181_v33  ;;  %v8139_v40 = vadd.f32 %v17230_v37, %v21179_v30 }
 0x3e1   : > { %v8308_v41 = vrot.slane %v8294_v38, %v21181_v33  ;;  %v8309_v42 = vcombine.high %v8301_v39, %v8301_v39  ;;  %v8967_v43 = vsel %vm8966_vm0, %v8301_v39, -inf  ;;  %v8311_v44 = vcombine.high %v8139_v40, %v8139_v40  ;;  %v17231_v45 = vpop.f32.mrb[4].mxu0 }
 0x3e2   : > { %v8968_v46 = vrot.slane %v8967_v43, 4  ;;  %v8318_v47 = vrot.slane %v8139_v40, %v21181_v33  ;;  %v17232_v48 = vpop.f32.mrb[5].mxu0 }
 0x3e3   : > { %v8310_v49 = vcombine.high %v8308_v41, %v8308_v41  ;;  %v8974_v50 = vsel %vm8966_vm0, %v8309_v42, -inf  ;;  %v8981_v51 = vsel %vm8966_vm0, %v8308_v41, -inf  ;;  %v8325_v52 = vrot.slane %v8311_v44, %v21181_v33  ;;  %v17234_v53 = vpop.f32.mrb[6].mxu0 }
 0x3e4   : > { %v8969_v54 = vmax.f32 %v8967_v43, %v8968_v46  ;;  %v8975_v55 = vrot.slane %v8974_v50, 4  ;;  %v8982_v56 = vrot.slane %v8981_v51, 4  ;;  %v8326_v57 = vcombine.high %v8318_v47, %v8318_v47  ;;  %v17235_v58 = vpop.f32.mrb[7].mxu0 }
 0x3e5   : > { %v8988_v59 = vsel %vm8966_vm0, %v8310_v49, -inf  ;;  %v8327_v60 = vcombine.high %v8325_v52, %v8325_v52  ;;  %v8995_v61 = vsel %vm8966_vm0, %v8318_v47, -inf  ;;  %v9009_v62 = vsel %vm8966_vm0, %v8325_v52, -inf }
 0x3e6   : > { %v8970_v63 = vrot.slane %v8969_v54, 2  ;;  %v8976_v0 = vmax.f32 %v8974_v50, %v8975_v55  ;;  %v8983_v1 = vmax.f32 %v8981_v51, %v8982_v56  ;;  %v8989_v2 = vrot.slane %v8988_v59, 4 }
 0x3e7   : > { %v8996_v3 = vrot.slane %v8995_v61, 4  ;;  %v9002_v4 = vsel %vm8966_vm0, %v8326_v57, -inf  ;;  %v9010_v5 = vrot.slane %v9009_v62, 4  ;;  %v9016_v6 = vsel %vm8966_vm0, %v8327_v60, -inf }
 0x3e8   : > { %v8971_v7 = vmax.f32 %v8969_v54, %v8970_v63  ;;  %v8977_v8 = vrot.slane %v8976_v0, 2  ;;  %v8984_v9 = vrot.slane %v8983_v1, 2  ;;  %v8990_v10 = vmax.f32 %v8988_v59, %v8989_v2 }
 0x3e9   : > { %v8997_v11 = vmax.f32 %v8995_v61, %v8996_v3  ;;  %v9003_v12 = vrot.slane %v9002_v4, 4  ;;  %v9017_v13 = vrot.slane %v9016_v6, 4  ;;  %v17237_v14 = vpop.f32.mrb[8].mxu0  ;;  %v21199_v18 = vmax.f32 %v9009_v62, %v9010_v5 }
 0x3ea   : > { %v8972_v15 = vrot.slane %v8971_v7, 1  ;;  %v21197_v16 = vmax.f32 %v8976_v0, %v8977_v8  ;;  %v8991_v17 = vrot.slane %v8990_v10, 2  ;;  %v17238_v19 = vpop.f32.mrb[9].mxu0  ;;  %v21201_v20 = vmax.f32 %v8983_v1, %v8984_v9 }
 0x3eb   : > { %v8998_v21 = vrot.slane %v8997_v11, 2  ;;  %v21203_v22 = vmax.f32 %v9002_v4, %v9003_v12  ;;  %v17240_v23 = vpop.f32.mrb[10].mxu0  ;;  %v21207_v25 = vmax.f32 %v9016_v6, %v9017_v13  ;;  %v17233_v29 = vadd.f32 %v17232_v48, %v17231_v45 }
 0x3ec   : > { %v21205_v24 = vmax.f32 %v8990_v10, %v8991_v17  ;;  %v17241_v26 = vpop.f32.mrb[11].mxu0  ;;  %v8973_v27 = vmax.f32 %v8971_v7, %v8972_v15  ;;  %v8979_v31 = vrot.slane %v21197_v16, 1  ;;  %v17236_v34 = vadd.f32 %v17235_v58, %v17234_v53 }
 0x3ed   : > { %23886 = vst [vmem:[#allocation10_spill] sm:$0xff] %v21207_v25  ;;  %v21209_v28 = vmax.f32 %v8997_v11, %v8998_v21  ;;  %v17239_v35 = vadd.f32 %v17238_v19, %v17237_v14  ;;  %v8986_v36 = vrot.slane %v21201_v20, 1  ;;  %v9005_v37 = vrot.slane %v21203_v22, 2 }
 0x3ee   : > { %v8144_v38 = vadd.f32 %v17233_v29, %v21179_v30  ;;  %v17242_v39 = vadd.f32 %v17241_v26, %v17240_v23  ;;  %v8993_v40 = vrot.slane %v21205_v24, 1  ;;  %v8147_v42 = vadd.f32 %v17236_v34, %v21179_v30 }
 0x3ef   : > { %v21220_v43 = vadd.f32 %v17239_v35, %v21179_v30  ;;  %v21223_v44 = vsel %vm9863_vm1, %v8973_v27, -inf }
 0x3f0   : > { %23887 = vst [vmem:[#allocation11_spill] sm:$0xff] %v21223_v44  ;;  %v8328_v46 = vcombine.high %v8144_v38, %v8144_v38  ;;  %v8335_v47 = vrot.slane %v8144_v38, %v21181_v33  ;;  %v8345_v49 = vcombine.high %v8147_v42, %v8147_v42  ;;  %v8352_v50 = vrot.slane %v8147_v42, %v21181_v33 }
 0x3f1   : > { %v21227_v48 = vpop.f32.mrb[12].mxu0  ;;  %v8362_v51 = vcombine.high %v21220_v43, %v21220_v43  ;;  %v21233_v52 = vadd.f32 %v17242_v39, %v21179_v30  ;;  %v8369_v57 = vrot.slane %v21220_v43, %v21181_v33 }
 0x3f2   : > { %v21235_v53 = vpop.f32.mrb[13].mxu0  ;;  %v8342_v54 = vrot.slane %v8328_v46, %v21181_v33  ;;  %v8343_v55 = vcombine.high %v8335_v47, %v8335_v47  ;;  %v9023_v56 = vsel %vm8966_vm0, %v8335_v47, -inf  ;;  %v8359_v60 = vrot.slane %v8345_v49, %v21181_v33 }
 0x3f3   : > { %v21241_v58 = vpop.f32.mrb[14].mxu0  ;;  %v9024_v59 = vrot.slane %v9023_v56, 4  ;;  %v8360_v61 = vcombine.high %v8352_v50, %v8352_v50  ;;  %v9051_v62 = vsel %vm8966_vm0, %v8352_v50, -inf  ;;  %v21266_v49 = vmax.f32 %v21203_v22, %v9005_v37 }
 0x3f4   : > { %v21245_v63 = vpop.f32.mrb[15].mxu0  ;;  %v8344_v0 = vcombine.high %v8342_v54, %v8342_v54  ;;  %v9030_v1 = vsel %vm8966_vm0, %v8343_v55, -inf  ;;  %v9037_v2 = vsel %vm8966_vm0, %v8342_v54, -inf  ;;  %v9052_v3 = vrot.slane %v9051_v62, 4 }
 0x3f5   : > { %v9025_v4 = vmax.f32 %v9023_v56, %v9024_v59  ;;  %v9031_v5 = vrot.slane %v9030_v1, 4  ;;  %v9038_v6 = vrot.slane %v9037_v2, 4  ;;  %v8361_v7 = vcombine.high %v8359_v60, %v8359_v60 }
 0x3f6   : > { %v9044_v8 = vsel %vm8966_vm0, %v8344_v0, -inf  ;;  %v9053_v9 = vmax.f32 %v9051_v62, %v9052_v3  ;;  %v9058_v10 = vsel %vm8966_vm0, %v8360_v61, -inf  ;;  %v9065_v11 = vsel %vm8966_vm0, %v8359_v60, -inf }
 0x3f7   : > { %v9026_v12 = vrot.slane %v9025_v4, 2  ;;  %v9032_v13 = vmax.f32 %v9030_v1, %v9031_v5  ;;  %v9039_v14 = vmax.f32 %v9037_v2, %v9038_v6  ;;  %v9045_v15 = vrot.slane %v9044_v8, 4 }
 0x3f8   : > { %v9054_v17 = vrot.slane %v9053_v9, 2  ;;  %v9059_v19 = vrot.slane %v9058_v10, 4  ;;  %v9066_v21 = vrot.slane %v9065_v11, 4  ;;  %v9072_v23 = vsel %vm8966_vm0, %v8361_v7, -inf }
 0x3f9   : > { %v21253_v26 = vpop.f32.mrb[16].mxu0  ;;  %v9027_v27 = vmax.f32 %v9025_v4, %v9026_v12  ;;  %v9033_v29 = vrot.slane %v9032_v13, 2  ;;  %v9040_v34 = vrot.slane %v9039_v14, 2  ;;  %v9046_v35 = vmax.f32 %v9044_v8, %v9045_v15 }
 0x3fa   : > { %v21255_v38 = vpop.f32.mrb[17].mxu0  ;;  %v21257_v39 = vmax.f32 %v9053_v9, %v9054_v17  ;;  %v21259_v42 = vmax.f32 %v9058_v10, %v9059_v19  ;;  %v21261_v43 = vmax.f32 %v9065_v11, %v9066_v21  ;;  %v9073_v46 = vrot.slane %v9072_v23, 4 }
 0x3fb   : > { %v21263_v47 = vpop.f32.mrb[18].mxu0  ;;  %v9028_v50 = vrot.slane %v9027_v27, 1  ;;  %v21268_v54 = vmax.f32 %v9032_v13, %v9033_v29  ;;  %v9047_v55 = vrot.slane %v9046_v35, 2  ;;  %v8379_v59 = vcombine.high %v21233_v52, %v21233_v52 }
 0x3fc   : > { %v21270_v56 = vpop.f32.mrb[19].mxu0  ;;  %v21277_v60 = vmax.f32 %v21197_v16, %v8979_v31  ;;  %v21282_v61 = vmax.f32 %v21201_v20, %v8986_v36  ;;  %v21287_v22 = vmax.f32 %v21205_v24, %v8993_v40  ;;  %v21289_v37 = vmax.f32 %v9039_v14, %v9040_v34 }
 0x3fd   : > { %v9061_v0 = vrot.slane %v21259_v42, 2  ;;  %v9029_v16 = vmax.f32 %v9027_v27, %v9028_v50  ;;  %v21294_v31 = vmax.f32 %v9072_v23, %v9073_v46  ;;  %v8376_v2 = vrot.slane %v8362_v51, %v21181_v33 }
 0x3fe   : > { %v8377_v20 = vcombine.high %v8369_v57, %v8369_v57  ;;  %v21298_v3 = vmax.f32 %v9046_v35, %v9047_v55  ;;  %v9079_v24 = vsel %vm8966_vm0, %v8369_v57, -inf  ;;  %v8386_v40 = vrot.slane %v21233_v52, %v21181_v33 }
 0x3ff   : > { %23888 = vst [vmem:[#allocation12_spill] sm:$0xff] %v21294_v31  ;;  %v8378_v4 = vcombine.high %v8376_v2, %v8376_v2  ;;  %v9080_v5 = vrot.slane %v9079_v24, 4  ;;  %v9093_v7 = vsel %vm8966_vm0, %v8376_v2, -inf  ;;  %v8393_v10 = vrot.slane %v8379_v59, %v21181_v33 }
 0x400   : > { %v9086_v6 = vsel %vm8966_vm0, %v8377_v20, -inf  ;;  %v9094_v51 = vrot.slane %v9093_v7, 4  ;;  %v8394_v11 = vcombine.high %v8386_v40, %v8386_v40  ;;  %v9107_v52 = vsel %vm8966_vm0, %v8386_v40, -inf }
 0x401   : > { %v21305_v8 = vpop.f32.mrb[20].mxu0  ;;  %v9087_v9 = vrot.slane %v9086_v6, 4  ;;  %v9081_v13 = vmax.f32 %v9079_v24, %v9080_v5  ;;  %v9100_v57 = vsel %vm8966_vm0, %v8378_v4, -inf  ;;  %v17245_v14 = vadd.f32 %v21235_v53, %v21227_v48 }
 0x402   : > { %v21308_v12 = vpop.f32.mrb[21].mxu0  ;;  %v9095_v19 = vmax.f32 %v9093_v7, %v9094_v51  ;;  %v9101_v21 = vrot.slane %v9100_v57, 4  ;;  %v8395_v23 = vcombine.high %v8393_v10, %v8393_v10  ;;  %v9108_v34 = vrot.slane %v9107_v52, 4 }
 0x403   : > { %v21314_v15 = vpop.f32.mrb[22].mxu0  ;;  %v9088_v17 = vmax.f32 %v9086_v6, %v9087_v9  ;;  %v9082_v29 = vrot.slane %v9081_v13, 2  ;;  %v9114_v35 = vsel %vm8966_vm0, %v8394_v11, -inf  ;;  %v9121_v46 = vsel %vm8966_vm0, %v8393_v10, -inf }
 0x404   : > { %v21316_v27 = vpop.f32.mrb[23].mxu0  ;;  %v9096_v55 = vrot.slane %v9095_v19, 2  ;;  %v9102_v59 = vmax.f32 %v9100_v57, %v9101_v21  ;;  %v9115_v2 = vrot.slane %v9114_v35, 4  ;;  %v9109_v48 = vmax.f32 %v9107_v52, %v9108_v34 }
 0x405   : > { %v9089_v50 = vrot.slane %v9088_v17, 2  ;;  %v9083_v20 = vmax.f32 %v9081_v13, %v9082_v29  ;;  %v9122_v53 = vrot.slane %v9121_v46, 4  ;;  %v9128_v24 = vsel %vm8966_vm0, %v8395_v23, -inf }
 0x406   : > { %v21323_v4 = vmax.f32 %v9095_v19, %v9096_v55  ;;  %v9103_v5 = vrot.slane %v9102_v59, 2  ;;  %v9116_v6 = vmax.f32 %v9114_v35, %v9115_v2  ;;  %v9110_v51 = vrot.slane %v9109_v48, 2 }
 0x407   : > { %v21321_v40 = vmax.f32 %v9088_v17, %v9089_v50  ;;  %v9084_v9 = vrot.slane %v9083_v20, 1  ;;  %v21326_v10 = vmax.f32 %v9121_v46, %v9122_v53  ;;  %v21332_v57 = vmax.f32 %v21259_v42, %v9061_v0 }
 0x408   : > { %v9129_v17 = vrot.slane %v9128_v24, 4  ;;  %v21338_v21 = vsel %vm9863_vm1, %v9029_v16, -inf  ;;  %v21340_v23 = vmax.f32 %v9102_v59, %v9103_v5  ;;  %v21342_v29 = vmax.f32 %v9109_v48, %v9110_v51 }
 0x409   : > { %v21328_v11 = vpop.f32.mrb[24].mxu0  ;;  %23889 = vst [vmem:[#allocation13_spill] sm:$0xff] %v21338_v21  ;;  %v9117_v34 = vrot.slane %v9116_v6, 2  ;;  %v8160_v0 = vadd.f32 %v17245_v14, %v21179_v30  ;;  %v17248_v50 = vadd.f32 %v21245_v63, %v21241_v58  ;;  %v21353_v16 = vmax.f32 %v9083_v20, %v9084_v9 }
 0x40a   : > { %v21335_v19 = vpop.f32.mrb[25].mxu0  ;;  %v17251_v2 = vadd.f32 %v21255_v38, %v21253_v26  ;;  %v17254_v48 = vadd.f32 %v21270_v56, %v21263_v47  ;;  %v21360_v53 = vmax.f32 %v9128_v24, %v9129_v17 }
 0x40b   : > { %v21344_v35 = vpop.f32.mrb[26].mxu0  ;;  %23890 = vst [vmem:[#allocation14_spill] sm:$0xff] %v21353_v16  ;;  %v8396_v5 = vcombine.high %v8160_v0, %v8160_v0  ;;  %v8403_v14 = vrot.slane %v8160_v0, %v21181_v33  ;;  %v8163_v51 = vadd.f32 %v17248_v50, %v21179_v30  ;;  %v21366_v20 = vmax.f32 %v9116_v6, %v9117_v34 }
 0x40c   : > { %v21351_v55 = vpop.f32.mrb[27].mxu0  ;;  %23891 = vst [vmem:[#allocation15_spill] sm:$0xff] %v21360_v53  ;;  %v8168_v9 = vadd.f32 %v17251_v2, %v21179_v30 }
 0x40d   : > { %v8410_v26 = vrot.slane %v8396_v5, %v21181_v33  ;;  %v8411_v38 = vcombine.high %v8403_v14, %v8403_v14  ;;  %v9135_v47 = vsel %vm8966_vm0, %v8403_v14, -inf  ;;  %v8413_v56 = vcombine.high %v8163_v51, %v8163_v51 }
 0x40e   : > { %v9136_v24 = vrot.slane %v9135_v47, 4  ;;  %v8420_v17 = vrot.slane %v8163_v51, %v21181_v33  ;;  %v8430_v0 = vcombine.high %v8168_v9, %v8168_v9  ;;  %v8437_v50 = vrot.slane %v8168_v9, %v21181_v33 }
 0x40f   : > { %v8412_v41 = vcombine.high %v8410_v26, %v8410_v26  ;;  %v9142_v6 = vsel %vm8966_vm0, %v8411_v38, -inf  ;;  %v9149_v34 = vsel %vm8966_vm0, %v8410_v26, -inf  ;;  %v8427_v2 = vrot.slane %v8413_v56, %v21181_v33 }
 0x410   : > { %v9137_v59 = vmax.f32 %v9135_v47, %v9136_v24  ;;  %v9143_v14 = vrot.slane %v9142_v6, 4  ;;  %v9150_v63 = vrot.slane %v9149_v34, 4  ;;  %v8428_v58 = vcombine.high %v8420_v17, %v8420_v17 }
 0x411   : > { %v21373_v52 = vpop.f32.mrb[28].mxu0  ;;  %v9156_v51 = vsel %vm8966_vm0, %v8412_v41, -inf  ;;  %v8429_v9 = vcombine.high %v8427_v2, %v8427_v2  ;;  %v9163_v46 = vsel %vm8966_vm0, %v8420_v17, -inf  ;;  %v9177_v1 = vsel %vm8966_vm0, %v8427_v2, -inf }
 0x412   : > { %v21378_v5 = vpop.f32.mrb[29].mxu0  ;;  %v9138_v26 = vrot.slane %v9137_v59, 2  ;;  %v9144_v32 = vmax.f32 %v9142_v6, %v9143_v14  ;;  %v9151_v56 = vmax.f32 %v9149_v34, %v9150_v63  ;;  %v9157_v62 = vrot.slane %v9156_v51, 4 }
 0x413   : > { %v21380_v42 = vpop.f32.mrb[30].mxu0  ;;  %v9164_v13 = vrot.slane %v9163_v46, 4  ;;  %v9170_v47 = vsel %vm8966_vm0, %v8428_v58, -inf  ;;  %v9178_v24 = vrot.slane %v9177_v1, 4  ;;  %v9184_v7 = vsel %vm8966_vm0, %v8429_v9, -inf }
 0x414   : > { %v21385_v38 = vpop.f32.mrb[31].mxu0  ;;  %v9139_v36 = vmax.f32 %v9137_v59, %v9138_v26  ;;  %v9145_v45 = vrot.slane %v9144_v32, 2  ;;  %v9152_v41 = vrot.slane %v9151_v56, 2  ;;  %v9158_v31 = vmax.f32 %v9156_v51, %v9157_v62 }
 0x415   : > { %23892 = vst [vmem:[#allocation16_spill] sm:$0xff] %v21385_v38  ;;  %v9165_v25 = vmax.f32 %v9163_v46, %v9164_v13  ;;  %v9171_v17 = vrot.slane %v9170_v47, 4  ;;  %v21389_v44 = vmax.f32 %v9177_v1, %v9178_v24  ;;  %v9185_v2 = vrot.slane %v9184_v7, 4 }
 0x416   : > { %v9140_v21 = vrot.slane %v9139_v36, 1  ;;  %v9159_v53 = vrot.slane %v9158_v31, 2  ;;  %v8171_v63 = vadd.f32 %v17254_v48, %v21179_v30  ;;  %v23893_v6 = vrot.slane %v21209_v28, 1 }
 0x417   : > { %v9166_v59 = vrot.slane %v9165_v25, 2  ;;  %v21399_v14 = vmax.f32 %v9170_v47, %v9171_v17  ;;  %v23895_v62 = vrot.slane %v21268_v54, 1  ;;  %v23896_v13 = vrot.slane %v21289_v37, 1 }
 0x418   : > { %v21395_v58 = vmax.f32 %v21209_v28, %v23893_v6  ;;  %v21413_v51 = vmax.f32 %v9144_v32, %v9145_v45  ;;  %v21415_v28 = vmax.f32 %v9151_v56, %v9152_v41  ;;  %v23898_v26 = vrot.slane %v21298_v3, 1 }
 0x419   : > { %v21397_v34 = vpop.f32.mrb[32].mxu0  ;;  %v21404_v1 = vmax.f32 %v21268_v54, %v23895_v62  ;;  %v21409_v46 = vmax.f32 %v21289_v37, %v23896_v13  ;;  %v21425_v24 = vmax.f32 %v9139_v36, %v9140_v21  ;;  %v21427_v17 = vmax.f32 %v9184_v7, %v9185_v2 }
 0x41a   : > { %23894 = vst [vmem:[#allocation17_spill] sm:$0xff] %v21397_v34  ;;  %v21411_v48 = vpop.f32.mrb[33].mxu0  ;;  %v21421_v47 = vmax.f32 %v21298_v3, %v23898_v26  ;;  %v8444_v37 = vrot.slane %v8430_v0, %v21181_v33  ;;  %v8445_v6 = vcombine.high %v8437_v50, %v8437_v50  ;;  %v21432_v45 = vmax.f32 %v9158_v31, %v9159_v53 }
 0x41b   : > { %23897 = vst [vmem:[#allocation18_spill] sm:$0xff] %v21411_v48  ;;  %v21423_v54 = vpop.f32.mrb[34].mxu0  ;;  %23900 = vst [vmem:[#allocation20_spill] sm:$0xff] %v21425_v24  ;;  %v9191_v56 = vsel %vm8966_vm0, %v8437_v50, -inf  ;;  %v8447_v41 = vcombine.high %v8171_v63, %v8171_v63  ;;  %v8454_v62 = vrot.slane %v8171_v63, %v21181_v33  ;;  %v21436_v3 = vmax.f32 %v9165_v25, %v9166_v59 }
 0x41c   : > { %23899 = vst [vmem:[#allocation19_spill] sm:$0xff] %v21423_v54  ;;  %23901 = vst [vmem:[#allocation21_spill] sm:$0xff] %v21427_v17  ;;  %v21430_v32 = vpop.f32.mrb[35].mxu0  ;;  %v9173_v13 = vrot.slane %v21399_v14, 2  ;;  %v8446_v36 = vcombine.high %v8444_v37, %v8444_v37  ;;  %v9192_v21 = vrot.slane %v9191_v56, 4  ;;  %v9198_v7 = vsel %vm8966_vm0, %v8445_v6, -inf }
 0x41d   : > { %23902 = vst [vmem:[#allocation22_spill] sm:$0xff] %v21430_v32  ;;  %v9205_v0 = vsel %vm8966_vm0, %v8444_v37, -inf  ;;  %v8461_v2 = vrot.slane %v8447_v41, %v21181_v33  ;;  %v8462_v26 = vcombine.high %v8454_v62, %v8454_v62  ;;  %v9199_v53 = vrot.slane %v9198_v7, 4 }
 0x41e   : > { %v9193_v31 = vmax.f32 %v9191_v56, %v9192_v21  ;;  %v9206_v9 = vrot.slane %v9205_v0, 4  ;;  %v9212_v50 = vsel %vm8966_vm0, %v8446_v36, -inf  ;;  %v9219_v25 = vsel %vm8966_vm0, %v8454_v62, -inf }
 0x41f   : > { %v9213_v17 = vrot.slane %v9212_v50, 4  ;;  %v8463_v63 = vcombine.high %v8461_v2, %v8461_v2  ;;  %v9226_v59 = vsel %vm8966_vm0, %v8462_v26, -inf  ;;  %v9200_v6 = vmax.f32 %v9198_v7, %v9199_v53 }
 0x420   : > { %v9194_v16 = vrot.slane %v9193_v31, 2  ;;  %v9207_v32 = vmax.f32 %v9205_v0, %v9206_v9  ;;  %v9220_v37 = vrot.slane %v9219_v25, 4  ;;  %v9227_v56 = vrot.slane %v9226_v59, 4 }
 0x421   : > { %v21445_v24 = vpop.f32.mrb[36].mxu0  ;;  %v9214_v41 = vmax.f32 %v9212_v50, %v9213_v17  ;;  %v9233_v21 = vsel %vm8966_vm0, %v8461_v2, -inf  ;;  %v9240_v36 = vsel %vm8966_vm0, %v8463_v63, -inf  ;;  %v9201_v34 = vrot.slane %v9200_v6, 2 }
 0x422   : > { %23903 = vst [vmem:[#allocation23_spill] sm:$0xff] %v21445_v24  ;;  %v21447_v54 = vpop.f32.mrb[37].mxu0  ;;  %v9195_v62 = vmax.f32 %v9193_v31, %v9194_v16  ;;  %v9208_v26 = vrot.slane %v9207_v32, 2  ;;  %v9221_v38 = vmax.f32 %v9219_v25, %v9220_v37  ;;  %v21455_v7 = vmax.f32 %v9226_v59, %v9227_v56 }
 0x423   : > { %v21451_v48 = vpop.f32.mrb[38].mxu0  ;;  %v9215_v9 = vrot.slane %v9214_v41, 2  ;;  %v9234_v0 = vrot.slane %v9233_v21, 4  ;;  %v9241_v17 = vrot.slane %v9240_v36, 4  ;;  %v21457_v2 = vmax.f32 %v9200_v6, %v9201_v34 }
 0x424   : > { %v21453_v24 = vpop.f32.mrb[39].mxu0  ;;  %v9196_v53 = vrot.slane %v9195_v62, 1  ;;  %v21459_v50 = vmax.f32 %v9207_v32, %v9208_v26  ;;  %v9222_v63 = vrot.slane %v9221_v38, 2  ;;  %v21468_v56 = vmax.f32 %v21399_v14, %v9173_v13 }
 0x425   : > { %23904 = vst [vmem:[#allocation24_spill] sm:$0xff] %v21453_v24  ;;  %v21464_v37 = vmax.f32 %v9214_v41, %v9215_v9  ;;  %v21475_v6 = vmax.f32 %v9233_v21, %v9234_v0  ;;  %v21477_v26 = vmax.f32 %v9240_v36, %v9241_v17  ;;  %v23907_v31 = vrot.slane %v21257_v39, 1 }
 0x426   : > { %v21470_v24 = vmax.f32 %v9221_v38, %v9222_v63  ;;  %v21473_v32 = vmax.f32 %v9195_v62, %v9196_v53  ;;  %v9867_v21 = vsel %vm9863_vm1, %v21277_v60, -inf  ;;  %v9868_v36 = vsel %vm9863_vm1, %v21404_v1, -inf }
 0x427   : > { %23906 = vst [vmem:[#allocation26_spill] sm:$0xff] %v21477_v26  ;;  %v9057_v41 = vmax.f32 %v21257_v39, %v23907_v31  ;;  %v9870_v39 = vsel %vm9863_vm1, %v21282_v61, -inf  ;;  %v9871_v0 = vsel %vm9863_vm1, %v21409_v46, -inf  ;;  %v21500_v53 = vmax.f32 %v9867_v21, %v9868_v36 }
 0x428   : > { %23905 = vst [vmem:[#allocation25_spill] sm:$0xff] %v21473_v32  ;;  %v21502_v63 = vmax.f32 %v9870_v39, %v9871_v0  ;;  %v9873_v31 = vsel %vm9863_vm1, %v21287_v22, -inf  ;;  %v9874_v60 = vsel %vm9863_vm1, %v21421_v47, -inf  ;;  %v9876_v61 = vsel %vm9863_vm1, %v21395_v58, -inf }
 0x429   : > { %v21482_v9 = vpop.f32.mrb[40].mxu0  ;;  %23908 = vst [vmem:[#allocation27_spill] sm:$0xff] %v21500_v53  ;;  %v21510_v1 = vmax.f32 %v9873_v31, %v9874_v60  ;;  %v9877_v46 = vsel %vm9863_vm1, %v9057_v41, -inf  ;;  %v17257_v21 = vadd.f32 %v21308_v12, %v21305_v8  ;;  %v9007_v47 = vrot.slane %v21266_v49, 1 }
 0x42a   : > { %v21488_v62 = vpop.f32.mrb[41].mxu0  ;;  %23909 = vst [vmem:[#allocation28_spill] sm:$0xff] %v21502_v63  ;;  %v21517_v36 = vmax.f32 %v9876_v61, %v9877_v46  ;;  %v10095_v22 = vsel %vm10072_vm2, %v21502_v63, %v21500_v53  ;;  %v23912_v39 = vrot.slane %v21199_v18, 2  ;;  %v9063_v31 = vrot.slane %v21332_v57, 1 }
 0x42b   : > { %v21498_v17 = vpop.f32.mrb[42].mxu0  ;;  %23910 = vst [vmem:[#allocation29_spill] sm:$0xff] %v21510_v1  ;;  %v10096_v58 = vsel %vm10074_vm3, %v21510_v1, %v10095_v22  ;;  %v8176_v41 = vadd.f32 %v17257_v21, %v21179_v30  ;;  %v23913_v8 = vrot.slane %v21261_v43, 2  ;;  %v9008_v61 = vmax.f32 %v21266_v49, %v9007_v47 }
 0x42c   : > { %v21508_v38 = vpop.f32.mrb[43].mxu0  ;;  %23911 = vst [vmem:[#allocation30_spill] sm:$0xff] %v21517_v36  ;;  %v9013_v0 = vmax.f32 %v21199_v18, %v23912_v39  ;;  %v10097_v60 = vsel %vm10076_vm4, %v21517_v36, %v10096_v58  ;;  %v10143_v18 = vsel %vm10072_vm2, %v21517_v36, %v21510_v1  ;;  %v9064_v39 = vmax.f32 %v21332_v57, %v9063_v31 }
 0x42d   : > { %v9069_v12 = vmax.f32 %v21261_v43, %v23913_v8  ;;  %10107 = vrot.lane.b32.xlu0 %v10097_v60, %s18903_s26  ;;  %v8464_v21 = vcombine.high %v8176_v41, %v8176_v41  ;;  %v8471_v22 = vrot.slane %v8176_v41, %v21181_v33  ;;  %v9879_v58 = vsel %vm9863_vm1, %v9008_v61, -inf }
 0x42e   : > { %v9014_v46 = vrot.slane %v9013_v0, 1  ;;  %v17260_v49 = vadd.f32 %v21316_v27, %v21314_v15  ;;  %v17263_v47 = vadd.f32 %v21335_v19, %v21328_v11  ;;  %v9880_v14 = vsel %vm9863_vm1, %v9064_v39, -inf }
 0x42f   : > { %v9070_v25 = vrot.slane %v9069_v12, 1  ;;  %v8478_v60 = vrot.slane %v8464_v21, %v21181_v33  ;;  %v8479_v13 = vcombine.high %v8471_v22, %v8471_v22  ;;  %v9247_v41 = vsel %vm8966_vm0, %v8471_v22, -inf }
 0x430   : > { %v9015_v8 = vmax.f32 %v9013_v0, %v9014_v46  ;;  %v9248_v31 = vrot.slane %v9247_v41, 4  ;;  %v8179_v61 = vadd.f32 %v17260_v49, %v21179_v30  ;;  %v21558_v11 = vmax.f32 %v9879_v58, %v9880_v14 }
 0x431   : > { %v21542_v43 = vpop.f32.mrb[44].mxu0  ;;  %v9071_v57 = vmax.f32 %v9069_v12, %v9070_v25  ;;  %v8480_v46 = vcombine.high %v8478_v60, %v8478_v60  ;;  %v9254_v15 = vsel %vm8966_vm0, %v8479_v13, -inf  ;;  %v9261_v27 = vsel %vm8966_vm0, %v8478_v60, -inf }
 0x432   : > { %v21549_v16 = vpop.f32.mrb[45].mxu0  ;;  %v9882_v0 = vsel %vm9863_vm1, %v9015_v8, -inf  ;;  %23914 = vst [vmem:[#allocation31_spill] sm:$0xff] %v21558_v11  ;;  %v9249_v19 = vmax.f32 %v9247_v41, %v9248_v31  ;;  %v9255_v21 = vrot.slane %v9254_v15, 4  ;;  %v9262_v59 = vrot.slane %v9261_v27, 4 }
 0x433   : > { %v9883_v22 = vsel %vm9863_vm1, %v9071_v57, -inf  ;;  %v9268_v25 = vsel %vm8966_vm0, %v8480_v46, -inf  ;;  %v10144_v39 = vsel %vm10074_vm3, %v21558_v11, %v10143_v18  ;;  %v8481_v8 = vcombine.high %v8179_v61, %v8179_v61 }
 0x434   : > { %v21562_v12 = vmax.f32 %v9882_v0, %v9883_v22  ;;  %v9250_v49 = vrot.slane %v9249_v19, 2  ;;  %v9256_v34 = vmax.f32 %v9254_v15, %v9255_v21  ;;  %v9263_v13 = vmax.f32 %v9261_v27, %v9262_v59  ;;  %v21574_v27 = vpop.f32.mrb[46].mxu0 }
 0x435   : > { %v9269_v36 = vrot.slane %v9268_v25, 4  ;;  %v8488_v58 = vrot.slane %v8179_v61, %v21181_v33  ;;  %v8495_v60 = vrot.slane %v8481_v8, %v21181_v33  ;;  %v8184_v41 = vadd.f32 %v17263_v47, %v21179_v30  ;;  %23916 = vst [vmem:[#allocation33_spill] sm:$0xff] %v21574_v27 }
 0x436   : > { %23915 = vst [vmem:[#allocation32_spill] sm:$0xff] %v21562_v12  ;;  %v10145_v14 = vsel %vm10076_vm4, %v21562_v12, %v10144_v39  ;;  %v9251_v57 = vmax.f32 %v9249_v19, %v9250_v49  ;;  %v9257_v31 = vrot.slane %v9256_v34, 2  ;;  %v9264_v0 = vrot.slane %v9263_v13, 2  ;;  %v21576_v12 = vpop.f32.mrb[47].mxu0 }
 0x437   : > { %v9270_v46 = vmax.f32 %v9268_v25, %v9269_v36  ;;  %10155 = vrot.lane.b32.xlu0 %v10145_v14, %s18903_s26  ;;  %v8496_v18 = vcombine.high %v8488_v58, %v8488_v58  ;;  %v8497_v22 = vcombine.high %v8495_v60, %v8495_v60  ;;  %v9275_v59 = vsel %vm8966_vm0, %v8488_v58, -inf  ;;  %23917 = vst [vmem:[#allocation34_spill] sm:$0xff] %v21576_v12 }
 0x438   : > { %v9289_v15 = vsel %vm8966_vm0, %v8495_v60, -inf  ;;  %v9252_v21 = vrot.slane %v9251_v57, 1  ;;  %v9258_v61 = vmax.f32 %v9256_v34, %v9257_v31  ;;  %v9265_v39 = vmax.f32 %v9263_v13, %v9264_v0 }
 0x439   : > { %v9271_v8 = vrot.slane %v9270_v46, 2  ;;  %v9276_v47 = vrot.slane %v9275_v59, 4  ;;  %v9282_v19 = vsel %vm8966_vm0, %v8496_v18, -inf  ;;  %v9290_v36 = vrot.slane %v9289_v15, 4 }
 0x43a   : > { %v9296_v25 = vsel %vm8966_vm0, %v8497_v22, -inf  ;;  %v23918_v49 = vrot.slane %v21455_v7, 2  ;;  %v9259_v58 = vrot.slane %v9258_v61, 1  ;;  %v9266_v60 = vrot.slane %v9265_v39, 1 }
 0x43b   : > { %v21585_v11 = vmax.f32 %v9270_v46, %v9271_v8  ;;  %v9277_v34 = vmax.f32 %v9275_v59, %v9276_v47  ;;  %v9283_v13 = vrot.slane %v9282_v19, 4  ;;  %v21587_v31 = vmax.f32 %v9289_v15, %v9290_v36 }
 0x43c   : > { %v21583_v14 = vmax.f32 %v21455_v7, %v23918_v49  ;;  %v9297_v0 = vrot.slane %v9296_v25, 4  ;;  %v23919_v1 = vrot.slane %v21457_v2, 1  ;;  %v23920_v22 = vrot.slane %v21459_v50, 1 }
 0x43d   : > { %v8498_v49 = vcombine.high %v8184_v41, %v8184_v41  ;;  %v23921_v46 = vrot.slane %v21470_v24, 1  ;;  %v21605_v15 = vmax.f32 %v9251_v57, %v9252_v21  ;;  %v21607_v8 = vmax.f32 %v9258_v61, %v9259_v58 }
 0x43e   : > { %v21592_v18 = vmax.f32 %v21457_v2, %v23919_v1  ;;  %v21597_v63 = vmax.f32 %v21459_v50, %v23920_v22  ;;  %v9278_v47 = vrot.slane %v9277_v34, 2  ;;  %v9284_v2 = vmax.f32 %v9282_v19, %v9283_v13  ;;  %v21613_v22 = vpop.f32.mrb[48].mxu0 }
 0x43f   : > { %v21603_v59 = vmax.f32 %v21470_v24, %v23921_v46  ;;  %23922 = vst [vmem:[#allocation35_spill] sm:$0xff] %v21605_v15  ;;  %v8505_v1 = vrot.slane %v8184_v41, %v21181_v33  ;;  %v8512_v36 = vrot.slane %v8498_v49, %v21181_v33  ;;  %v17266_v50 = vadd.f32 %v21351_v55, %v21344_v35  ;;  %v21621_v61 = vpop.f32.mrb[49].mxu0 }
 0x440   : > { %23923 = vst [vmem:[#allocation36_spill] sm:$0xff] %v21613_v22  ;;  %v21615_v7 = vmax.f32 %v9265_v39, %v9266_v60  ;;  %v21619_v21 = vmax.f32 %v9296_v25, %v9297_v0  ;;  %23925 = vst [vmem:[#allocation38_spill] sm:$0xff] %v21621_v61  ;;  %v9279_v49 = vmax.f32 %v9277_v34, %v9278_v47  ;;  %v23926_v39 = vrot.slane %v21321_v40, 1 }
 0x441   : > { %v8513_v19 = vcombine.high %v8505_v1, %v8505_v1  ;;  %v8514_v58 = vcombine.high %v8512_v36, %v8512_v36  ;;  %v9303_v41 = vsel %vm8966_vm0, %v8505_v1, -inf  ;;  %v9317_v13 = vsel %vm8966_vm0, %v8512_v36, -inf }
 0x442   : > { %23924 = vst [vmem:[#allocation37_spill] sm:$0xff] %v21619_v21  ;;  %v9304_v35 = vrot.slane %v9303_v41, 4  ;;  %v9318_v55 = vrot.slane %v9317_v13, 4  ;;  %v9092_v60 = vmax.f32 %v21321_v40, %v23926_v39  ;;  %v9285_v46 = vrot.slane %v9284_v2, 2 }
 0x443   : > { %v9310_v57 = vsel %vm8966_vm0, %v8513_v19, -inf  ;;  %v9324_v25 = vsel %vm8966_vm0, %v8514_v58, -inf  ;;  %v8187_v0 = vadd.f32 %v17266_v50, %v21179_v30  ;;  %v23927_v1 = vrot.slane %v21323_v4, 1 }
 0x444   : > { %v9305_v24 = vmax.f32 %v9303_v41, %v9304_v35  ;;  %v9311_v53 = vrot.slane %v9310_v57, 4  ;;  %v9319_v21 = vmax.f32 %v9317_v13, %v9318_v55  ;;  %v9325_v47 = vrot.slane %v9324_v25, 4 }
 0x445   : > { %v9099_v34 = vmax.f32 %v21323_v4, %v23927_v1  ;;  %v8515_v36 = vcombine.high %v8187_v0, %v8187_v0  ;;  %v8522_v26 = vrot.slane %v8187_v0, %v21181_v33  ;;  %v23928_v40 = vrot.slane %v21340_v23, 1 }
 0x446   : > { %v9280_v19 = vrot.slane %v9279_v49, 1  ;;  %v9306_v61 = vrot.slane %v9305_v24, 2  ;;  %v9312_v58 = vmax.f32 %v9310_v57, %v9311_v53  ;;  %v9320_v22 = vrot.slane %v9319_v21, 2 }
 0x447   : > { %v9106_v39 = vmax.f32 %v21340_v23, %v23928_v40  ;;  %v9326_v30 = vmax.f32 %v9324_v25, %v9325_v47  ;;  %v8529_v50 = vrot.slane %v8515_v36, %v21181_v33  ;;  %v8530_v41 = vcombine.high %v8522_v26, %v8522_v26 }
 0x448   : > { %v9331_v13 = vsel %vm8966_vm0, %v8522_v26, -inf  ;;  %v9307_v35 = vmax.f32 %v9305_v24, %v9306_v61  ;;  %v9313_v4 = vrot.slane %v9312_v58, 2  ;;  %v9321_v55 = vmax.f32 %v9319_v21, %v9320_v22 }
 0x449   : > { %v9332_v1 = vrot.slane %v9331_v13, 4  ;;  %v9327_v15 = vrot.slane %v9326_v30, 2  ;;  %v8531_v0 = vcombine.high %v8529_v50, %v8529_v50  ;;  %v9338_v32 = vsel %vm8966_vm0, %v8530_v41, -inf  ;;  %v21650_v41 = vpop.f32.mrb[50].mxu0 }
 0x44a   : > { %v9345_v23 = vsel %vm8966_vm0, %v8529_v50, -inf  ;;  %v9308_v40 = vrot.slane %v9307_v35, 1  ;;  %v9314_v12 = vmax.f32 %v9312_v58, %v9313_v4  ;;  %v9322_v53 = vrot.slane %v9321_v55, 1  ;;  %23930 = vst [vmem:[#allocation39_spill] sm:$0xff] %v21650_v41 }
 0x44b   : > { %v9333_v57 = vmax.f32 %v9331_v13, %v9332_v1  ;;  %v21642_v25 = vmax.f32 %v9284_v2, %v9285_v46  ;;  %v9328_v47 = vmax.f32 %v9326_v30, %v9327_v15  ;;  %v9339_v36 = vrot.slane %v9338_v32, 4  ;;  %v21660_v13 = vpop.f32.mrb[51].mxu0 }
 0x44c   : > { %v9346_v27 = vrot.slane %v9345_v23, 4  ;;  %v9315_v26 = vrot.slane %v9314_v12, 1  ;;  %v21645_v22 = vsel %vm8966_vm0, %v8531_v0, -inf  ;;  %v23929_v21 = vrot.slane %v21413_v51, 1  ;;  %23933 = vst [vmem:[#allocation40_spill] sm:$0xff] %v21660_v13 }
 0x44d   : > { %v9334_v24 = vrot.slane %v9333_v57, 2  ;;  %v9329_v50 = vrot.slane %v9328_v47, 1  ;;  %v21652_v58 = vmax.f32 %v9338_v32, %v9339_v36  ;;  %v23931_v2 = vrot.slane %v21342_v29, 1 }
 0x44e   : > { %v9148_v61 = vmax.f32 %v21413_v51, %v23929_v21  ;;  %v23932_v46 = vrot.slane %v21415_v28, 1  ;;  %v21662_v4 = vmax.f32 %v9279_v49, %v9280_v19  ;;  %v21664_v1 = vmax.f32 %v9307_v35, %v9308_v40 }
 0x44f   : > { %v9113_v15 = vmax.f32 %v21342_v29, %v23931_v2  ;;  %v21666_v51 = vmax.f32 %v9321_v55, %v9322_v53  ;;  %v23934_v0 = vrot.slane %v21432_v45, 1  ;;  %v21671_v36 = vmax.f32 %v9314_v12, %v9315_v26 }
 0x450   : > { %v9155_v30 = vmax.f32 %v21415_v28, %v23932_v46  ;;  %v21673_v21 = vmax.f32 %v9345_v23, %v9346_v27  ;;  %v23935_v28 = vrot.slane %v21436_v3, 1  ;;  %v21679_v49 = vmax.f32 %v9328_v47, %v9329_v50 }
 0x451   : > { %v9162_v32 = vmax.f32 %v21432_v45, %v23934_v0  ;;  %v9335_v19 = vmax.f32 %v9333_v57, %v9334_v24  ;;  %v9891_v35 = vsel %vm9863_vm1, %v9092_v60, -inf  ;;  %v9892_v55 = vsel %vm9863_vm1, %v9148_v61, -inf }
 0x452   : > { %v9169_v2 = vmax.f32 %v21436_v3, %v23935_v28  ;;  %v21684_v45 = vmax.f32 %v9891_v35, %v9892_v55  ;;  %v9894_v12 = vsel %vm9863_vm1, %v9099_v34, -inf  ;;  %v9895_v27 = vsel %vm9863_vm1, %v9155_v30, -inf }
 0x453   : > { %v21688_v23 = vmax.f32 %v9894_v12, %v9895_v27  ;;  %v9897_v53 = vsel %vm9863_vm1, %v9106_v39, -inf  ;;  %v9898_v3 = vsel %vm9863_vm1, %v9162_v32, -inf  ;;  %v9900_v57 = vsel %vm9863_vm1, %v9113_v15, -inf }
 0x454   : > { %v21693_v47 = vmax.f32 %v9897_v53, %v9898_v3  ;;  %v9901_v60 = vsel %vm9863_vm1, %v9169_v2, -inf  ;;  %v9119_v26 = vrot.slane %v21366_v20, 1  ;;  %v23936_v24 = vrot.slane %v21326_v10, 2  ;;  %v23942_v3 = vld [vmem:[#allocation16_spill] sm:$0xff] }
 0x455   : > { %v9336_v61 = vrot.slane %v9335_v19, 1  ;;  %v21700_v50 = vmax.f32 %v9900_v57, %v9901_v60  ;;  %v10098_v39 = vsel %vm10072_vm2, %v21688_v23, %v21684_v45  ;;  %v9175_v46 = vrot.slane %v21468_v56, 1 }
 0x456   : > { %v9125_v34 = vmax.f32 %v21326_v10, %v23936_v24  ;;  %v10099_v15 = vsel %vm10074_vm3, %v21693_v47, %v10098_v39  ;;  %v9120_v30 = vmax.f32 %v21366_v20, %v9119_v26  ;;  %v23938_v32 = vrot.slane %v21389_v44, 2  ;;  %v21712_v10 = vpop.f32.mrb[52].mxu0  ;;  %v23943_v26 = vld [vmem:[#allocation17_spill] sm:$0xff]  ;;  %v23944_v24 = vld [vmem:[#allocation18_spill] sm:$0xff] }
 0x457   : > { %23937 = vst [vmem:[#allocation41_spill] sm:$0xff] %v21700_v50  ;;  %23939 = vst [vmem:[#allocation42_spill] sm:$0xff] %v21712_v10  ;;  %v21717_v35 = vsel %vm10076_vm4, %v21700_v50, %v10099_v15  ;;  %v9176_v55 = vmax.f32 %v21468_v56, %v9175_v46  ;;  %v17269_v12 = vadd.f32 %v21378_v5, %v21373_v52  ;;  %v21722_v27 = vpop.f32.mrb[53].mxu0  ;;  %v21736_v52 = vld [vmem:[%s23805_s2] ss:$0 sm:$0xff] }
 0x458   : > { %v9126_v0 = vrot.slane %v9125_v34, 1  ;;  %v9181_v28 = vmax.f32 %v21389_v44, %v23938_v32  ;;  %23940 = vst [vmem:[#allocation43_spill] sm:$0xff] %v21717_v35  ;;  %23941 = vst [vmem:[#allocation44_spill] sm:$0xff] %v21722_v27  ;;  %10109 = vrot.lane.b32.xlu1 %v21717_v35, %s18903_s26  ;;  %v10146_v53 = vsel %vm10072_vm2, %v21700_v50, %v21693_v47  ;;  %v9903_v60 = vsel %vm9863_vm1, %v9120_v30, -inf  ;;  %v21770_v35 = vpop.f32.mrb[54].mxu0 }
 0x459   : > { %v17272_v57 = vadd.f32 %v23942_v3, %v21380_v42  ;;  %v9904_v56 = vsel %vm9863_vm1, %v9176_v55, -inf  ;;  %v8192_v5 = vadd.f32 %v21736_v52, %v17269_v12  ;;  %v9337_v39 = vmax.f32 %v9335_v19, %v9336_v61  ;;  %23948 = vst [vmem:[#allocation45_spill] sm:$0xff] %v21770_v35 }
 0x45a   : > { %v9127_v20 = vmax.f32 %v9125_v34, %v9126_v0  ;;  %v9182_v44 = vrot.slane %v9181_v28, 1  ;;  %v17275_v34 = vadd.f32 %v23944_v24, %v23943_v26  ;;  %v21741_v15 = vmax.f32 %v9903_v60, %v9904_v56 }
 0x45b   : > { %v8195_v42 = vadd.f32 %v21736_v52, %v17272_v57  ;;  %v8532_v0 = vcombine.high %v8192_v5, %v8192_v5  ;;  %v8539_v32 = vrot.slane %v8192_v5, %v21181_v33 }
 0x45c   : > { %v9183_v46 = vmax.f32 %v9181_v28, %v9182_v44  ;;  %23945 = vst [vmem:[#allocation16_spill] sm:$0xff] %v21741_v15  ;;  %v9906_v30 = vsel %vm9863_vm1, %v9127_v20, -inf  ;;  %v21747_v55 = vadd.f32 %v21736_v52, %v17275_v34  ;;  %v10147_v12 = vsel %vm10074_vm3, %v21741_v15, %v10146_v53 }
 0x45d   : > { %v8549_v26 = vcombine.high %v8195_v42, %v8195_v42  ;;  %v8556_v19 = vrot.slane %v8195_v42, %v21181_v33  ;;  %v8546_v28 = vrot.slane %v8532_v0, %v21181_v33  ;;  %v8547_v44 = vcombine.high %v8539_v32, %v8539_v32 }
 0x45e   : > { %v9907_v3 = vsel %vm9863_vm1, %v9183_v46, -inf  ;;  %v9359_v20 = vsel %vm8966_vm0, %v8539_v32, -inf }
 0x45f   : > { %v21753_v61 = vmax.f32 %v9906_v30, %v9907_v3  ;;  %v9360_v57 = vrot.slane %v9359_v20, 4  ;;  %v8563_v60 = vrot.slane %v8549_v26, %v21181_v33  ;;  %v8564_v56 = vcombine.high %v8556_v19, %v8556_v19 }
 0x460   : > { %v9387_v5 = vsel %vm8966_vm0, %v8556_v19, -inf  ;;  %v8548_v53 = vcombine.high %v8546_v28, %v8546_v28  ;;  %v9366_v34 = vsel %vm8966_vm0, %v8547_v44, -inf  ;;  %v9373_v46 = vsel %vm8966_vm0, %v8546_v28, -inf }
 0x461   : > { %23946 = vst [vmem:[#allocation17_spill] sm:$0xff] %v21753_v61  ;;  %v21761_v24 = vsel %vm10076_vm4, %v21753_v61, %v10147_v12  ;;  %v9361_v42 = vmax.f32 %v9359_v20, %v9360_v57  ;;  %v9367_v30 = vrot.slane %v9366_v34, 4  ;;  %v9374_v0 = vrot.slane %v9373_v46, 4  ;;  %v21773_v57 = vpop.f32.mrb[55].mxu0 }
 0x462   : > { %23947 = vst [vmem:[#allocation18_spill] sm:$0xff] %v21761_v24  ;;  %10157 = vrot.lane.b32.xlu0 %v21761_v24, %s18903_s26  ;;  %v8565_v32 = vcombine.high %v8563_v60, %v8563_v60  ;;  %v9380_v3 = vsel %vm8966_vm0, %v8548_v53, -inf  ;;  %v9388_v26 = vrot.slane %v9387_v5, 4  ;;  %v9394_v19 = vsel %vm8966_vm0, %v8564_v56, -inf  ;;  %23949 = vst [vmem:[#allocation46_spill] sm:$0xff] %v21773_v57 }
 0x463   : > { %v9401_v12 = vsel %vm8966_vm0, %v8563_v60, -inf  ;;  %v9362_v2 = vrot.slane %v9361_v42, 2  ;;  %v9368_v29 = vmax.f32 %v9366_v34, %v9367_v30  ;;  %v9375_v40 = vmax.f32 %v9373_v46, %v9374_v0 }
 0x464   : > { %v9381_v44 = vrot.slane %v9380_v3, 4  ;;  %v9389_v28 = vmax.f32 %v9387_v5, %v9388_v26  ;;  %v9395_v61 = vrot.slane %v9394_v19, 4  ;;  %v9402_v24 = vrot.slane %v9401_v12, 4 }
 0x465   : > { %v9408_v20 = vsel %vm8966_vm0, %v8565_v32, -inf  ;;  %v9363_v27 = vmax.f32 %v9361_v42, %v9362_v2  ;;  %v9369_v53 = vrot.slane %v9368_v29, 2  ;;  %v9376_v10 = vrot.slane %v9375_v40, 2 }
 0x466   : > { %v9382_v13 = vmax.f32 %v9380_v3, %v9381_v44  ;;  %v9390_v56 = vrot.slane %v9389_v28, 2  ;;  %v9396_v41 = vmax.f32 %v9394_v19, %v9395_v61  ;;  %v21775_v60 = vmax.f32 %v9401_v12, %v9402_v24 }
 0x467   : > { %v9409_v34 = vrot.slane %v9408_v20, 4  ;;  %v9364_v46 = vrot.slane %v9363_v27, 1  ;;  %v9370_v30 = vmax.f32 %v9368_v29, %v9369_v53  ;;  %v21777_v0 = vmax.f32 %v9375_v40, %v9376_v10 }
 0x468   : > { %v9383_v5 = vrot.slane %v9382_v13, 2  ;;  %v23950_v26 = vrot.slane %v21652_v58, 2  ;;  %v23951_v2 = vrot.slane %v21645_v22, 4  ;;  %v21790_v61 = vsel %vm9863_vm1, %v9337_v39, -inf }
 0x469   : > { %v9391_v24 = vmax.f32 %v9389_v28, %v9390_v56  ;;  %v9397_v19 = vrot.slane %v9396_v41, 2  ;;  %v23953_v29 = vrot.slane %v21464_v37, 1  ;;  %v23954_v10 = vrot.slane %v21585_v11, 1 }
 0x46a   : > { %v21782_v32 = vmax.f32 %v21652_v58, %v23950_v26  ;;  %v21787_v42 = vmax.f32 %v21645_v22, %v23951_v2  ;;  %v9384_v3 = vmax.f32 %v9382_v13, %v9383_v5  ;;  %v8566_v22 = vcombine.high %v21747_v55, %v21747_v55 }
 0x46b   : > { %v9218_v40 = vmax.f32 %v21464_v37, %v23953_v29  ;;  %v9274_v58 = vmax.f32 %v21585_v11, %v23954_v10  ;;  %v9392_v12 = vrot.slane %v9391_v24, 1  ;;  %v8573_v39 = vrot.slane %v21747_v55, %v21181_v33 }
 0x46c   : > { %23952 = vst [vmem:[#allocation47_spill] sm:$0xff] %v21787_v42  ;;  %v21803_v28 = vmax.f32 %v9363_v27, %v9364_v46  ;;  %v9371_v13 = vrot.slane %v9370_v30, 1  ;;  %v9378_v53 = vrot.slane %v21777_v0, 1  ;;  %v21806_v56 = vmax.f32 %v9408_v20, %v9409_v34 }
 0x46d   : > { %v9385_v37 = vrot.slane %v9384_v3, 1  ;;  %v8580_v5 = vrot.slane %v8566_v22, %v21181_v33  ;;  %v8581_v11 = vcombine.high %v8573_v39, %v8573_v39  ;;  %v9415_v26 = vsel %vm8966_vm0, %v8573_v39, -inf }
 0x46e   : > { %23955 = vst [vmem:[#allocation48_spill] sm:$0xff] %v21806_v56  ;;  %v9393_v2 = vmax.f32 %v9391_v24, %v9392_v12  ;;  %v9416_v29 = vrot.slane %v9415_v26, 4  ;;  %v9915_v10 = vsel %vm9863_vm1, %v21592_v18, -inf  ;;  %v9916_v27 = vsel %vm9863_vm1, %v21607_v8, -inf }
 0x46f   : > { %v8582_v55 = vcombine.high %v8580_v5, %v8580_v5  ;;  %v9422_v46 = vsel %vm8966_vm0, %v8581_v11, -inf  ;;  %v9429_v20 = vsel %vm8966_vm0, %v8580_v5, -inf  ;;  %v9918_v34 = vsel %vm9863_vm1, %v21597_v63, -inf }
 0x470   : > { %v9417_v22 = vmax.f32 %v9415_v26, %v9416_v29  ;;  %v9423_v44 = vrot.slane %v9422_v46, 4  ;;  %v9430_v56 = vrot.slane %v9429_v20, 4  ;;  %v21818_v39 = vmax.f32 %v9915_v10, %v9916_v27 }
 0x471   : > { %v9436_v24 = vsel %vm8966_vm0, %v8582_v55, -inf  ;;  %v9919_v18 = vsel %vm9863_vm1, %v21615_v7, -inf  ;;  %v9921_v8 = vsel %vm9863_vm1, %v9218_v40, -inf  ;;  %v9922_v12 = vsel %vm9863_vm1, %v9274_v58, -inf  ;;  %v21833_v55 = vpop.f32.mrb[56].mxu0 }
 0x472   : > { %23956 = vst [vmem:[#allocation49_spill] sm:$0xff] %v21818_v39  ;;  %v9418_v11 = vrot.slane %v9417_v22, 2  ;;  %v9424_v42 = vmax.f32 %v9422_v46, %v9423_v44  ;;  %v9431_v5 = vmax.f32 %v9429_v20, %v9430_v56  ;;  %v9437_v57 = vrot.slane %v9436_v24, 4  ;;  %23957 = vst [vmem:[#allocation50_spill] sm:$0xff] %v21833_v55  ;;  %v23958_v46 = vld [vmem:[#allocation19_spill] sm:$0xff]  ;;  %v23959_v20 = vld [vmem:[#allocation22_spill] sm:$0xff] }
 0x473   : > { %v21825_v35 = vmax.f32 %v9918_v34, %v9919_v18  ;;  %v21827_v63 = vmax.f32 %v9921_v8, %v9922_v12  ;;  %v9924_v26 = vsel %vm9863_vm1, %v21603_v59, -inf  ;;  %v9925_v29 = vsel %vm9863_vm1, %v21662_v4, -inf  ;;  %v21844_v34 = vpop.f32.mrb[57].mxu0 }
 0x474   : > { %v9419_v10 = vmax.f32 %v9417_v22, %v9418_v11  ;;  %v9425_v7 = vrot.slane %v9424_v42, 2  ;;  %v9432_v27 = vrot.slane %v9431_v5, 2  ;;  %v9438_v40 = vmax.f32 %v9436_v24, %v9437_v57  ;;  %23960 = vst [vmem:[#allocation19_spill] sm:$0xff] %v21844_v34 }
 0x475   : > { %v21835_v58 = vmax.f32 %v9396_v41, %v9397_v19  ;;  %v21837_v44 = vmax.f32 %v9924_v26, %v9925_v29  ;;  %v10101_v56 = vsel %vm10072_vm2, %v21825_v35, %v21818_v39  ;;  %v17278_v59 = vadd.f32 %v23959_v20, %v23958_v46 }
 0x476   : > { %v21846_v4 = vmax.f32 %v9370_v30, %v9371_v13  ;;  %v9420_v22 = vrot.slane %v9419_v10, 1  ;;  %v9426_v18 = vmax.f32 %v9424_v42, %v9425_v7  ;;  %v9231_v57 = vrot.slane %v21583_v14, 1 }
 0x477   : > { %v9433_v24 = vmax.f32 %v9431_v5, %v9432_v27  ;;  %v10102_v41 = vsel %vm10074_vm3, %v21827_v63, %v10101_v56  ;;  %v8203_v19 = vadd.f32 %v21736_v52, %v17278_v59  ;;  %v23961_v8 = vrot.slane %v21475_v6, 2 }
 0x478   : > { %v21856_v11 = vmax.f32 %v21777_v0, %v9378_v53  ;;  %v21858_v26 = vmax.f32 %v9384_v3, %v9385_v37  ;;  %v21861_v30 = vsel %vm9863_vm1, %v9393_v2, -inf  ;;  %v9439_v42 = vrot.slane %v9438_v40, 2 }
 0x479   : > { %v9237_v12 = vmax.f32 %v21475_v6, %v23961_v8  ;;  %v21865_v13 = vsel %vm10076_vm4, %v21837_v44, %v10102_v41  ;;  %v8583_v5 = vcombine.high %v8203_v19, %v8203_v19  ;;  %v8590_v29 = vrot.slane %v8203_v19, %v21181_v33 }
 0x47a   : > { %23962 = vst [vmem:[#allocation22_spill] sm:$0xff] %v21865_v13  ;;  %v21868_v27 = vmax.f32 %v9419_v10, %v9420_v22  ;;  %v9427_v6 = vrot.slane %v9426_v18, 1  ;;  %10111 = vrot.lane.b32.xlu0 %v21865_v13, %s18903_s26  ;;  %v9232_v0 = vmax.f32 %v21583_v14, %v9231_v57  ;;  %v9287_v3 = vrot.slane %v21642_v25, 1 }
 0x47b   : > { %v9238_v7 = vrot.slane %v9237_v12, 1  ;;  %v9434_v53 = vrot.slane %v9433_v24, 1  ;;  %v8597_v37 = vrot.slane %v8583_v5, %v21181_v33  ;;  %v8598_v2 = vcombine.high %v8590_v29, %v8590_v29 }
 0x47c   : > { %23963 = vst [vmem:[#allocation51_spill] sm:$0xff] %v21868_v27  ;;  %v9443_v56 = vsel %vm8966_vm0, %v8590_v29, -inf  ;;  %v21876_v46 = vmax.f32 %v9438_v40, %v9439_v42  ;;  %v9288_v10 = vmax.f32 %v21642_v25, %v9287_v3  ;;  %v23964_v59 = vrot.slane %v21587_v31, 2  ;;  %v23966_v42 = vld [vmem:[#allocation23_spill] sm:$0xff] }
 0x47d   : > { %v9444_v20 = vrot.slane %v9443_v56, 4  ;;  %v8599_v41 = vcombine.high %v8597_v37, %v8597_v37  ;;  %v9450_v14 = vsel %vm8966_vm0, %v8598_v2, -inf  ;;  %v9457_v57 = vsel %vm8966_vm0, %v8597_v37, -inf }
 0x47e   : > { %v9293_v22 = vmax.f32 %v21587_v31, %v23964_v59  ;;  %v9239_v19 = vmax.f32 %v9237_v12, %v9238_v7  ;;  %v9451_v5 = vrot.slane %v9450_v14, 4  ;;  %v9458_v13 = vrot.slane %v9457_v57, 4  ;;  %v21891_v31 = vpop.f32.mrb[58].mxu0 }
 0x47f   : > { %v9445_v8 = vmax.f32 %v9443_v56, %v9444_v20  ;;  %v21884_v29 = vmax.f32 %v9426_v18, %v9427_v6  ;;  %v21886_v40 = vmax.f32 %v9433_v24, %v9434_v53  ;;  %v9928_v25 = vsel %vm9863_vm1, %v9288_v10, -inf  ;;  %23967 = vst [vmem:[#allocation23_spill] sm:$0xff] %v21891_v31  ;;  %v21901_v24 = vpop.f32.mrb[59].mxu0 }
 0x480   : > { %v9294_v34 = vrot.slane %v9293_v22, 1  ;;  %v17281_v3 = vadd.f32 %v21447_v54, %v23966_v42  ;;  %v21895_v37 = vsel %vm8966_vm0, %v8599_v41, -inf  ;;  %v9927_v12 = vsel %vm9863_vm1, %v9232_v0, -inf  ;;  %23968 = vst [vmem:[#allocation53_spill] sm:$0xff] %v21901_v24 }
 0x481   : > { %23965 = vst [vmem:[#allocation52_spill] sm:$0xff] %v21886_v40  ;;  %v10149_v18 = vsel %vm10072_vm2, %v21837_v44, %v21827_v63  ;;  %v21903_v6 = vmax.f32 %v9927_v12, %v9928_v25  ;;  %v10126_v53 = vsel %vm10072_vm2, %v21693_v47, %v21688_v23  ;;  %v9446_v56 = vrot.slane %v9445_v8, 2 }
 0x482   : > { %v9295_v7 = vmax.f32 %v9293_v22, %v9294_v34  ;;  %v8208_v54 = vadd.f32 %v21736_v52, %v17281_v3  ;;  %v21909_v20 = vmax.f32 %v9450_v14, %v9451_v5  ;;  %v21911_v10 = vmax.f32 %v9457_v57, %v9458_v13  ;;  %v23971_v13 = vld [vmem:[#allocation24_spill] sm:$0xff] }
 0x483   : > { %v9930_v0 = vsel %vm9863_vm1, %v9239_v19, -inf  ;;  %v10150_v34 = vsel %vm10074_vm3, %v21903_v6, %v10149_v18  ;;  %v9465_v25 = vrot.slane %v21895_v37, 4  ;;  %v10127_v14 = vsel %vm10074_vm3, %v21700_v50, %v10126_v53 }
 0x484   : > { %23969 = vst [vmem:[#allocation54_spill] sm:$0xff] %v21911_v10  ;;  %v9931_v59 = vsel %vm9863_vm1, %v9295_v7, -inf  ;;  %v8600_v22 = vcombine.high %v8208_v54, %v8208_v54  ;;  %v8607_v41 = vrot.slane %v8208_v54, %v21181_v33  ;;  %v17284_v57 = vadd.f32 %v23971_v13, %v21451_v48 }
 0x485   : > { %v21919_v42 = vmax.f32 %v9930_v0, %v9931_v59  ;;  %v21929_v12 = vsel %vm10076_vm4, %v21741_v15, %v10127_v14  ;;  %v9447_v18 = vmax.f32 %v9445_v8, %v9446_v56 }
 0x486   : > { %v8614_v19 = vrot.slane %v8600_v22, %v21181_v33  ;;  %v8615_v5 = vcombine.high %v8607_v41, %v8607_v41  ;;  %v9471_v3 = vsel %vm8966_vm0, %v8607_v41, -inf  ;;  %23972 = vst [vmem:[#allocation24_spill] sm:$0xff] %v21929_v12  ;;  %10218 = vrot.lane.b32.xlu0 %v21929_v12, %s18903_s26  ;;  %v8211_v48 = vadd.f32 %v21736_v52, %v17284_v57  ;;  %v23974_v22 = vld [vmem:[#allocation14_spill] sm:$0xff]  ;;  %v23975_v57 = vld [vmem:[#allocation20_spill] sm:$0xff] }
 0x487   : > { %23970 = vst [vmem:[#allocation55_spill] sm:$0xff] %v21919_v42  ;;  %v21933_v7 = vsel %vm10076_vm4, %v21919_v42, %v10150_v34  ;;  %v9472_v54 = vrot.slane %v9471_v3, 4  ;;  %v9888_v8 = vsel %vm9863_vm1, %v23974_v22, -inf  ;;  %v9889_v12 = vsel %vm9863_vm1, %v23975_v57, -inf }
 0x488   : > { %23973 = vst [vmem:[#allocation56_spill] sm:$0xff] %v21933_v7  ;;  %10159 = vrot.lane.b32.xlu1 %v21933_v7, %s18903_s26  ;;  %v8616_v53 = vcombine.high %v8614_v19, %v8614_v19  ;;  %v9478_v0 = vsel %vm8966_vm0, %v8615_v5, -inf  ;;  %v9485_v59 = vsel %vm8966_vm0, %v8614_v19, -inf  ;;  %v8617_v14 = vcombine.high %v8211_v48, %v8211_v48 }
 0x489   : > { %v9473_v56 = vmax.f32 %v9471_v3, %v9472_v54  ;;  %v9479_v34 = vrot.slane %v9478_v0, 4  ;;  %v9486_v41 = vrot.slane %v9485_v59, 4  ;;  %v8624_v2 = vrot.slane %v8211_v48, %v21181_v33 }
 0x48a   : > { %v9492_v13 = vsel %vm8966_vm0, %v8616_v53, -inf  ;;  %v17287_v7 = vadd.f32 %v21488_v62, %v21482_v9  ;;  %v8631_v22 = vrot.slane %v8617_v14, %v21181_v33  ;;  %v9890_v42 = vmax.f32 %v9888_v8, %v9889_v12 }
 0x48b   : > { %v9474_v5 = vrot.slane %v9473_v56, 2  ;;  %v9480_v24 = vmax.f32 %v9478_v0, %v9479_v34  ;;  %v9487_v19 = vmax.f32 %v9485_v59, %v9486_v41  ;;  %v9493_v31 = vrot.slane %v9492_v13, 4 }
 0x48c   : > { %v8632_v3 = vcombine.high %v8624_v2, %v8624_v2  ;;  %v9499_v54 = vsel %vm8966_vm0, %v8624_v2, -inf  ;;  %v8633_v15 = vcombine.high %v8631_v22, %v8631_v22  ;;  %v9513_v9 = vsel %vm8966_vm0, %v8631_v22, -inf  ;;  %v21954_v2 = vpop.f32.mrb[60].mxu0 }
 0x48d   : > { %v9475_v55 = vmax.f32 %v9473_v56, %v9474_v5  ;;  %v9481_v53 = vrot.slane %v9480_v24, 2  ;;  %v9488_v27 = vrot.slane %v9487_v19, 2  ;;  %v9494_v48 = vmax.f32 %v9492_v13, %v9493_v31  ;;  %23976 = vst [vmem:[#allocation14_spill] sm:$0xff] %v21954_v2  ;;  %v21960_v13 = vpop.f32.mrb[61].mxu0 }
 0x48e   : > { %v9500_v50 = vrot.slane %v9499_v54, 4  ;;  %v9506_v57 = vsel %vm8966_vm0, %v8632_v3, -inf  ;;  %v9448_v62 = vrot.slane %v9447_v18, 1  ;;  %v9514_v40 = vrot.slane %v9513_v9, 4  ;;  %23977 = vst [vmem:[#allocation20_spill] sm:$0xff] %v21960_v13 }
 0x48f   : > { %v9482_v0 = vmax.f32 %v9480_v24, %v9481_v53  ;;  %v9489_v59 = vmax.f32 %v9487_v19, %v9488_v27  ;;  %v9495_v34 = vrot.slane %v9494_v48, 2  ;;  %v9476_v41 = vrot.slane %v9475_v55, 1 }
 0x490   : > { %v9501_v14 = vmax.f32 %v9499_v54, %v9500_v50  ;;  %v9507_v39 = vrot.slane %v9506_v57, 4  ;;  %v21958_v56 = vsel %vm8966_vm0, %v8633_v15, -inf  ;;  %v21967_v50 = vmax.f32 %v9447_v18, %v9448_v62 }
 0x491   : > { %v9483_v8 = vrot.slane %v9482_v0, 1  ;;  %v9490_v31 = vrot.slane %v9489_v59, 1  ;;  %v21963_v24 = vmax.f32 %v9494_v48, %v9495_v34  ;;  %v21970_v22 = vmax.f32 %v21895_v37, %v9465_v25  ;;  %v21988_v25 = vpop.f32.mrb[62].mxu0 }
 0x492   : > { %v9502_v27 = vrot.slane %v9501_v14, 2  ;;  %v21965_v19 = vmax.f32 %v9506_v57, %v9507_v39  ;;  %v21972_v3 = vmax.f32 %v9513_v9, %v9514_v40  ;;  %v10078_v15 = vsel %vm10072_vm2, %v21684_v45, %v9890_v42  ;;  %23980 = vst [vmem:[#allocation59_spill] sm:$0xff] %v21988_v25 }
 0x493   : > { %23978 = vst [vmem:[#allocation57_spill] sm:$0xff] %v21970_v22  ;;  %v21976_v54 = vmax.f32 %v9475_v55, %v9476_v41  ;;  %v21978_v53 = vmax.f32 %v9482_v0, %v9483_v8  ;;  %v9521_v48 = vrot.slane %v21958_v56, 4  ;;  %v21981_v34 = vmax.f32 %v9489_v59, %v9490_v31 }
 0x494   : > { %23979 = vst [vmem:[#allocation58_spill] sm:$0xff] %v21972_v3  ;;  %v9503_v5 = vmax.f32 %v9501_v14, %v9502_v27  ;;  %v10079_v39 = vsel %vm10074_vm3, %v21688_v23, %v10078_v15  ;;  %v8216_v37 = vadd.f32 %v21736_v52, %v17287_v7  ;;  %v17290_v40 = vadd.f32 %v21508_v38, %v21498_v17 }
 0x495   : > { %v21994_v42 = vsel %vm10076_vm4, %v21693_v47, %v10079_v39  ;;  %v23982_v18 = vrot.slane %v21673_v21, 2  ;;  %v9343_v62 = vrot.slane %v21782_v32, 1  ;;  %v9399_v47 = vrot.slane %v21835_v58, 1 }
 0x496   : > { %23981 = vst [vmem:[#allocation60_spill] sm:$0xff] %v21994_v42  ;;  %10194 = vrot.lane.b32.xlu0 %v21994_v42, %s18903_s26  ;;  %v8634_v38 = vcombine.high %v8216_v37, %v8216_v37  ;;  %v8641_v17 = vrot.slane %v8216_v37, %v21181_v33  ;;  %v8219_v7 = vadd.f32 %v21736_v52, %v17290_v40  ;;  %v9504_v9 = vrot.slane %v9503_v5, 1 }
 0x497   : > { %v9349_v57 = vmax.f32 %v21673_v21, %v23982_v18  ;;  %v23983_v0 = vrot.slane %v21775_v60, 2  ;;  %v22009_v21 = vpop.f32.mrb[63].mxu0 }
 0x498   : > { %23984 = vst [vmem:[#allocation61_spill] sm:$0xff] %v22009_v21  ;;  %v8648_v41 = vrot.slane %v8634_v38, %v21181_v33  ;;  %v8649_v14 = vcombine.high %v8641_v17, %v8641_v17  ;;  %v9527_v8 = vsel %vm8966_vm0, %v8641_v17, -inf  ;;  %v8651_v31 = vcombine.high %v8219_v7, %v8219_v7 }
 0x499   : > { %v9405_v59 = vmax.f32 %v21775_v60, %v23983_v0  ;;  %v9528_v27 = vrot.slane %v9527_v8, 4  ;;  %v8658_v15 = vrot.slane %v8219_v7, %v21181_v33  ;;  %v9350_v39 = vrot.slane %v9349_v57, 1 }
 0x49a   : > { %v8650_v40 = vcombine.high %v8648_v41, %v8648_v41  ;;  %v9534_v18 = vsel %vm8966_vm0, %v8649_v14, -inf  ;;  %v9541_v23 = vsel %vm8966_vm0, %v8648_v41, -inf  ;;  %v8665_v60 = vrot.slane %v8651_v31, %v21181_v33 }
 0x49b   : > { %v9406_v37 = vrot.slane %v9405_v59, 1  ;;  %v9529_v0 = vmax.f32 %v9527_v8, %v9528_v27  ;;  %v9535_v55 = vrot.slane %v9534_v18, 4  ;;  %v9542_v12 = vrot.slane %v9541_v23, 4 }
 0x49c   : > { %v8666_v38 = vcombine.high %v8658_v15, %v8658_v15  ;;  %v9548_v45 = vsel %vm8966_vm0, %v8650_v40, -inf  ;;  %v8667_v17 = vcombine.high %v8665_v60, %v8665_v60  ;;  %v9555_v42 = vsel %vm8966_vm0, %v8658_v15, -inf }
 0x49d   : > { %v9569_v7 = vsel %vm8966_vm0, %v8665_v60, -inf  ;;  %v9530_v21 = vrot.slane %v9529_v0, 2  ;;  %v9536_v25 = vmax.f32 %v9534_v18, %v9535_v55  ;;  %v9543_v22 = vmax.f32 %v9541_v23, %v9542_v12 }
 0x49e   : > { %v9549_v3 = vrot.slane %v9548_v45, 4  ;;  %v9556_v14 = vrot.slane %v9555_v42, 4  ;;  %v9562_v41 = vsel %vm8966_vm0, %v8666_v38, -inf  ;;  %v9570_v10 = vrot.slane %v9569_v7, 4 }
 0x49f   : > { %v9576_v8 = vsel %vm8966_vm0, %v8667_v17, -inf  ;;  %v22022_v31 = vmax.f32 %v9529_v0, %v9530_v21  ;;  %v9537_v27 = vrot.slane %v9536_v25, 2  ;;  %v9544_v13 = vrot.slane %v9543_v22, 2 }
 0x4a0   : > { %v22024_v40 = vmax.f32 %v9548_v45, %v9549_v3  ;;  %v22027_v15 = vmax.f32 %v21958_v56, %v9521_v48  ;;  %v9557_v60 = vmax.f32 %v9555_v42, %v9556_v14  ;;  %v9563_v2 = vrot.slane %v9562_v41, 4 }
 0x4a1   : > { %v22029_v55 = vmax.f32 %v9569_v7, %v9570_v10  ;;  %v22031_v12 = vmax.f32 %v9503_v5, %v9504_v9  ;;  %v22033_v23 = vmax.f32 %v9536_v25, %v9537_v27  ;;  %v9577_v18 = vrot.slane %v9576_v8, 4  ;;  %v23986_v27 = vld [vmem:[#allocation34_spill] sm:$0xff] }
 0x4a2   : > { %v9344_v38 = vmax.f32 %v21782_v32, %v9343_v62  ;;  %v9558_v21 = vrot.slane %v9557_v60, 2  ;;  %v22036_v0 = vmax.f32 %v9562_v41, %v9563_v2  ;;  %v9351_v17 = vmax.f32 %v9349_v57, %v9350_v39 }
 0x4a3   : > { %v9400_v3 = vmax.f32 %v21835_v58, %v9399_v47  ;;  %v9532_v56 = vrot.slane %v22022_v31, 1  ;;  %v22040_v48 = vmax.f32 %v9543_v22, %v9544_v13  ;;  %v9407_v45 = vmax.f32 %v9405_v59, %v9406_v37 }
 0x4a4   : > { %v22043_v5 = vmax.f32 %v9557_v60, %v9558_v21  ;;  %v9945_v32 = vsel %vm9863_vm1, %v21679_v49, -inf  ;;  %v9946_v2 = vsel %vm9863_vm1, %v21858_v26, -inf  ;;  %v9539_v42 = vrot.slane %v22033_v23, 1 }
 0x4a5   : > { %v22051_v58 = vmax.f32 %v9576_v8, %v9577_v18  ;;  %v22053_v57 = vmax.f32 %v9945_v32, %v9946_v2  ;;  %v22057_v13 = vmax.f32 %v21790_v61, %v21861_v30  ;;  %v9951_v62 = vsel %vm9863_vm1, %v9344_v38, -inf  ;;  %v23985_v8 = vld [vmem:[#allocation33_spill] sm:$0xff] }
 0x4a6   : > { %v9952_v49 = vsel %vm9863_vm1, %v9400_v3, -inf  ;;  %v9954_v26 = vsel %vm9863_vm1, %v9351_v17, -inf  ;;  %v9955_v59 = vsel %vm9863_vm1, %v9407_v45, -inf  ;;  %v9942_v30 = vsel %vm9863_vm1, %v21666_v51, -inf }
 0x4a7   : > { %v22063_v47 = vmax.f32 %v9951_v62, %v9952_v49  ;;  %v10152_v39 = vsel %vm10072_vm2, %v22057_v13, %v22053_v57  ;;  %v22070_v61 = vmax.f32 %v9954_v26, %v9955_v59  ;;  %v9943_v37 = vsel %vm9863_vm1, %v21856_v11, -inf }
 0x4a8   : > { %v17293_v7 = vadd.f32 %v21549_v16, %v21542_v43  ;;  %v22080_v41 = vmax.f32 %v9942_v30, %v9943_v37  ;;  %v17296_v60 = vadd.f32 %v23986_v27, %v23985_v8  ;;  %v9939_v18 = vsel %vm9863_vm1, %v21671_v36, -inf }
 0x4a9   : > { %v10153_v14 = vsel %vm10074_vm3, %v22063_v47, %v10152_v39  ;;  %v9940_v16 = vsel %vm9863_vm1, %v21846_v4, -inf  ;;  %v22095_v43 = vsel %vm9863_vm1, %v21664_v1, -inf  ;;  %v22107_v17 = vsel %vm9863_vm1, %v21803_v28, -inf }
 0x4aa   : > { %v22088_v51 = vsel %vm10076_vm4, %v22070_v61, %v10153_v14  ;;  %v8224_v11 = vadd.f32 %v21736_v52, %v17293_v7  ;;  %v10132_v36 = vsel %vm10072_vm2, %v22053_v57, %v22080_v41  ;;  %v8227_v38 = vadd.f32 %v21736_v52, %v17296_v60 }
 0x4ab   : > { %23987 = vst [vmem:[#allocation33_spill] sm:$0xff] %v22088_v51  ;;  %10161 = vrot.lane.b32.xlu1 %v22088_v51, %s18903_s26  ;;  %v22103_v21 = vmax.f32 %v9939_v18, %v9940_v16  ;;  %v10133_v4 = vsel %vm10074_vm3, %v22057_v13, %v10132_v36  ;;  %v9938_v45 = vmax.f32 %v22095_v43, %v22107_v17  ;;  %v9961_v51 = vsel %vm9863_vm1, %v21976_v54, -inf }
 0x4ac   : > { %v8668_v1 = vcombine.high %v8224_v11, %v8224_v11  ;;  %v8675_v3 = vrot.slane %v8224_v11, %v21181_v33  ;;  %v22116_v32 = vsel %vm10076_vm4, %v22063_v47, %v10133_v4  ;;  %v8685_v2 = vcombine.high %v8227_v38, %v8227_v38 }
 0x4ad   : > { %23988 = vst [vmem:[#allocation34_spill] sm:$0xff] %v22116_v32  ;;  %v8692_v62 = vrot.slane %v8227_v38, %v21181_v33  ;;  %v10104_v28 = vsel %vm10072_vm2, %v22080_v41, %v22103_v21  ;;  %10222 = vrot.lane.b32.xlu0 %v22116_v32, %s18903_s26 }
 0x4ae   : > { %v8682_v49 = vrot.slane %v8668_v1, %v21181_v33  ;;  %v8683_v26 = vcombine.high %v8675_v3, %v8675_v3  ;;  %v9583_v59 = vsel %vm8966_vm0, %v8675_v3, -inf  ;;  %v10105_v39 = vsel %vm10074_vm3, %v22053_v57, %v10104_v28 }
 0x4af   : > { %v9584_v30 = vrot.slane %v9583_v59, 4  ;;  %v8699_v37 = vrot.slane %v8685_v2, %v21181_v33  ;;  %v8700_v7 = vcombine.high %v8692_v62, %v8692_v62  ;;  %v9611_v14 = vsel %vm8966_vm0, %v8692_v62, -inf }
 0x4b0   : > { %v8684_v8 = vcombine.high %v8682_v49, %v8682_v49  ;;  %v9590_v27 = vsel %vm8966_vm0, %v8683_v26, -inf  ;;  %v9597_v60 = vsel %vm8966_vm0, %v8682_v49, -inf  ;;  %v9612_v18 = vrot.slane %v9611_v14, 4 }
 0x4b1   : > { %v9585_v11 = vmax.f32 %v9583_v59, %v9584_v30  ;;  %v9591_v16 = vrot.slane %v9590_v27, 4  ;;  %v9598_v43 = vrot.slane %v9597_v60, 4  ;;  %v8701_v36 = vcombine.high %v8699_v37, %v8699_v37 }
 0x4b2   : > { %v9604_v38 = vsel %vm8966_vm0, %v8684_v8, -inf  ;;  %v9613_v17 = vmax.f32 %v9611_v14, %v9612_v18  ;;  %v9618_v4 = vsel %vm8966_vm0, %v8700_v7, -inf  ;;  %v9625_v1 = vsel %vm8966_vm0, %v8699_v37, -inf }
 0x4b3   : > { %v9586_v3 = vrot.slane %v9585_v11, 2  ;;  %v9592_v2 = vmax.f32 %v9590_v27, %v9591_v16  ;;  %v9599_v62 = vmax.f32 %v9597_v60, %v9598_v43  ;;  %v9605_v28 = vrot.slane %v9604_v38, 4 }
 0x4b4   : > { %v9614_v25 = vrot.slane %v9613_v17, 2  ;;  %v9619_v26 = vrot.slane %v9618_v4, 4  ;;  %v9626_v9 = vrot.slane %v9625_v1, 4  ;;  %v9632_v49 = vsel %vm8966_vm0, %v8701_v36, -inf }
 0x4b5   : > { %v9587_v59 = vmax.f32 %v9585_v11, %v9586_v3  ;;  %v9593_v30 = vrot.slane %v9592_v2, 2  ;;  %v9600_v22 = vrot.slane %v9599_v62, 2  ;;  %v22136_v10 = vmax.f32 %v9604_v38, %v9605_v28  ;;  %v23993_v3 = vld [vmem:[#allocation25_spill] sm:$0xff] }
 0x4b6   : > { %v22138_v8 = vmax.f32 %v9613_v17, %v9614_v25  ;;  %v22140_v14 = vmax.f32 %v9618_v4, %v9619_v26  ;;  %v22142_v7 = vmax.f32 %v9625_v1, %v9626_v9  ;;  %v9633_v37 = vrot.slane %v9632_v49, 4  ;;  %v23997_v26 = vld [vmem:[#allocation36_spill] sm:$0xff] }
 0x4b7   : > { %v22147_v27 = vmax.f32 %v22022_v31, %v9532_v56  ;;  %v22152_v60 = vmax.f32 %v22033_v23, %v9539_v42  ;;  %v23989_v18 = vrot.slane %v22024_v40, 2  ;;  %v9588_v11 = vrot.slane %v9587_v59, 1 }
 0x4b8   : > { %v23990_v9 = vrot.slane %v22043_v5, 1  ;;  %v23991_v43 = vrot.slane %v22036_v0, 2  ;;  %v22169_v56 = vmax.f32 %v9592_v2, %v9593_v30  ;;  %v22171_v23 = vmax.f32 %v9599_v62, %v9600_v22 }
 0x4b9   : > { %v22157_v25 = vmax.f32 %v22024_v40, %v23989_v18  ;;  %v9607_v42 = vrot.slane %v22136_v10, 2  ;;  %v9616_v40 = vrot.slane %v22138_v8, 1  ;;  %v9621_v36 = vrot.slane %v22140_v14, 2 }
 0x4ba   : > { %v22162_v16 = vmax.f32 %v22043_v5, %v23990_v9  ;;  %v22167_v31 = vmax.f32 %v22036_v0, %v23991_v43  ;;  %v22178_v38 = vsel %vm10076_vm4, %v22057_v13, %v10105_v39  ;;  %v22181_v17 = vmax.f32 %v9632_v49, %v9633_v37  ;;  %v23998_v49 = vld [vmem:[#allocation38_spill] sm:$0xff] }
 0x4bb   : > { %23992 = vst [vmem:[#allocation62_spill] sm:$0xff] %v22178_v38  ;;  %10113 = vrot.lane.b32.xlu1 %v22178_v38, %s18903_s26  ;;  %v10084_v0 = vsel %vm10072_vm2, %v22103_v21, %v9938_v45  ;;  %v10129_v22 = vsel %vm10072_vm2, %v21827_v63, %v21825_v35  ;;  %v22190_v4 = vmax.f32 %v9587_v59, %v9588_v11  ;;  %v9912_v2 = vsel %vm9863_vm1, %v23993_v3, -inf  ;;  %v23996_v45 = vld [vmem:[#allocation35_spill] sm:$0xff] }
 0x4bc   : > { %v10085_v39 = vsel %vm10074_vm3, %v22080_v41, %v10084_v0  ;;  %v10130_v1 = vsel %vm10074_vm3, %v21837_v44, %v10129_v22  ;;  %v9913_v28 = vsel %vm9863_vm1, %v23996_v45, -inf  ;;  %v17299_v41 = vadd.f32 %v23998_v49, %v23997_v26  ;;  %v24001_v0 = vld [vmem:[#allocation52_spill] sm:$0xff] }
 0x4bd   : > { %v22200_v62 = vsel %vm10076_vm4, %v22053_v57, %v10085_v39  ;;  %v22204_v21 = vsel %vm10076_vm4, %v21903_v6, %v10130_v1  ;;  %v9914_v59 = vmax.f32 %v9912_v2, %v9913_v28  ;;  %v23999_v30 = vrot.slane %v21876_v46, 1  ;;  %v24002_v39 = vld [vmem:[#allocation49_spill] sm:$0xff] }
 0x4be   : > { %23994 = vst [vmem:[#allocation25_spill] sm:$0xff] %v22200_v62  ;;  %23995 = vst [vmem:[#allocation63_spill] sm:$0xff] %v22204_v21  ;;  %10198 = vrot.lane.b32.xlu0 %v22200_v62, %s18903_s26  ;;  %v24000_v57 = vrot.slane %v21963_v24, 1  ;;  %v9963_v11 = vsel %vm9863_vm1, %v21884_v29, -inf  ;;  %v8232_v9 = vadd.f32 %v21736_v52, %v17299_v41  ;;  %v9964_v43 = vsel %vm9863_vm1, %v21978_v53, -inf }
 0x4bf   : > { %v9442_v37 = vmax.f32 %v21876_v46, %v23999_v30  ;;  %10220 = vrot.lane.b32.xlu1 %v22204_v21, %s18903_s26  ;;  %v9966_v22 = vsel %vm9863_vm1, %v24001_v0, -inf  ;;  %v9967_v46 = vsel %vm9863_vm1, %v21981_v34, -inf  ;;  %v22231_v1 = vmax.f32 %v9963_v11, %v9964_v43  ;;  %v18220_v21 = vld [vmem:[%s22308_s24 + $0x18] sm:$0xff]  }
 0x4c0   : > { %v9498_v18 = vmax.f32 %v21963_v24, %v24000_v57  ;;  %v10081_v24 = vsel %vm10072_vm2, %v24002_v39, %v9914_v59  ;;  %v22233_v29 = vmax.f32 %v9966_v22, %v9967_v46  ;;  %v8702_v45 = vcombine.high %v8232_v9, %v8232_v9 }
 0x4c1   : > { %v9969_v3 = vsel %vm9863_vm1, %v9442_v37, -inf  ;;  %v10082_v2 = vsel %vm10074_vm3, %v21825_v35, %v10081_v24  ;;  %v8709_v53 = vrot.slane %v8232_v9, %v21181_v33  ;;  %v9972_v49 = vsel %vm9863_vm1, %v21967_v50, -inf  ;;  %v24005_v50 = vld [vmem:[#allocation40_spill] sm:$0xff] }
 0x4c2   : > { %v9970_v28 = vsel %vm9863_vm1, %v9498_v18, -inf  ;;  %v22242_v34 = vsel %vm10076_vm4, %v21827_v63, %v10082_v2  ;;  %v9973_v41 = vsel %vm9863_vm1, %v22031_v12, -inf  ;;  %v8716_v35 = vrot.slane %v8702_v45, %v21181_v33  ;;  %v24004_v18 = vld [vmem:[#allocation39_spill] sm:$0xff] }
 0x4c3   : > { %24003 = vst [vmem:[#allocation35_spill] sm:$0xff] %v22242_v34  ;;  %v22244_v26 = vmax.f32 %v9969_v3, %v9970_v28  ;;  %10196 = vrot.lane.b32.xlu1 %v22242_v34, %s18903_s26  ;;  %v8717_v59 = vcombine.high %v8709_v53, %v8709_v53  ;;  %v9639_v30 = vsel %vm8966_vm0, %v8709_v53, -inf  ;;  %v22254_v37 = vmax.f32 %v9972_v49, %v9973_v41  ;;  %v18221_v34 = vld [vmem:[%s22308_s24 + $0x60] sm:$0xff]  }
 0x4c4   : > { %v9640_v63 = vrot.slane %v9639_v30, 4  ;;  %v10207_v57 = vsel %vm10072_vm2, %v22233_v29, %v22231_v1  ;;  %v17302_v11 = vadd.f32 %v24005_v50, %v24004_v18  ;;  %v24006_v12 = vrot.slane %v21909_v20, 2 }
 0x4c5   : > { %v8718_v43 = vcombine.high %v8716_v35, %v8716_v35  ;;  %v9646_v0 = vsel %vm8966_vm0, %v8717_v59, -inf  ;;  %v9653_v22 = vsel %vm8966_vm0, %v8716_v35, -inf  ;;  %v10208_v46 = vsel %vm10074_vm3, %v22244_v26, %v10207_v57 }
 0x4c6   : > { %v9454_v9 = vmax.f32 %v21909_v20, %v24006_v12  ;;  %v9641_v39 = vmax.f32 %v9639_v30, %v9640_v63  ;;  %v9647_v24 = vrot.slane %v9646_v0, 4  ;;  %v9654_v3 = vrot.slane %v9653_v22, 4 }
 0x4c7   : > { %v22270_v2 = vsel %vm10076_vm4, %v22254_v37, %v10208_v46  ;;  %v9660_v45 = vsel %vm8966_vm0, %v8718_v43, -inf  ;;  %v8235_v20 = vadd.f32 %v21736_v52, %v17302_v11  ;;  %v24008_v28 = vrot.slane %v21965_v19, 2 }
 0x4c8   : > { %24007 = vst [vmem:[#allocation36_spill] sm:$0xff] %v22270_v2  ;;  %10267 = vrot.lane.b32.xlu0 %v22270_v2, %s18903_s26  ;;  %v9455_v53 = vrot.slane %v9454_v9, 1  ;;  %v9642_v41 = vrot.slane %v9641_v39, 2  ;;  %v9648_v35 = vmax.f32 %v9646_v0, %v9647_v24  ;;  %v9655_v59 = vmax.f32 %v9653_v22, %v9654_v3 }
 0x4c9   : > { %v9510_v49 = vmax.f32 %v21965_v19, %v24008_v28  ;;  %v9661_v30 = vrot.slane %v9660_v45, 4  ;;  %v9595_v63 = vrot.slane %v22169_v56, 1  ;;  %v8719_v57 = vcombine.high %v8235_v20, %v8235_v20 }
 0x4ca   : > { %v8726_v18 = vrot.slane %v8235_v20, %v21181_v33  ;;  %v22284_v52 = vmax.f32 %v22136_v10, %v9607_v42  ;;  %v9643_v11 = vmax.f32 %v9641_v39, %v9642_v41  ;;  %v9649_v12 = vrot.slane %v9648_v35, 2 }
 0x4cb   : > { %v9511_v50 = vrot.slane %v9510_v49, 1  ;;  %v22286_v43 = vmax.f32 %v9660_v45, %v9661_v30  ;;  %v8733_v19 = vrot.slane %v8719_v57, %v21181_v33  ;;  %v9456_v46 = vmax.f32 %v9454_v9, %v9455_v53 }
 0x4cc   : > { %v8734_v0 = vcombine.high %v8726_v18, %v8726_v18  ;;  %v9667_v22 = vsel %vm8966_vm0, %v8726_v18, -inf  ;;  %v22296_v24 = vmax.f32 %v22138_v8, %v9616_v40  ;;  %v22298_v10 = vmax.f32 %v9648_v35, %v9649_v12  ;;  %v18213_v40 = vld [vmem:[%s22308_s24 + $0x40] sm:$0xff]  }
 0x4cd   : > { %v9656_v42 = vrot.slane %v9655_v59, 2  ;;  %v9512_v39 = vmax.f32 %v9510_v49, %v9511_v50  ;;  %v8735_v3 = vcombine.high %v8733_v19, %v8733_v19  ;;  %v9668_v45 = vrot.slane %v9667_v22, 4  ;;  %v18214_v18 = vld [vmem:[%s22308_s24] sm:$0xff]   ;;  %17321 = vmatprep.subr.bf16.mxu1 %v18213_v40 }
 0x4ce   : > { %v9674_v20 = vsel %vm8966_vm0, %v8734_v0, -inf  ;;  %v9681_v28 = vsel %vm8966_vm0, %v8733_v19, -inf  ;;  %v22305_v9 = vmax.f32 %v22140_v14, %v9621_v36  ;;  %v9644_v53 = vrot.slane %v9643_v11, 1  ;;  %17322 = vmatpush3.bf16.msra.mxu1 %v18214_v18  ;;  %v18218_v36 = vld [vmem:[%s22308_s24 + $0x10] sm:$0xff]  }
 0x4cf   : > { %v9675_v8 = vrot.slane %v9674_v20, 4  ;;  %v9669_v49 = vmax.f32 %v9667_v22, %v9668_v45  ;;  %v9682_v35 = vrot.slane %v9681_v28, 4  ;;  %v22312_v30 = vsel %vm8966_vm0, %v8735_v3, -inf  ;;  %v18215_v3 = vld [vmem:[%s22308_s24 + $0x48] sm:$0xff]   ;;  %v24009_v45 = vld [vmem:[#allocation42_spill] sm:$0xff] }
 0x4d0   : > { %v9975_v57 = vsel %vm9863_vm1, %v9456_v46, -inf  ;;  %v22317_v14 = vmax.f32 %v22169_v56, %v9595_v63  ;;  %v9976_v12 = vsel %vm9863_vm1, %v9512_v39, -inf  ;;  %v10215_v46 = vsel %vm10072_vm2, %v22244_v26, %v22233_v29  ;;  %17323 = vmatprep.subr.bf16.mxu1 %v18215_v3  ;;  %v18217_v3 = vld [vmem:[%s22308_s24 + $0x50] sm:$0xff]  }
 0x4d1   : > { %v22320_v50 = vmax.f32 %v9674_v20, %v9675_v8  ;;  %v9670_v19 = vrot.slane %v9669_v49, 2  ;;  %v22323_v0 = vmax.f32 %v9681_v28, %v9682_v35  ;;  %v22325_v22 = vmax.f32 %v9975_v57, %v9976_v12  ;;  %v24010_v20 = vld [vmem:[#allocation44_spill] sm:$0xff]  ;;  %v18216_v8 = vld [vmem:[%s22308_s24 + $0x8] sm:$0xff]   ;;  %v22352_v12 = vld [vmem:[%s23805_s2] ss:$0 sm:$0xff] }
 0x4d2   : > { %v22331_v56 = vmax.f32 %v9655_v59, %v9656_v42  ;;  %v10216_v39 = vsel %vm10074_vm3, %v22254_v37, %v10215_v46  ;;  %v17305_v28 = vadd.f32 %v24010_v20, %v24009_v45  ;;  %v24012_v59 = vld [vmem:[#allocation15_spill] sm:$0xff]  ;;  %v22345_v18 = vmax.f32 %v9643_v11, %v9644_v53  ;;  %v24015_v45 = vld [vmem:[#allocation16_spill] sm:$0xff]  ;;  %17324 = vmatpush3.bf16.msra.mxu1 %v18216_v8  ;;  %v24017_v53 = vld [vmem:[#allocation17_spill] sm:$0xff] }
 0x4d3   : > { %v9671_v40 = vmax.f32 %v9669_v49, %v9670_v19  ;;  %v22342_v57 = vsel %vm10076_vm4, %v22325_v22, %v10216_v39  ;;  %v9131_v42 = vrot.slane %v24012_v59, 2  ;;  %v24013_v19 = vld [vmem:[#allocation21_spill] sm:$0xff]  ;;  %v24016_v35 = vld [vmem:[#allocation51_spill] sm:$0xff]  ;;  %17325 = vmatprep.subr.bf16.mxu1 %v18217_v3  ;;  %v24019_v8 = vld [vmem:[#allocation46_spill] sm:$0xff] }
 0x4d4   : > { %24011 = vst [vmem:[#allocation38_spill] sm:$0xff] %v22342_v57  ;;  %10224 = vrot.lane.b32.xlu1 %v22342_v57, %s18903_s26  ;;  %v8240_v49 = vadd.f32 %v22352_v12, %v17305_v28  ;;  %v9187_v46 = vrot.slane %v24013_v19, 2  ;;  %v24014_v39 = vld [vmem:[#allocation41_spill] sm:$0xff]  ;;  %v9960_v63 = vsel %vm9863_vm1, %v24016_v35, -inf }
 0x4d5   : > { %v10174_v20 = vsel %vm10072_vm2, %v24015_v45, %v24014_v39  ;;  %v9672_v11 = vrot.slane %v9671_v40, 1  ;;  %v9132_v5 = vmax.f32 %v24012_v59, %v9131_v42  ;;  %v18219_v39 = vld [vmem:[%s22308_s24 + $0x58] sm:$0xff]   ;;  %v9962_v42 = vmax.f32 %v9960_v63, %v9961_v51 }
 0x4d6   : > { %v8736_v41 = vcombine.high %v8240_v49, %v8240_v49  ;;  %v8743_v28 = vrot.slane %v8240_v49, %v21181_v33  ;;  %v9188_v57 = vmax.f32 %v24013_v19, %v9187_v46  ;;  %v10175_v59 = vsel %vm10074_vm3, %v24017_v53, %v10174_v20  ;;  %v24018_v35 = vld [vmem:[#allocation45_spill] sm:$0xff]  ;;  %17326 = vmatpush3.bf16.msra.mxu1 %v18218_v36 }
 0x4d7   : > { %v9133_v45 = vrot.slane %v9132_v5, 1  ;;  %v17308_v2 = vadd.f32 %v24019_v8, %v24018_v35  ;;  %v9673_v62 = vmax.f32 %v9671_v40, %v9672_v11  ;;  %v10191_v3 = vsel %vm10072_vm2, %v22231_v1, %v9962_v42  ;;  %17327 = vmatprep.subr.bf16.mxu1 %v18219_v39  ;;  %v18222_v39 = vld [vmem:[%s22308_s24 + $0x20] sm:$0xff]   ;;  %v18223_v8 = vld [vmem:[%s22308_s24 + $0x68] sm:$0xff]  }
 0x4d8   : > { %v8750_v38 = vrot.slane %v8736_v41, %v21181_v33  ;;  %v8751_v49 = vcombine.high %v8743_v28, %v8743_v28  ;;  %v9695_v19 = vsel %vm8966_vm0, %v8743_v28, -inf  ;;  %v9189_v46 = vrot.slane %v9188_v57, 1 }
 0x4d9   : > { %v9696_v54 = vrot.slane %v9695_v19, 4  ;;  %v9134_v32 = vmax.f32 %v9132_v5, %v9133_v45  ;;  %v10192_v36 = vsel %vm10074_vm3, %v22233_v29, %v10191_v3  ;;  %v8243_v45 = vadd.f32 %v22352_v12, %v17308_v2 }
 0x4da   : > { %v8752_v20 = vcombine.high %v8750_v38, %v8750_v38  ;;  %v9702_v51 = vsel %vm8966_vm0, %v8751_v49, -inf  ;;  %v9709_v63 = vsel %vm8966_vm0, %v8750_v38, -inf  ;;  %v9190_v41 = vmax.f32 %v9188_v57, %v9189_v46  ;;  %17328 = vmatpush3.bf16.msra.mxu1 %v18220_v21 }
 0x4db   : > { %v9697_v53 = vmax.f32 %v9695_v19, %v9696_v54  ;;  %v9703_v28 = vrot.slane %v9702_v51, 4  ;;  %v9710_v40 = vrot.slane %v9709_v63, 4  ;;  %v9909_v5 = vsel %vm9863_vm1, %v9134_v32, -inf  ;;  %17329 = vmatprep.subr.bf16.mxu1 %v18221_v34 }
 0x4dc   : > { %v9716_v11 = vsel %vm8966_vm0, %v8752_v20, -inf  ;;  %v9910_v1 = vsel %vm9863_vm1, %v9190_v41, -inf  ;;  %v22392_v32 = vsel %vm10076_vm4, %v22244_v26, %v10192_v36  ;;  %v8753_v19 = vcombine.high %v8243_v45, %v8243_v45  ;;  %v18224_v41 = vld [vmem:[%s22308_s24 + $0x28] sm:$0xff]   ;;  %v18225_v36 = vld [vmem:[%s22308_s24 + $0x70] sm:$0xff]  }
 0x4dd   : > { %v9698_v42 = vrot.slane %v9697_v53, 2  ;;  %v9704_v38 = vmax.f32 %v9702_v51, %v9703_v28  ;;  %v9711_v35 = vmax.f32 %v9709_v63, %v9710_v40  ;;  %v9717_v57 = vrot.slane %v9716_v11, 4  ;;  %24020 = vst [vmem:[#allocation52_spill] sm:$0xff] %v22392_v32  ;;  %10200 = vrot.lane.b32.xlu1 %v22392_v32, %s18903_s26 }
 0x4de   : > { %v9911_v49 = vmax.f32 %v9909_v5, %v9910_v1  ;;  %v8760_v46 = vrot.slane %v8243_v45, %v21181_v33  ;;  %v22396_v29 = vsel %vm9863_vm1, %v9673_v62, -inf  ;;  %v8767_v20 = vrot.slane %v8753_v19, %v21181_v33  ;;  %17330 = vmatpush3.bf16.msra.mxu1 %v18222_v39 }
 0x4df   : > { %v9699_v2 = vmax.f32 %v9697_v53, %v9698_v42  ;;  %v9705_v54 = vrot.slane %v9704_v38, 2  ;;  %v9718_v3 = vmax.f32 %v9716_v11, %v9717_v57  ;;  %v24022_v34 = vrot.slane %v22286_v43, 2  ;;  %17331 = vmatprep.subr.bf16.mxu1 %v18223_v8  ;;  %v18226_v8 = vld [vmem:[%s22308_s24 + $0x30] sm:$0xff]  }
 0x4e0   : > { %v22401_v21 = vsel %vm10076_vm4, %v9911_v49, %v10175_v59  ;;  %v8768_v51 = vcombine.high %v8760_v46, %v8760_v46  ;;  %v9723_v63 = vsel %vm8966_vm0, %v8760_v46, -inf  ;;  %v9712_v40 = vrot.slane %v9711_v35, 2 }
 0x4e1   : > { %24021 = vst [vmem:[#allocation49_spill] sm:$0xff] %v22401_v21  ;;  %v22409_v62 = vmax.f32 %v22286_v43, %v24022_v34  ;;  %v9700_v53 = vrot.slane %v9699_v2, 1  ;;  %v9706_v28 = vmax.f32 %v9704_v38, %v9705_v54  ;;  %10242 = vrot.lane.b32.xlu0 %v22401_v21, %s18903_s26  ;;  %v8769_v59 = vcombine.high %v8767_v20, %v8767_v20  ;;  %v24026_v54 = vld [vmem:[#allocation47_spill] sm:$0xff] }
 0x4e2   : > { %v9724_v5 = vrot.slane %v9723_v63, 4  ;;  %v9730_v11 = vsel %vm8966_vm0, %v8768_v51, -inf  ;;  %v9737_v1 = vsel %vm8966_vm0, %v8767_v20, -inf  ;;  %v24023_v45 = vrot.slane %v22298_v10, 1  ;;  %17332 = vmatpush3.bf16.msra.mxu1 %v18224_v41 }
 0x4e3   : > { %v24024_v42 = vrot.slane %v22312_v30, 4  ;;  %v9719_v57 = vrot.slane %v9718_v3, 2  ;;  %v9731_v39 = vrot.slane %v9730_v11, 4  ;;  %v9707_v49 = vrot.slane %v9706_v28, 1  ;;  %17333 = vmatprep.subr.bf16.mxu1 %v18225_v36 }
 0x4e4   : > { %v22419_v43 = vmax.f32 %v22298_v10, %v24023_v45  ;;  %v9725_v19 = vmax.f32 %v9723_v63, %v9724_v5  ;;  %v9738_v46 = vrot.slane %v9737_v1, 4  ;;  %v9355_v20 = vrot.slane %v24026_v54, 2 }
 0x4e5   : > { %v22424_v38 = vmax.f32 %v22312_v30, %v24024_v42  ;;  %v24027_v51 = vrot.slane %v22320_v50, 2  ;;  %v22433_v10 = vmax.f32 %v9711_v35, %v9712_v40  ;;  %v22436_v45 = vsel %vm8966_vm0, %v8769_v59, -inf  ;;  %v24028_v30 = vld [vmem:[#allocation48_spill] sm:$0xff] }
 0x4e6   : > { %v9411_v42 = vrot.slane %v24028_v30, 2  ;;  %v9726_v32 = vrot.slane %v9725_v19, 2  ;;  %v22439_v21 = vmax.f32 %v9730_v11, %v9731_v39  ;;  %v9356_v63 = vmax.f32 %v24026_v54, %v9355_v20  ;;  %v24029_v20 = vld [vmem:[#allocation26_spill] sm:$0xff]  ;;  %17334 = vmatpush3.bf16.msra.mxu1 %v18226_v8 }
 0x4e7   : > { %24025 = vst [vmem:[#allocation39_spill] sm:$0xff] %v22424_v38  ;;  %v22431_v34 = vmax.f32 %v22320_v50, %v24027_v51  ;;  %v10180_v5 = vsel %vm10072_vm2, %v22063_v47, %v22057_v13  ;;  %v18227_v50 = vld [vmem:[%s22308_s24 + $0x78] sm:$0xff]   ;;  %v22446_v35 = vmax.f32 %v9699_v2, %v9700_v53  ;;  %v22448_v40 = vmax.f32 %v9718_v3, %v9719_v57 }
 0x4e8   : > { %v9412_v59 = vmax.f32 %v24028_v30, %v9411_v42  ;;  %v10181_v41 = vsel %vm10074_vm3, %v22070_v61, %v10180_v5  ;;  %v22453_v11 = vmax.f32 %v9706_v28, %v9707_v49  ;;  %v9357_v54 = vrot.slane %v9356_v63, 1  ;;  %v24030_v2 = vld [vmem:[#allocation37_spill] sm:$0xff]  ;;  %17335 = vmatprep.subr.bf16.mxu1 %v18227_v50  ;;  %v24031_v42 = vld [vmem:[#allocation50_spill] sm:$0xff]  ;;  %v24032_v5 = vld [vmem:[#allocation19_spill] sm:$0xff] }
 0x4e9   : > { %v9243_v13 = vrot.slane %v24029_v20, 2  ;;  %v22457_v47 = vmax.f32 %v9737_v1, %v9738_v46  ;;  %v9299_v53 = vrot.slane %v24030_v2, 2  ;;  %v10177_v3 = vsel %vm10072_vm2, %v21903_v6, %v21837_v44  ;;  %v18228_v61 = vld [vmem:[%s22308_s24 + $0x38] sm:$0xff]   ;;  %v18229_v1 = vld [vmem:[%s22308_s24 + $0xc0] sm:$0xff]  }
 0x4ea   : > { %v9413_v36 = vrot.slane %v9412_v59, 1  ;;  %v22464_v57 = vmax.f32 %v9725_v19, %v9726_v32  ;;  %v9733_v28 = vrot.slane %v22439_v21, 2  ;;  %v9358_v49 = vmax.f32 %v9356_v63, %v9357_v54  ;;  %v24033_v32 = vld [vmem:[#allocation55_spill] sm:$0xff]  ;;  %v18239_v54 = vld [vmem:[%s22308_s24 + $0x240] sm:$0xff]   ;;  %17336 = vmatpush3.bf16.msra.mxu1 %v18228_v61 }
 0x4eb   : > { %v9244_v51 = vmax.f32 %v24029_v20, %v9243_v13  ;;  %v9300_v30 = vmax.f32 %v24030_v2, %v9299_v53  ;;  %v17311_v39 = vadd.f32 %v24032_v5, %v24031_v42  ;;  %v9546_v44 = vrot.slane %v22040_v48, 1  ;;  %17343 = vmatprep.subr.bf16.mxu1 %v18229_v1  ;;  %17409 = vmatprep.subr.bf16.mxu0 %v18239_v54 }
 0x4ec   : > { %v9414_v46 = vmax.f32 %v9412_v59, %v9413_v36  ;;  %v9957_v6 = vsel %vm9863_vm1, %v9358_v49, -inf  ;;  %v10178_v19 = vsel %vm10074_vm3, %v24033_v32, %v10177_v3  ;;  %v9553_v63 = vrot.slane %v22157_v25, 1  ;;  %v18241_v32 = vld [vmem:[%s22308_s24 + $0x200] sm:$0xff]  }
 0x4ed   : > { %v9245_v8 = vrot.slane %v9244_v51, 1  ;;  %v9301_v59 = vrot.slane %v9300_v30, 1  ;;  %v8248_v20 = vadd.f32 %v22352_v12, %v17311_v39  ;;  %v9547_v13 = vmax.f32 %v22040_v48, %v9546_v44  ;;  %17410 = vmatpush3.bf16.msra.mxu0 %v18241_v32 }
 0x4ee   : > { %v9958_v50 = vsel %vm9863_vm1, %v9414_v46, -inf  ;;  %v9728_v36 = vrot.slane %v22464_v57, 1  ;;  %v9554_v49 = vmax.f32 %v22157_v25, %v9553_v63  ;;  %v9602_v46 = vrot.slane %v22171_v23, 1 }
 0x4ef   : > { %v9959_v2 = vmax.f32 %v9957_v6, %v9958_v50  ;;  %v9246_v53 = vmax.f32 %v9244_v51, %v9245_v8  ;;  %v9302_v3 = vmax.f32 %v9300_v30, %v9301_v59  ;;  %v8770_v42 = vcombine.high %v8248_v20, %v8248_v20 }
 0x4f0   : > { %v8777_v5 = vrot.slane %v8248_v20, %v21181_v33  ;;  %v9609_v61 = vrot.slane %v22284_v52, 1  ;;  %v9984_v51 = vsel %vm9863_vm1, %v22147_v27, -inf  ;;  %v9603_v8 = vmax.f32 %v22171_v23, %v9602_v46 }
 0x4f1   : > { %v22487_v39 = vsel %vm10076_vm4, %v9959_v2, %v10181_v41  ;;  %v9933_v48 = vsel %vm9863_vm1, %v9246_v53, -inf  ;;  %v9934_v25 = vsel %vm9863_vm1, %v9302_v3, -inf  ;;  %v8784_v1 = vrot.slane %v8770_v42, %v21181_v33 }
 0x4f2   : > { %24034 = vst [vmem:[#allocation40_spill] sm:$0xff] %v22487_v39  ;;  %10246 = vrot.lane.b32.xlu0 %v22487_v39, %s18903_s26  ;;  %v8785_v30 = vcombine.high %v8777_v5, %v8777_v5  ;;  %v9751_v44 = vsel %vm8966_vm0, %v8777_v5, -inf  ;;  %v9935_v41 = vmax.f32 %v9933_v48, %v9934_v25  ;;  %v9610_v63 = vmax.f32 %v22284_v52, %v9609_v61 }
 0x4f3   : > { %v9752_v6 = vrot.slane %v9751_v44, 4  ;;  %v8786_v54 = vcombine.high %v8784_v1, %v8784_v1  ;;  %v9765_v50 = vsel %vm8966_vm0, %v8784_v1, -inf  ;;  %v9985_v59 = vsel %vm9863_vm1, %v22190_v4, -inf }
 0x4f4   : > { %v9758_v27 = vsel %vm8966_vm0, %v8785_v30, -inf  ;;  %v22505_v20 = vsel %vm10076_vm4, %v9935_v41, %v10178_v19  ;;  %v9766_v3 = vrot.slane %v9765_v50, 4  ;;  %v9986_v52 = vmax.f32 %v9984_v51, %v9985_v59 }
 0x4f5   : > { %24035 = vst [vmem:[#allocation42_spill] sm:$0xff] %v22505_v20  ;;  %v9753_v2 = vmax.f32 %v9751_v44, %v9752_v6  ;;  %v9759_v53 = vrot.slane %v9758_v27, 4  ;;  %10244 = vrot.lane.b32.xlu1 %v22505_v20, %s18903_s26  ;;  %v9772_v23 = vsel %vm8966_vm0, %v8786_v54, -inf  ;;  %v9987_v42 = vsel %vm9863_vm1, %v22152_v60, -inf }
 0x4f6   : > { %v9988_v5 = vsel %vm9863_vm1, %v22317_v14, -inf  ;;  %v9767_v32 = vmax.f32 %v9765_v50, %v9766_v3  ;;  %v9773_v19 = vrot.slane %v9772_v23, 4  ;;  %v9990_v61 = vsel %vm9863_vm1, %v9547_v13, -inf }
 0x4f7   : > { %v9754_v46 = vrot.slane %v9753_v2, 2  ;;  %v9760_v4 = vmax.f32 %v9758_v27, %v9759_v53  ;;  %v9989_v48 = vmax.f32 %v9987_v42, %v9988_v5  ;;  %v9991_v25 = vsel %vm9863_vm1, %v9603_v8, -inf  ;;  %v24039_v42 = vld [vmem:[#allocation23_spill] sm:$0xff]  ;;  %v24040_v5 = vld [vmem:[#allocation53_spill] sm:$0xff] }
 0x4f8   : > { %v9993_v1 = vsel %vm9863_vm1, %v9554_v49, -inf  ;;  %v9768_v51 = vrot.slane %v9767_v32, 2  ;;  %v9774_v41 = vmax.f32 %v9772_v23, %v9773_v19  ;;  %v22517_v6 = vmax.f32 %v9990_v61, %v9991_v25  ;;  %v24042_v25 = vld [vmem:[#allocation14_spill] sm:$0xff] }
 0x4f9   : > { %v9755_v30 = vmax.f32 %v9753_v2, %v9754_v46  ;;  %v9761_v44 = vrot.slane %v9760_v4, 2  ;;  %v9994_v60 = vsel %vm9863_vm1, %v9610_v63, -inf  ;;  %v10258_v14 = vsel %vm10072_vm2, %v9989_v48, %v9986_v52 }
 0x4fa   : > { %v9996_v54 = vsel %vm9863_vm1, %v22162_v16, -inf  ;;  %v9729_v27 = vmax.f32 %v22464_v57, %v9728_v36  ;;  %v9775_v8 = vrot.slane %v9774_v41, 2  ;;  %v22524_v59 = vmax.f32 %v9993_v1, %v9994_v60  ;;  %v24043_v1 = vld [vmem:[#allocation20_spill] sm:$0xff] }
 0x4fb   : > { %v9756_v13 = vrot.slane %v9755_v30, 1  ;;  %v9762_v50 = vmax.f32 %v9760_v4, %v9761_v44  ;;  %v10259_v49 = vsel %vm10074_vm3, %v22517_v6, %v10258_v14  ;;  %v9997_v2 = vsel %vm9863_vm1, %v22296_v24, -inf }
 0x4fc   : > { %v10264_v63 = vsel %vm10072_vm2, %v22517_v6, %v9989_v48  ;;  %v24036_v16 = vrot.slane %v22436_v45, 4  ;;  %v9769_v36 = vmax.f32 %v9767_v32, %v9768_v51  ;;  %v22538_v3 = vmax.f32 %v9774_v41, %v9775_v8  ;;  %v24044_v51 = vld [vmem:[#allocation54_spill] sm:$0xff] }
 0x4fd   : > { %v22542_v23 = vsel %vm10076_vm4, %v22524_v59, %v10259_v49  ;;  %v22544_v52 = vmax.f32 %v9996_v54, %v9997_v2  ;;  %v10265_v24 = vsel %vm10074_vm3, %v22524_v59, %v10264_v63  ;;  %v17314_v46 = vadd.f32 %v24040_v5, %v24039_v42 }
 0x4fe   : > { %v22536_v57 = vmax.f32 %v22436_v45, %v24036_v16  ;;  %24038 = vst [vmem:[#allocation15_spill] sm:$0xff] %v22542_v23  ;;  %v22553_v45 = vmax.f32 %v22439_v21, %v9733_v28  ;;  %v22556_v4 = vsel %vm9863_vm1, %v9729_v27, -inf  ;;  %v9757_v32 = vmax.f32 %v9755_v30, %v9756_v13  ;;  %10302 = vrot.lane.b32.xlu0 %v22542_v23, %s18903_s26  ;;  %v24046_v30 = vld [vmem:[#allocation58_spill] sm:$0xff]  ;;  %v24048_v27 = vld [vmem:[#allocation57_spill] sm:$0xff] }
 0x4ff   : > { %v9763_v19 = vrot.slane %v9762_v50, 1  ;;  %v22562_v48 = vsel %vm10076_vm4, %v22544_v52, %v10265_v24  ;;  %v8251_v61 = vadd.f32 %v22352_v12, %v17314_v46  ;;  %v17317_v44 = vadd.f32 %v24043_v1, %v24042_v25 }
 0x500   : > { %24037 = vst [vmem:[#allocation44_spill] sm:$0xff] %v22536_v57  ;;  %24041 = vst [vmem:[#allocation21_spill] sm:$0xff] %v22562_v48  ;;  %v24045_v21 = vrot.slane %v24044_v51, 2  ;;  %v9770_v41 = vrot.slane %v9769_v36, 1  ;;  %10269 = vrot.lane.b32.xlu1 %v22562_v48, %s18903_s26  ;;  %v24047_v60 = vrot.slane %v24046_v30, 2  ;;  %v10231_v54 = vsel %vm10072_vm2, %v22254_v37, %v22244_v26 }
 0x501   : > { %v9467_v13 = vrot.slane %v24048_v27, 2  ;;  %v8787_v49 = vcombine.high %v8251_v61, %v8251_v61  ;;  %v8794_v2 = vrot.slane %v8251_v61, %v21181_v33  ;;  %v8256_v63 = vadd.f32 %v22352_v12, %v17317_v44 }
 0x502   : > { %v9461_v28 = vmax.f32 %v24044_v51, %v24045_v21  ;;  %v9517_v14 = vmax.f32 %v24046_v30, %v24047_v60  ;;  %v22582_v16 = vmax.f32 %v9762_v50, %v9763_v19  ;;  %v22585_v24 = vsel %vm9863_vm1, %v9757_v32, -inf }
 0x503   : > { %24049 = vst [vmem:[#allocation41_spill] sm:$0xff] %v22585_v24  ;;  %v22589_v5 = vsel %vm10074_vm3, %v22325_v22, %v10231_v54  ;;  %v8801_v26 = vrot.slane %v8787_v49, %v21181_v33  ;;  %v8802_v46 = vcombine.high %v8794_v2, %v8794_v2  ;;  %v9779_v25 = vsel %vm8966_vm0, %v8794_v2, -inf }
 0x504   : > { %v9462_v42 = vrot.slane %v9461_v28, 1  ;;  %v8804_v1 = vcombine.high %v8256_v63, %v8256_v63  ;;  %v9780_v51 = vrot.slane %v9779_v25, 4  ;;  %v8811_v61 = vrot.slane %v8256_v63, %v21181_v33 }
 0x505   : > { %v9518_v44 = vrot.slane %v9517_v14, 1  ;;  %v9468_v50 = vmax.f32 %v24048_v27, %v9467_v13  ;;  %v8803_v19 = vcombine.high %v8801_v26, %v8801_v26  ;;  %v9786_v32 = vsel %vm8966_vm0, %v8802_v46, -inf }
 0x506   : > { %v9793_v21 = vsel %vm8966_vm0, %v8801_v26, -inf  ;;  %v8818_v30 = vrot.slane %v8804_v1, %v21181_v33  ;;  %v9781_v60 = vmax.f32 %v9779_v25, %v9780_v51  ;;  %v9787_v54 = vrot.slane %v9786_v32, 4 }
 0x507   : > { %v9794_v49 = vrot.slane %v9793_v21, 4  ;;  %v8819_v53 = vcombine.high %v8811_v61, %v8811_v61  ;;  %v9800_v2 = vsel %vm8966_vm0, %v8803_v19, -inf  ;;  %v9807_v48 = vsel %vm8966_vm0, %v8811_v61, -inf }
 0x508   : > { %v8820_v8 = vcombine.high %v8818_v30, %v8818_v30  ;;  %v9821_v63 = vsel %vm8966_vm0, %v8818_v30, -inf  ;;  %v9782_v23 = vrot.slane %v9781_v60, 2  ;;  %v9788_v27 = vmax.f32 %v9786_v32, %v9787_v54 }
 0x509   : > { %v9801_v13 = vrot.slane %v9800_v2, 4  ;;  %v9463_v20 = vmax.f32 %v9461_v28, %v9462_v42  ;;  %v9808_v46 = vrot.slane %v9807_v48, 4  ;;  %v9814_v26 = vsel %vm8966_vm0, %v8819_v53, -inf }
 0x50a   : > { %v9822_v39 = vrot.slane %v9821_v63, 4  ;;  %v9828_v25 = vsel %vm8966_vm0, %v8820_v8, -inf  ;;  %v9783_v1 = vmax.f32 %v9781_v60, %v9782_v23  ;;  %v22603_v51 = vmax.f32 %v9793_v21, %v9794_v49 }
 0x50b   : > { %v9519_v24 = vmax.f32 %v9517_v14, %v9518_v44  ;;  %v9523_v19 = vrot.slane %v22027_v15, 2  ;;  %v22606_v57 = vmax.f32 %v9769_v36, %v9770_v41  ;;  %v9815_v61 = vrot.slane %v9814_v26, 4 }
 0x50c   : > { %v9823_v30 = vmax.f32 %v9821_v63, %v9822_v39  ;;  %v9829_v38 = vrot.slane %v9828_v25, 4  ;;  %v9784_v32 = vrot.slane %v9783_v1, 1  ;;  %v9789_v28 = vrot.slane %v9788_v27, 2  ;;  %v18249_v63 = vld [vmem:[%s22308_s24 + $0x248] sm:$0xff]  }
 0x50d   : > { %v22608_v42 = vmax.f32 %v9800_v2, %v9801_v13  ;;  %v22610_v53 = vmax.f32 %v9807_v48, %v9808_v46  ;;  %v9816_v54 = vmax.f32 %v9814_v26, %v9815_v61  ;;  %v9978_v14 = vsel %vm9863_vm1, %v9463_v20, -inf  ;;  %17411 = vmatprep.subr.bf16.mxu0 %v18249_v63 }
 0x50e   : > { %v9824_v8 = vrot.slane %v9823_v30, 2  ;;  %v9830_v23 = vmax.f32 %v9828_v25, %v9829_v38  ;;  %v9979_v36 = vsel %vm9863_vm1, %v9519_v24, -inf  ;;  %v9469_v41 = vrot.slane %v9468_v50, 1  ;;  %v18251_v38 = vld [vmem:[%s22308_s24 + $0x208] sm:$0xff]  }
 0x50f   : > { %v9524_v39 = vmax.f32 %v22027_v15, %v9523_v19  ;;  %v9785_v21 = vmax.f32 %v9783_v1, %v9784_v32  ;;  %v9817_v60 = vrot.slane %v9816_v54, 2  ;;  %v9803_v48 = vrot.slane %v22608_v42, 2  ;;  %17412 = vmatpush3.bf16.msra.mxu0 %v18251_v38 }
 0x510   : > { %v9825_v49 = vmax.f32 %v9823_v30, %v9824_v8  ;;  %v9831_v2 = vrot.slane %v9830_v23, 2  ;;  %v9980_v13 = vmax.f32 %v9978_v14, %v9979_v36  ;;  %v9470_v46 = vmax.f32 %v9468_v50, %v9469_v41 }
 0x511   : > { %v9525_v26 = vrot.slane %v9524_v39, 1  ;;  %v9810_v20 = vrot.slane %v22610_v53, 2  ;;  %v9818_v25 = vmax.f32 %v9816_v54, %v9817_v60  ;;  %v10239_v50 = vsel %vm10072_vm2, %v22325_v22, %v22254_v37  ;;  %v24051_v37 = vld [vmem:[#allocation59_spill] sm:$0xff]  ;;  %v24052_v22 = vld [vmem:[#allocation61_spill] sm:$0xff] }
 0x512   : > { %v9826_v61 = vrot.slane %v9825_v49, 1  ;;  %v22620_v44 = vmax.f32 %v9830_v23, %v9831_v2  ;;  %v22624_v15 = vsel %vm10076_vm4, %v9980_v13, %v22589_v5  ;;  %v9981_v1 = vsel %vm9863_vm1, %v9470_v46, -inf }
 0x513   : > { %v9526_v24 = vmax.f32 %v9524_v39, %v9525_v26  ;;  %v24050_v19 = vrot.slane %v22538_v3, 1  ;;  %v22635_v32 = vmax.f32 %v9788_v27, %v9789_v28  ;;  %v22638_v54 = vsel %vm9863_vm1, %v9785_v21, -inf  ;;  %10283 = vrot.lane.b32.xlu0 %v22624_v15, %s18903_s26 }
 0x514   : > { %v9819_v5 = vrot.slane %v9818_v25, 1  ;;  %v10240_v23 = vsel %vm10074_vm3, %v9980_v13, %v10239_v50  ;;  %v17320_v14 = vadd.f32 %v24052_v22, %v24051_v37  ;;  %v9658_v36 = vrot.slane %v22331_v56, 1 }
 0x515   : > { %v22633_v30 = vmax.f32 %v22538_v3, %v24050_v19  ;;  %v9982_v8 = vsel %vm9863_vm1, %v9526_v24, -inf  ;;  %v22649_v27 = vmax.f32 %v9825_v49, %v9826_v61  ;;  %v9833_v28 = vrot.slane %v22620_v44, 1 }
 0x516   : > { %v22647_v3 = vmax.f32 %v9818_v25, %v9819_v5  ;;  %v9983_v41 = vmax.f32 %v9981_v1, %v9982_v8  ;;  %v8259_v39 = vadd.f32 %v22352_v12, %v17320_v14  ;;  %v9659_v21 = vmax.f32 %v22331_v56, %v9658_v36 }
 0x517   : > { %v9665_v60 = vrot.slane %v22409_v62, 1  ;;  %v9714_v2 = vrot.slane %v22433_v10, 1  ;;  %v9721_v13 = vrot.slane %v22448_v40, 1  ;;  %v10008_v49 = vsel %vm9863_vm1, %v22345_v18, -inf }
 0x518   : > { %v22657_v63 = vsel %vm10076_vm4, %v9983_v41, %v10240_v23  ;;  %v10009_v46 = vsel %vm9863_vm1, %v22446_v35, -inf  ;;  %v8821_v12 = vcombine.high %v8259_v39, %v8259_v39  ;;  %v8828_v56 = vrot.slane %v8259_v39, %v21181_v33 }
 0x519   : > { %10248 = vrot.lane.b32.xlu1 %v22657_v63, %s18903_s26  ;;  %v9666_v26 = vmax.f32 %v22409_v62, %v9665_v60  ;;  %v9715_v38 = vmax.f32 %v22433_v10, %v9714_v2  ;;  %v9722_v25 = vmax.f32 %v22448_v40, %v9721_v13  ;;  %v10010_v61 = vmax.f32 %v10008_v49, %v10009_v46 }
 0x51a   : > { %v10011_v24 = vsel %vm9863_vm1, %v22419_v43, -inf  ;;  %v10012_v18 = vsel %vm9863_vm1, %v22453_v11, -inf  ;;  %v8835_v35 = vrot.slane %v8821_v12, %v21181_v33  ;;  %v8836_v1 = vcombine.high %v8828_v56, %v8828_v56 }
 0x51b   : > { %v9835_v50 = vsel %vm8966_vm0, %v8828_v56, -inf  ;;  %v22676_v19 = vmax.f32 %v10011_v24, %v10012_v18  ;;  %v10014_v62 = vsel %vm9863_vm1, %v9659_v21, -inf  ;;  %v10015_v10 = vsel %vm9863_vm1, %v9715_v38, -inf }
 0x51c   : > { %v9836_v5 = vrot.slane %v9835_v50, 4  ;;  %v10017_v40 = vsel %vm9863_vm1, %v9666_v26, -inf  ;;  %v8837_v8 = vcombine.high %v8835_v35, %v8835_v35  ;;  %v9842_v43 = vsel %vm8966_vm0, %v8836_v1, -inf }
 0x51d   : > { %v9849_v23 = vsel %vm8966_vm0, %v8835_v35, -inf  ;;  %v22683_v11 = vmax.f32 %v10014_v62, %v10015_v10  ;;  %v9843_v37 = vrot.slane %v9842_v43, 4  ;;  %v10018_v14 = vsel %vm9863_vm1, %v9722_v25, -inf }
 0x51e   : > { %v9837_v33 = vmax.f32 %v9835_v50, %v9836_v5  ;;  %v9850_v22 = vrot.slane %v9849_v23, 4  ;;  %v9856_v36 = vsel %vm8966_vm0, %v8837_v8, -inf  ;;  %v22687_v41 = vmax.f32 %v10017_v40, %v10018_v14 }
 0x51f   : > { %v10299_v39 = vsel %vm10072_vm2, %v22676_v19, %v10010_v61  ;;  %v9679_v21 = vrot.slane %v22431_v34, 1  ;;  %v9844_v2 = vmax.f32 %v9842_v43, %v9843_v37  ;;  %v9857_v49 = vrot.slane %v9856_v36, 4 }
 0x520   : > { %v9838_v60 = vrot.slane %v9837_v33, 2  ;;  %v22692_v13 = vmax.f32 %v9849_v23, %v9850_v22  ;;  %v10300_v46 = vsel %vm10074_vm3, %v22683_v11, %v10299_v39  ;;  %v24053_v56 = vrot.slane %v22323_v0, 2 }
 0x521   : > { %v9680_v12 = vmax.f32 %v22431_v34, %v9679_v21  ;;  %v9735_v38 = vrot.slane %v22553_v45, 1  ;;  %v22702_v25 = vmax.f32 %v22620_v44, %v9833_v28  ;;  %v9845_v24 = vrot.slane %v9844_v2, 2 }
 0x522   : > { %v9685_v26 = vmax.f32 %v22323_v0, %v24053_v56  ;;  %v9839_v61 = vmax.f32 %v9837_v33, %v9838_v60  ;;  %v9852_v18 = vrot.slane %v22692_v13, 2  ;;  %v22707_v35 = vsel %vm10076_vm4, %v22687_v41, %v10300_v46 }
 0x523   : > { %v9736_v34 = vmax.f32 %v22553_v45, %v9735_v38  ;;  %v24054_v50 = vrot.slane %v22457_v47, 2  ;;  %v22713_v62 = vmax.f32 %v9844_v2, %v9845_v24  ;;  %v22715_v44 = vmax.f32 %v9856_v36, %v9857_v49  ;;  %10304 = vrot.lane.b32.xlu1 %v22707_v35, %s18903_s26  ;;  %v22745_v49 = vpop.permute.xlu1 %10109 }
 0x524   : > { %v9686_v1 = vrot.slane %v9685_v26, 1  ;;  %v9840_v5 = vrot.slane %v9839_v61, 1  ;;  %v22721_v28 = vmax.f32 %v22396_v29, %v22556_v4  ;;  %v10023_v45 = vsel %vm9863_vm1, %v9680_v12, -inf }
 0x525   : > { %v9741_v0 = vmax.f32 %v22457_v47, %v24054_v50  ;;  %v10024_v8 = vsel %vm9863_vm1, %v9736_v34, -inf  ;;  %v9567_v33 = vrot.slane %v22167_v31, 1  ;;  %v24055_v29 = vrot.slane %v22029_v55, 2 }
 0x526   : > { %v9687_v10 = vmax.f32 %v9685_v26, %v9686_v1  ;;  %v9841_v43 = vmax.f32 %v9839_v61, %v9840_v5  ;;  %v22725_v47 = vmax.f32 %v10023_v45, %v10024_v8  ;;  %v10351_v23 = vsel %vm10072_vm2, %v22721_v28, %v22687_v41  ;;  %v22752_v26 = vpop.permute.xlu0 %10107 }
 0x527   : > { %v9742_v40 = vrot.slane %v9741_v0, 1  ;;  %v9573_v4 = vmax.f32 %v22029_v55, %v24055_v29  ;;  %v9623_v14 = vrot.slane %v22305_v9, 1  ;;  %v9568_v21 = vmax.f32 %v22167_v31, %v9567_v33  ;;  %v18260_v33 = vld [vmem:[%s22308_s24 + $0x210] sm:$0xff]  }
 0x528   : > { %v10026_v22 = vsel %vm9863_vm1, %v9687_v10, -inf  ;;  %v22737_v36 = vsel %vm9863_vm1, %v9841_v43, -inf  ;;  %v10352_v39 = vsel %vm10074_vm3, %v22725_v47, %v10351_v23  ;;  %v24056_v60 = vrot.slane %v22142_v7, 2 }
 0x529   : > { %v9743_v37 = vmax.f32 %v9741_v0, %v9742_v40  ;;  %v9574_v12 = vrot.slane %v9573_v4, 1  ;;  %v9624_v55 = vmax.f32 %v22305_v9, %v9623_v14  ;;  %v10280_v56 = vsel %vm10072_vm2, %v22544_v52, %v22524_v59  ;;  %v18258_v40 = vld [vmem:[%s22308_s24 + $0x250] sm:$0xff]  }
 0x52a   : > { %v9629_v2 = vmax.f32 %v22142_v7, %v24056_v60  ;;  %v9999_v61 = vsel %vm9863_vm1, %v9568_v21, -inf  ;;  %v10335_v7 = vsel %vm10072_vm2, %v22683_v11, %v22676_v19  ;;  %v9579_v34 = vrot.slane %v22051_v58, 2  ;;  %v22772_v19 = vpop.permute.xlu1 %10159  ;;  %17413 = vmatprep.subr.bf16.mxu0 %v18258_v40 }
 0x52b   : > { %v10027_v46 = vsel %vm9863_vm1, %v9743_v37, -inf  ;;  %v9575_v24 = vmax.f32 %v9573_v4, %v9574_v12  ;;  %v10000_v9 = vsel %vm9863_vm1, %v9624_v55, -inf  ;;  %v10336_v1 = vsel %vm10074_vm3, %v22687_v41, %v10335_v7  ;;  %17414 = vmatpush3.bf16.msra.mxu0 %v18260_v33  ;;  %v18262_v12 = vld [vmem:[%s22308_s24 + $0x258] sm:$0xff]   ;;  %v18266_v7 = vld [vmem:[%s22308_s24 + $0x260] sm:$0xff]  }
 0x52c   : > { %v22754_v38 = vmax.f32 %v10026_v22, %v10027_v46  ;;  %v9630_v31 = vrot.slane %v9629_v2, 1  ;;  %v10001_v5 = vmax.f32 %v9999_v61, %v10000_v9  ;;  %v22770_v10 = vsel %vm10076_vm4, %v22721_v28, %v10336_v1  ;;  %v18264_v61 = vld [vmem:[%s22308_s24 + $0x218] sm:$0xff]   ;;  %17415 = vmatprep.subr.bf16.mxu0 %v18262_v12 }
 0x52d   : > { %v10002_v45 = vsel %vm9863_vm1, %v9575_v24, -inf  ;;  %v9580_v8 = vmax.f32 %v22051_v58, %v9579_v34  ;;  %v9635_v43 = vrot.slane %v22181_v17, 2  ;;  %v10274_v23 = vsel %vm10072_vm2, %v22524_v59, %v22517_v6  ;;  %v22794_v59 = vpop.permute.xlu0 %10155  ;;  %v24058_v33 = vld [vmem:[#allocation13_spill] sm:$0xff] }
 0x52e   : > { %v22766_v50 = vsel %vm10076_vm4, %v22754_v38, %v10352_v39  ;;  %v9631_v0 = vmax.f32 %v9629_v2, %v9630_v31  ;;  %v10281_v22 = vsel %vm10074_vm3, %v10001_v5, %v10280_v56  ;;  %v10290_v29 = vsel %vm10072_vm2, %v10001_v5, %v22544_v52 }
 0x52f   : > { %10395 = vrot.lane.b32.xlu0 %v22766_v50, %s18903_s26  ;;  %v10275_v4 = vsel %vm10074_vm3, %v22544_v52, %v10274_v23  ;;  %v9581_v14 = vrot.slane %v9580_v8, 1  ;;  %v9636_v39 = vmax.f32 %v22181_v17, %v9635_v43  ;;  %v9791_v21 = vrot.slane %v22635_v32, 1  ;;  %v22804_v17 = vpop.permute.xlu1 %10161  ;;  %17416 = vmatpush3.bf16.msra.mxu0 %v18264_v61 }
 0x530   : > { %v10003_v37 = vsel %vm9863_vm1, %v9631_v0, -inf  ;;  %v22792_v6 = vsel %vm10076_vm4, %v10001_v5, %v10275_v4  ;;  %v24057_v60 = vrot.slane %v22603_v51, 2  ;;  %v9847_v52 = vrot.slane %v22713_v62, 1  ;;  %17417 = vmatprep.subr.bf16.mxu0 %v18266_v7 }
 0x531   : > { %v10004_v58 = vmax.f32 %v10002_v45, %v10003_v37  ;;  %v9853_v46 = vmax.f32 %v22692_v13, %v9852_v18  ;;  %v9582_v56 = vmax.f32 %v9580_v8, %v9581_v14  ;;  %v9637_v31 = vrot.slane %v9636_v39, 1  ;;  %v22824_v40 = vpop.permute.xlu0 %10157  ;;  %v18268_v45 = vld [vmem:[%s22308_s24 + $0x220] sm:$0xff]   ;;  %v24059_v37 = vld [vmem:[#allocation11_spill] sm:$0xff] }
 0x532   : > { %v9797_v2 = vmax.f32 %v22603_v51, %v24057_v60  ;;  %v9792_v13 = vmax.f32 %v22635_v32, %v9791_v21  ;;  %v9848_v24 = vmax.f32 %v22713_v62, %v9847_v52  ;;  %v10041_v0 = vsel %vm9863_vm1, %v22633_v30, -inf }
 0x533   : > { %v22808_v55 = vsel %vm10076_vm4, %v10004_v58, %v10281_v22  ;;  %10379 = vrot.lane.b32.xlu0 %v22770_v10, %s18903_s26  ;;  %v10291_v51 = vsel %vm10074_vm3, %v10004_v58, %v10290_v29  ;;  %v9854_v9 = vrot.slane %v9853_v46, 1  ;;  %v9638_v1 = vmax.f32 %v9636_v39, %v9637_v31  ;;  %17418 = vmatpush3.bf16.msra.mxu0 %v18268_v45  ;;  %v24060_v31 = vld [vmem:[#allocation27_spill] sm:$0xff] }
 0x534   : > { %10285 = vrot.lane.b32.xlu1 %v22808_v55, %s18903_s26  ;;  %v9798_v18 = vrot.slane %v9797_v2, 1  ;;  %v10005_v34 = vsel %vm9863_vm1, %v9582_v56, -inf  ;;  %v10042_v5 = vsel %vm9863_vm1, %v22702_v25, -inf  ;;  %v22831_v62 = vmax.f32 %v22638_v54, %v22737_v36  ;;  %v22842_v54 = vpop.permute.xlu1 %10113  ;;  %v18270_v36 = vld [vmem:[%s22308_s24 + $0x268] sm:$0xff]  }
 0x535   : > { %v9855_v8 = vmax.f32 %v9853_v46, %v9854_v9  ;;  %v22827_v43 = vmax.f32 %v10041_v0, %v10042_v5  ;;  %v10006_v23 = vsel %vm9863_vm1, %v9638_v1, -inf  ;;  %v10047_v30 = vsel %vm9863_vm1, %v9792_v13, -inf  ;;  %v22853_v52 = vpop.permute.xlu0 %10111  ;;  %v18272_v46 = vld [vmem:[%s22308_s24 + $0x228] sm:$0xff]   ;;  %17419 = vmatprep.subr.bf16.mxu0 %v18270_v36  ;;  %v24061_v13 = vld [vmem:[#allocation28_spill] sm:$0xff] }
 0x536   : > { %v9799_v32 = vmax.f32 %v9797_v2, %v9798_v18  ;;  %v10048_v25 = vsel %vm9863_vm1, %v9848_v24, -inf  ;;  %v9866_v22 = vmax.f32 %v24059_v37, %v24058_v33  ;;  %v10007_v29 = vmax.f32 %v10005_v34, %v10006_v23  ;;  %v24062_v18 = vld [vmem:[#allocation29_spill] sm:$0xff]  ;;  %v24063_v34 = vld [vmem:[#allocation39_spill] sm:$0xff]  ;;  %v24064_v5 = vld [vmem:[#allocation44_spill] sm:$0xff] }
 0x537   : > { %v22838_v4 = vmax.f32 %v10047_v30, %v10048_v25  ;;  %v10051_v14 = vsel %vm9863_vm1, %v9855_v8, -inf  ;;  %v9811_v39 = vmax.f32 %v22610_v53, %v9810_v20  ;;  %v10392_v60 = vsel %vm10072_vm2, %v22831_v62, %v22827_v43  ;;  %17420 = vmatpush3.bf16.msra.mxu0 %v18272_v46  ;;  %v18276_v25 = vld [vmem:[%s22308_s24 + $0x230] sm:$0xff]   ;;  %v24065_v37 = vld [vmem:[#allocation30_spill] sm:$0xff] }
 0x538   : > { %v10050_v58 = vsel %vm9863_vm1, %v9799_v32, -inf  ;;  %v10035_v2 = vsel %vm9863_vm1, %v22582_v16, -inf  ;;  %v9859_v12 = vrot.slane %v22715_v44, 2  ;;  %v22858_v56 = vsel %vm10076_vm4, %v10007_v29, %v10291_v51  ;;  %v18274_v32 = vld [vmem:[%s22308_s24 + $0x270] sm:$0xff]   ;;  %v22893_v30 = vpop.permute.xlu1 %10220 }
 0x539   : > { %v10052_v21 = vmax.f32 %v10050_v58, %v10051_v14  ;;  %v10393_v53 = vsel %vm10074_vm3, %v22838_v4, %v10392_v60  ;;  %v10036_v20 = vsel %vm9863_vm1, %v22647_v3, -inf  ;;  %10360 = vrot.lane.b32.xlu0 %v22858_v56, %s18903_s26  ;;  %v10073_v61 = vsel %vm10072_vm2, %v24060_v31, %v9866_v22  ;;  %17421 = vmatprep.subr.bf16.mxu0 %v18274_v32 }
 0x53a   : > { %v22869_v7 = vmax.f32 %v10035_v2, %v10036_v20  ;;  %v10038_v51 = vsel %vm9863_vm1, %v22606_v57, -inf  ;;  %v10039_v3 = vsel %vm9863_vm1, %v22649_v27, -inf  ;;  %v10123_v24 = vsel %vm10072_vm2, %v24062_v18, %v24061_v13 }
 0x53b   : > { %v10394_v16 = vsel %vm10076_vm4, %v10052_v21, %v10393_v53  ;;  %v9812_v9 = vrot.slane %v9811_v39, 1  ;;  %v22879_v1 = vmax.f32 %v10038_v51, %v10039_v3  ;;  %v9691_v0 = vrot.slane %v24063_v34, 2  ;;  %17422 = vmatpush3.bf16.msra.mxu0 %v18276_v25  ;;  %v24068_v25 = vld [vmem:[#allocation24_spill] sm:$0xff] }
 0x53c   : > { %10397 = vrot.lane.b32.xlu1 %v10394_v16, %s18903_s26  ;;  %v9747_v45 = vrot.slane %v24064_v5, 2  ;;  %v10075_v8 = vsel %vm10074_vm3, %v24061_v13, %v10073_v61  ;;  %v9804_v57 = vmax.f32 %v22608_v42, %v9803_v48  ;;  %v9860_v27 = vmax.f32 %v22715_v44, %v9859_v12  ;;  %v22905_v44 = vpop.permute.xlu0 %10218  ;;  %v18278_v13 = vld [vmem:[%s22308_s24 + $0x278] sm:$0xff]  }
 0x53d   : > { %v10357_v23 = vsel %vm10072_vm2, %v22725_v47, %v22721_v28  ;;  %10344 = vrot.lane.b32.xlu0 %v22792_v6, %s18903_s26  ;;  %v10376_v33 = vsel %vm10072_vm2, %v22879_v1, %v22869_v7  ;;  %v10124_v22 = vsel %vm10074_vm3, %v24065_v37, %v10123_v24  ;;  %v9692_v42 = vmax.f32 %v24063_v34, %v9691_v0 }
 0x53e   : > { %v9748_v48 = vmax.f32 %v24064_v5, %v9747_v45  ;;  %v10377_v29 = vsel %vm10074_vm3, %v22827_v43, %v10376_v33  ;;  %v9805_v58 = vrot.slane %v9804_v57, 1  ;;  %v9861_v14 = vrot.slane %v9860_v27, 1  ;;  %17423 = vmatprep.subr.bf16.mxu0 %v18278_v13 }
 0x53f   : > { %v10358_v36 = vsel %vm10074_vm3, %v22754_v38, %v10357_v23  ;;  %v10378_v60 = vsel %vm10076_vm4, %v22831_v62, %v10377_v29  ;;  %v9693_v2 = vrot.slane %v9692_v42, 1  ;;  %v10402_v12 = vsel %vm10072_vm2, %v22838_v4, %v22831_v62 }
 0x540   : > { %v9749_v46 = vrot.slane %v9748_v48, 1  ;;  %10381 = vrot.lane.b32.xlu1 %v10378_v60, %s18903_s26  ;;  %v9806_v53 = vmax.f32 %v9804_v57, %v9805_v58  ;;  %v9862_v20 = vmax.f32 %v9860_v27, %v9861_v14  ;;  %v10403_v16 = vsel %vm10074_vm3, %v10052_v21, %v10402_v12  ;;  %v22939_v45 = vpop.permute.xlu0 %10194  ;;  %v24067_v57 = vld [vmem:[#allocation60_spill] sm:$0xff]  ;;  %v24073_v58 = vld [vmem:[#allocation35_spill] sm:$0xff] }
 0x541   : > { %v10341_v38 = vsel %vm10072_vm2, %v22687_v41, %v22683_v11  ;;  %v9813_v31 = vmax.f32 %v9811_v39, %v9812_v9  ;;  %v9694_v61 = vmax.f32 %v9692_v42, %v9693_v2  ;;  %v10077_v24 = vsel %vm10076_vm4, %v24062_v18, %v10075_v8  ;;  %v22932_v11 = vpop.permute.xlu1 %10196  ;;  %v18280_v41 = vld [vmem:[%s22308_s24 + $0x238] sm:$0xff]   ;;  %v24066_v39 = vld [vmem:[#allocation31_spill] sm:$0xff] }
 0x542   : > { %v9750_v51 = vmax.f32 %v9748_v48, %v9749_v46  ;;  %v10342_v3 = vsel %vm10074_vm3, %v22721_v28, %v10341_v38  ;;  %v10053_v34 = vsel %vm9863_vm1, %v9806_v53, -inf  ;;  %v10054_v0 = vsel %vm9863_vm1, %v9862_v20, -inf  ;;  %17424 = vmatpush3.bf16.msra.mxu0 %v18280_v41  ;;  %v24074_v60 = vld [vmem:[#allocation63_spill] sm:$0xff]  ;;  %v18230_v41 = vld [vmem:[%s22308_s24 + $0x80] sm:$0xff]  }
 0x543   : > { %v22930_v21 = vsel %vm10076_vm4, %v22725_v47, %v10342_v3  ;;  %v10125_v9 = vsel %vm10076_vm4, %v24066_v39, %v10124_v22  ;;  %v10029_v28 = vsel %vm9863_vm1, %v9694_v61, -inf  ;;  %v10055_v18 = vmax.f32 %v10053_v34, %v10054_v0  ;;  %v24069_v22 = vld [vmem:[#allocation10_spill] sm:$0xff] }
 0x544   : > { %v10030_v5 = vsel %vm9863_vm1, %v9750_v51, -inf  ;;  %v10308_v32 = vsel %vm9863_vm1, %v10077_v24, %v22752_v26  ;;  %v10312_v47 = vsel %vm9863_vm1, %v10125_v9, %v22794_v59  ;;  %v10309_v27 = vsel %vm9863_vm1, %v24067_v57, %v22745_v49  ;;  %v24071_v59 = vld [vmem:[#allocation12_spill] sm:$0xff]  ;;  %v10223_v20 = vpop.permute.xlu0 %10222  ;;  %v24077_v34 = vld [vmem:[#allocation22_spill] sm:$0xff]  ;;  %v18231_v9 = vld [vmem:[%s22308_s24 + $0xc8] sm:$0xff]  }
 0x545   : > { %v10031_v8 = vmax.f32 %v10029_v28, %v10030_v5  ;;  %v22951_v23 = vsel %vm10076_vm4, %v10055_v18, %v10403_v16  ;;  %v10313_v33 = vsel %vm9863_vm1, %v24068_v25, %v22824_v40  ;;  %v24070_v26 = vrot.slane %v24069_v22, 2  ;;  %v24075_v40 = vld [vmem:[#allocation34_spill] sm:$0xff]  ;;  %v24080_v57 = vld [vmem:[#allocation36_spill] sm:$0xff] }
 0x546   : > { %v24072_v48 = vrot.slane %v24071_v59, 2  ;;  %v10310_v14 = vsel %vm9863_vm1, %v24073_v58, %v22853_v52  ;;  %v10314_v2 = vsel %vm9863_vm1, %v24074_v60, %v22772_v19  ;;  %v10315_v46 = vsel %vm9863_vm1, %v24075_v40, %v22804_v17  ;;  %v24076_v52 = vld [vmem:[#allocation25_spill] sm:$0xff]  ;;  %v10225_v51 = vpop.permute.xlu1 %10224  ;;  %v24079_v5 = vld [vmem:[#allocation62_spill] sm:$0xff] }
 0x547   : > { %v9020_v42 = vmax.f32 %v24069_v22, %v24070_v26  ;;  %v22963_v49 = vsel %vm10076_vm4, %v10031_v8, %v10358_v36  ;;  %v10311_v16 = vsel %vm9863_vm1, %v24076_v52, %v22842_v54  ;;  %v16615_v19 = vcombine.low %v10308_v32, %v10309_v27  ;;  %v24078_v54 = vld [vmem:[#allocation43_spill] sm:$0xff]  ;;  %v24081_v22 = vld [vmem:[#allocation41_spill] sm:$0xff] }
 0x548   : > { %v9076_v29 = vmax.f32 %v24071_v59, %v24072_v48  ;;  %v10496_v12 = vcombine.low %v22963_v49, %v22951_v23  ;;  %10362 = vrot.lane.b32.xlu1 %v22963_v49, %s18903_s26  ;;  %v22981_v38 = vcombine.low %v10310_v14, %v10311_v16  ;;  %v16616_v61 = vcombine.low %v10312_v47, %v10313_v33  ;;  %v18233_v59 = vld [vmem:[%s22308_s24 + $0xd0] sm:$0xff]   ;;  %v18236_v40 = vld [vmem:[%s22308_s24 + $0x98] sm:$0xff]  }
 0x549   : > { %v9021_v36 = vrot.slane %v9020_v42, 1  ;;  %v22983_v17 = vcombine.low %v10314_v2, %v10315_v46  ;;  %v10033_v3 = vsel %vm9863_vm1, %v9813_v31, -inf  ;;  %v10321_v0 = vsel %vm9863_vm1, %v24077_v34, %v22893_v30  ;;  %v18238_v46 = vld [vmem:[%s22308_s24 + $0xa0] sm:$0xff]   ;;  %v18244_v16 = vld [vmem:[%s22308_s24 + $0xb0] sm:$0xff]  }
 0x54a   : > { %v9077_v53 = vrot.slane %v9076_v29, 1  ;;  %v10320_v28 = vsel %vm9863_vm1, %v24078_v54, %v22905_v44  ;;  %v10322_v18 = vsel %vm9863_vm1, %v24079_v5, %v10223_v20  ;;  %v10523_v32 = vpack.c.bf16 %v22981_v38, %v16615_v19  ;;  %v18243_v20 = vld [vmem:[%s22308_s24 + $0xf0] sm:$0xff]   ;;  %v10199_v19 = vpop.permute.xlu0 %10198  ;;  %v24084_v34 = vld [vmem:[#allocation42_spill] sm:$0xff] }
 0x54b   : > { %v9022_v13 = vmax.f32 %v9020_v42, %v9021_v36  ;;  %v10524_v31 = vpack.c.bf16 %v22983_v17, %v16616_v61  ;;  %v16618_v8 = vcombine.low %v10320_v28, %v10321_v0  ;;  %v10323_v27 = vsel %vm9863_vm1, %v24080_v57, %v10225_v51  ;;  %v18232_v42 = vld [vmem:[%s22308_s24 + $0x88] sm:$0xff]   ;;  %v18245_v61 = vld [vmem:[%s22308_s24 + $0xf8] sm:$0xff]   ;;  %v24082_v51 = vld [vmem:[#allocation32_spill] sm:$0xff] }
 0x54c   : > { %v9078_v24 = vmax.f32 %v9076_v29, %v9077_v53  ;;  %10346 = vrot.lane.b32.xlu1 %v22930_v21, %s18903_s26  ;;  %v23006_v25 = vcombine.low %v10322_v18, %v10323_v27  ;;  %v10386_v33 = vsel %vm10072_vm2, %v22827_v43, %v22879_v1  ;;  %v10034_v26 = vmax.f32 %v24081_v22, %v10033_v3  ;;  %v18240_v36 = vld [vmem:[%s22308_s24 + $0xe8] sm:$0xff]   ;;  %v18247_v28 = vld [vmem:[%s22308_s24 + $0x140] sm:$0xff]   ;;  %v18323_v23 = vld [vmem:[%s22991_s16 + $0xd0] sm:$0xff]   ;;  %s23298_s26 = scalar_select %p7762_p4, %s18884_s18, 1 }
 0x54d   : > { %v9885_v30 = vsel %vm9863_vm1, %v9022_v13, -inf  ;;  %11378 = vmatprep.mubr.bf16.mxu1 %v10524_v31  ;;  %v10387_v48 = vsel %vm10074_vm3, %v22831_v62, %v10386_v33  ;;  %v18904_v2 = vmov 0.0   ;;  %v18234_v62 = vld [vmem:[%s22308_s24 + $0x90] sm:$0xff]   ;;  %v18242_v53 = vld [vmem:[%s22308_s24 + $0xa8] sm:$0xff]   ;;  %v10318_v0 = vsel %vm9863_vm1, %v24084_v34, %v10199_v19  ;;  %v18248_v31 = vld [vmem:[%s22308_s24 + $0x100] sm:$0xff]  }
 0x54e   : > { %v9886_v47 = vsel %vm9863_vm1, %v9078_v24, -inf  ;;  %11379 = vmatmul.mubr.bf16.vlgmr.msra.gmra.mrb[0].mxu1 %v10523_v32  ;;  %v10526_v29 = vpack.c.bf16 %v23006_v25, %v16618_v8  ;;  %v23019_v58 = vsel %vm10076_vm4, %v22838_v4, %v10387_v48  ;;  %v10370_v14 = vsel %vm10072_vm2, %v22869_v7, %v10034_v26  ;;  %18018 = vmatprep.subr.bf16.mxu0 %v18904_v2  ;;  %v18235_v7 = vld [vmem:[%s22308_s24 + $0xd8] sm:$0xff]   ;;  %v24083_v13 = vld [vmem:[#allocation40_spill] sm:$0xff]  ;;  %v18250_v32 = vld [vmem:[%s22308_s24 + $0x148] sm:$0xff]   ;;  %v10268_v57 = vpop.permute.xlu0 %10267  ;;  %s7764_s12 = scalar_lea.vmem %s23807_s4, %s23298_s26  ;;  %s7772_s23 = scalar_lea.vmem %s23810_s7, %s23298_s26 }
 0x54f   : > { %v9887_v44 = vmax.f32 %v9885_v30, %v9886_v47  ;;  %17344 = vmatpush3.bf16.msra.mxu1 %v18230_v41  ;;  %v10371_v60 = vsel %vm10074_vm3, %v22879_v1, %v10370_v14  ;;  %v18237_v1 = vld [vmem:[%s22308_s24 + $0xe0] sm:$0xff]   ;;  %v10201_v52 = vpop.permute.xlu1 %10200  ;;  %v18246_v41 = vld [vmem:[%s22308_s24 + $0xb8] sm:$0xff]   ;;  %v18252_v30 = vld [vmem:[%s22308_s24 + $0x108] sm:$0xff]   ;;  %s24093_s26 = sld [smem:[#allocation68_spill]] }
 0x550   : > { %17345 = vmatprep.subr.bf16.mxu1 %v18231_v9  ;;  %11419 = vmatprep.mubr.bf16.mxu1 %v10526_v29  ;;  %v23029_v4 = vsel %vm10076_vm4, %v22827_v43, %v10371_v60  ;;  %v10171_v43 = vsel %vm10072_vm2, %v24066_v39, %v24065_v37  ;;  %v10319_v24 = vsel %vm9863_vm1, %v24083_v13, %v10201_v52  ;;  %v24085_v37 = vld [vmem:[#allocation49_spill] sm:$0xff]  ;;  %v18253_v8 = vld [vmem:[%s22308_s24 + $0x150] sm:$0xff]   ;;  %v24087_v26 = vld [vmem:[#allocation15_spill] sm:$0xff] }
 0x551   : > { %v10172_v3 = vsel %vm10074_vm3, %v24082_v51, %v10171_v43  ;;  %v10317_v39 = vsel %vm9863_vm1, %v24085_v37, %v22932_v11  ;;  %v23054_v54 = vcombine.low %v10318_v0, %v10319_v24  ;;  %v24086_v33 = vld [vmem:[#allocation52_spill] sm:$0xff]  ;;  %v18256_v48 = vld [vmem:[%s22308_s24 + $0x118] sm:$0xff]   ;;  %v18257_v14 = vld [vmem:[%s22308_s24 + $0x160] sm:$0xff]  }
 0x552   : > { %v10173_v9 = vsel %vm10076_vm4, %v9887_v44, %v10172_v3  ;;  %v18255_v44 = vld [vmem:[%s22308_s24 + $0x158] sm:$0xff]   ;;  %v10328_v22 = vsel %vm9863_vm1, %v24086_v33, %v10268_v57  ;;  %v18259_v60 = vld [vmem:[%s22308_s24 + $0x120] sm:$0xff]   ;;  %v24088_v43 = vld [vmem:[#allocation56_spill] sm:$0xff] }
 0x553   : > { %17346 = vmatpush3.bf16.msra.mxu1 %v18232_v42  ;;  %v10316_v5 = vsel %vm9863_vm1, %v10173_v9, %v22939_v45  ;;  %v18254_v45 = vld [vmem:[%s22308_s24 + $0x110] sm:$0xff]   ;;  %v24089_v19 = vld [vmem:[#allocation18_spill] sm:$0xff]  ;;  %v24090_v51 = vld [vmem:[#allocation33_spill] sm:$0xff] }
 0x554   : > { %17347 = vmatprep.subr.bf16.mxu1 %v18233_v59  ;;  %v16617_v18 = vcombine.low %v10316_v5, %v10317_v39  ;;  %v18275_v0 = vld [vmem:[%s22308_s24 + $0x180] sm:$0xff]   ;;  %v18277_v39 = vld [vmem:[%s22308_s24 + $0x1c8] sm:$0xff]   ;;  %v18281_v9 = vld [vmem:[%s22308_s24 + $0x1d0] sm:$0xff]  }
 0x555   : > { %v18288_v57 = vld [vmem:[%s22308_s24 + $0x1a0] sm:$0xff]   ;;  %v18322_v49 = vld [vmem:[%s22991_s16 + $0x10] sm:$0xff]  }
 0x556   : > { %v10525_v11 = vpack.c.bf16 %v23054_v54, %v16617_v18 }
 0x557   : > { %17348 = vmatpush3.bf16.msra.mxu1 %v18234_v62  ;;  %v18261_v62 = vld [vmem:[%s22308_s24 + $0x168] sm:$0xff]  }
 0x558   : > { %17349 = vmatprep.subr.bf16.mxu1 %v18235_v7  ;;  %v18263_v7 = vld [vmem:[%s22308_s24 + $0x128] sm:$0xff]  }
 0x55b   : > { %17350 = vmatpush3.bf16.msra.mxu1 %v18236_v40  ;;  %v18265_v40 = vld [vmem:[%s22308_s24 + $0x170] sm:$0xff]  }
 0x55c   : > { %17351 = vmatprep.subr.bf16.mxu1 %v18237_v1  ;;  %v18267_v1 = vld [vmem:[%s22308_s24 + $0x130] sm:$0xff]  }
 0x55f   : > { %17352 = vmatpush3.bf16.msra.mxu1 %v18238_v46  ;;  %v10243_v46 = vpop.permute.xlu0 %10242 }
 0x560   : > { %17353 = vmatprep.subr.bf16.mxu1 %v18240_v36  ;;  %v18271_v36 = vld [vmem:[%s22308_s24 + $0x138] sm:$0xff]  }
 0x563   : > { %17354 = vmatpush3.bf16.msra.mxu1 %v18242_v53  ;;  %v18273_v53 = vld [vmem:[%s22308_s24 + $0x1c0] sm:$0xff]  }
 0x564   : > { %17355 = vmatprep.subr.bf16.mxu1 %v18243_v20  ;;  %v10247_v20 = vpop.permute.xlu0 %10246 }
 0x565   : > { %v10326_v3 = vsel %vm9863_vm1, %v24090_v51, %v10247_v20  ;;  %v18299_v20 = vld [vmem:[%s22308_s24 + $0x2c8] sm:$0xff]  }
 0x567   : > { %17356 = vmatpush3.bf16.msra.mxu1 %v18244_v16  ;;  %v10245_v47 = vpop.permute.xlu1 %10244 }
 0x568   : > { %17357 = vmatprep.subr.bf16.mxu1 %v18245_v61  ;;  %v10325_v52 = vsel %vm9863_vm1, %v24088_v43, %v10245_v47  ;;  %v10324_v61 = vsel %vm9863_vm1, %v24089_v19, %v10243_v46  ;;  %v18285_v47 = vld [vmem:[%s22308_s24 + $0x198] sm:$0xff]  }
 0x569   : > { %v16619_v24 = vcombine.low %v10324_v61, %v10325_v52 }
 0x56b   : > { %17358 = vmatpush3.bf16.msra.mxu1 %v18246_v41  ;;  %v18279_v41 = vld [vmem:[%s22308_s24 + $0x188] sm:$0xff]  }
 0x56c   : > { %17365 = vmatprep.subr.bf16.mxu1 %v18247_v28 }
 0x56e   : > { %11420 = vmatmul.mubr.bf16.vlgmr.msra.gmra.mrb[4].mxu1 %v10525_v11  ;;  %v18284_v11 = vld [vmem:[%s22308_s24 + $0x1d8] sm:$0xff]  }
 0x56f   : > { %17366 = vmatpush3.bf16.msra.mxu1 %v18248_v31 }
 0x570   : > { %17367 = vmatprep.subr.bf16.mxu1 %v18250_v32  ;;  %v10303_v28 = vpop.permute.xlu0 %10302 }
 0x571   : > { %v10332_v18 = vsel %vm9863_vm1, %v22657_v63, %v10303_v28  ;;  %v24092_v28 = vld [vmem:[#allocation21_spill] sm:$0xff] }
 0x572   : > { %v10270_v27 = vpop.permute.xlu1 %10269 }
 0x573   : > { %17368 = vmatpush3.bf16.msra.mxu1 %v18252_v30  ;;  %v10329_v42 = vsel %vm9863_vm1, %v24087_v26, %v10270_v27  ;;  %v18291_v27 = vld [vmem:[%s22308_s24 + $0x1a8] sm:$0xff]   ;;  %v18295_v26 = vld [vmem:[%s22308_s24 + $0x1f8] sm:$0xff]  }
 0x574   : > { %17369 = vmatprep.subr.bf16.mxu1 %v18253_v8  ;;  %v23070_v59 = vcombine.low %v10328_v22, %v10329_v42  ;;  %v18287_v8 = vld [vmem:[%s22308_s24 + $0x1e0] sm:$0xff]  }
 0x576   : > { %v10528_v29 = vpack.c.bf16 %v23070_v59, %v22981_v38  ;;  %v18269_v38 = vld [vmem:[%s22308_s24 + $0x178] sm:$0xff]  }
 0x577   : > { %17370 = vmatpush3.bf16.msra.mxu1 %v18254_v45  ;;  %v18290_v45 = vld [vmem:[%s22308_s24 + $0x1e8] sm:$0xff]  }
 0x578   : > { %17371 = vmatprep.subr.bf16.mxu1 %v18255_v44  ;;  %11460 = vmatprep.mubr.bf16.mxu1 %v10528_v29  ;;  %v18293_v44 = vld [vmem:[%s22308_s24 + $0x1f0] sm:$0xff]   ;;  %v24091_v29 = vld [vmem:[#allocation38_spill] sm:$0xff] }
 0x57b   : > { %17372 = vmatpush3.bf16.msra.mxu1 %v18256_v48 }
 0x57c   : > { %17373 = vmatprep.subr.bf16.mxu1 %v18257_v14 }
 0x57f   : > { %17374 = vmatpush3.bf16.msra.mxu1 %v18259_v60  ;;  %v18296_v60 = vld [vmem:[%s22308_s24 + $0x1b8] sm:$0xff]  }
 0x580   : > { %17375 = vmatprep.subr.bf16.mxu1 %v18261_v62 }
 0x583   : > { %17376 = vmatpush3.bf16.msra.mxu1 %v18263_v7  ;;  %v18297_v7 = vld [vmem:[%s22308_s24 + $0x2c0] sm:$0xff]  }
 0x584   : > { %17377 = vmatprep.subr.bf16.mxu1 %v18265_v40 }
 0x585   : > { %v10284_v33 = vpop.permute.xlu0 %10283 }
 0x586   : > { %v10330_v14 = vsel %vm9863_vm1, %v24091_v29, %v10284_v33  ;;  %v18316_v33 = vld [vmem:[%s22991_s16 + $0x80] sm:$0xff]   ;;  %v18318_v29 = vld [vmem:[%s22991_s16 + $0x8] sm:$0xff]  }
 0x587   : > { %17378 = vmatpush3.bf16.msra.mxu1 %v18267_v1 }
 0x588   : > { %17379 = vmatprep.subr.bf16.mxu1 %v18269_v38 }
 0x58b   : > { %17380 = vmatpush3.bf16.msra.mxu1 %v18271_v36  ;;  %v10249_v16 = vpop.permute.xlu1 %10248 }
 0x58c   : > { %17387 = vmatprep.subr.bf16.mxu1 %v18273_v53  ;;  %v10327_v13 = vsel %vm9863_vm1, %v22624_v15, %v10249_v16  ;;  %v18282_v15 = vld [vmem:[%s22308_s24 + $0x190] sm:$0xff]  }
 0x58d   : > { %v23092_v34 = vcombine.low %v10326_v3, %v10327_v13  ;;  %v18302_v3 = vld [vmem:[%s22308_s24 + $0x290] sm:$0xff]   ;;  %v18303_v13 = vld [vmem:[%s22308_s24 + $0x2d8] sm:$0xff]  }
 0x58f   : > { %v10527_v37 = vpack.c.bf16 %v23092_v34, %v16619_v24 }
 0x591   : > { %11461 = vmatmul.mubr.bf16.vlgmr.msra.gmra.mrb[8].mxu1 %v10527_v37 }
 0x592   : > { %17388 = vmatpush3.bf16.msra.mxu1 %v18275_v0 }
 0x593   : > { %17389 = vmatprep.subr.bf16.mxu1 %v18277_v39 }
 0x595   : > { %v10305_v5 = vpop.permute.xlu1 %10304 }
 0x596   : > { %17390 = vmatpush3.bf16.msra.mxu1 %v18279_v41  ;;  %v10333_v31 = vsel %vm9863_vm1, %v22858_v56, %v10305_v5 }
 0x597   : > { %17391 = vmatprep.subr.bf16.mxu1 %v18281_v9  ;;  %v16634_v32 = vcombine.low %v10332_v18, %v10333_v31  ;;  %v18307_v18 = vld [vmem:[%s22308_s24 + $0x2e8] sm:$0xff]   ;;  %v18283_v31 = vld [vmem:[%s22308_s24 + $0x300] sm:$0xff]  }
 0x599   : > { %v10530_v30 = vpack.c.bf16 %v16634_v32, %v23054_v54  ;;  %v18294_v54 = vld [vmem:[%s22308_s24 + $0x1b0] sm:$0xff]  }
 0x59a   : > { %17392 = vmatpush3.bf16.msra.mxu1 %v18282_v15  ;;  %v18309_v32 = vld [vmem:[%s22308_s24 + $0x2f0] sm:$0xff]  }
 0x59b   : > { %17393 = vmatprep.subr.bf16.mxu1 %v18284_v11  ;;  %11501 = vmatprep.mubr.bf16.mxu1 %v10530_v30  ;;  %v18311_v30 = vld [vmem:[%s22308_s24 + $0x2f8] sm:$0xff]  }
 0x59e   : > { %17394 = vmatpush3.bf16.msra.mxu1 %v18285_v47  ;;  %v18289_v47 = vld [vmem:[%s22308_s24 + $0x310] sm:$0xff]  }
 0x59f   : > { %17395 = vmatprep.subr.bf16.mxu1 %v18287_v8  ;;  %v18292_v8 = vld [vmem:[%s22308_s24 + $0x318] sm:$0xff]  }
 0x5a1   : > { %v10396_v48 = vpop.permute.xlu0 %10395 }
 0x5a2   : > { %17396 = vmatpush3.bf16.msra.mxu1 %v18288_v57  ;;  %v10411_v1 = vsel %vm9863_vm1, %v22930_v21, %v10396_v48  ;;  %v18300_v21 = vld [vmem:[%s22308_s24 + $0x288] sm:$0xff]   ;;  %v18312_v57 = vld [vmem:[%s22308_s24 + $0x2b8] sm:$0xff]  }
 0x5a3   : > { %17397 = vmatprep.subr.bf16.mxu1 %v18290_v45  ;;  %v18313_v45 = vld [vmem:[%s22991_s16 + $0x40] sm:$0xff]  }
 0x5a5   : > { %v10380_v53 = vpop.permute.xlu0 %10379 }
 0x5a6   : > { %v10286_v22 = vpop.permute.xlu1 %10285  ;;  %17398 = vmatpush3.bf16.msra.mxu1 %v18291_v27  ;;  %v18314_v27 = vld [vmem:[%s22991_s16] sm:$0xff]  }
 0x5a7   : > { %17399 = vmatprep.subr.bf16.mxu1 %v18293_v44  ;;  %v10331_v42 = vsel %vm9863_vm1, %v22792_v6, %v10286_v22  ;;  %v18298_v6 = vld [vmem:[%s22308_s24 + $0x280] sm:$0xff]  }
 0x5a8   : > { %v16626_v62 = vcombine.low %v10330_v14, %v10331_v42  ;;  %v18315_v44 = vld [vmem:[%s22991_s16 + $0xc0] sm:$0xff]   ;;  %v18351_v42 = vld [vmem:[%s21145_s10 + $0xc] ss:$200 sps:$4 sm:$0xff]   ;;  %v18325_v14 = vld [vmem:[%s22991_s16 + $0x58] sm:$0xff]  }
 0x5a9   : > { %v18346_v22 = vld [vmem:[%s21145_s10 + $0x4] ss:$200 sps:$4 sm:$0xff]  }
 0x5aa   : > { %17400 = vmatpush3.bf16.msra.mxu1 %v18294_v54  ;;  %v10529_v36 = vpack.c.bf16 %v16626_v62, %v22983_v17  ;;  %v18301_v17 = vld [vmem:[%s22308_s24 + $0x2d0] sm:$0xff]   ;;  %v10483_v54 = vcombine.low %v22657_v63, %v22858_v56  ;;  %v18320_v56 = vld [vmem:[%s22991_s16 + $0x88] sm:$0xff]  }
 0x5ab   : > { %17401 = vmatprep.subr.bf16.mxu1 %v18295_v26  ;;  %v10361_v61 = vpop.permute.xlu0 %10360  ;;  %v18317_v26 = vld [vmem:[%s22991_s16 + $0x48] sm:$0xff]   ;;  %v18321_v63 = vld [vmem:[%s22991_s16 + $0x50] sm:$0xff]  }
 0x5ac   : > { %v10407_v0 = vsel %vm9863_vm1, %v22808_v55, %v10361_v61  ;;  %v18306_v55 = vld [vmem:[%s22308_s24 + $0x2a0] sm:$0xff]   ;;  %v10535_v48 = vpack.c.bf16 %v10496_v12, %v10483_v54  ;;  %v18324_v12 = vld [vmem:[%s22991_s16 + $0x90] sm:$0xff]   ;;  %v18347_v61 = vld [vmem:[%s22991_s16 + $0xb8] sm:$0xff]  }
 0x5ad   : > { %v18381_v54 = vld [vmem:[%s22991_s16 + $0x1f8] sm:$0xff]  }
 0x5ae   : > { %v10398_v40 = vpop.permute.xlu1 %10397  ;;  %17402 = vmatpush3.bf16.msra.mxu1 %v18296_v60  ;;  %v18326_v60 = vld [vmem:[%s22991_s16 + $0x18] sm:$0xff]  }
 0x5af   : > { %v10412_v46 = vsel %vm9863_vm1, %v23019_v58, %v10398_v40  ;;  %17431 = vmatprep.subr.bf16.mxu1 %v18297_v7  ;;  %v10409_v58 = vsel %vm9863_vm1, %v22707_v35, %v10380_v53  ;;  %v10345_v37 = vpop.permute.xlu0 %10344  ;;  %v18328_v7 = vld [vmem:[%s22991_s16 + $0x98] sm:$0xff]   ;;  %v18329_v40 = vld [vmem:[%s22991_s16 + $0x60] sm:$0xff]   ;;  %v18335_v53 = vld [vmem:[%s22991_s16 + $0xe8] sm:$0xff]  }
 0x5b0   : > { %v16638_v38 = vcombine.low %v10411_v1, %v10412_v46  ;;  %v10405_v5 = vsel %vm9863_vm1, %v24092_v28, %v10345_v37  ;;  %v18330_v1 = vld [vmem:[%s22991_s16 + $0x20] sm:$0xff]   ;;  %v18355_v37 = vld [vmem:[%s22991_s16 + $0x148] sm:$0xff]   ;;  %v18359_v28 = vld [vmem:[%s22991_s16 + $0x150] sm:$0xff]  }
 0x5b1   : > { %11502 = vmatmul.mubr.bf16.vlgmr.msra.gmra.mrb[12].mxu1 %v10529_v36  ;;  %v18331_v46 = vld [vmem:[%s22991_s16 + $0xe0] sm:$0xff]   ;;  %v18334_v36 = vld [vmem:[%s22991_s16 + $0x28] sm:$0xff]  }
 0x5b2   : > { %v10534_v43 = vpack.c.bf16 %v16638_v38, %v16626_v62  ;;  %v10382_v52 = vpop.permute.xlu1 %10381  ;;  %17432 = vmatpush3.bf16.msra.mxu1 %v18298_v6  ;;  %v18327_v62 = vld [vmem:[%s22991_s16 + $0xd8] sm:$0xff]   ;;  %v18332_v38 = vld [vmem:[%s22991_s16 + $0xa0] sm:$0xff]   ;;  %v18333_v6 = vld [vmem:[%s22991_s16 + $0x68] sm:$0xff]  }
 0x5b3   : > { %v10410_v16 = vsel %vm9863_vm1, %v23029_v4, %v10382_v52  ;;  %17433 = vmatprep.subr.bf16.mxu1 %v18299_v20  ;;  %v18304_v4 = vld [vmem:[%s22308_s24 + $0x298] sm:$0xff]   ;;  %v18336_v20 = vld [vmem:[%s22991_s16 + $0xa8] sm:$0xff]   ;;  %v18338_v52 = vld [vmem:[%s22991_s16 + $0x30] sm:$0xff]  }
 0x5b4   : > { %11583 = vmatprep.mubr.bf16.mxu1 %v10534_v43  ;;  %v16637_v19 = vcombine.low %v10409_v58, %v10410_v16  ;;  %v18337_v43 = vld [vmem:[%s22991_s16 + $0x70] sm:$0xff]   ;;  %v18341_v16 = vld [vmem:[%s22991_s16 + $0x78] sm:$0xff]  }
 0x5b5   : > { %v18340_v58 = vld [vmem:[%s22991_s16 + $0xb0] sm:$0xff]  }
 0x5b6   : > { %v10533_v51 = vpack.c.bf16 %v16637_v19, %v23070_v59  ;;  %17434 = vmatpush3.bf16.msra.mxu1 %v18300_v21  ;;  %v18305_v59 = vld [vmem:[%s22308_s24 + $0x2e0] sm:$0xff]   ;;  %v18339_v21 = vld [vmem:[%s22991_s16 + $0xf0] sm:$0xff]   ;;  %v18343_v19 = vld [vmem:[%s22991_s16 + $0xf8] sm:$0xff]  }
 0x5b7   : > { %17435 = vmatprep.subr.bf16.mxu1 %v18301_v17  ;;  %v18342_v17 = vld [vmem:[%s22991_s16 + $0x38] sm:$0xff]  }
 0x5ba   : > { %v10363_v24 = vpop.permute.xlu1 %10362  ;;  %17436 = vmatpush3.bf16.msra.mxu1 %v18302_v3  ;;  %v18348_v3 = vld [vmem:[%s22991_s16 + $0x140] sm:$0xff]  }
 0x5bb   : > { %v10408_v35 = vsel %vm9863_vm1, %v22766_v50, %v10363_v24  ;;  %17437 = vmatprep.subr.bf16.mxu1 %v18303_v13  ;;  %v18352_v13 = vld [vmem:[%s22991_s16 + $0x100] sm:$0xff]   ;;  %v18349_v24 = vld [vmem:[%s21145_s10 + $0x8] ss:$200 sps:$4 sm:$0xff]  }
 0x5bc   : > { %v16636_v39 = vcombine.low %v10407_v0, %v10408_v35  ;;  %v18353_v0 = vld [vmem:[%s22991_s16 + $0x1c0] sm:$0xff]  }
 0x5bd   : > { %v18354_v35 = vld [vmem:[%s22991_s16 + $0x180] sm:$0xff]  }
 0x5be   : > { %v10347_v41 = vpop.permute.xlu1 %10346  ;;  %v10532_v9 = vpack.c.bf16 %v16636_v39, %v23092_v34  ;;  %17438 = vmatpush3.bf16.msra.mxu1 %v18304_v4  ;;  %v18308_v34 = vld [vmem:[%s22308_s24 + $0x2a8] sm:$0xff]   ;;  %v18384_v4 = vld [vmem:[%s21145_s10 + $0x14] ss:$200 sps:$4 sm:$0xff]  }
 0x5bf   : > { %v10406_v50 = vsel %vm9863_vm1, %v22770_v10, %v10347_v41  ;;  %17439 = vmatprep.subr.bf16.mxu1 %v18305_v59  ;;  %v18286_v10 = vld [vmem:[%s22308_s24 + $0x308] sm:$0xff]   ;;  %v18389_v59 = vld [vmem:[%s21145_s10 + $0x1c] ss:$200 sps:$4 sm:$0xff]  }
 0x5c0   : > { %v16635_v15 = vcombine.low %v10405_v5, %v10406_v50  ;;  %11542 = vmatprep.mubr.bf16.mxu0 %v10532_v9  ;;  %v18356_v39 = vld [vmem:[%s22991_s16 + $0x108] sm:$0xff]   ;;  %v18361_v5 = vld [vmem:[%s22991_s16 + $0x1d0] sm:$0xff]  }
 0x5c1   : > { %v18357_v41 = vld [vmem:[%s22991_s16 + $0x1c8] sm:$0xff]   ;;  %v18360_v50 = vld [vmem:[%s22991_s16 + $0x110] sm:$0xff]  }
 0x5c2   : > { %v10531_v11 = vpack.c.bf16 %v16635_v15, %v23006_v25  ;;  %17440 = vmatpush3.bf16.msra.mxu1 %v18306_v55  ;;  %v18310_v25 = vld [vmem:[%s22308_s24 + $0x2b0] sm:$0xff]   ;;  %v18358_v9 = vld [vmem:[%s22991_s16 + $0x188] sm:$0xff]   ;;  %v18363_v55 = vld [vmem:[%s22991_s16 + $0x158] sm:$0xff]   ;;  %s23453_s24 = scalar_lea.vmem [#allocation4], %s16561_s6 }
 0x5c3   : > { %17441 = vmatprep.subr.bf16.mxu1 %v18307_v18  ;;  %v18362_v15 = vld [vmem:[%s22991_s16 + $0x190] sm:$0xff]   ;;  %v18365_v18 = vld [vmem:[%s22991_s16 + $0x1d8] sm:$0xff]  }
 0x5c4   : > { %11543 = vmatmul.mubr.bf16.vlgmr.msra.gmra.mrb[64].mxu0 %v10531_v11  ;;  %v18367_v11 = vld [vmem:[%s22991_s16 + $0x160] sm:$0xff]  }
 0x5c5   : > { %18019 = vmatpush3.bf16.msra.mxu0 %v18283_v31  ;;  %18026 = vmatprep.mubr.msk.bf16.mxu0 %vm18905_vm5, %v18904_v2  ;;  %v18364_v31 = vld [vmem:[%s22991_s16 + $0x118] sm:$0xff]  }
 0x5c6   : > { %18020 = vmatprep.subr.bf16.mxu0 %v18904_v2  ;;  %17442 = vmatpush3.bf16.msra.mxu1 %v18308_v34  ;;  %v18366_v34 = vld [vmem:[%s22991_s16 + $0x198] sm:$0xff]  }
 0x5c7   : > { %17443 = vmatprep.subr.bf16.mxu1 %v18309_v32  ;;  %v18369_v32 = vld [vmem:[%s22991_s16 + $0x1e0] sm:$0xff]  }
 0x5c9   : > { %18021 = vmatpush3.bf16.msra.mxu0 %v18286_v10  ;;  %v18368_v10 = vld [vmem:[%s22991_s16 + $0x120] sm:$0xff]  }
 0x5ca   : > { %18022 = vmatprep.subr.bf16.mxu0 %v18904_v2  ;;  %17444 = vmatpush3.bf16.msra.mxu1 %v18310_v25  ;;  %v18371_v25 = vld [vmem:[%s22991_s16 + $0x168] sm:$0xff]  }
 0x5cb   : > { %17445 = vmatprep.subr.bf16.mxu1 %v18311_v30  ;;  %v18370_v30 = vld [vmem:[%s22991_s16 + $0x1a0] sm:$0xff]  }
 0x5cd   : > { %18023 = vmatpush3.bf16.msra.mxu0 %v18289_v47  ;;  %v18373_v47 = vld [vmem:[%s22991_s16 + $0x1e8] sm:$0xff]  }
 0x5ce   : > { %18024 = vmatprep.subr.bf16.mxu0 %v18904_v2  ;;  %17446 = vmatpush3.bf16.msra.mxu1 %v18312_v57  ;;  %v18319_v2 = vld [vmem:[%s22991_s16 + $0xc8] sm:$0xff]   ;;  %v18375_v57 = vld [vmem:[%s22991_s16 + $0x170] sm:$0xff]  }
 0x5cf   : > { %17458 = vmatprep.subr.bf16.mxu1 %v18313_v45  ;;  %v18374_v45 = vld [vmem:[%s22991_s16 + $0x1a8] sm:$0xff]  }
 0x5d1   : > { %18025 = vmatpush3.bf16.msra.mxu0 %v18292_v8  ;;  %11584 = vmatmul.mubr.bf16.vlgmr.msra.gmra.mrb[16].mxu1 %v10533_v51  ;;  %v18344_v51 = vld [vmem:[%s21145_s10] ss:$200 sps:$4 sm:$0xff]  }
 0x5d2   : > { %17480 = vmatprep.subr.bf16.mxu0 %v18315_v44  ;;  %17459 = vmatpush3.bf16.msra.mxu1 %v18314_v27  ;;  %v18372_v8 = vld [vmem:[%s22991_s16 + $0x128] sm:$0xff]   ;;  %v18377_v27 = vld [vmem:[%s22991_s16 + $0x1f0] sm:$0xff]  }
 0x5d3   : > { %15174 = vmatprep.mubr.bf16.mxu1 %v18346_v22  ;;  %17460 = vmatprep.subr.bf16.mxu1 %v18317_v26  ;;  %v18376_v44 = vld [vmem:[%s22991_s16 + $0x130] sm:$0xff]   ;;  %v18380_v26 = vld [vmem:[%s22991_s16 + $0x138] sm:$0xff]  }
 0x5d4   : > { %18027 = vmatmul.mubr.msk.bf16.vlgmr.msra.gmra.mrb[68].mxu0 %vm9863_vm1, %v10535_v48  ;;  %v18378_v22 = vld [vmem:[%s22991_s16 + $0x1b0] sm:$0xff]   ;;  %v18385_v48 = vld [vmem:[%s22991_s16 + $0x1b8] sm:$0xff]  }
 0x5d5   : > { %17481 = vmatpush3.bf16.msra.mxu0 %v18316_v33  ;;  %15215 = vmatprep.mubr.bf16.mxu0 %v18351_v42  ;;  %v18379_v33 = vld [vmem:[%s22991_s16 + $0x178] sm:$0xff]   ;;  %v18386_v42 = vld [vmem:[%s22991_s16 + $0x240] sm:$0xff]  }
 0x5d6   : > { %17482 = vmatprep.subr.bf16.mxu0 %v18319_v2  ;;  %17461 = vmatpush3.bf16.msra.mxu1 %v18318_v29  ;;  %v18382_v2 = vld [vmem:[%s21145_s10 + $0x10] ss:$200 sps:$4 sm:$0xff]   ;;  %v18391_v29 = vld [vmem:[%s22991_s16 + $0x2c0] sm:$0xff]  }
 0x5d7   : > { %17462 = vmatprep.subr.bf16.mxu1 %v18321_v63  ;;  %v18390_v63 = vld [vmem:[%s22991_s16 + $0x200] sm:$0xff]  }
 0x5d9   : > { %17483 = vmatpush3.bf16.msra.mxu0 %v18320_v56  ;;  %v18422_v56 = vld [vmem:[%s21145_s10 + $0x24] ss:$200 sps:$4 sm:$0xff]  }
 0x5da   : > { %17484 = vmatprep.subr.bf16.mxu0 %v18323_v23  ;;  %17463 = vmatpush3.bf16.msra.mxu1 %v18322_v49  ;;  %v18387_v23 = vld [vmem:[%s21145_s10 + $0x18] ss:$200 sps:$4 sm:$0xff]   ;;  %v18393_v49 = vld [vmem:[%s22991_s16 + $0x248] sm:$0xff]  }
 0x5db   : > { %17464 = vmatprep.subr.bf16.mxu1 %v18325_v14  ;;  %v18427_v14 = vld [vmem:[%s21145_s10 + $0x2c] ss:$200 sps:$4 sm:$0xff]  }
 0x5dd   : > { %17485 = vmatpush3.bf16.msra.mxu0 %v18324_v12  ;;  %v18392_v12 = vld [vmem:[%s22991_s16 + $0x280] sm:$0xff]  }
 0x5de   : > { %17486 = vmatprep.subr.bf16.mxu0 %v18327_v62  ;;  %17465 = vmatpush3.bf16.msra.mxu1 %v18326_v60  ;;  %v18395_v60 = vld [vmem:[%s22991_s16 + $0x2c8] sm:$0xff]  }
 0x5df   : > { %17466 = vmatprep.subr.bf16.mxu1 %v18329_v40  ;;  %v18394_v62 = vld [vmem:[%s22991_s16 + $0x208] sm:$0xff]  }
 0x5e0   : > { %v18396_v40 = vld [vmem:[%s22991_s16 + $0x288] sm:$0xff]  }
 0x5e1   : > { %17487 = vmatpush3.bf16.msra.mxu0 %v18328_v7  ;;  %v18397_v7 = vld [vmem:[%s22991_s16 + $0x250] sm:$0xff]  }
 0x5e2   : > { %17488 = vmatprep.subr.bf16.mxu0 %v18331_v46  ;;  %17467 = vmatpush3.bf16.msra.mxu1 %v18330_v1  ;;  %v18399_v1 = vld [vmem:[%s22991_s16 + $0x2d0] sm:$0xff]  }
 0x5e3   : > { %17468 = vmatprep.subr.bf16.mxu1 %v18333_v6  ;;  %v18398_v46 = vld [vmem:[%s22991_s16 + $0x210] sm:$0xff]  }
 0x5e4   : > { %v18400_v6 = vld [vmem:[%s22991_s16 + $0x290] sm:$0xff]  }
 0x5e5   : > { %17489 = vmatpush3.bf16.msra.mxu0 %v18332_v38  ;;  %v18401_v38 = vld [vmem:[%s22991_s16 + $0x258] sm:$0xff]  }
 0x5e6   : > { %17490 = vmatprep.subr.bf16.mxu0 %v18335_v53  ;;  %17469 = vmatpush3.bf16.msra.mxu1 %v18334_v36  ;;  %v18403_v36 = vld [vmem:[%s22991_s16 + $0x2d8] sm:$0xff]  }
 0x5e7   : > { %17470 = vmatprep.subr.bf16.mxu1 %v18337_v43  ;;  %v18402_v53 = vld [vmem:[%s22991_s16 + $0x218] sm:$0xff]  }
 0x5e8   : > { %v18404_v43 = vld [vmem:[%s22991_s16 + $0x298] sm:$0xff]  }
 0x5e9   : > { %17491 = vmatpush3.bf16.msra.mxu0 %v18336_v20  ;;  %v18405_v20 = vld [vmem:[%s22991_s16 + $0x260] sm:$0xff]  }
 0x5ea   : > { %17492 = vmatprep.subr.bf16.mxu0 %v18339_v21  ;;  %17471 = vmatpush3.bf16.msra.mxu1 %v18338_v52  ;;  %v18407_v52 = vld [vmem:[%s22991_s16 + $0x2e0] sm:$0xff]  }
 0x5eb   : > { %17472 = vmatprep.subr.bf16.mxu1 %v18341_v16  ;;  %v18406_v21 = vld [vmem:[%s22991_s16 + $0x220] sm:$0xff]   ;;  %v18409_v16 = vld [vmem:[%s22991_s16 + $0x268] sm:$0xff]  }
 0x5ed   : > { %17493 = vmatpush3.bf16.msra.mxu0 %v18340_v58  ;;  %v18408_v58 = vld [vmem:[%s22991_s16 + $0x2a0] sm:$0xff]  }
 0x5ee   : > { %17494 = vmatprep.subr.bf16.mxu0 %v18343_v19  ;;  %17473 = vmatpush3.bf16.msra.mxu1 %v18342_v17  ;;  %v18410_v19 = vld [vmem:[%s22991_s16 + $0x228] sm:$0xff]  }
 0x5ef   : > { %17502 = vmatprep.subr.bf16.mxu1 %v18348_v3 }
 0x5f1   : > { %17495 = vmatpush3.bf16.msra.mxu0 %v18347_v61  ;;  %15175 = vmatmul.mubr.bf16.vlgmr.msra.gmra.mrb[20].mxu1 %v18344_v51  ;;  %v18411_v51 = vld [vmem:[%s22991_s16 + $0x2e8] sm:$0xff]  }
 0x5f2   : > { %17524 = vmatprep.subr.bf16.mxu0 %v18353_v0  ;;  %17503 = vmatpush3.bf16.msra.mxu1 %v18352_v13  ;;  %v18413_v0 = vld [vmem:[%s22991_s16 + $0x270] sm:$0xff]  }
 0x5f3   : > { %15256 = vmatprep.mubr.bf16.mxu1 %v18384_v4  ;;  %17504 = vmatprep.subr.bf16.mxu1 %v18355_v37  ;;  %v18415_v4 = vld [vmem:[%s22991_s16 + $0x2f0] sm:$0xff]  }
 0x5f4   : > { %15216 = vmatmul.mubr.bf16.vlgmr.msra.gmra.mrb[72].mxu0 %v18349_v24  ;;  %v18412_v24 = vld [vmem:[%s22991_s16 + $0x2a8] sm:$0xff]  }
 0x5f5   : > { %17525 = vmatpush3.bf16.msra.mxu0 %v18354_v35  ;;  %15297 = vmatprep.mubr.bf16.mxu0 %v18389_v59  ;;  %v18417_v59 = vld [vmem:[%s22991_s16 + $0x278] sm:$0xff]  }
 0x5f6   : > { %17526 = vmatprep.subr.bf16.mxu0 %v18357_v41  ;;  %17505 = vmatpush3.bf16.msra.mxu1 %v18356_v39  ;;  %v18414_v39 = vld [vmem:[%s22991_s16 + $0x230] sm:$0xff]  }
 0x5f7   : > { %17506 = vmatprep.subr.bf16.mxu1 %v18359_v28  ;;  %v18416_v41 = vld [vmem:[%s22991_s16 + $0x2b0] sm:$0xff]   ;;  %v18418_v28 = vld [vmem:[%s22991_s16 + $0x238] sm:$0xff]  }
 0x5f9   : > { %17527 = vmatpush3.bf16.msra.mxu0 %v18358_v9  ;;  %v18419_v9 = vld [vmem:[%s22991_s16 + $0x2f8] sm:$0xff]  }
 0x5fa   : > { %17528 = vmatprep.subr.bf16.mxu0 %v18361_v5  ;;  %17507 = vmatpush3.bf16.msra.mxu1 %v18360_v50  ;;  %v18424_v5 = vld [vmem:[%s22991_s16 + $0x340] sm:$0xff]   ;;  %v18423_v50 = vld [vmem:[%s22991_s16 + $0x2b8] sm:$0xff]  }
 0x5fb   : > { %17508 = vmatprep.subr.bf16.mxu1 %v18363_v55  ;;  %v18420_v55 = vld [vmem:[%s21145_s10 + $0x20] ss:$200 sps:$4 sm:$0xff]  }
 0x5fd   : > { %17529 = vmatpush3.bf16.msra.mxu0 %v18362_v15  ;;  %v18429_v15 = vld [vmem:[%s22991_s16 + $0x3c0] sm:$0xff]  }
 0x5fe   : > { %17530 = vmatprep.subr.bf16.mxu0 %v18365_v18  ;;  %17509 = vmatpush3.bf16.msra.mxu1 %v18364_v31  ;;  %v18428_v18 = vld [vmem:[%s22991_s16 + $0x300] sm:$0xff]   ;;  %v18460_v31 = vld [vmem:[%s21145_s10 + $0x34] ss:$200 sps:$4 sm:$0xff]  }
 0x5ff   : > { %17510 = vmatprep.subr.bf16.mxu1 %v18367_v11  ;;  %v18425_v11 = vld [vmem:[%s21145_s10 + $0x28] ss:$200 sps:$4 sm:$0xff]  }
 0x601   : > { %17531 = vmatpush3.bf16.msra.mxu0 %v18366_v34  ;;  %v18431_v34 = vld [vmem:[%s22991_s16 + $0x348] sm:$0xff]  }
 0x602   : > { %17532 = vmatprep.subr.bf16.mxu0 %v18369_v32  ;;  %17511 = vmatpush3.bf16.msra.mxu1 %v18368_v10  ;;  %v18430_v32 = vld [vmem:[%s22991_s16 + $0x380] sm:$0xff]  }
 0x603   : > { %17512 = vmatprep.subr.bf16.mxu1 %v18371_v25  ;;  %v18465_v10 = vld [vmem:[%s21145_s10 + $0x3c] ss:$200 sps:$4 sm:$0xff]   ;;  %v18433_v25 = vld [vmem:[%s22991_s16 + $0x3c8] sm:$0xff]  }
 0x605   : > { %17533 = vmatpush3.bf16.msra.mxu0 %v18370_v30  ;;  %v18432_v30 = vld [vmem:[%s22991_s16 + $0x308] sm:$0xff]  }
 0x606   : > { %17534 = vmatprep.subr.bf16.mxu0 %v18373_v47  ;;  %17513 = vmatpush3.bf16.msra.mxu1 %v18372_v8  ;;  %v18435_v47 = vld [vmem:[%s22991_s16 + $0x350] sm:$0xff]   ;;  %v18434_v8 = vld [vmem:[%s22991_s16 + $0x388] sm:$0xff]  }
 0x607   : > { %17514 = vmatprep.subr.bf16.mxu1 %v18375_v57  ;;  %v18437_v57 = vld [vmem:[%s22991_s16 + $0x3d0] sm:$0xff]  }
 0x609   : > { %17535 = vmatpush3.bf16.msra.mxu0 %v18374_v45  ;;  %v18436_v45 = vld [vmem:[%s22991_s16 + $0x310] sm:$0xff]  }
 0x60a   : > { %17536 = vmatprep.subr.bf16.mxu0 %v18377_v27  ;;  %17515 = vmatpush3.bf16.msra.mxu1 %v18376_v44  ;;  %v18439_v27 = vld [vmem:[%s22991_s16 + $0x358] sm:$0xff]   ;;  %v18438_v44 = vld [vmem:[%s22991_s16 + $0x390] sm:$0xff]  }
 0x60b   : > { %17516 = vmatprep.subr.bf16.mxu1 %v18379_v33  ;;  %v18441_v33 = vld [vmem:[%s22991_s16 + $0x3d8] sm:$0xff]  }
 0x60d   : > { %17537 = vmatpush3.bf16.msra.mxu0 %v18378_v22  ;;  %v18440_v22 = vld [vmem:[%s22991_s16 + $0x318] sm:$0xff]  }
 0x60e   : > { %17538 = vmatprep.subr.bf16.mxu0 %v18381_v54  ;;  %17517 = vmatpush3.bf16.msra.mxu1 %v18380_v26  ;;  %v18443_v54 = vld [vmem:[%s22991_s16 + $0x360] sm:$0xff]   ;;  %v18442_v26 = vld [vmem:[%s22991_s16 + $0x398] sm:$0xff]  }
 0x60f   : > { %17546 = vmatprep.subr.bf16.mxu1 %v18386_v42  ;;  %v16639_v42 = vld [vmem:[%s7764_s12] ss:$0 sm:$0xff] }
 0x611   : > { %17539 = vmatpush3.bf16.msra.mxu0 %v18385_v48  ;;  %15257 = vmatmul.mubr.bf16.vlgmr.msra.gmra.mrb[24].mxu1 %v18382_v2  ;;  %v18444_v48 = vld [vmem:[%s22991_s16 + $0x320] sm:$0xff]  }
 0x612   : > { %17568 = vmatprep.subr.bf16.mxu0 %v18391_v29  ;;  %17547 = vmatpush3.bf16.msra.mxu1 %v18390_v63  ;;  %v18445_v2 = vld [vmem:[%s22991_s16 + $0x3e0] sm:$0xff]   ;;  %v18447_v63 = vld [vmem:[%s22991_s16 + $0x368] sm:$0xff]  }
 0x613   : > { %15338 = vmatprep.mubr.bf16.mxu1 %v18422_v56  ;;  %17548 = vmatprep.subr.bf16.mxu1 %v18393_v49  ;;  %v18446_v29 = vld [vmem:[%s22991_s16 + $0x3a0] sm:$0xff]  }
 0x614   : > { %15298 = vmatmul.mubr.bf16.vlgmr.msra.gmra.mrb[76].mxu0 %v18387_v23  ;;  %v18448_v23 = vld [vmem:[%s22991_s16 + $0x328] sm:$0xff]  }
 0x615   : > { %17569 = vmatpush3.bf16.msra.mxu0 %v18392_v12  ;;  %15379 = vmatprep.mubr.bf16.mxu0 %v18427_v14  ;;  %v18449_v12 = vld [vmem:[%s22991_s16 + $0x3e8] sm:$0xff]  }
 0x616   : > { %17570 = vmatprep.subr.bf16.mxu0 %v18395_v60  ;;  %17549 = vmatpush3.bf16.msra.mxu1 %v18394_v62 }
 0x617   : > { %17550 = vmatprep.subr.bf16.mxu1 %v18397_v7  ;;  %v18450_v7 = vld [vmem:[%s22991_s16 + $0x3a8] sm:$0xff]  }
 0x619   : > { %17571 = vmatpush3.bf16.msra.mxu0 %v18396_v40 }
 0x61a   : > { %17572 = vmatprep.subr.bf16.mxu0 %v18399_v1  ;;  %17551 = vmatpush3.bf16.msra.mxu1 %v18398_v46  ;;  %v18451_v1 = vld [vmem:[%s22991_s16 + $0x370] sm:$0xff]  }
 0x61b   : > { %17552 = vmatprep.subr.bf16.mxu1 %v18401_v38 }
 0x61d   : > { %17573 = vmatpush3.bf16.msra.mxu0 %v18400_v6 }
 0x61e   : > { %17574 = vmatprep.subr.bf16.mxu0 %v18403_v36  ;;  %17553 = vmatpush3.bf16.msra.mxu1 %v18402_v53  ;;  %v18452_v36 = vld [vmem:[%s22991_s16 + $0x330] sm:$0xff]  }
 0x61f   : > { %17554 = vmatprep.subr.bf16.mxu1 %v18405_v20  ;;  %v18453_v53 = vld [vmem:[%s22991_s16 + $0x3f0] sm:$0xff]  }
 0x621   : > { %17575 = vmatpush3.bf16.msra.mxu0 %v18404_v43  ;;  %v17337_v17 = vpop.f32.mrb[0].mxu1  ;;  %v18454_v43 = vld [vmem:[%s22991_s16 + $0x3b0] sm:$0xff]  }
 0x622   : > { %17576 = vmatprep.subr.bf16.mxu0 %v18407_v52  ;;  %v17338_v61 = vpop.f32.mrb[1].mxu1  ;;  %17555 = vmatpush3.bf16.msra.mxu1 %v18406_v21  ;;  %v18455_v52 = vld [vmem:[%s22991_s16 + $0x378] sm:$0xff]  }
 0x623   : > { %v23266_v3 = vadd.f32 %v17338_v61, %v17337_v17  ;;  %v17340_v13 = vpop.f32.mrb[2].mxu1  ;;  %17556 = vmatprep.subr.bf16.mxu1 %v18409_v16  ;;  %v18456_v21 = vld [vmem:[%s22991_s16 + $0x338] sm:$0xff]   ;;  %v18466_v61 = vld [vmem:[%s22991_s16 + $0x400] sm:$0xff]  }
 0x624   : > { %v17341_v35 = vpop.f32.mrb[3].mxu1  ;;  %v18461_v16 = vld [vmem:[%s22991_s16 + $0x3b8] sm:$0xff]  }
 0x625   : > { %17577 = vmatpush3.bf16.msra.mxu0 %v18408_v58  ;;  %v23271_v37 = vadd.f32 %v17341_v35, %v17340_v13  ;;  %v11381_v14 = vadd.f32 %v23266_v3, %v16639_v42  ;;  %v18457_v58 = vld [vmem:[%s22991_s16 + $0x3f8] sm:$0xff]   ;;  %v18467_v3 = vld [vmem:[%s22991_s16 + $0x4c0] sm:$0xff]   ;;  %v18503_v35 = vld [vmem:[%s21145_s10 + $0x4c] ss:$200 sps:$4 sm:$0xff]  }
 0x626   : > { %17578 = vmatprep.subr.bf16.mxu0 %v18411_v51  ;;  %17557 = vmatpush3.bf16.msra.mxu1 %v18410_v19  ;;  %v18458_v17 = vld [vmem:[%s21145_s10 + $0x30] ss:$200 sps:$4 sm:$0xff]   ;;  %v18462_v19 = vld [vmem:[%s22991_s16 + $0x440] sm:$0xff]  }
 0x627   : > { %17558 = vmatprep.subr.bf16.mxu1 %v18413_v0  ;;  %v11384_v46 = vadd.f32 %v23271_v37, %v16639_v42  ;;  %v18463_v51 = vld [vmem:[%s21145_s10 + $0x38] ss:$200 sps:$4 sm:$0xff]   ;;  %v18498_v13 = vld [vmem:[%s21145_s10 + $0x44] ss:$200 sps:$4 sm:$0xff]  }
 0x628   : > { %v18468_v0 = vld [vmem:[%s22991_s16 + $0x480] sm:$0xff]   ;;  %v18470_v37 = vld [vmem:[%s22991_s16 + $0x408] sm:$0xff]  }
 0x629   : > { %17579 = vmatpush3.bf16.msra.mxu0 %v18412_v24  ;;  %v18469_v24 = vld [vmem:[%s22991_s16 + $0x448] sm:$0xff]  }
 0x62a   : > { %17580 = vmatprep.subr.bf16.mxu0 %v18415_v4  ;;  %17559 = vmatpush3.bf16.msra.mxu1 %v18414_v39  ;;  %v18471_v4 = vld [vmem:[%s22991_s16 + $0x4c8] sm:$0xff]   ;;  %v18473_v39 = vld [vmem:[%s22991_s16 + $0x450] sm:$0xff]  }
 0x62b   : > { %17560 = vmatprep.subr.bf16.mxu1 %v18417_v59  ;;  %v18472_v59 = vld [vmem:[%s22991_s16 + $0x488] sm:$0xff]  }
 0x62d   : > { %17581 = vmatpush3.bf16.msra.mxu0 %v18416_v41  ;;  %v18475_v41 = vld [vmem:[%s22991_s16 + $0x4d0] sm:$0xff]  }
 0x62e   : > { %17582 = vmatprep.subr.bf16.mxu0 %v18419_v9  ;;  %17561 = vmatpush3.bf16.msra.mxu1 %v18418_v28  ;;  %v18474_v9 = vld [vmem:[%s22991_s16 + $0x410] sm:$0xff]   ;;  %v18477_v28 = vld [vmem:[%s22991_s16 + $0x458] sm:$0xff]  }
 0x62f   : > { %17590 = vmatprep.subr.bf16.mxu1 %v18424_v5  ;;  %v18476_v5 = vld [vmem:[%s22991_s16 + $0x490] sm:$0xff]  }
 0x631   : > { %17583 = vmatpush3.bf16.msra.mxu0 %v18423_v50  ;;  %15339 = vmatmul.mubr.bf16.vlgmr.msra.gmra.mrb[28].mxu1 %v18420_v55  ;;  %v18479_v50 = vld [vmem:[%s22991_s16 + $0x4d8] sm:$0xff]  }
 0x632   : > { %17612 = vmatprep.subr.bf16.mxu0 %v18429_v15  ;;  %17591 = vmatpush3.bf16.msra.mxu1 %v18428_v18  ;;  %v18478_v55 = vld [vmem:[%s22991_s16 + $0x418] sm:$0xff]   ;;  %v18481_v15 = vld [vmem:[%s22991_s16 + $0x460] sm:$0xff]  }
 0x633   : > { %15420 = vmatprep.mubr.bf16.mxu1 %v18460_v31  ;;  %17592 = vmatprep.subr.bf16.mxu1 %v18431_v34  ;;  %v18480_v18 = vld [vmem:[%s22991_s16 + $0x498] sm:$0xff]   ;;  %v18483_v31 = vld [vmem:[%s22991_s16 + $0x4e0] sm:$0xff]  }
 0x634   : > { %15380 = vmatmul.mubr.bf16.vlgmr.msra.gmra.mrb[80].mxu0 %v18425_v11  ;;  %v18482_v11 = vld [vmem:[%s22991_s16 + $0x420] sm:$0xff]  }
 0x635   : > { %17613 = vmatpush3.bf16.msra.mxu0 %v18430_v32  ;;  %15461 = vmatprep.mubr.bf16.mxu0 %v18465_v10  ;;  %v18484_v34 = vld [vmem:[%s22991_s16 + $0x4a0] sm:$0xff]   ;;  %v18485_v32 = vld [vmem:[%s22991_s16 + $0x468] sm:$0xff]  }
 0x636   : > { %17614 = vmatprep.subr.bf16.mxu0 %v18433_v25  ;;  %17593 = vmatpush3.bf16.msra.mxu1 %v18432_v30  ;;  %v18486_v10 = vld [vmem:[%s22991_s16 + $0x428] sm:$0xff]  }
 0x637   : > { %17594 = vmatprep.subr.bf16.mxu1 %v18435_v47  ;;  %v18487_v25 = vld [vmem:[%s22991_s16 + $0x4e8] sm:$0xff]   ;;  %v18489_v47 = vld [vmem:[%s22991_s16 + $0x470] sm:$0xff]  }
 0x638   : > { %v18488_v30 = vld [vmem:[%s22991_s16 + $0x4a8] sm:$0xff]  }
 0x639   : > { %17615 = vmatpush3.bf16.msra.mxu0 %v18434_v8 }
 0x63a   : > { %17616 = vmatprep.subr.bf16.mxu0 %v18437_v57  ;;  %17595 = vmatpush3.bf16.msra.mxu1 %v18436_v45  ;;  %v18490_v57 = vld [vmem:[%s22991_s16 + $0x430] sm:$0xff]  }
 0x63b   : > { %17596 = vmatprep.subr.bf16.mxu1 %v18439_v27  ;;  %v18491_v27 = vld [vmem:[%s22991_s16 + $0x4f0] sm:$0xff]  }
 0x63d   : > { %17617 = vmatpush3.bf16.msra.mxu0 %v18438_v44 }
 0x63e   : > { %17618 = vmatprep.subr.bf16.mxu0 %v18441_v33  ;;  %17597 = vmatpush3.bf16.msra.mxu1 %v18440_v22  ;;  %v18492_v22 = vld [vmem:[%s22991_s16 + $0x4b0] sm:$0xff]  }
 0x63f   : > { %17598 = vmatprep.subr.bf16.mxu1 %v18443_v54 }
 0x641   : > { %17619 = vmatpush3.bf16.msra.mxu0 %v18442_v26  ;;  %v17359_v56 = vpop.f32.mrb[4].mxu1  ;;  %v18493_v26 = vld [vmem:[%s22991_s16 + $0x478] sm:$0xff]  }
 0x642   : > { %17620 = vmatprep.subr.bf16.mxu0 %v18445_v2  ;;  %v17360_v49 = vpop.f32.mrb[5].mxu1  ;;  %17599 = vmatpush3.bf16.msra.mxu1 %v18444_v48  ;;  %v18494_v2 = vld [vmem:[%s22991_s16 + $0x438] sm:$0xff]  }
 0x643   : > { %v17361_v60 = vadd.f32 %v17360_v49, %v17359_v56  ;;  %v17362_v62 = vpop.f32.mrb[6].mxu1  ;;  %17600 = vmatprep.subr.bf16.mxu1 %v18447_v63  ;;  %v18499_v56 = vld [vmem:[%s22991_s16 + $0x4b8] sm:$0xff]   ;;  %v18500_v49 = vld [vmem:[%s22991_s16 + $0x540] sm:$0xff]  }
 0x644   : > { %v17363_v40 = vpop.f32.mrb[7].mxu1 }
 0x645   : > { %17621 = vmatpush3.bf16.msra.mxu0 %v18446_v29  ;;  %v23321_v38 = vadd.f32 %v17361_v60, %v11381_v14  ;;  %v17364_v6 = vadd.f32 %v17363_v40, %v17362_v62  ;;  %v18495_v29 = vld [vmem:[%s22991_s16 + $0x4f8] sm:$0xff]   ;;  %v18501_v14 = vld [vmem:[%s21145_s10 + $0x48] ss:$200 sps:$4 sm:$0xff]   ;;  %v18505_v60 = vld [vmem:[%s22991_s16 + $0x5c0] sm:$0xff]  }
 0x646   : > { %17622 = vmatprep.subr.bf16.mxu0 %v18449_v12  ;;  %17601 = vmatpush3.bf16.msra.mxu1 %v18448_v23  ;;  %v18496_v23 = vld [vmem:[%s21145_s10 + $0x40] ss:$200 sps:$4 sm:$0xff]  }
 0x647   : > { %v23325_v20 = vadd.f32 %v17364_v6, %v11384_v46  ;;  %17602 = vmatprep.subr.bf16.mxu1 %v18451_v1  ;;  %v18504_v12 = vld [vmem:[%s22991_s16 + $0x500] sm:$0xff]   ;;  %v18507_v40 = vld [vmem:[%s22991_s16 + $0x548] sm:$0xff]   ;;  %v18511_v6 = vld [vmem:[%s22991_s16 + $0x550] sm:$0xff]  }
 0x648   : > { %v18506_v62 = vld [vmem:[%s22991_s16 + $0x580] sm:$0xff]   ;;  %v18509_v46 = vld [vmem:[%s22991_s16 + $0x5c8] sm:$0xff]  }
 0x649   : > { %17623 = vmatpush3.bf16.msra.mxu0 %v18450_v7  ;;  %v18536_v7 = vld [vmem:[%s21145_s10 + $0x54] ss:$200 sps:$4 sm:$0xff]  }
 0x64a   : > { %17624 = vmatprep.subr.bf16.mxu0 %v18453_v53  ;;  %17603 = vmatpush3.bf16.msra.mxu1 %v18452_v36  ;;  %v18541_v1 = vld [vmem:[%s21145_s10 + $0x5c] ss:$200 sps:$4 sm:$0xff]   ;;  %v18510_v36 = vld [vmem:[%s22991_s16 + $0x588] sm:$0xff]   ;;  %v18513_v53 = vld [vmem:[%s22991_s16 + $0x5d0] sm:$0xff]  }
 0x64b   : > { %17604 = vmatprep.subr.bf16.mxu1 %v18455_v52  ;;  %v18514_v52 = vld [vmem:[%s22991_s16 + $0x590] sm:$0xff]  }
 0x64d   : > { %17625 = vmatpush3.bf16.msra.mxu0 %v18454_v43  ;;  %v18515_v43 = vld [vmem:[%s22991_s16 + $0x558] sm:$0xff]  }
 0x64e   : > { %17626 = vmatprep.subr.bf16.mxu0 %v18457_v58  ;;  %17605 = vmatpush3.bf16.msra.mxu1 %v18456_v21  ;;  %v18517_v21 = vld [vmem:[%s22991_s16 + $0x5d8] sm:$0xff]  }
 0x64f   : > { %17634 = vmatprep.subr.bf16.mxu1 %v18462_v19  ;;  %v18516_v58 = vld [vmem:[%s22991_s16 + $0x518] sm:$0xff]   ;;  %v18521_v19 = vld [vmem:[%s22991_s16 + $0x5e0] sm:$0xff]  }
 0x651   : > { %17627 = vmatpush3.bf16.msra.mxu0 %v18461_v16  ;;  %15421 = vmatmul.mubr.bf16.vlgmr.msra.gmra.mrb[32].mxu1 %v18458_v17  ;;  %v18519_v16 = vld [vmem:[%s22991_s16 + $0x560] sm:$0xff]   ;;  %v18518_v17 = vld [vmem:[%s22991_s16 + $0x598] sm:$0xff]  }
 0x652   : > { %17656 = vmatprep.subr.bf16.mxu0 %v18467_v3  ;;  %17635 = vmatpush3.bf16.msra.mxu1 %v18466_v61  ;;  %v18520_v61 = vld [vmem:[%s22991_s16 + $0x520] sm:$0xff]  }
 0x653   : > { %15502 = vmatprep.mubr.bf16.mxu1 %v18498_v13  ;;  %17636 = vmatprep.subr.bf16.mxu1 %v18469_v24  ;;  %v18522_v3 = vld [vmem:[%s22991_s16 + $0x5a0] sm:$0xff]   ;;  %v18524_v13 = vld [vmem:[%s22991_s16 + $0x528] sm:$0xff]  }
 0x654   : > { %15462 = vmatmul.mubr.bf16.vlgmr.msra.gmra.mrb[84].mxu0 %v18463_v51  ;;  %v18523_v51 = vld [vmem:[%s22991_s16 + $0x568] sm:$0xff]  }
 0x655   : > { %17657 = vmatpush3.bf16.msra.mxu0 %v18468_v0  ;;  %15543 = vmatprep.mubr.bf16.mxu0 %v18503_v35  ;;  %v18525_v24 = vld [vmem:[%s22991_s16 + $0x5e8] sm:$0xff]   ;;  %v18527_v35 = vld [vmem:[%s22991_s16 + $0x570] sm:$0xff]  }
 0x656   : > { %17658 = vmatprep.subr.bf16.mxu0 %v18471_v4  ;;  %17637 = vmatpush3.bf16.msra.mxu1 %v18470_v37  ;;  %v18526_v0 = vld [vmem:[%s22991_s16 + $0x5a8] sm:$0xff]   ;;  %v18528_v37 = vld [vmem:[%s22991_s16 + $0x530] sm:$0xff]  }
 0x657   : > { %17638 = vmatprep.subr.bf16.mxu1 %v18473_v39 }
 0x659   : > { %17659 = vmatpush3.bf16.msra.mxu0 %v18472_v59  ;;  %v18529_v59 = vld [vmem:[%s22991_s16 + $0x5f0] sm:$0xff]  }
 0x65a   : > { %17660 = vmatprep.subr.bf16.mxu0 %v18475_v41  ;;  %17639 = vmatpush3.bf16.msra.mxu1 %v18474_v9 }
 0x65b   : > { %17640 = vmatprep.subr.bf16.mxu1 %v18477_v28  ;;  %v18530_v28 = vld [vmem:[%s22991_s16 + $0x5b0] sm:$0xff]  }
 0x65d   : > { %17661 = vmatpush3.bf16.msra.mxu0 %v18476_v5 }
 0x65e   : > { %17662 = vmatprep.subr.bf16.mxu0 %v18479_v50  ;;  %17641 = vmatpush3.bf16.msra.mxu1 %v18478_v55  ;;  %v18531_v50 = vld [vmem:[%s22991_s16 + $0x578] sm:$0xff]  }
 0x65f   : > { %17642 = vmatprep.subr.bf16.mxu1 %v18481_v15 }
 0x661   : > { %17663 = vmatpush3.bf16.msra.mxu0 %v18480_v18  ;;  %v18532_v18 = vld [vmem:[%s22991_s16 + $0x538] sm:$0xff]  }
 0x662   : > { %17664 = vmatprep.subr.bf16.mxu0 %v18483_v31  ;;  %17643 = vmatpush3.bf16.msra.mxu1 %v18482_v11  ;;  %v18533_v31 = vld [vmem:[%s22991_s16 + $0x5f8] sm:$0xff]  }
 0x663   : > { %17644 = vmatprep.subr.bf16.mxu1 %v18485_v32  ;;  %v18534_v32 = vld [vmem:[%s21145_s10 + $0x50] ss:$200 sps:$4 sm:$0xff]  }
 0x664   : > { %v17381_v8 = vpop.f32.mrb[8].mxu1 }
 0x665   : > { %17665 = vmatpush3.bf16.msra.mxu0 %v18484_v34  ;;  %v17382_v45 = vpop.f32.mrb[9].mxu1  ;;  %v18537_v34 = vld [vmem:[%s22991_s16 + $0x5b8] sm:$0xff]  }
 0x666   : > { %17666 = vmatprep.subr.bf16.mxu0 %v18487_v25  ;;  %v17383_v44 = vadd.f32 %v17382_v45, %v17381_v8  ;;  %v17384_v33 = vpop.f32.mrb[10].mxu1  ;;  %17645 = vmatpush3.bf16.msra.mxu1 %v18486_v10  ;;  %v18538_v10 = vld [vmem:[%s22991_s16 + $0x640] sm:$0xff]   ;;  %v18545_v45 = vld [vmem:[%s22991_s16 + $0x648] sm:$0xff]  }
 0x667   : > { %v17385_v54 = vpop.f32.mrb[11].mxu1  ;;  %17646 = vmatprep.subr.bf16.mxu1 %v18489_v47  ;;  %v18542_v25 = vld [vmem:[%s22991_s16 + $0x600] sm:$0xff]  }
 0x668   : > { %v23366_v42 = vadd.f32 %v17383_v44, %v23321_v38  ;;  %v17386_v48 = vadd.f32 %v17385_v54, %v17384_v33  ;;  %v18508_v38 = vld [vmem:[%s22991_s16 + $0x508] sm:$0xff]   ;;  %v18543_v47 = vld [vmem:[%s22991_s16 + $0x6c0] sm:$0xff]  }
 0x669   : > { %17667 = vmatpush3.bf16.msra.mxu0 %v18488_v30  ;;  %v18539_v30 = vld [vmem:[%s21145_s10 + $0x58] ss:$200 sps:$4 sm:$0xff]   ;;  %v18547_v44 = vld [vmem:[%s22991_s16 + $0x6c8] sm:$0xff]  }
 0x66a   : > { %17668 = vmatprep.subr.bf16.mxu0 %v18491_v27  ;;  %v23371_v63 = vadd.f32 %v17386_v48, %v23325_v20  ;;  %17647 = vmatpush3.bf16.msra.mxu1 %v18490_v57  ;;  %v18512_v20 = vld [vmem:[%s22991_s16 + $0x510] sm:$0xff]   ;;  %v18544_v8 = vld [vmem:[%s22991_s16 + $0x680] sm:$0xff]   ;;  %v18546_v33 = vld [vmem:[%s22991_s16 + $0x608] sm:$0xff]  }
 0x66b   : > { %17648 = vmatprep.subr.bf16.mxu1 %v18493_v26  ;;  %v18574_v57 = vld [vmem:[%s21145_s10 + $0x64] ss:$200 sps:$4 sm:$0xff]   ;;  %v18551_v26 = vld [vmem:[%s22991_s16 + $0x6d0] sm:$0xff]  }
 0x66c   : > { %v18579_v27 = vld [vmem:[%s21145_s10 + $0x6c] ss:$200 sps:$4 sm:$0xff]  }
 0x66d   : > { %17669 = vmatpush3.bf16.msra.mxu0 %v18492_v22  ;;  %v18549_v22 = vld [vmem:[%s22991_s16 + $0x650] sm:$0xff]   ;;  %v18548_v54 = vld [vmem:[%s22991_s16 + $0x688] sm:$0xff]  }
 0x66e   : > { %17670 = vmatprep.subr.bf16.mxu0 %v18495_v29  ;;  %17649 = vmatpush3.bf16.msra.mxu1 %v18494_v2  ;;  %v18550_v48 = vld [vmem:[%s22991_s16 + $0x610] sm:$0xff]   ;;  %v18553_v29 = vld [vmem:[%s22991_s16 + $0x658] sm:$0xff]  }
 0x66f   : > { %17678 = vmatprep.subr.bf16.mxu1 %v18500_v49 }
 0x671   : > { %17671 = vmatpush3.bf16.msra.mxu0 %v18499_v56  ;;  %15503 = vmatmul.mubr.bf16.vlgmr.msra.gmra.mrb[36].mxu1 %v18496_v23  ;;  %v18552_v23 = vld [vmem:[%s22991_s16 + $0x690] sm:$0xff]  }
 0x672   : > { %17700 = vmatprep.subr.bf16.mxu0 %v18505_v60  ;;  %17679 = vmatpush3.bf16.msra.mxu1 %v18504_v12  ;;  %v18555_v12 = vld [vmem:[%s22991_s16 + $0x6d8] sm:$0xff]  }
 0x673   : > { %15584 = vmatprep.mubr.bf16.mxu1 %v18536_v7  ;;  %17680 = vmatprep.subr.bf16.mxu1 %v18507_v40  ;;  %v18554_v60 = vld [vmem:[%s22991_s16 + $0x618] sm:$0xff]   ;;  %v18557_v7 = vld [vmem:[%s22991_s16 + $0x660] sm:$0xff]  }
 0x674   : > { %15544 = vmatmul.mubr.bf16.vlgmr.msra.gmra.mrb[88].mxu0 %v18501_v14  ;;  %v18556_v40 = vld [vmem:[%s22991_s16 + $0x698] sm:$0xff]  }
 0x675   : > { %17701 = vmatpush3.bf16.msra.mxu0 %v18506_v62  ;;  %15625 = vmatprep.mubr.bf16.mxu0 %v18541_v1 }
 0x676   : > { %17702 = vmatprep.subr.bf16.mxu0 %v18509_v46  ;;  %17681 = vmatpush3.bf16.msra.mxu1 %v18508_v38  ;;  %v18559_v46 = vld [vmem:[%s22991_s16 + $0x6e0] sm:$0xff]  }
 0x677   : > { %17682 = vmatprep.subr.bf16.mxu1 %v18511_v6  ;;  %v18558_v38 = vld [vmem:[%s22991_s16 + $0x620] sm:$0xff]   ;;  %v18561_v6 = vld [vmem:[%s22991_s16 + $0x668] sm:$0xff]  }
 0x679   : > { %17703 = vmatpush3.bf16.msra.mxu0 %v18510_v36  ;;  %v18560_v36 = vld [vmem:[%s22991_s16 + $0x6a0] sm:$0xff]  }
 0x67a   : > { %17704 = vmatprep.subr.bf16.mxu0 %v18513_v53  ;;  %17683 = vmatpush3.bf16.msra.mxu1 %v18512_v20  ;;  %v18562_v53 = vld [vmem:[%s22991_s16 + $0x628] sm:$0xff]  }
 0x67b   : > { %17684 = vmatprep.subr.bf16.mxu1 %v18515_v43  ;;  %v18563_v20 = vld [vmem:[%s22991_s16 + $0x6e8] sm:$0xff]  }
 0x67c   : > { %v18564_v43 = vld [vmem:[%s22991_s16 + $0x6a8] sm:$0xff]  }
 0x67d   : > { %17705 = vmatpush3.bf16.msra.mxu0 %v18514_v52  ;;  %v18565_v52 = vld [vmem:[%s22991_s16 + $0x670] sm:$0xff]  }
 0x67e   : > { %17706 = vmatprep.subr.bf16.mxu0 %v18517_v21  ;;  %17685 = vmatpush3.bf16.msra.mxu1 %v18516_v58  ;;  %v18566_v58 = vld [vmem:[%s22991_s16 + $0x630] sm:$0xff]  }
 0x67f   : > { %17686 = vmatprep.subr.bf16.mxu1 %v18519_v16 }
 0x681   : > { %17707 = vmatpush3.bf16.msra.mxu0 %v18518_v17  ;;  %v18567_v17 = vld [vmem:[%s22991_s16 + $0x6f0] sm:$0xff]  }
 0x682   : > { %17708 = vmatprep.subr.bf16.mxu0 %v18521_v19  ;;  %17687 = vmatpush3.bf16.msra.mxu1 %v18520_v61 }
 0x683   : > { %17688 = vmatprep.subr.bf16.mxu1 %v18523_v51 }
 0x684   : > { %v17403_v4 = vpop.f32.mrb[12].mxu1 }
 0x685   : > { %17709 = vmatpush3.bf16.msra.mxu0 %v18522_v3  ;;  %v17404_v39 = vpop.f32.mrb[13].mxu1 }
 0x686   : > { %17710 = vmatprep.subr.bf16.mxu0 %v18525_v24  ;;  %v17405_v41 = vadd.f32 %v17404_v39, %v17403_v4  ;;  %v17406_v9 = vpop.f32.mrb[14].mxu1  ;;  %17689 = vmatpush3.bf16.msra.mxu1 %v18524_v13  ;;  %v18568_v24 = vld [vmem:[%s22991_s16 + $0x6b0] sm:$0xff]   ;;  %v18570_v39 = vld [vmem:[%s22991_s16 + $0x638] sm:$0xff]  }
 0x687   : > { %v17407_v5 = vpop.f32.mrb[15].mxu1  ;;  %17690 = vmatprep.subr.bf16.mxu1 %v18527_v35 }
 0x688   : > { %v11504_v55 = vadd.f32 %v17405_v41, %v23366_v42  ;;  %v17408_v15 = vadd.f32 %v17407_v5, %v17406_v9  ;;  %v18571_v41 = vld [vmem:[%s22991_s16 + $0x6f8] sm:$0xff]  }
 0x689   : > { %17711 = vmatpush3.bf16.msra.mxu0 %v18526_v0  ;;  %v18569_v0 = vld [vmem:[%s22991_s16 + $0x678] sm:$0xff]  }
 0x68a   : > { %17712 = vmatprep.subr.bf16.mxu0 %v18529_v59  ;;  %v11507_v11 = vadd.f32 %v17408_v15, %v23371_v63  ;;  %17691 = vmatpush3.bf16.msra.mxu1 %v18528_v37  ;;  %v18575_v5 = vld [vmem:[%s22991_s16 + $0x6b8] sm:$0xff]  }
 0x68b   : > { %17692 = vmatprep.subr.bf16.mxu1 %v18531_v50  ;;  %v18572_v50 = vld [vmem:[%s21145_s10 + $0x60] ss:$200 sps:$4 sm:$0xff]  }
 0x68d   : > { %17713 = vmatpush3.bf16.msra.mxu0 %v18530_v28 }
 0x68e   : > { %17714 = vmatprep.subr.bf16.mxu0 %v18533_v31  ;;  %17693 = vmatpush3.bf16.msra.mxu1 %v18532_v18  ;;  %v18580_v18 = vld [vmem:[%s22991_s16 + $0x700] sm:$0xff]   ;;  %v18577_v31 = vld [vmem:[%s21145_s10 + $0x68] ss:$200 sps:$4 sm:$0xff]  }
 0x68f   : > { %17722 = vmatprep.subr.bf16.mxu1 %v18538_v10  ;;  %v18583_v10 = vld [vmem:[%s22991_s16 + $0x748] sm:$0xff]  }
 0x691   : > { %17715 = vmatpush3.bf16.msra.mxu0 %v18537_v34  ;;  %15585 = vmatmul.mubr.bf16.vlgmr.msra.gmra.mrb[40].mxu1 %v18534_v32  ;;  %v18582_v34 = vld [vmem:[%s22991_s16 + $0x780] sm:$0xff]   ;;  %v18612_v32 = vld [vmem:[%s21145_s10 + $0x74] ss:$200 sps:$4 sm:$0xff]  }
 0x692   : > { %17744 = vmatprep.subr.bf16.mxu0 %v18543_v47  ;;  %17723 = vmatpush3.bf16.msra.mxu1 %v18542_v25  ;;  %v18617_v25 = vld [vmem:[%s21145_s10 + $0x7c] ss:$200 sps:$4 sm:$0xff]   ;;  %v18584_v47 = vld [vmem:[%s22991_s16 + $0x708] sm:$0xff]  }
 0x693   : > { %15666 = vmatprep.mubr.bf16.mxu1 %v18574_v57  ;;  %17724 = vmatprep.subr.bf16.mxu1 %v18545_v45  ;;  %v18586_v57 = vld [vmem:[%s22991_s16 + $0x788] sm:$0xff]   ;;  %v18589_v45 = vld [vmem:[%s22991_s16 + $0x7d0] sm:$0xff]  }
 0x694   : > { %15626 = vmatmul.mubr.bf16.vlgmr.msra.gmra.mrb[92].mxu0 %v18539_v30  ;;  %v18585_v30 = vld [vmem:[%s22991_s16 + $0x7c8] sm:$0xff]  }
 0x695   : > { %17745 = vmatpush3.bf16.msra.mxu0 %v18544_v8  ;;  %15707 = vmatprep.mubr.bf16.mxu0 %v18579_v27  ;;  %v18587_v8 = vld [vmem:[%s22991_s16 + $0x750] sm:$0xff]  }
 0x696   : > { %17746 = vmatprep.subr.bf16.mxu0 %v18547_v44  ;;  %17725 = vmatpush3.bf16.msra.mxu1 %v18546_v33  ;;  %v18588_v27 = vld [vmem:[%s22991_s16 + $0x710] sm:$0xff]   ;;  %v18591_v44 = vld [vmem:[%s22991_s16 + $0x758] sm:$0xff]  }
 0x697   : > { %v17425_v42 = vpop.f32.mrb[64].mxu0  ;;  %17726 = vmatprep.subr.bf16.mxu1 %v18549_v22  ;;  %v18590_v33 = vld [vmem:[%s22991_s16 + $0x790] sm:$0xff]   ;;  %v18593_v22 = vld [vmem:[%s22991_s16 + $0x7d8] sm:$0xff]  }
 0x698   : > { %v17426_v2 = vpop.f32.mrb[65].mxu0 }
 0x699   : > { %v17427_v63 = vadd.f32 %v17426_v2, %v17425_v42  ;;  %v17428_v56 = vpop.f32.mrb[66].mxu0  ;;  %17747 = vmatpush3.bf16.msra.mxu0 %v18548_v54  ;;  %v18592_v54 = vld [vmem:[%s22991_s16 + $0x718] sm:$0xff]   ;;  %v18596_v2 = vld [vmem:[%s22991_s16 + $0x720] sm:$0xff]  }
 0x69a   : > { %v17429_v49 = vpop.f32.mrb[67].mxu0  ;;  %17748 = vmatprep.subr.bf16.mxu0 %v18551_v26  ;;  %17727 = vmatpush3.bf16.msra.mxu1 %v18550_v48  ;;  %v18595_v26 = vld [vmem:[%s22991_s16 + $0x760] sm:$0xff]   ;;  %v18594_v42 = vld [vmem:[%s22991_s16 + $0x798] sm:$0xff]  }
 0x69b   : > { %v17430_v14 = vadd.f32 %v17429_v49, %v17428_v56  ;;  %v11545_v62 = vadd.f32 %v17427_v63, %v11504_v55  ;;  %17728 = vmatprep.subr.bf16.mxu1 %v18553_v29  ;;  %v18576_v55 = vld [vmem:[%s22991_s16 + $0x740] sm:$0xff]   ;;  %v18599_v29 = vld [vmem:[%s22991_s16 + $0x768] sm:$0xff]  }
 0x69c   : > { %v18597_v48 = vld [vmem:[%s22991_s16 + $0x7e0] sm:$0xff]   ;;  %v18601_v56 = vld [vmem:[%s22991_s16 + $0x7e8] sm:$0xff]  }
 0x69d   : > { %17749 = vmatpush3.bf16.msra.mxu0 %v18552_v23  ;;  %v11548_v1 = vadd.f32 %v17430_v14, %v11507_v11  ;;  %v18581_v11 = vld [vmem:[%s22991_s16 + $0x7c0] sm:$0xff]   ;;  %v18600_v23 = vld [vmem:[%s22991_s16 + $0x728] sm:$0xff]   ;;  %v18603_v14 = vld [vmem:[%s22991_s16 + $0x770] sm:$0xff]  }
 0x69e   : > { %17750 = vmatprep.subr.bf16.mxu0 %v18555_v12  ;;  %17729 = vmatpush3.bf16.msra.mxu1 %v18554_v60  ;;  %v18598_v63 = vld [vmem:[%s22991_s16 + $0x7a0] sm:$0xff]   ;;  %v18602_v12 = vld [vmem:[%s22991_s16 + $0x7a8] sm:$0xff]  }
 0x69f   : > { %17730 = vmatprep.subr.bf16.mxu1 %v18557_v7  ;;  %v16741_v49 = vld [vmem:[%s7772_s23] ss:$0 sm:$0xff]  ;;  %s23716_s23 = scalar_lea.vmem [#allocation5], %s16562_s30 }
 0x6a1   : > { %17751 = vmatpush3.bf16.msra.mxu0 %v18556_v40  ;;  %v18605_v40 = vld [vmem:[%s22991_s16 + $0x7f0] sm:$0xff]  }
 0x6a2   : > { %17752 = vmatprep.subr.bf16.mxu0 %v18559_v46  ;;  %17731 = vmatpush3.bf16.msra.mxu1 %v18558_v38 }
 0x6a3   : > { %17732 = vmatprep.subr.bf16.mxu1 %v18561_v6  ;;  %v18606_v6 = vld [vmem:[%s22991_s16 + $0x7b0] sm:$0xff]  }
 0x6a4   : > { %v17447_v21 = vpop.f32.mrb[16].mxu1 }
 0x6a5   : > { %17753 = vmatpush3.bf16.msra.mxu0 %v18560_v36  ;;  %v17448_v16 = vpop.f32.mrb[17].mxu1  ;;  %v18607_v36 = vld [vmem:[%s22991_s16 + $0x778] sm:$0xff]  }
 0x6a6   : > { %17754 = vmatprep.subr.bf16.mxu0 %v18563_v20  ;;  %v17449_v61 = vadd.f32 %v17448_v16, %v17447_v21  ;;  %v17450_v51 = vpop.f32.mrb[18].mxu1  ;;  %17733 = vmatpush3.bf16.msra.mxu1 %v18562_v53  ;;  %v18608_v16 = vld [vmem:[%s22991_s16 + $0x738] sm:$0xff]  }
 0x6a7   : > { %v11626_v19 = vpop.f32.mrb[68].mxu0  ;;  %v17451_v13 = vpop.f32.mrb[19].mxu1  ;;  %17734 = vmatprep.subr.bf16.mxu1 %v18565_v52 }
 0x6a8   : > { %v18028_v3 = vpop.f32.mrb[69].mxu0  ;;  %v11586_v4 = vadd.f32 %v17449_v61, %v11545_v62  ;;  %v17452_v37 = vadd.f32 %v17451_v13, %v17450_v51  ;;  %v18604_v62 = vld [vmem:[%s22991_s16 + $0x730] sm:$0xff]   ;;  %v18613_v13 = vld [vmem:[%s22991_s16 + $0x7b8] sm:$0xff]  }
 0x6a9   : > { %v11629_v35 = vpop.f32.mrb[70].mxu0  ;;  %17755 = vmatpush3.bf16.msra.mxu0 %v18564_v43 }
 0x6aa   : > { %v18029_v59 = vpop.f32.mrb[71].mxu0  ;;  %17756 = vmatprep.subr.bf16.mxu0 %v18567_v17  ;;  %v11627_v9 = vadd.f32 %v11626_v19, %v11586_v4  ;;  %v11589_v28 = vadd.f32 %v17452_v37, %v11548_v1  ;;  %17735 = vmatpush3.bf16.msra.mxu1 %v18566_v58  ;;  %v18609_v19 = vld [vmem:[%s22991_s16 + $0x7f8] sm:$0xff]   ;;  %v18618_v4 = vld [vmem:[%s22991_s16 + $0x800] sm:$0xff]  }
 0x6ab   : > { %17736 = vmatprep.subr.bf16.mxu1 %v18569_v0  ;;  %v18614_v0 = vld [vmem:[%s22991_s16 + $0x840] sm:$0xff]  }
 0x6ac   : > { %11633 = vst [vmem:[%s23453_s24] sm:$0xff] %v11627_v9  ;;  %v11630_v15 = vadd.f32 %v11629_v35, %v11589_v28  ;;  %v18615_v37 = vld [vmem:[%s21145_s10 + $0x78] ss:$200 sps:$4 sm:$0xff]   ;;  %v18621_v9 = vld [vmem:[%s22991_s16 + $0x848] sm:$0xff]  }
 0x6ad   : > { %17757 = vmatpush3.bf16.msra.mxu0 %v18568_v24  ;;  %v18610_v24 = vld [vmem:[%s21145_s10 + $0x70] ss:$200 sps:$4 sm:$0xff]   ;;  %v18620_v59 = vld [vmem:[%s22991_s16 + $0x880] sm:$0xff]   ;;  %v18655_v28 = vld [vmem:[%s21145_s10 + $0x8c] ss:$200 sps:$4 sm:$0xff]  }
 0x6ae   : > { %17758 = vmatprep.subr.bf16.mxu0 %v18571_v41  ;;  %11634 = vst [vmem:[%s23453_s24 + $0x8] sm:$0xff] %v11630_v15  ;;  %17737 = vmatpush3.bf16.msra.mxu1 %v18570_v39  ;;  %v18619_v39 = vld [vmem:[%s22991_s16 + $0x8c0] sm:$0xff]   ;;  %v18624_v15 = vld [vmem:[%s22991_s16 + $0x888] sm:$0xff]  }
 0x6af   : > { %17766 = vmatprep.subr.bf16.mxu1 %v18576_v55  ;;  %v18650_v41 = vld [vmem:[%s21145_s10 + $0x84] ss:$200 sps:$4 sm:$0xff]   ;;  %v18625_v55 = vld [vmem:[%s22991_s16 + $0x850] sm:$0xff]  }
 0x6b1   : > { %17759 = vmatpush3.bf16.msra.mxu0 %v18575_v5  ;;  %15667 = vmatmul.mubr.bf16.vlgmr.msra.gmra.mrb[44].mxu1 %v18572_v50  ;;  %v18623_v5 = vld [vmem:[%s22991_s16 + $0x8c8] sm:$0xff]  }
 0x6b2   : > { %17788 = vmatprep.subr.bf16.mxu0 %v18581_v11  ;;  %17767 = vmatpush3.bf16.msra.mxu1 %v18580_v18  ;;  %v18622_v50 = vld [vmem:[%s22991_s16 + $0x808] sm:$0xff]   ;;  %v18627_v18 = vld [vmem:[%s22991_s16 + $0x8d0] sm:$0xff]   ;;  %v18629_v11 = vld [vmem:[%s22991_s16 + $0x858] sm:$0xff]  }
 0x6b3   : > { %15748 = vmatprep.mubr.bf16.mxu1 %v18612_v32  ;;  %17768 = vmatprep.subr.bf16.mxu1 %v18583_v10  ;;  %v18631_v32 = vld [vmem:[%s22991_s16 + $0x8d8] sm:$0xff]  }
 0x6b4   : > { %15708 = vmatmul.mubr.bf16.vlgmr.msra.gmra.mrb[96].mxu0 %v18577_v31  ;;  %v18626_v31 = vld [vmem:[%s22991_s16 + $0x810] sm:$0xff]   ;;  %v18630_v10 = vld [vmem:[%s22991_s16 + $0x818] sm:$0xff]  }
 0x6b5   : > { %17789 = vmatpush3.bf16.msra.mxu0 %v18582_v34  ;;  %15789 = vmatprep.mubr.bf16.mxu0 %v18617_v25  ;;  %v18628_v34 = vld [vmem:[%s22991_s16 + $0x890] sm:$0xff]   ;;  %v18633_v25 = vld [vmem:[%s22991_s16 + $0x860] sm:$0xff]  }
 0x6b6   : > { %17790 = vmatprep.subr.bf16.mxu0 %v18585_v30  ;;  %17769 = vmatpush3.bf16.msra.mxu1 %v18584_v47  ;;  %v18632_v30 = vld [vmem:[%s22991_s16 + $0x898] sm:$0xff]   ;;  %v18635_v47 = vld [vmem:[%s22991_s16 + $0x8e0] sm:$0xff]  }
 0x6b7   : > { %17770 = vmatprep.subr.bf16.mxu1 %v18587_v8  ;;  %v18634_v8 = vld [vmem:[%s22991_s16 + $0x820] sm:$0xff]  }
 0x6b9   : > { %17791 = vmatpush3.bf16.msra.mxu0 %v18586_v57  ;;  %v18637_v57 = vld [vmem:[%s22991_s16 + $0x868] sm:$0xff]  }
 0x6ba   : > { %17792 = vmatprep.subr.bf16.mxu0 %v18589_v45  ;;  %17771 = vmatpush3.bf16.msra.mxu1 %v18588_v27  ;;  %v18636_v45 = vld [vmem:[%s22991_s16 + $0x8a0] sm:$0xff]   ;;  %v18639_v27 = vld [vmem:[%s22991_s16 + $0x8e8] sm:$0xff]  }
 0x6bb   : > { %17772 = vmatprep.subr.bf16.mxu1 %v18591_v44  ;;  %v18638_v44 = vld [vmem:[%s22991_s16 + $0x828] sm:$0xff]  }
 0x6bd   : > { %17793 = vmatpush3.bf16.msra.mxu0 %v18590_v33  ;;  %v18641_v33 = vld [vmem:[%s22991_s16 + $0x870] sm:$0xff]  }
 0x6be   : > { %17794 = vmatprep.subr.bf16.mxu0 %v18593_v22  ;;  %17773 = vmatpush3.bf16.msra.mxu1 %v18592_v54  ;;  %v18640_v54 = vld [vmem:[%s22991_s16 + $0x8a8] sm:$0xff]  }
 0x6bf   : > { %17774 = vmatprep.subr.bf16.mxu1 %v18595_v26 }
 0x6c1   : > { %17795 = vmatpush3.bf16.msra.mxu0 %v18594_v42  ;;  %v18642_v42 = vld [vmem:[%s22991_s16 + $0x830] sm:$0xff]  }
 0x6c2   : > { %17796 = vmatprep.subr.bf16.mxu0 %v18597_v48  ;;  %17775 = vmatpush3.bf16.msra.mxu1 %v18596_v2  ;;  %v18643_v48 = vld [vmem:[%s22991_s16 + $0x8f0] sm:$0xff]  }
 0x6c3   : > { %17776 = vmatprep.subr.bf16.mxu1 %v18599_v29 }
 0x6c4   : > { %v17474_v60 = vpop.f32.mrb[20].mxu1 }
 0x6c5   : > { %17797 = vmatpush3.bf16.msra.mxu0 %v18598_v63  ;;  %v17475_v7 = vpop.f32.mrb[21].mxu1 }
 0x6c6   : > { %17798 = vmatprep.subr.bf16.mxu0 %v18601_v56  ;;  %v17476_v1 = vadd.f32 %v17475_v7, %v17474_v60  ;;  %v17477_v46 = vpop.f32.mrb[22].mxu1  ;;  %17777 = vmatpush3.bf16.msra.mxu1 %v18600_v23 }
 0x6c7   : > { %v17496_v38 = vpop.f32.mrb[72].mxu0  ;;  %v17478_v53 = vpop.f32.mrb[23].mxu1  ;;  %17778 = vmatprep.subr.bf16.mxu1 %v18603_v14 }
 0x6c8   : > { %v17497_v20 = vpop.f32.mrb[73].mxu0  ;;  %v15177_v43 = vadd.f32 %v17476_v1, %v16741_v49  ;;  %v17479_v52 = vadd.f32 %v17478_v53, %v17477_v46  ;;  %v18647_v46 = vld [vmem:[%s22991_s16 + $0x8f8] sm:$0xff]  }
 0x6c9   : > { %v17498_v21 = vadd.f32 %v17497_v20, %v17496_v38  ;;  %v17499_v58 = vpop.f32.mrb[74].mxu0  ;;  %17799 = vmatpush3.bf16.msra.mxu0 %v18602_v12  ;;  %v18645_v12 = vld [vmem:[%s22991_s16 + $0x878] sm:$0xff]   ;;  %v18648_v20 = vld [vmem:[%s21145_s10 + $0x80] ss:$200 sps:$4 sm:$0xff]  }
 0x6ca   : > { %v17500_v17 = vpop.f32.mrb[75].mxu0  ;;  %17800 = vmatprep.subr.bf16.mxu0 %v18605_v40  ;;  %v15180_v61 = vadd.f32 %v17479_v52, %v16741_v49  ;;  %17779 = vmatpush3.bf16.msra.mxu1 %v18604_v62  ;;  %v18644_v49 = vld [vmem:[%s22991_s16 + $0x8b0] sm:$0xff]   ;;  %v18646_v40 = vld [vmem:[%s22991_s16 + $0x838] sm:$0xff]  }
 0x6cb   : > { %v23494_v51 = vadd.f32 %v17498_v21, %v15177_v43  ;;  %v17501_v3 = vadd.f32 %v17500_v17, %v17499_v58  ;;  %17780 = vmatprep.subr.bf16.mxu1 %v18607_v36  ;;  %v18651_v53 = vld [vmem:[%s22991_s16 + $0x8b8] sm:$0xff]   ;;  %v18652_v43 = vld [vmem:[%s22991_s16 + $0x940] sm:$0xff]   ;;  %v18653_v58 = vld [vmem:[%s21145_s10 + $0x88] ss:$200 sps:$4 sm:$0xff]  }
 0x6cc   : > { %v18656_v21 = vld [vmem:[%s22991_s16 + $0x900] sm:$0xff]  }
 0x6cd   : > { %v23499_v35 = vadd.f32 %v17501_v3, %v15180_v61  ;;  %17801 = vmatpush3.bf16.msra.mxu0 %v18606_v6  ;;  %v18658_v17 = vld [vmem:[%s22991_s16 + $0x980] sm:$0xff]   ;;  %v18659_v61 = vld [vmem:[%s22991_s16 + $0x948] sm:$0xff]  }
 0x6ce   : > { %17802 = vmatprep.subr.bf16.mxu0 %v18609_v19  ;;  %17781 = vmatpush3.bf16.msra.mxu1 %v18608_v16  ;;  %v18657_v16 = vld [vmem:[%s22991_s16 + $0x9c0] sm:$0xff]   ;;  %v18688_v19 = vld [vmem:[%s21145_s10 + $0x94] ss:$200 sps:$4 sm:$0xff]   ;;  %v18661_v3 = vld [vmem:[%s22991_s16 + $0x9c8] sm:$0xff]  }
 0x6cf   : > { %17810 = vmatprep.subr.bf16.mxu1 %v18614_v0  ;;  %v18662_v0 = vld [vmem:[%s22991_s16 + $0x988] sm:$0xff]  }
 0x6d1   : > { %17803 = vmatpush3.bf16.msra.mxu0 %v18613_v13  ;;  %15749 = vmatmul.mubr.bf16.vlgmr.msra.gmra.mrb[48].mxu1 %v18610_v24  ;;  %v18660_v13 = vld [vmem:[%s22991_s16 + $0x908] sm:$0xff]   ;;  %v18663_v24 = vld [vmem:[%s22991_s16 + $0x950] sm:$0xff]  }
 0x6d2   : > { %17832 = vmatprep.subr.bf16.mxu0 %v18619_v39  ;;  %17811 = vmatpush3.bf16.msra.mxu1 %v18618_v4  ;;  %v18664_v4 = vld [vmem:[%s22991_s16 + $0x910] sm:$0xff]  }
 0x6d3   : > { %15830 = vmatprep.mubr.bf16.mxu1 %v18650_v41  ;;  %17812 = vmatprep.subr.bf16.mxu1 %v18621_v9  ;;  %v18666_v39 = vld [vmem:[%s22991_s16 + $0x990] sm:$0xff]   ;;  %v18668_v41 = vld [vmem:[%s22991_s16 + $0x918] sm:$0xff]   ;;  %v18671_v9 = vld [vmem:[%s22991_s16 + $0x960] sm:$0xff]  }
 0x6d4   : > { %15790 = vmatmul.mubr.bf16.vlgmr.msra.gmra.mrb[100].mxu0 %v18615_v37  ;;  %v18667_v37 = vld [vmem:[%s22991_s16 + $0x958] sm:$0xff]  }
 0x6d5   : > { %17833 = vmatpush3.bf16.msra.mxu0 %v18620_v59  ;;  %15871 = vmatprep.mubr.bf16.mxu0 %v18655_v28  ;;  %v18669_v59 = vld [vmem:[%s22991_s16 + $0x9d8] sm:$0xff]  }
 0x6d6   : > { %17834 = vmatprep.subr.bf16.mxu0 %v18623_v5  ;;  %17813 = vmatpush3.bf16.msra.mxu1 %v18622_v50  ;;  %v18670_v28 = vld [vmem:[%s22991_s16 + $0x998] sm:$0xff]   ;;  %v18673_v5 = vld [vmem:[%s22991_s16 + $0x9e0] sm:$0xff]  }
 0x6d7   : > { %17814 = vmatprep.subr.bf16.mxu1 %v18625_v55  ;;  %v18672_v50 = vld [vmem:[%s22991_s16 + $0x920] sm:$0xff]   ;;  %v18675_v55 = vld [vmem:[%s22991_s16 + $0x968] sm:$0xff]  }
 0x6d9   : > { %17835 = vmatpush3.bf16.msra.mxu0 %v18624_v15  ;;  %v18674_v15 = vld [vmem:[%s22991_s16 + $0x9a0] sm:$0xff]  }
 0x6da   : > { %17836 = vmatprep.subr.bf16.mxu0 %v18627_v18  ;;  %17815 = vmatpush3.bf16.msra.mxu1 %v18626_v31  ;;  %v18677_v18 = vld [vmem:[%s22991_s16 + $0x9e8] sm:$0xff]  }
 0x6db   : > { %17816 = vmatprep.subr.bf16.mxu1 %v18629_v11  ;;  %v18676_v31 = vld [vmem:[%s22991_s16 + $0x928] sm:$0xff]   ;;  %v18679_v11 = vld [vmem:[%s22991_s16 + $0x970] sm:$0xff]  }
 0x6dd   : > { %17837 = vmatpush3.bf16.msra.mxu0 %v18628_v34 }
 0x6de   : > { %17838 = vmatprep.subr.bf16.mxu0 %v18631_v32  ;;  %17817 = vmatpush3.bf16.msra.mxu1 %v18630_v10  ;;  %v18678_v32 = vld [vmem:[%s22991_s16 + $0x9a8] sm:$0xff]  }
 0x6df   : > { %17818 = vmatprep.subr.bf16.mxu1 %v18633_v25  ;;  %v18681_v25 = vld [vmem:[%s22991_s16 + $0x9f0] sm:$0xff]  }
 0x6e1   : > { %17839 = vmatpush3.bf16.msra.mxu0 %v18632_v30 }
 0x6e2   : > { %17840 = vmatprep.subr.bf16.mxu0 %v18635_v47  ;;  %17819 = vmatpush3.bf16.msra.mxu1 %v18634_v8 }
 0x6e3   : > { %17820 = vmatprep.subr.bf16.mxu1 %v18637_v57  ;;  %v18680_v57 = vld [vmem:[%s22991_s16 + $0x930] sm:$0xff]  }
 0x6e4   : > { %v17518_v22 = vpop.f32.mrb[24].mxu1 }
 0x6e5   : > { %17841 = vmatpush3.bf16.msra.mxu0 %v18636_v45  ;;  %v17519_v26 = vpop.f32.mrb[25].mxu1 }
 0x6e6   : > { %17842 = vmatprep.subr.bf16.mxu0 %v18639_v27  ;;  %v17520_v2 = vadd.f32 %v17519_v26, %v17518_v22  ;;  %v17521_v29 = vpop.f32.mrb[26].mxu1  ;;  %17821 = vmatpush3.bf16.msra.mxu1 %v18638_v44  ;;  %v18683_v44 = vld [vmem:[%s22991_s16 + $0x978] sm:$0xff]  }
 0x6e7   : > { %v17540_v63 = vpop.f32.mrb[76].mxu0  ;;  %v17522_v56 = vpop.f32.mrb[27].mxu1  ;;  %17822 = vmatprep.subr.bf16.mxu1 %v18641_v33 }
 0x6e8   : > { %v17541_v23 = vpop.f32.mrb[77].mxu0  ;;  %v15259_v14 = vadd.f32 %v17520_v2, %v23494_v51  ;;  %v17523_v60 = vadd.f32 %v17522_v56, %v17521_v29  ;;  %v18693_v51 = vld [vmem:[%s21145_s10 + $0x9c] ss:$200 sps:$4 sm:$0xff]  }
 0x6e9   : > { %v17542_v62 = vadd.f32 %v17541_v23, %v17540_v63  ;;  %v17543_v7 = vpop.f32.mrb[78].mxu0  ;;  %17843 = vmatpush3.bf16.msra.mxu0 %v18640_v54  ;;  %v18685_v2 = vld [vmem:[%s22991_s16 + $0x9f8] sm:$0xff]  }
 0x6ea   : > { %v17544_v1 = vpop.f32.mrb[79].mxu0  ;;  %17844 = vmatprep.subr.bf16.mxu0 %v18643_v48  ;;  %v15262_v38 = vadd.f32 %v17523_v60, %v23499_v35  ;;  %17823 = vmatpush3.bf16.msra.mxu1 %v18642_v42  ;;  %v18665_v35 = vld [vmem:[%s22991_s16 + $0x9d0] sm:$0xff]   ;;  %v18684_v23 = vld [vmem:[%s22991_s16 + $0x938] sm:$0xff]  }
 0x6eb   : > { %v23536_v6 = vadd.f32 %v17542_v62, %v15259_v14  ;;  %v17545_v36 = vadd.f32 %v17544_v1, %v17543_v7  ;;  %17824 = vmatprep.subr.bf16.mxu1 %v18645_v12  ;;  %v18682_v42 = vld [vmem:[%s22991_s16 + $0x9b0] sm:$0xff]   ;;  %v18689_v14 = vld [vmem:[%s22991_s16 + $0x9b8] sm:$0xff]   ;;  %v18695_v62 = vld [vmem:[%s22991_s16 + $0xac0] sm:$0xff]  }
 0x6ec   : > { %v18686_v60 = vld [vmem:[%s21145_s10 + $0x90] ss:$200 sps:$4 sm:$0xff]   ;;  %v18694_v7 = vld [vmem:[%s22991_s16 + $0xa00] sm:$0xff]  }
 0x6ed   : > { %v23541_v52 = vadd.f32 %v17545_v36, %v15262_v38  ;;  %17845 = vmatpush3.bf16.msra.mxu0 %v18644_v49  ;;  %v18690_v49 = vld [vmem:[%s22991_s16 + $0xa40] sm:$0xff]   ;;  %v18699_v36 = vld [vmem:[%s22991_s16 + $0xac8] sm:$0xff]  }
 0x6ee   : > { %17846 = vmatprep.subr.bf16.mxu0 %v18647_v46  ;;  %17825 = vmatpush3.bf16.msra.mxu1 %v18646_v40  ;;  %v18726_v40 = vld [vmem:[%s21145_s10 + $0xa4] ss:$200 sps:$4 sm:$0xff]   ;;  %v18691_v1 = vld [vmem:[%s21145_s10 + $0x98] ss:$200 sps:$4 sm:$0xff]  }
 0x6ef   : > { %17854 = vmatprep.subr.bf16.mxu1 %v18652_v43  ;;  %v18697_v46 = vld [vmem:[%s22991_s16 + $0xa48] sm:$0xff]   ;;  %v18696_v38 = vld [vmem:[%s22991_s16 + $0xa80] sm:$0xff]  }
 0x6f0   : > { %v18700_v43 = vld [vmem:[%s22991_s16 + $0xa88] sm:$0xff]  }
 0x6f1   : > { %17847 = vmatpush3.bf16.msra.mxu0 %v18651_v53  ;;  %15831 = vmatmul.mubr.bf16.vlgmr.msra.gmra.mrb[52].mxu1 %v18648_v20  ;;  %v18698_v53 = vld [vmem:[%s22991_s16 + $0xa08] sm:$0xff]   ;;  %v18701_v20 = vld [vmem:[%s22991_s16 + $0xa50] sm:$0xff]  }
 0x6f2   : > { %17876 = vmatprep.subr.bf16.mxu0 %v18657_v16  ;;  %17855 = vmatpush3.bf16.msra.mxu1 %v18656_v21  ;;  %v18702_v21 = vld [vmem:[%s22991_s16 + $0xa10] sm:$0xff]  }
 0x6f3   : > { %15912 = vmatprep.mubr.bf16.mxu1 %v18688_v19  ;;  %17856 = vmatprep.subr.bf16.mxu1 %v18659_v61  ;;  %v18704_v16 = vld [vmem:[%s22991_s16 + $0xa90] sm:$0xff]   ;;  %v18706_v19 = vld [vmem:[%s22991_s16 + $0xa18] sm:$0xff]   ;;  %v18709_v61 = vld [vmem:[%s22991_s16 + $0xa60] sm:$0xff]  }
 0x6f4   : > { %15872 = vmatmul.mubr.bf16.vlgmr.msra.gmra.mrb[104].mxu0 %v18653_v58  ;;  %v18705_v58 = vld [vmem:[%s22991_s16 + $0xa58] sm:$0xff]  }
 0x6f5   : > { %17877 = vmatpush3.bf16.msra.mxu0 %v18658_v17  ;;  %15953 = vmatprep.mubr.bf16.mxu0 %v18693_v51  ;;  %v18707_v17 = vld [vmem:[%s22991_s16 + $0xad8] sm:$0xff]  }
 0x6f6   : > { %17878 = vmatprep.subr.bf16.mxu0 %v18661_v3  ;;  %17857 = vmatpush3.bf16.msra.mxu1 %v18660_v13  ;;  %v18708_v51 = vld [vmem:[%s22991_s16 + $0xa98] sm:$0xff]   ;;  %v18711_v3 = vld [vmem:[%s22991_s16 + $0xae0] sm:$0xff]  }
 0x6f7   : > { %17858 = vmatprep.subr.bf16.mxu1 %v18663_v24  ;;  %v18710_v13 = vld [vmem:[%s22991_s16 + $0xa20] sm:$0xff]   ;;  %v18713_v24 = vld [vmem:[%s22991_s16 + $0xa68] sm:$0xff]  }
 0x6f9   : > { %17879 = vmatpush3.bf16.msra.mxu0 %v18662_v0  ;;  %v18712_v0 = vld [vmem:[%s22991_s16 + $0xaa0] sm:$0xff]  }
 0x6fa   : > { %17880 = vmatprep.subr.bf16.mxu0 %v18665_v35  ;;  %17859 = vmatpush3.bf16.msra.mxu1 %v18664_v4  ;;  %v18715_v35 = vld [vmem:[%s22991_s16 + $0xae8] sm:$0xff]  }
 0x6fb   : > { %17860 = vmatprep.subr.bf16.mxu1 %v18667_v37  ;;  %v18714_v4 = vld [vmem:[%s22991_s16 + $0xa28] sm:$0xff]   ;;  %v18717_v37 = vld [vmem:[%s22991_s16 + $0xa70] sm:$0xff]  }
 0x6fd   : > { %17881 = vmatpush3.bf16.msra.mxu0 %v18666_v39 }
 0x6fe   : > { %17882 = vmatprep.subr.bf16.mxu0 %v18669_v59  ;;  %17861 = vmatpush3.bf16.msra.mxu1 %v18668_v41  ;;  %v18716_v59 = vld [vmem:[%s22991_s16 + $0xaa8] sm:$0xff]  }
 0x6ff   : > { %17862 = vmatprep.subr.bf16.mxu1 %v18671_v9  ;;  %v18719_v9 = vld [vmem:[%s22991_s16 + $0xaf0] sm:$0xff]  }
 0x701   : > { %17883 = vmatpush3.bf16.msra.mxu0 %v18670_v28 }
 0x702   : > { %17884 = vmatprep.subr.bf16.mxu0 %v18673_v5  ;;  %17863 = vmatpush3.bf16.msra.mxu1 %v18672_v50 }
 0x703   : > { %17864 = vmatprep.subr.bf16.mxu1 %v18675_v55  ;;  %v18718_v55 = vld [vmem:[%s22991_s16 + $0xa30] sm:$0xff]  }
 0x704   : > { %v17562_v34 = vpop.f32.mrb[28].mxu1 }
 0x705   : > { %17885 = vmatpush3.bf16.msra.mxu0 %v18674_v15  ;;  %v17563_v10 = vpop.f32.mrb[29].mxu1 }
 0x706   : > { %17886 = vmatprep.subr.bf16.mxu0 %v18677_v18  ;;  %v17564_v30 = vadd.f32 %v17563_v10, %v17562_v34  ;;  %v17565_v47 = vpop.f32.mrb[30].mxu1  ;;  %17865 = vmatpush3.bf16.msra.mxu1 %v18676_v31  ;;  %v18721_v31 = vld [vmem:[%s22991_s16 + $0xa78] sm:$0xff]  }
 0x707   : > { %v17584_v8 = vpop.f32.mrb[80].mxu0  ;;  %v17566_v45 = vpop.f32.mrb[31].mxu1  ;;  %17866 = vmatprep.subr.bf16.mxu1 %v18679_v11 }
 0x708   : > { %v17585_v27 = vpop.f32.mrb[81].mxu0  ;;  %v15341_v33 = vadd.f32 %v17564_v30, %v23536_v6  ;;  %v17567_v22 = vadd.f32 %v17566_v45, %v17565_v47  ;;  %v18731_v6 = vld [vmem:[%s21145_s10 + $0xac] ss:$200 sps:$4 sm:$0xff]   ;;  %v18723_v47 = vld [vmem:[%s22991_s16 + $0xaf8] sm:$0xff]  }
 0x709   : > { %v17586_v54 = vadd.f32 %v17585_v27, %v17584_v8  ;;  %v17587_v26 = vpop.f32.mrb[82].mxu0  ;;  %17887 = vmatpush3.bf16.msra.mxu0 %v18678_v32  ;;  %v18722_v27 = vld [vmem:[%s22991_s16 + $0xa38] sm:$0xff]  }
 0x70a   : > { %v17588_v48 = vpop.f32.mrb[83].mxu0  ;;  %17888 = vmatprep.subr.bf16.mxu0 %v18681_v25  ;;  %v15344_v29 = vadd.f32 %v17567_v22, %v23541_v52  ;;  %17867 = vmatpush3.bf16.msra.mxu1 %v18680_v57  ;;  %v18703_v52 = vld [vmem:[%s22991_s16 + $0xad0] sm:$0xff]   ;;  %v18727_v22 = vld [vmem:[%s22991_s16 + $0xab8] sm:$0xff]  }
 0x70b   : > { %v23577_v63 = vadd.f32 %v17586_v54, %v15341_v33  ;;  %v17589_v56 = vadd.f32 %v17588_v48, %v17587_v26  ;;  %17868 = vmatprep.subr.bf16.mxu1 %v18683_v44  ;;  %v18720_v25 = vld [vmem:[%s22991_s16 + $0xab0] sm:$0xff]   ;;  %v18728_v44 = vld [vmem:[%s22991_s16 + $0xb40] sm:$0xff]  }
 0x70c   : > { %v18724_v54 = vld [vmem:[%s21145_s10 + $0xa0] ss:$200 sps:$4 sm:$0xff]   ;;  %v18764_v48 = vld [vmem:[%s21145_s10 + $0xb4] ss:$200 sps:$4 sm:$0xff]  }
 0x70d   : > { %v23581_v12 = vadd.f32 %v17589_v56, %v15344_v29  ;;  %17889 = vmatpush3.bf16.msra.mxu0 %v18682_v42  ;;  %v18733_v26 = vld [vmem:[%s22991_s16 + $0xbc0] sm:$0xff]   ;;  %v18735_v29 = vld [vmem:[%s22991_s16 + $0xb48] sm:$0xff]  }
 0x70e   : > { %17890 = vmatprep.subr.bf16.mxu0 %v18685_v2  ;;  %17869 = vmatpush3.bf16.msra.mxu1 %v18684_v23  ;;  %v18732_v42 = vld [vmem:[%s22991_s16 + $0xb00] sm:$0xff]   ;;  %v18729_v2 = vld [vmem:[%s21145_s10 + $0xa8] ss:$200 sps:$4 sm:$0xff]  }
 0x70f   : > { %17898 = vmatprep.subr.bf16.mxu1 %v18690_v49  ;;  %v18769_v56 = vld [vmem:[%s21145_s10 + $0xbc] ss:$200 sps:$4 sm:$0xff]   ;;  %v18737_v23 = vld [vmem:[%s22991_s16 + $0xbc8] sm:$0xff]  }
 0x710   : > { %v18736_v49 = vld [vmem:[%s22991_s16 + $0xb08] sm:$0xff]  }
 0x711   : > { %17891 = vmatpush3.bf16.msra.mxu0 %v18689_v14  ;;  %15913 = vmatmul.mubr.bf16.vlgmr.msra.gmra.mrb[56].mxu1 %v18686_v60  ;;  %v18738_v14 = vld [vmem:[%s22991_s16 + $0xb88] sm:$0xff]   ;;  %v18741_v60 = vld [vmem:[%s22991_s16 + $0xbd0] sm:$0xff]  }
 0x712   : > { %17920 = vmatprep.subr.bf16.mxu0 %v18695_v62  ;;  %17899 = vmatpush3.bf16.msra.mxu1 %v18694_v7  ;;  %v18740_v62 = vld [vmem:[%s22991_s16 + $0xb10] sm:$0xff]   ;;  %v18743_v7 = vld [vmem:[%s22991_s16 + $0xb58] sm:$0xff]  }
 0x713   : > { %15994 = vmatprep.mubr.bf16.mxu1 %v18726_v40  ;;  %17900 = vmatprep.subr.bf16.mxu1 %v18697_v46  ;;  %v18742_v40 = vld [vmem:[%s22991_s16 + $0xb90] sm:$0xff]   ;;  %v18744_v46 = vld [vmem:[%s22991_s16 + $0xb18] sm:$0xff]  }
 0x714   : > { %15954 = vmatmul.mubr.bf16.vlgmr.msra.gmra.mrb[108].mxu0 %v18691_v1  ;;  %v18745_v1 = vld [vmem:[%s22991_s16 + $0xbd8] sm:$0xff]  }
 0x715   : > { %17921 = vmatpush3.bf16.msra.mxu0 %v18696_v38  ;;  %16035 = vmatprep.mubr.bf16.mxu0 %v18731_v6  ;;  %v18747_v38 = vld [vmem:[%s22991_s16 + $0xb60] sm:$0xff]   ;;  %v18746_v6 = vld [vmem:[%s22991_s16 + $0xb98] sm:$0xff]  }
 0x716   : > { %17922 = vmatprep.subr.bf16.mxu0 %v18699_v36  ;;  %17901 = vmatpush3.bf16.msra.mxu1 %v18698_v53  ;;  %v18749_v36 = vld [vmem:[%s22991_s16 + $0xbe0] sm:$0xff]  }
 0x717   : > { %17902 = vmatprep.subr.bf16.mxu1 %v18701_v20  ;;  %v18748_v53 = vld [vmem:[%s22991_s16 + $0xb20] sm:$0xff]   ;;  %v18751_v20 = vld [vmem:[%s22991_s16 + $0xb68] sm:$0xff]  }
 0x719   : > { %17923 = vmatpush3.bf16.msra.mxu0 %v18700_v43  ;;  %v18750_v43 = vld [vmem:[%s22991_s16 + $0xba0] sm:$0xff]  }
 0x71a   : > { %17924 = vmatprep.subr.bf16.mxu0 %v18703_v52  ;;  %17903 = vmatpush3.bf16.msra.mxu1 %v18702_v21  ;;  %v18753_v52 = vld [vmem:[%s22991_s16 + $0xbe8] sm:$0xff]  }
 0x71b   : > { %17904 = vmatprep.subr.bf16.mxu1 %v18705_v58  ;;  %v18752_v21 = vld [vmem:[%s22991_s16 + $0xb28] sm:$0xff]   ;;  %v18755_v58 = vld [vmem:[%s22991_s16 + $0xb70] sm:$0xff]  }
 0x71d   : > { %17925 = vmatpush3.bf16.msra.mxu0 %v18704_v16 }
 0x71e   : > { %17926 = vmatprep.subr.bf16.mxu0 %v18707_v17  ;;  %17905 = vmatpush3.bf16.msra.mxu1 %v18706_v19  ;;  %v18754_v17 = vld [vmem:[%s22991_s16 + $0xba8] sm:$0xff]  }
 0x71f   : > { %17906 = vmatprep.subr.bf16.mxu1 %v18709_v61  ;;  %v18757_v61 = vld [vmem:[%s22991_s16 + $0xbf0] sm:$0xff]  }
 0x721   : > { %17927 = vmatpush3.bf16.msra.mxu0 %v18708_v51 }
 0x722   : > { %17928 = vmatprep.subr.bf16.mxu0 %v18711_v3  ;;  %17907 = vmatpush3.bf16.msra.mxu1 %v18710_v13 }
 0x723   : > { %17908 = vmatprep.subr.bf16.mxu1 %v18713_v24  ;;  %v18756_v24 = vld [vmem:[%s22991_s16 + $0xb30] sm:$0xff]  }
 0x724   : > { %v17606_v39 = vpop.f32.mrb[32].mxu1 }
 0x725   : > { %17929 = vmatpush3.bf16.msra.mxu0 %v18712_v0  ;;  %v17607_v41 = vpop.f32.mrb[33].mxu1 }
 0x726   : > { %17930 = vmatprep.subr.bf16.mxu0 %v18715_v35  ;;  %v17608_v28 = vadd.f32 %v17607_v41, %v17606_v39  ;;  %v17609_v5 = vpop.f32.mrb[34].mxu1  ;;  %17909 = vmatpush3.bf16.msra.mxu1 %v18714_v4  ;;  %v18759_v4 = vld [vmem:[%s22991_s16 + $0xb78] sm:$0xff]  }
 0x727   : > { %v17628_v50 = vpop.f32.mrb[84].mxu0  ;;  %v17610_v15 = vpop.f32.mrb[35].mxu1  ;;  %17910 = vmatprep.subr.bf16.mxu1 %v18717_v37 }
 0x728   : > { %v17629_v18 = vpop.f32.mrb[85].mxu0  ;;  %v15423_v11 = vadd.f32 %v17608_v28, %v23577_v63  ;;  %v17611_v34 = vadd.f32 %v17610_v15, %v17609_v5  ;;  %v18734_v63 = vld [vmem:[%s22991_s16 + $0xb80] sm:$0xff]   ;;  %v18761_v5 = vld [vmem:[%s22991_s16 + $0xbf8] sm:$0xff]  }
 0x729   : > { %v17630_v32 = vadd.f32 %v17629_v18, %v17628_v50  ;;  %v17631_v10 = vpop.f32.mrb[86].mxu0  ;;  %17931 = vmatpush3.bf16.msra.mxu0 %v18716_v59  ;;  %v18760_v18 = vld [vmem:[%s22991_s16 + $0xb38] sm:$0xff]  }
 0x72a   : > { %v17632_v30 = vpop.f32.mrb[87].mxu0  ;;  %17932 = vmatprep.subr.bf16.mxu0 %v18719_v9  ;;  %v15426_v8 = vadd.f32 %v17611_v34, %v23581_v12  ;;  %17911 = vmatpush3.bf16.msra.mxu1 %v18718_v55  ;;  %v18739_v12 = vld [vmem:[%s22991_s16 + $0xb50] sm:$0xff]   ;;  %v18765_v34 = vld [vmem:[%s22991_s16 + $0xbb8] sm:$0xff]  }
 0x72b   : > { %v23619_v57 = vadd.f32 %v17630_v32, %v15423_v11  ;;  %v17633_v45 = vadd.f32 %v17632_v30, %v17631_v10  ;;  %17912 = vmatprep.subr.bf16.mxu1 %v18721_v31  ;;  %v18758_v9 = vld [vmem:[%s22991_s16 + $0xbb0] sm:$0xff]   ;;  %v18766_v31 = vld [vmem:[%s22991_s16 + $0xc40] sm:$0xff]  }
 0x72c   : > { %v18762_v32 = vld [vmem:[%s21145_s10 + $0xb0] ss:$200 sps:$4 sm:$0xff]   ;;  %v18770_v10 = vld [vmem:[%s22991_s16 + $0xc00] sm:$0xff]  }
 0x72d   : > { %v23623_v33 = vadd.f32 %v17633_v45, %v15426_v8  ;;  %17933 = vmatpush3.bf16.msra.mxu0 %v18720_v25  ;;  %v18787_v25 = vld [vmem:[%s21145_s10 + $0xc4] ss:$200 sps:$4 sm:$0xff]   ;;  %v18767_v30 = vld [vmem:[%s21145_s10 + $0xb8] ss:$200 sps:$4 sm:$0xff]   ;;  %v18774_v45 = vld [vmem:[%s22991_s16 + $0xc10] sm:$0xff]  }
 0x72e   : > { %17934 = vmatprep.subr.bf16.mxu0 %v18723_v47  ;;  %17913 = vmatpush3.bf16.msra.mxu1 %v18722_v27  ;;  %v18771_v47 = vld [vmem:[%s22991_s16 + $0xc48] sm:$0xff]   ;;  %v18775_v27 = vld [vmem:[%s22991_s16 + $0xc58] sm:$0xff]  }
 0x72f   : > { %17942 = vmatprep.subr.bf16.mxu1 %v18728_v44  ;;  %v18772_v8 = vld [vmem:[%s22991_s16 + $0xc08] sm:$0xff]   ;;  %v18776_v44 = vld [vmem:[%s22991_s16 + $0xc18] sm:$0xff]  }
 0x731   : > { %17935 = vmatpush3.bf16.msra.mxu0 %v18727_v22  ;;  %15995 = vmatmul.mubr.bf16.vlgmr.msra.gmra.mrb[60].mxu1 %v18724_v54  ;;  %v18778_v22 = vld [vmem:[%s22991_s16 + $0xc20] sm:$0xff]   ;;  %v18779_v54 = vld [vmem:[%s22991_s16 + $0xc68] sm:$0xff]  }
 0x732   : > { %17964 = vmatprep.subr.bf16.mxu0 %v18733_v26  ;;  %17943 = vmatpush3.bf16.msra.mxu1 %v18732_v42  ;;  %v18780_v26 = vld [vmem:[%s22991_s16 + $0xc28] sm:$0xff]   ;;  %v18781_v42 = vld [vmem:[%s22991_s16 + $0xc70] sm:$0xff]  }
 0x733   : > { %16076 = vmatprep.mubr.bf16.mxu1 %v18764_v48  ;;  %17944 = vmatprep.subr.bf16.mxu1 %v18735_v29 }
 0x734   : > { %16036 = vmatmul.mubr.bf16.vlgmr.msra.gmra.mrb[112].mxu0 %v18729_v2 }
 0x735   : > { %17965 = vmatpush3.bf16.msra.mxu0 %v18734_v63  ;;  %16117 = vmatprep.mubr.bf16.mxu0 %v18769_v56 }
 0x736   : > { %17966 = vmatprep.subr.bf16.mxu0 %v18737_v23  ;;  %17945 = vmatpush3.bf16.msra.mxu1 %v18736_v49  ;;  %v18782_v23 = vld [vmem:[%s22991_s16 + $0xc30] sm:$0xff]  }
 0x737   : > { %17946 = vmatprep.subr.bf16.mxu1 %v18739_v12 }
 0x739   : > { %17967 = vmatpush3.bf16.msra.mxu0 %v18738_v14  ;;  %v18783_v14 = vld [vmem:[%s22991_s16 + $0xc78] sm:$0xff]  }
 0x73a   : > { %17968 = vmatprep.subr.bf16.mxu0 %v18741_v60  ;;  %17947 = vmatpush3.bf16.msra.mxu1 %v18740_v62 }
 0x73b   : > { %17948 = vmatprep.subr.bf16.mxu1 %v18743_v7 }
 0x73d   : > { %17969 = vmatpush3.bf16.msra.mxu0 %v18742_v40 }
 0x73e   : > { %17970 = vmatprep.subr.bf16.mxu0 %v18745_v1  ;;  %17949 = vmatpush3.bf16.msra.mxu1 %v18744_v46 }
 0x73f   : > { %17950 = vmatprep.subr.bf16.mxu1 %v18747_v38 }
 0x741   : > { %17971 = vmatpush3.bf16.msra.mxu0 %v18746_v6 }
 0x742   : > { %17972 = vmatprep.subr.bf16.mxu0 %v18749_v36  ;;  %17951 = vmatpush3.bf16.msra.mxu1 %v18748_v53  ;;  %v18784_v36 = vld [vmem:[%s22991_s16 + $0xc38] sm:$0xff]  }
 0x743   : > { %17952 = vmatprep.subr.bf16.mxu1 %v18751_v20  ;;  %v18785_v20 = vld [vmem:[%s21145_s10 + $0xc0] ss:$200 sps:$4 sm:$0xff]  }
 0x744   : > { %v17650_v16 = vpop.f32.mrb[36].mxu1 }
 0x745   : > { %17973 = vmatpush3.bf16.msra.mxu0 %v18750_v43  ;;  %v17651_v19 = vpop.f32.mrb[37].mxu1 }
 0x746   : > { %17974 = vmatprep.subr.bf16.mxu0 %v18753_v52  ;;  %v17652_v51 = vadd.f32 %v17651_v19, %v17650_v16  ;;  %v17653_v3 = vpop.f32.mrb[38].mxu1  ;;  %17953 = vmatpush3.bf16.msra.mxu1 %v18752_v21 }
 0x747   : > { %v17672_v13 = vpop.f32.mrb[88].mxu0  ;;  %v17654_v0 = vpop.f32.mrb[39].mxu1  ;;  %17954 = vmatprep.subr.bf16.mxu1 %v18755_v58 }
 0x748   : > { %v17673_v35 = vpop.f32.mrb[89].mxu0  ;;  %v15505_v37 = vadd.f32 %v17652_v51, %v23619_v57  ;;  %v17655_v39 = vadd.f32 %v17654_v0, %v17653_v3  ;;  %v18773_v57 = vld [vmem:[%s22991_s16 + $0xc50] sm:$0xff]  }
 0x749   : > { %v17674_v59 = vadd.f32 %v17673_v35, %v17672_v13  ;;  %v17675_v41 = vpop.f32.mrb[90].mxu0  ;;  %17975 = vmatpush3.bf16.msra.mxu0 %v18754_v17 }
 0x74a   : > { %v17676_v28 = vpop.f32.mrb[91].mxu0  ;;  %17976 = vmatprep.subr.bf16.mxu0 %v18757_v61  ;;  %v15508_v50 = vadd.f32 %v17655_v39, %v23623_v33  ;;  %17955 = vmatpush3.bf16.msra.mxu1 %v18756_v24  ;;  %v18777_v33 = vld [vmem:[%s22991_s16 + $0xc60] sm:$0xff]   ;;  %s17202_s16 = sshll.u32 (%p19044_p10), %s18888_s19, 2 }
 0x74b   : > { %v15546_v55 = vadd.f32 %v17674_v59, %v15505_v37  ;;  %v17677_v15 = vadd.f32 %v17676_v28, %v17675_v41  ;;  %17956 = vmatprep.subr.bf16.mxu1 %v18759_v4  ;;  %s16326_s27 = sadd.s32 (%p19044_p10), %s18884_s18, %s17202_s16 }
 0x74c   : > { %s17203_s28 = sshll.u32 (%p19044_p10), %s16326_s27, 3 }
 0x74d   : > { %v15549_v11 = vadd.f32 %v17677_v15, %v15508_v50  ;;  %17977 = vmatpush3.bf16.msra.mxu0 %v18758_v9  ;;  %s16328_s30 = scalar_lea.vmem (%p19044_p10), %s24094_s29, %s17203_s28 }
 0x74e   : > { %17978 = vmatprep.subr.bf16.mxu0 %v18761_v5  ;;  %17957 = vmatpush3.bf16.msra.mxu1 %v18760_v18 }
 0x74f   : > { %17986 = vmatprep.subr.bf16.mxu1 %v18766_v31 }
 0x751   : > { %17979 = vmatpush3.bf16.msra.mxu0 %v18765_v34  ;;  %16077 = vmatmul.mubr.bf16.vlgmr.msra.gmra.mrb[64].mxu1 %v18762_v32 }
 0x752   : > { %17987 = vmatpush3.bf16.msra.mxu1 %v18770_v10  ;;  %16158 = vmatprep.mubr.bf16.mxu1 %v18787_v25 }
 0x753   : > { %17988 = vmatprep.subr.bf16.mxu1 %v18771_v47 }
 0x754   : > { %16118 = vmatmul.mubr.bf16.vlgmr.msra.gmra.mrb[116].mxu0 %v18767_v30 }
 0x756   : > { %17989 = vmatpush3.bf16.msra.mxu1 %v18772_v8 }
 0x757   : > { %17990 = vmatprep.subr.bf16.mxu1 %v18773_v57 }
 0x75a   : > { %17991 = vmatpush3.bf16.msra.mxu1 %v18774_v45 }
 0x75b   : > { %17992 = vmatprep.subr.bf16.mxu1 %v18775_v27 }
 0x75e   : > { %17993 = vmatpush3.bf16.msra.mxu1 %v18776_v44 }
 0x75f   : > { %17994 = vmatprep.subr.bf16.mxu1 %v18777_v33 }
 0x762   : > { %17995 = vmatpush3.bf16.msra.mxu1 %v18778_v22 }
 0x763   : > { %17996 = vmatprep.subr.bf16.mxu1 %v18779_v54 }
 0x764   : > { %v17694_v48 = vpop.f32.mrb[40].mxu1 }
 0x765   : > { %v17695_v2 = vpop.f32.mrb[41].mxu1 }
 0x766   : > { %v17696_v29 = vadd.f32 %v17695_v2, %v17694_v48  ;;  %v17697_v63 = vpop.f32.mrb[42].mxu1  ;;  %17997 = vmatpush3.bf16.msra.mxu1 %v18780_v26 }
 0x767   : > { %v17716_v56 = vpop.f32.mrb[92].mxu0  ;;  %v17698_v49 = vpop.f32.mrb[43].mxu1  ;;  %17998 = vmatprep.subr.bf16.mxu1 %v18781_v42 }
 0x768   : > { %v17717_v12 = vpop.f32.mrb[93].mxu0  ;;  %v15587_v60 = vadd.f32 %v17696_v29, %v15546_v55  ;;  %v17699_v62 = vadd.f32 %v17698_v49, %v17697_v63 }
 0x769   : > { %v17718_v7 = vadd.f32 %v17717_v12, %v17716_v56  ;;  %v17719_v40 = vpop.f32.mrb[94].mxu0  ;;  %v16167_v56 = vld [vmem:[%s24093_s26] sm:$0xff] }
 0x76a   : > { %v17720_v1 = vpop.f32.mrb[95].mxu0  ;;  %v15590_v46 = vadd.f32 %v17699_v62, %v15549_v11  ;;  %17999 = vmatpush3.bf16.msra.mxu1 %v18782_v23  ;;  %18034 = vmatprep.mubr.msk.f32.mxu0 %vm16175_vm6, %v16167_v56  ;;  %v16174_v56 = vld [vmem:[%s24093_s26 + $0x38] sm:$0xff] }
 0x76b   : > { %v15628_v38 = vadd.f32 %v17718_v7, %v15587_v60  ;;  %v17721_v6 = vadd.f32 %v17720_v1, %v17719_v40  ;;  %18000 = vmatprep.subr.bf16.mxu1 %v18783_v14 }
 0x76d   : > { %v15631_v53 = vadd.f32 %v17721_v6, %v15590_v46 }
 0x76e   : > { %18001 = vmatpush3.bf16.msra.mxu1 %v18784_v36 }
 0x771   : > { %16159 = vmatmul.mubr.bf16.vlgmr.msra.gmra.mrb[68].mxu1 %v18785_v20 }
 0x784   : > { %v17738_v43 = vpop.f32.mrb[44].mxu1 }
 0x785   : > { %v17739_v52 = vpop.f32.mrb[45].mxu1 }
 0x786   : > { %v17740_v21 = vadd.f32 %v17739_v52, %v17738_v43  ;;  %v17741_v58 = vpop.f32.mrb[46].mxu1 }
 0x787   : > { %v17760_v16 = vpop.f32.mrb[96].mxu0  ;;  %v17742_v17 = vpop.f32.mrb[47].mxu1 }
 0x788   : > { %v17761_v19 = vpop.f32.mrb[97].mxu0  ;;  %v15669_v61 = vadd.f32 %v17740_v21, %v15628_v38  ;;  %v17743_v51 = vadd.f32 %v17742_v17, %v17741_v58 }
 0x789   : > { %v17762_v3 = vadd.f32 %v17761_v19, %v17760_v16  ;;  %v17763_v13 = vpop.f32.mrb[98].mxu0 }
 0x78a   : > { %v17764_v24 = vpop.f32.mrb[99].mxu0  ;;  %v15672_v0 = vadd.f32 %v17743_v51, %v15631_v53 }
 0x78b   : > { %v15710_v35 = vadd.f32 %v17762_v3, %v15669_v61  ;;  %v17765_v4 = vadd.f32 %v17764_v24, %v17763_v13 }
 0x78d   : > { %v15713_v37 = vadd.f32 %v17765_v4, %v15672_v0 }
 0x7a4   : > { %v17782_v39 = vpop.f32.mrb[48].mxu1 }
 0x7a5   : > { %v17783_v59 = vpop.f32.mrb[49].mxu1 }
 0x7a6   : > { %v17784_v41 = vadd.f32 %v17783_v59, %v17782_v39  ;;  %v17785_v9 = vpop.f32.mrb[50].mxu1 }
 0x7a7   : > { %v17804_v28 = vpop.f32.mrb[100].mxu0  ;;  %v17786_v5 = vpop.f32.mrb[51].mxu1 }
 0x7a8   : > { %v17805_v50 = vpop.f32.mrb[101].mxu0  ;;  %v15751_v55 = vadd.f32 %v17784_v41, %v15710_v35  ;;  %v17787_v15 = vadd.f32 %v17786_v5, %v17785_v9 }
 0x7a9   : > { %v17806_v18 = vadd.f32 %v17805_v50, %v17804_v28  ;;  %v17807_v31 = vpop.f32.mrb[102].mxu0 }
 0x7aa   : > { %v17808_v11 = vpop.f32.mrb[103].mxu0  ;;  %v15754_v34 = vadd.f32 %v17787_v15, %v15713_v37 }
 0x7ab   : > { %v15792_v32 = vadd.f32 %v17806_v18, %v15751_v55  ;;  %v17809_v10 = vadd.f32 %v17808_v11, %v17807_v31 }
 0x7ad   : > { %v15795_v25 = vadd.f32 %v17809_v10, %v15754_v34 }
 0x7c4   : > { %v17826_v30 = vpop.f32.mrb[52].mxu1 }
 0x7c5   : > { %v17827_v47 = vpop.f32.mrb[53].mxu1 }
 0x7c6   : > { %v17828_v8 = vadd.f32 %v17827_v47, %v17826_v30  ;;  %v17829_v57 = vpop.f32.mrb[54].mxu1 }
 0x7c7   : > { %v17848_v45 = vpop.f32.mrb[104].mxu0  ;;  %v17830_v27 = vpop.f32.mrb[55].mxu1 }
 0x7c8   : > { %v17849_v44 = vpop.f32.mrb[105].mxu0  ;;  %v15833_v33 = vadd.f32 %v17828_v8, %v15792_v32  ;;  %v17831_v22 = vadd.f32 %v17830_v27, %v17829_v57 }
 0x7c9   : > { %v17850_v54 = vadd.f32 %v17849_v44, %v17848_v45  ;;  %v17851_v26 = vpop.f32.mrb[106].mxu0 }
 0x7ca   : > { %v17852_v42 = vpop.f32.mrb[107].mxu0  ;;  %v15836_v48 = vadd.f32 %v17831_v22, %v15795_v25 }
 0x7cb   : > { %v15874_v2 = vadd.f32 %v17850_v54, %v15833_v33  ;;  %v17853_v29 = vadd.f32 %v17852_v42, %v17851_v26  ;;  %v16168_v26 = vld [vmem:[%s24093_s26 + $0x8] sm:$0xff]  ;;  %v16169_v42 = vld [vmem:[%s24093_s26 + $0x10] sm:$0xff] }
 0x7cd   : > { %v15877_v63 = vadd.f32 %v17853_v29, %v15836_v48  ;;  %v16170_v48 = vld [vmem:[%s24093_s26 + $0x18] sm:$0xff]  ;;  %v16172_v29 = vld [vmem:[%s24093_s26 + $0x28] sm:$0xff] }
 0x7e4   : > { %v17870_v23 = vpop.f32.mrb[56].mxu1 }
 0x7e5   : > { %v17871_v49 = vpop.f32.mrb[57].mxu1 }
 0x7e6   : > { %v17872_v12 = vadd.f32 %v17871_v49, %v17870_v23  ;;  %v17873_v14 = vpop.f32.mrb[58].mxu1 }
 0x7e7   : > { %v17892_v60 = vpop.f32.mrb[108].mxu0  ;;  %v17874_v62 = vpop.f32.mrb[59].mxu1 }
 0x7e8   : > { %v17893_v7 = vpop.f32.mrb[109].mxu0  ;;  %v15915_v40 = vadd.f32 %v17872_v12, %v15874_v2  ;;  %v17875_v1 = vadd.f32 %v17874_v62, %v17873_v14  ;;  %v16171_v2 = vld [vmem:[%s24093_s26 + $0x20] sm:$0xff] }
 0x7e9   : > { %v17894_v46 = vadd.f32 %v17893_v7, %v17892_v60  ;;  %v17895_v38 = vpop.f32.mrb[110].mxu0 }
 0x7ea   : > { %v17896_v6 = vpop.f32.mrb[111].mxu0  ;;  %v15918_v36 = vadd.f32 %v17875_v1, %v15877_v63  ;;  %v16173_v63 = vld [vmem:[%s24093_s26 + $0x30] sm:$0xff] }
 0x7eb   : > { %v15956_v53 = vadd.f32 %v17894_v46, %v15915_v40  ;;  %v17897_v20 = vadd.f32 %v17896_v6, %v17895_v38  ;;  %v16358_v1 = vld [vmem:[%s23453_s24] sm:$0xff] (%p19044_p10)  ;;  %v16360_v46 = vld [vmem:[%s23453_s24 + $0x8] sm:$0xff] (%p19044_p10) }
 0x7ec   : > { %16359 = vst [vmem:[%s16328_s30] sm:$0xff] (%p19044_p10), %v16358_v1  ;;  %16361 = vst [vmem:[%s16328_s30 + $0x10] sm:$0xff] (%p19044_p10), %v16360_v46 }
 0x7ed   : > { %v15959_v43 = vadd.f32 %v17897_v20, %v15918_v36 }
 0x804   : > { %v17914_v52 = vpop.f32.mrb[60].mxu1 }
 0x805   : > { %v17915_v21 = vpop.f32.mrb[61].mxu1 }
 0x806   : > { %v17916_v58 = vadd.f32 %v17915_v21, %v17914_v52  ;;  %v17917_v16 = vpop.f32.mrb[62].mxu1 }
 0x807   : > { %v17936_v17 = vpop.f32.mrb[112].mxu0  ;;  %v17918_v19 = vpop.f32.mrb[63].mxu1 }
 0x808   : > { %v17937_v61 = vpop.f32.mrb[113].mxu0  ;;  %v15997_v51 = vadd.f32 %v17916_v58, %v15956_v53  ;;  %v17919_v3 = vadd.f32 %v17918_v19, %v17917_v16 }
 0x809   : > { %v17938_v13 = vadd.f32 %v17937_v61, %v17936_v17  ;;  %v17939_v24 = vpop.f32.mrb[114].mxu0 }
 0x80a   : > { %v17940_v0 = vpop.f32.mrb[115].mxu0  ;;  %v16000_v35 = vadd.f32 %v17919_v3, %v15959_v43 }
 0x80b   : > { %v16038_v4 = vadd.f32 %v17938_v13, %v15997_v51  ;;  %v17941_v37 = vadd.f32 %v17940_v0, %v17939_v24 }
 0x80d   : > { %v16041_v39 = vadd.f32 %v17941_v37, %v16000_v35 }
 0x824   : > { %v17958_v59 = vpop.f32.mrb[64].mxu1 }
 0x825   : > { %v17959_v41 = vpop.f32.mrb[65].mxu1 }
 0x826   : > { %v17960_v9 = vadd.f32 %v17959_v41, %v17958_v59  ;;  %v17961_v28 = vpop.f32.mrb[66].mxu1 }
 0x827   : > { %v17980_v5 = vpop.f32.mrb[116].mxu0  ;;  %v17962_v50 = vpop.f32.mrb[67].mxu1 }
 0x828   : > { %v17981_v55 = vpop.f32.mrb[117].mxu0  ;;  %v16079_v15 = vadd.f32 %v17960_v9, %v16038_v4  ;;  %v17963_v18 = vadd.f32 %v17962_v50, %v17961_v28 }
 0x829   : > { %v17982_v31 = vadd.f32 %v17981_v55, %v17980_v5  ;;  %v17983_v11 = vpop.f32.mrb[118].mxu0 }
 0x82a   : > { %v17984_v34 = vpop.f32.mrb[119].mxu0  ;;  %v16082_v32 = vadd.f32 %v17963_v18, %v16041_v39 }
 0x82b   : > { %v16120_v10 = vadd.f32 %v17982_v31, %v16079_v15  ;;  %v17985_v25 = vadd.f32 %v17984_v34, %v17983_v11 }
 0x82d   : > { %v16123_v30 = vadd.f32 %v17985_v25, %v16082_v32 }
 0x844   : > { %v18002_v47 = vpop.f32.mrb[68].mxu1 }
 0x845   : > { %v18003_v8 = vpop.f32.mrb[69].mxu1 }
 0x846   : > { %v18004_v57 = vadd.f32 %v18003_v8, %v18002_v47  ;;  %v18005_v45 = vpop.f32.mrb[70].mxu1 }
 0x847   : > { %v18006_v27 = vpop.f32.mrb[71].mxu1 }
 0x848   : > { %v16161_v44 = vadd.f32 %v18004_v57, %v16120_v10  ;;  %v18007_v33 = vadd.f32 %v18006_v27, %v18005_v45 }
 0x84a   : > { %v16164_v22 = vadd.f32 %v18007_v33, %v16123_v30 }
 0x84c   : > { %v18046_v54 = vpack.c.bf16 %v16164_v22, %v16161_v44 }
 0x84e   : > { %18047 = vmatprep.subr.bf16.mxu0 %v18046_v54 }
 0x84f   : > { %18049 = vmatpush3.bf16.msra.mxu0 %v18046_v54 }
 0x852   : > { %18035 = vmatmul.mubr.msk.f32.vlgmr.msra.gmra.mrb[120].mxu0 %vm16175_vm6, %v16168_v26 }
 0x853   : > { %18037 = vmatprep.mubr.msk.f32.mxu0 %vm16175_vm6, %v16169_v42 }
 0x856   : > { %18038 = vmatmul.mubr.msk.f32.gmra.mrb[122].mxu0 %vm16175_vm6, %v16170_v48 }
 0x857   : > { %18040 = vmatprep.mubr.msk.f32.mxu0 %vm16175_vm6, %v16171_v2 }
 0x85a   : > { %18041 = vmatmul.mubr.msk.f32.gmra.mrb[124].mxu0 %vm16175_vm6, %v16172_v29 }
 0x85b   : > { %18043 = vmatprep.mubr.msk.f32.mxu0 %vm16175_vm6, %v16173_v63 }
 0x85e   : > { %18044 = vmatmul.mubr.msk.f32.gmra.mrb[126].mxu0 %vm16175_vm6, %v16174_v56 }
 0x925   : > { %v18036_v23 = vpop.f32.mrb[120].mxu0 }
 0x926   : > { %16306 = vst [vmem:[%s23716_s23 + $0x8] sm:$0xff] %v18036_v23  ;;  %v16266_v49 = vpop.f32.mrb[121].mxu0 }
 0x927   : > { %16305 = vst [vmem:[%s23716_s23] sm:$0xff] %v16266_v49 }
 0x929   : > { %v18039_v12 = vpop.f32.mrb[122].mxu0 }
 0x92a   : > { %16308 = vst [vmem:[%s23716_s23 + $0x18] sm:$0xff] %v18039_v12  ;;  %v16276_v14 = vpop.f32.mrb[123].mxu0 }
 0x92b   : > { %16307 = vst [vmem:[%s23716_s23 + $0x10] sm:$0xff] %v16276_v14 }
 0x92d   : > { %v18042_v60 = vpop.f32.mrb[124].mxu0  ;;  %16324 = sbr.rel (!%p19044_p10) target bundleno = 2356 (0x934), region = 153 }
 0x92e   : > { %16310 = vst [vmem:[%s23716_s23 + $0x28] sm:$0xff] %v18042_v60  ;;  %v16286_v62 = vpop.f32.mrb[125].mxu0 }
 0x92f   : > { %16309 = vst [vmem:[%s23716_s23 + $0x20] sm:$0xff] %v16286_v62 }
 0x931   : > { %v18045_v7 = vpop.f32.mrb[126].mxu0 }
 0x932   : > { %16312 = vst [vmem:[%s23716_s23 + $0x38] sm:$0xff] %v18045_v7  ;;  %v16296_v40 = vpop.f32.mrb[127].mxu0 }
 0x933   : > { %16311 = vst [vmem:[%s23716_s23 + $0x30] sm:$0xff] %v16296_v40 }
 0x934 PF: > { %s17204_s10 = sshll.u32 %s18888_s19, 4  ;;  %s16375_s0 = sshll.u32 %s23716_s23, 4  ;;  %s23739_s0 = int_to_ptr.vmem [resolvable:$true] %s16375_s0 }
 0x935   : > { %s16372_s1 = sadd.s32 %s18884_s18, %s17204_s10  ;;  %s24095_s12 = sld [smem:[#allocation70_spill]] }
 0x936   : > { %s17205_s24 = sshll.u32 %s16372_s1, 7  ;;  %s18790_s6 = scalar_lea.vmem %s23739_s0, 1024 }
 0x937   : > { %p18791_p5 = scmp.ne.s32.totalorder %s23739_s0, %s18790_s6  ;;  %s18906_s29 = smov [#allocation5]  }
 0x938   : > { %s18794_s19 = sshll.u32 %s18906_s29, 4  ;;  %s18795_s19 = int_to_ptr.vmem [resolvable:$false] %s18794_s19 }
 0x939   : > { %p18792_p6 = pnand %p18791_p5, %p19044_p10  ;;  %s18796_s18 = scalar_lea.vmem %s18795_s19, 2048 }
 0x93a   : > { %p18797_p8 = scmp.lt.s32.totalorder %s23739_s0, %s18795_s19  ;;  %p18798_p9 = scmp.lt.s32.totalorder %s18796_s18, %s18790_s6 }
 0x93b   : > { %s23744_s28 = scalar_lea.hbm %s24095_s12, %s17205_s24  ;;  %p18793_p7 = pneg %p18792_p6 }
 0x93c   : > { %p18799_p11 = por %p18798_p9, %p18797_p8 }
 0x93e   : > { %p18800_p13 = pnand %p18799_p11, %p18793_p7 }
 0x940   : > { %18803 = shalt.err (!%p18800_p13)
}
 0x941   : > { %s18804_s1 = scalar_lea.hbm %s23744_s28, 1024  ;;  %s18808_s30 = scalar_lea.hbm %s24095_s12, 4096 }
 0x942   : > { %p18805_p0 = scmp.ne.s32.totalorder %s23744_s28, %s18804_s1  ;;  %p18809_p3 = scmp.lt.u32.totalorder %s23744_s28, %s24095_s12 }
 0x943   : > { %p18810_p4 = scmp.lt.u32.totalorder %s18808_s30, %s18804_s1  ;;  %p18812_p6 = scmp.lt.u32.totalorder %s18804_s1, %s23744_s28 }
 0x944   : > { %p18806_p1 = pnand %p18805_p0, %p19044_p10 }
 0x945   : > { %p18811_p5 = por %p18810_p4, %p18809_p3 }
 0x946   : > { %p18807_p2 = pneg %p18806_p1 }
 0x947   : > { %p18813_p7 = por %p18812_p6, %p18811_p5 }
 0x949   : > { %p18814_p8 = pnand %p18813_p7, %p18807_p2 }
 0x94b   : > { %18817 = shalt.err (!%p18814_p8)
}
 0x94c   : > { %s18907_s27 = smov 128   ;;  %s18908_s6 = smov 256  }
 0x94d   : > { %s18909_s29 = smov 8   ;;  %s24096_s19 = scalar_lea.sflag [#allocation6], %s23280_s3 }
 0x94e   : > { %18055 = dma.vmem_to_hbm [thread:$0]  (%p19044_p10), %s23739_s0, 1024, %s23744_s28, %s24096_s19, %s18907_s27, %s18908_s6, %s18909_s29  }
 0x94f PF: > { %p18061_p9 = scmp.ge.s32.totalorder %s18900_s22, 2  ;;  %s16397_s18 = sand.u32 1, %s18864_s13  }
 0x950   : > { %s16398_s1 = scalar_lea.sflag [#allocation6], %s16397_s18 }
 0x951   : > { %p18058_p11 = pnand %p18061_p9, %p19051_p12 }
 0x953   : > { %18859 = dma.done.wait (!%p18058_p11), %s16398_s1, 1024  }
 0x954   : > { %18861 = vsyncadd (!%p18058_p11), %s16398_s1, 4294966272  ;;  %s24_s22 = sadd.s32 1, %s18900_s22   ;;  %s24097_s0 = sld [smem:[#allocation8_spill]] }
 0x955   : > { %p21_p13 = scmp.ge.s32.totalorder %s24_s22, 6   ;;  %s24098_s25 = sld [smem:[#allocation9_spill]] }
 0x956   : > { %s24099_s13 = smov %s18868_s14  ;;  %s24100_s14 = smov %s18872_s15 }
 0x957   : > { %s24101_s15 = smov %s19049_s9  ;;  %s24102_s16 = smov %s18880_s17 }
 0x958   : > { %s24103_s17 = smov %s19038_s11  ;;  %s24104_s18 = smov %s18892_s20 }
 0x959   : > { %s24105_s19 = smov %s18896_s21  ;;  %23 = sbr.rel (!%p21_p13) target bundleno = 14 (0xe), region = 263 }
 0x95a   : > { %s24106_s20 = smov %s24097_s0 }
 0x95b   : > { %s24107_s21 = smov %s24098_s25 }
 0x960   :  { %16403 = vsyncpa [#allocation6], 1 }
 0x961   :  { %16405 = vsyncpa [#allocation6 + $0x1], 1 }

</bundles_post_ra>
